<compile_context>
chip_gen: v5e
topology: v5e:2x2
jax: 0.10.0
libtpu: 0.0.40
codegen_flags: <defaults>
</compile_context>

<pallas_src>
import functools

import jax
import jax.numpy as jnp
from jax import lax
from jax.experimental import pallas as pl
from jax.experimental.pallas import tpu as pltpu

_HIGHEST = jax.lax.Precision.HIGHEST
_BF16 = jnp.bfloat16

# Parameters as consumed by the fused kernel (post host-side folding).
# Order = positional order of the pallas_call operands.
_KPARAM_ORDER = (
    "qkv_w", "qkv_b",          # norm1 affine + q-scale folded in
    "proj_w", "proj_b",
    "ptq_w", "ptq_b",          # pt.q_proj ∘ mha.Wq, scale2 folded in
    "ptk_w", "ptk_b",          # pt.kv_proj[:, :C] ∘ mha.Wk
    "ptv_w", "ptv_b",          # pt.kv_proj[:, C:] ∘ mha.Wv
    "mha_wo", "mha_bo",
    "pt_n1_g", "pt_n1_b",
    "gate_w1a", "gate_w1b", "gate_b1",
    "gate_n_g", "gate_n_b",
    "gate_w2", "gate_b2",
    "ffn_w1", "ffn_b1",        # pt.norm2 affine folded into ffn_w1/ffn_b1
    "ffn_w2", "ffn_b2",
    "mlp_w1", "mlp_b1",        # norm2 affine folded into mlp_w1/mlp_b1
    "mlp_w2", "mlp_b2",
)

# Matrix weights ship as bf16 (native MXU dtype, half the DMA/VMEM bytes);
# biases / LN params / the VPU-only gate_w2 stay f32.
_BF16_KPARAMS = frozenset({
    "qkv_w", "proj_w", "ptq_w", "ptk_w", "ptv_w", "mha_wo",
    "gate_w1a", "gate_w1b", "ffn_w1", "ffn_w2", "mlp_w1", "mlp_w2",
})


# ----------------------------------------------------------------------------
# In-kernel helpers (VPU/MXU/EUP ops inside the fused kernel)
# ----------------------------------------------------------------------------
def _mm(a, b):
    """a @ b with bf16 MXU operands and f32 accumulation (no-op cast if bf16)."""
    return lax.dot_general(a.astype(_BF16), b.astype(_BF16),
                           dimension_numbers=(((1,), (0,)), ((), ())),
                           preferred_element_type=jnp.float32)


def _mm_t(a, b):
    """a @ b.T (contract last dims) without materializing a transpose."""
    return lax.dot_general(a.astype(_BF16), b.astype(_BF16),
                           dimension_numbers=(((1,), (1,)), ((), ())),
                           preferred_element_type=jnp.float32)


def _normalize(x):
    """LayerNorm without affine (affine is pre-folded into the next linear)."""
    mu = jnp.mean(x, axis=-1, keepdims=True)
    xc = x - mu
    var = jnp.mean(xc * xc, axis=-1, keepdims=True)
    return xc * lax.rsqrt(var + 1e-5)


def _layernorm(x, g, b):
    return _normalize(x) * g + b


def _softmax(s):
    m = jnp.max(s, axis=-1, keepdims=True)
    e = jnp.exp(s - m)
    return e * pl.reciprocal(jnp.sum(e, axis=-1, keepdims=True), approx=True)


def _erf(x):
    # Abramowitz & Stegun 7.1.26 polynomial (|err| < 1.5e-7): exact-GELU math
    # without relying on an erf lowering inside Mosaic.
    a1, a2, a3, a4, a5 = 0.254829592, -0.284496736, 1.421413741, -1.453152027, 1.061405429
    pp = 0.3275911
    sgn = jnp.where(x >= 0.0, 1.0, -1.0)
    ax = jnp.abs(x)
    t = 1.0 / (1.0 + pp * ax)
    poly = ((((a5 * t + a4) * t + a3) * t + a2) * t + a1) * t
    return sgn * (1.0 - poly * jnp.exp(-ax * ax))


def _gelu(x):
    # torch nn.GELU default = exact (erf) gelu.
    return 0.5 * x * (1.0 + _erf(x * 0.7071067811865476))


# ----------------------------------------------------------------------------
# The single fused Block kernel: one grid step == one image (L tokens)
# ----------------------------------------------------------------------------
def _block_kernel(x_ref, prompt_ref, *refs, num_heads):
    *param_refs, o_ref, hbuf = refs        # hbuf: (L, C) f32 per-head slab
    p = dict(zip(_KPARAM_ORDER, param_refs))

    x = x_ref[...]                         # (L, C) f32 tokens of one image
    prompt = prompt_ref[...]               # (P, C) f32
    L, C = x.shape
    P = prompt.shape[0]
    nh, dh = num_heads, C // num_heads
    nh2, dh2 = num_heads // 2, C // (num_heads // 2)

    # ---- norm1 (affine folded into qkv) + multi-head self attention ----
    shortcut = x
    xn = _normalize(x)
    qkv = _mm(xn, p["qkv_w"][...]) + p["qkv_b"][...]     # (L, 3C); q pre-scaled
    # bf16 casts hoisted out of the head loop
    qb = qkv[:, 0:C].astype(_BF16)
    kb = qkv[:, C:2 * C].astype(_BF16)
    vb = qkv[:, 2 * C:3 * C].astype(_BF16)
    for h in range(nh):                                  # static unroll
        sl = slice(h * dh, (h + 1) * dh)
        s = _mm_t(qb[:, sl], kb[:, sl])                  # (L, L)
        hbuf[:, sl] = _mm(_softmax(s), vb[:, sl])        # lane-slice write
    # one (L,C)@(C,C) output projection instead of nh tiny matmuls
    x = shortcut + _mm(hbuf[...], p["proj_w"][...]) + p["proj_b"][...]

    # ---- PromptTuningModule (q_proj/kv_proj pre-folded with MHA in-proj) ----
    identity = x
    qm = _mm(x, p["ptq_w"][...]) + p["ptq_b"][...]       # (L, C); scale folded
    km = _mm(prompt, p["ptk_w"][...]) + p["ptk_b"][...]  # (P, C)
    vm = _mm(prompt, p["ptv_w"][...]) + p["ptv_b"][...]  # (P, C) f32
    qmb = qm.astype(_BF16)
    kmb = km.astype(_BF16)
    for h in range(nh2):
        sl = slice(h * dh2, (h + 1) * dh2)
        s = _mm_t(qmb[:, sl], kmb[:, sl])                # (L, P)
        pr = _softmax(s)
        # softmax @ V on the VPU: only P prompt rows, an MXU pass is ~97% pad
        oh = pr[:, 0:1] * vm[0:1, sl]
        for j in range(1, P):
            oh = oh + pr[:, j:j + 1] * vm[j:j + 1, sl]
        hbuf[:, sl] = oh
    am = _mm(hbuf[...], p["mha_wo"][...]) + p["mha_bo"][...]
    am = _layernorm(am, p["pt_n1_g"][...], p["pt_n1_b"][...])   # pt.norm1

    # gate: Linear(2C,C) on cat([identity, am]) -> LN -> GELU -> Linear(C,1) -> sigmoid
    gh = (_mm(identity, p["gate_w1a"][...]) + _mm(am, p["gate_w1b"][...])
          + p["gate_b1"][...])
    gh = _gelu(_layernorm(gh, p["gate_n_g"][...], p["gate_n_b"][...]))
    glogit = jnp.sum(gh * p["gate_w2"][...], axis=-1, keepdims=True) + p["gate_b2"][...]
    gate = 1.0 / (1.0 + jnp.exp(-glogit))                # (L, 1)
    x = identity + gate * am

    # residual FFN: pt.norm2 (affine folded into ffn_w1) -> 2C -> GELU -> C
    f = _gelu(_mm(_normalize(x), p["ffn_w1"][...]) + p["ffn_b1"][...])
    x = x + _mm(f, p["ffn_w2"][...]) + p["ffn_b2"][...]

    # ---- MLPBlock: norm2 (affine folded into mlp_w1) -> mlp -> GELU -> C ----
    m = _gelu(_mm(_normalize(x), p["mlp_w1"][...]) + p["mlp_b1"][...])
    x = x + _mm(m, p["mlp_w2"][...]) + p["mlp_b2"][...]

    o_ref[...] = x.astype(o_ref.dtype)


def block_forward_pallas(x, prompt, kparams, num_heads):
    B, H, W, C = x.shape
    L = H * W
    x2 = x.reshape(B, L, C)
    arrs = [kparams[name] for name in _KPARAM_ORDER]

    in_specs = [
        pl.BlockSpec((None, L, C), lambda b: (b, 0, 0)),            # per-image tokens
        pl.BlockSpec(prompt.shape, lambda b: (0, 0)),               # shared prompts
    ] + [pl.BlockSpec(a.shape, lambda b: (0, 0)) for a in arrs]     # resident weights

    out = pl.pallas_call(
        functools.partial(_block_kernel, num_heads=num_heads),
        out_shape=jax.ShapeDtypeStruct((B, L, C), jnp.float32),
        grid=(B,),
        in_specs=in_specs,
        out_specs=pl.BlockSpec((None, L, C), lambda b: (b, 0, 0)),
        scratch_shapes=[pltpu.VMEM((L, C), jnp.float32)],           # head-concat slab
        compiler_params=pltpu.CompilerParams(
            dimension_semantics=("parallel",),    # B=2 -> one image per v7x TC
            vmem_limit_bytes=32 * 1024 * 1024),
    )(x2, prompt, *arrs)
    return out.reshape(B, H, W, C)


# ----------------------------------------------------------------------------
# Host-side parameter preparation (run ONCE, outside the jitted forward):
# exact weight foldings + bf16 casting of matrix weights.
# ----------------------------------------------------------------------------
def prepare_kernel_params(p, num_heads):
    C = p["proj_w"].shape[0]
    dh = C // num_heads
    dh2 = C // (num_heads // 2)
    f32 = jnp.float32
    dot = lambda a, b: jnp.dot(a.astype(f32), b.astype(f32), precision=_HIGHEST)

    k = {}
    # norm1 affine + attention q-scale folded into qkv
    qkv_w = p["qkv_w"] * p["n1_g"].reshape(-1, 1)
    qkv_b = dot(p["n1_b"], p["qkv_w"]) + p["qkv_b"]
    qscale = jnp.concatenate([jnp.full((1, C), dh ** -0.5, f32),
                              jnp.ones((1, 2 * C), f32)], axis=-1)
    k["qkv_w"], k["qkv_b"] = qkv_w * qscale, qkv_b * qscale
    k["proj_w"], k["proj_b"] = p["proj_w"], p["proj_b"]

    # PromptTuning: fold back-to-back linears (q_proj∘Wq incl. scale2,
    # kv_proj[:, :C]∘Wk, kv_proj[:, C:]∘Wv)
    scale2 = dh2 ** -0.5
    k["ptq_w"] = dot(p["pt_q_w"], p["mha_wq"]) * scale2
    k["ptq_b"] = (dot(p["pt_q_b"], p["mha_wq"]) + p["mha_bq"]) * scale2
    k["ptk_w"] = dot(p["pt_kv_w"][:, :C], p["mha_wk"])
    k["ptk_b"] = dot(p["pt_kv_b"][:, :C], p["mha_wk"]) + p["mha_bk"]
    k["ptv_w"] = dot(p["pt_kv_w"][:, C:], p["mha_wv"])
    k["ptv_b"] = dot(p["pt_kv_b"][:, C:], p["mha_wv"]) + p["mha_bv"]
    k["mha_wo"], k["mha_bo"] = p["mha_wo"], p["mha_bo"]
    k["pt_n1_g"], k["pt_n1_b"] = p["pt_n1_g"], p["pt_n1_b"]

    # gate: split the (2C,C) first linear so the kernel never row-slices it
    k["gate_w1a"], k["gate_w1b"] = p["gate_w1"][:C, :], p["gate_w1"][C:, :]
    k["gate_b1"] = p["gate_b1"]
    k["gate_n_g"], k["gate_n_b"] = p["gate_n_g"], p["gate_n_b"]
    k["gate_w2"], k["gate_b2"] = p["gate_w2"], p["gate_b2"]

    # pt.norm2 affine folded into ffn_w1; norm2 affine folded into mlp_w1
    k["ffn_w1"] = p["ffn_w1"] * p["pt_n2_g"].reshape(-1, 1)
    k["ffn_b1"] = dot(p["pt_n2_b"], p["ffn_w1"]) + p["ffn_b1"]
    k["ffn_w2"], k["ffn_b2"] = p["ffn_w2"], p["ffn_b2"]
    k["mlp_w1"] = p["mlp_w1"] * p["n2_g"].reshape(-1, 1)
    k["mlp_b1"] = dot(p["n2_b"], p["mlp_w1"]) + p["mlp_b1"]
    k["mlp_w2"], k["mlp_b2"] = p["mlp_w2"], p["mlp_b2"]

    return {name: (v.astype(_BF16) if name in _BF16_KPARAMS else v.astype(f32))
            for name, v in k.items()}


# ----------------------------------------------------------------------------
# Pure-JAX f32 reference (mirrors the PyTorch module math) for correctness
# ----------------------------------------------------------------------------
def _ref_ln(x, g, b):
    mu = jnp.mean(x, axis=-1, keepdims=True)
    xc = x - mu
    var = jnp.mean(xc * xc, axis=-1, keepdims=True)
    return xc * jax.lax.rsqrt(var + 1e-5) * g + b


def _ref_attn(q, k, v, scale):
    s = jnp.einsum("bqd,bkd->bqk", q * scale, k, precision=_HIGHEST)
    pr = jax.nn.softmax(s, axis=-1)
    return jnp.einsum("bqk,bkd->bqd", pr, v, precision=_HIGHEST)


def block_forward_ref(x, prompt, p, num_heads):
    B, H, W, C = x.shape
    L = H * W
    nh, dh = num_heads, C // num_heads
    lin = lambda a, w, b: jnp.dot(a, w, precision=_HIGHEST) + b
    gelu = lambda a: jax.nn.gelu(a, approximate=False)

    x2 = x.reshape(B * L, C)
    shortcut = x2
    xn = _ref_ln(x2, p["n1_g"], p["n1_b"])
    qkv = lin(xn, p["qkv_w"], p["qkv_b"]).reshape(B, L, 3, nh, dh)
    qkv = qkv.transpose(2, 0, 3, 1, 4).reshape(3, B * nh, L, dh)
    ao = _ref_attn(qkv[0], qkv[1], qkv[2], dh ** -0.5)
    ao = ao.reshape(B, nh, L, dh).transpose(0, 2, 1, 3).reshape(B * L, C)
    ao = lin(ao, p["proj_w"], p["proj_b"])
    x2 = shortcut + ao

    identity = x2
    q_pt = lin(x2, p["pt_q_w"], p["pt_q_b"])
    kv_pt = lin(prompt, p["pt_kv_w"], p["pt_kv_b"])
    P_ = prompt.shape[0]
    k_pt, v_pt = kv_pt[:, :C], kv_pt[:, C:]
    nh2, dh2 = num_heads // 2, C // (num_heads // 2)
    qm = lin(q_pt, p["mha_wq"], p["mha_bq"])
    km = lin(k_pt, p["mha_wk"], p["mha_bk"])
    vm = lin(v_pt, p["mha_wv"], p["mha_bv"])
    qm = qm.reshape(B, L, nh2, dh2).transpose(0, 2, 1, 3).reshape(B * nh2, L, dh2)
    km = jnp.broadcast_to(km.reshape(1, P_, nh2, dh2), (B, P_, nh2, dh2))
    km = km.transpose(0, 2, 1, 3).reshape(B * nh2, P_, dh2)
    vm = jnp.broadcast_to(vm.reshape(1, P_, nh2, dh2), (B, P_, nh2, dh2))
    vm = vm.transpose(0, 2, 1, 3).reshape(B * nh2, P_, dh2)
    am = _ref_attn(qm, km, vm, dh2 ** -0.5)
    am = am.reshape(B, nh2, L, dh2).transpose(0, 2, 1, 3).reshape(B * L, C)
    am = lin(am, p["mha_wo"], p["mha_bo"])
    am = _ref_ln(am, p["pt_n1_g"], p["pt_n1_b"])

    ctx = jnp.concatenate([identity, am], axis=-1)
    g = lin(ctx, p["gate_w1"], p["gate_b1"])
    g = gelu(_ref_ln(g, p["gate_n_g"], p["gate_n_b"]))
    glogit = jnp.sum(g * p["gate_w2"], axis=-1, keepdims=True) + p["gate_b2"]
    gate = jax.nn.sigmoid(glogit)
    x2 = identity + gate * am

    f = _ref_ln(x2, p["pt_n2_g"], p["pt_n2_b"])
    f = gelu(lin(f, p["ffn_w1"], p["ffn_b1"]))
    f = lin(f, p["ffn_w2"], p["ffn_b2"])
    x2 = x2 + f

    m = _ref_ln(x2, p["n2_g"], p["n2_b"])
    m = gelu(lin(m, p["mlp_w1"], p["mlp_b1"]))
    m = lin(m, p["mlp_w2"], p["mlp_b2"])
    x2 = x2 + m
    return x2.reshape(B, H, W, C)


# ----------------------------------------------------------------------------
# Deterministic parameter initialization (shapes from Block.__init__)
# ----------------------------------------------------------------------------
def init_params(key, C, mlp_ratio=4.0):
    mlp_dim = int(C * mlp_ratio)
    keys = iter(jax.random.split(key, 64))

    def w(shape, scale=0.05):
        return scale * jax.random.normal(next(keys), shape, jnp.float32)

    def b(n):
        return 0.01 * jax.random.normal(next(keys), (1, n), jnp.float32)

    def ln_p(n):
        g = 1.0 + 0.05 * jax.random.normal(next(keys), (1, n), jnp.float32)
        be = 0.01 * jax.random.normal(next(keys), (1, n), jnp.float32)
        return g, be

    p = {}
    p["n1_g"], p["n1_b"] = ln_p(C)
    p["qkv_w"], p["qkv_b"] = w((C, 3 * C)), b(3 * C)
    p["proj_w"], p["proj_b"] = w((C, C)), b(C)
    p["n2_g"], p["n2_b"] = ln_p(C)
    p["mlp_w1"], p["mlp_b1"] = w((C, mlp_dim)), b(mlp_dim)
    p["mlp_w2"], p["mlp_b2"] = w((mlp_dim, C)), b(C)
    # PromptTuningModule
    p["pt_q_w"], p["pt_q_b"] = w((C, C)), b(C)
    p["pt_kv_w"], p["pt_kv_b"] = w((C, 2 * C)), b(2 * C)
    p["mha_wq"], p["mha_bq"] = w((C, C)), b(C)
    p["mha_wk"], p["mha_bk"] = w((C, C)), b(C)
    p["mha_wv"], p["mha_bv"] = w((C, C)), b(C)
    p["mha_wo"], p["mha_bo"] = w((C, C)), b(C)
    p["pt_n1_g"], p["pt_n1_b"] = ln_p(C)
    p["pt_n2_g"], p["pt_n2_b"] = ln_p(C)
    p["gate_w1"], p["gate_b1"] = w((2 * C, C)), b(C)
    p["gate_n_g"], p["gate_n_b"] = ln_p(C)
    p["gate_w2"], p["gate_b2"] = w((1, C)), b(1)   # gate_w2 stored transposed (1, C)
    p["ffn_w1"], p["ffn_b1"] = w((C, 2 * C)), b(2 * C)
    p["ffn_w2"], p["ffn_b2"] = w((2 * C, C)), b(C)
    return p


# ----------------------------------------------------------------------------
# Main
# ----------------------------------------------------------------------------
if __name__ == "__main__":
    B, H, W, C = 2, 8, 8, 32
    NUM_HEADS = 4
    NUM_PROMPTS = 4

    key = jax.random.PRNGKey(0)
    kx, kp, kw = jax.random.split(key, 3)
    x = jax.random.normal(kx, (B, H, W, C), jnp.float32)
    prompt = jax.random.normal(kp, (NUM_PROMPTS, C), jnp.float32)
    params = init_params(kw, C, mlp_ratio=4.0)

    # Weight folding + bf16 casting once, OUTSIDE the jitted forward.
    kparams = prepare_kernel_params(params, NUM_HEADS)

    fwd_pallas = jax.jit(functools.partial(block_forward_pallas, num_heads=NUM_HEADS))
    fwd_ref = jax.jit(functools.partial(block_forward_ref, num_heads=NUM_HEADS))

    out = jax.block_until_ready(fwd_pallas(x, prompt, kparams))
    ref = jax.block_until_ready(fwd_ref(x, prompt, params))

    assert out.shape == (B, H, W, C)
    max_err = float(jnp.max(jnp.abs(out - ref)))
    # bf16 MXU operands vs. f32-HIGHEST reference -> tolerance loosened to 2e-2.
    assert jnp.allclose(out, ref, atol=2e-2, rtol=2e-2), max_err
    print("KERNEL_OK")
</pallas_src>

<mosaic_0001>
module attributes {stable_mosaic.version = 11 : i64} {
  func.func @_block_kernel(%arg0: i32, %arg1: memref<1x64x32xf32, #tpu.memory_space<vmem>>, %arg2: memref<4x32xf32, #tpu.memory_space<vmem>>, %arg3: memref<32x96xbf16, #tpu.memory_space<vmem>>, %arg4: memref<1x96xf32, #tpu.memory_space<vmem>>, %arg5: memref<32x32xbf16, #tpu.memory_space<vmem>>, %arg6: memref<1x32xf32, #tpu.memory_space<vmem>>, %arg7: memref<32x32xbf16, #tpu.memory_space<vmem>>, %arg8: memref<1x32xf32, #tpu.memory_space<vmem>>, %arg9: memref<32x32xbf16, #tpu.memory_space<vmem>>, %arg10: memref<1x32xf32, #tpu.memory_space<vmem>>, %arg11: memref<32x32xbf16, #tpu.memory_space<vmem>>, %arg12: memref<1x32xf32, #tpu.memory_space<vmem>>, %arg13: memref<32x32xbf16, #tpu.memory_space<vmem>>, %arg14: memref<1x32xf32, #tpu.memory_space<vmem>>, %arg15: memref<1x32xf32, #tpu.memory_space<vmem>>, %arg16: memref<1x32xf32, #tpu.memory_space<vmem>>, %arg17: memref<32x32xbf16, #tpu.memory_space<vmem>>, %arg18: memref<32x32xbf16, #tpu.memory_space<vmem>>, %arg19: memref<1x32xf32, #tpu.memory_space<vmem>>, %arg20: memref<1x32xf32, #tpu.memory_space<vmem>>, %arg21: memref<1x32xf32, #tpu.memory_space<vmem>>, %arg22: memref<1x32xf32, #tpu.memory_space<vmem>>, %arg23: memref<1x1xf32, #tpu.memory_space<vmem>>, %arg24: memref<32x64xbf16, #tpu.memory_space<vmem>>, %arg25: memref<1x64xf32, #tpu.memory_space<vmem>>, %arg26: memref<64x32xbf16, #tpu.memory_space<vmem>>, %arg27: memref<1x32xf32, #tpu.memory_space<vmem>>, %arg28: memref<32x128xbf16, #tpu.memory_space<vmem>>, %arg29: memref<1x128xf32, #tpu.memory_space<vmem>>, %arg30: memref<128x32xbf16, #tpu.memory_space<vmem>>, %arg31: memref<1x32xf32, #tpu.memory_space<vmem>>, %arg32: memref<1x64x32xf32, #tpu.memory_space<vmem>>, %arg33: memref<64x32xf32, #tpu.memory_space<vmem>>) attributes {dimension_semantics = [#tpu.dimension_semantics<parallel>], iteration_bounds = array<i64: 2>, scalar_prefetch = 0 : i64, scratch_operands = 1 : i64, tpu.core_type = #tpu.core_type<tc>, window_params = [{transform_indices = @transform_0, window_bounds = array<i64: 1, 64, 32>}, {pipeline_mode = #tpu.pipeline_mode<synchronous>, transform_indices = @transform_1, window_bounds = array<i64: 4, 32>}, {pipeline_mode = #tpu.pipeline_mode<synchronous>, transform_indices = @transform_2, window_bounds = array<i64: 32, 96>}, {pipeline_mode = #tpu.pipeline_mode<synchronous>, transform_indices = @transform_3, window_bounds = array<i64: 1, 96>}, {pipeline_mode = #tpu.pipeline_mode<synchronous>, transform_indices = @transform_4, window_bounds = array<i64: 32, 32>}, {pipeline_mode = #tpu.pipeline_mode<synchronous>, transform_indices = @transform_5, window_bounds = array<i64: 1, 32>}, {pipeline_mode = #tpu.pipeline_mode<synchronous>, transform_indices = @transform_6, window_bounds = array<i64: 32, 32>}, {pipeline_mode = #tpu.pipeline_mode<synchronous>, transform_indices = @transform_7, window_bounds = array<i64: 1, 32>}, {pipeline_mode = #tpu.pipeline_mode<synchronous>, transform_indices = @transform_8, window_bounds = array<i64: 32, 32>}, {pipeline_mode = #tpu.pipeline_mode<synchronous>, transform_indices = @transform_9, window_bounds = array<i64: 1, 32>}, {pipeline_mode = #tpu.pipeline_mode<synchronous>, transform_indices = @transform_10, window_bounds = array<i64: 32, 32>}, {pipeline_mode = #tpu.pipeline_mode<synchronous>, transform_indices = @transform_11, window_bounds = array<i64: 1, 32>}, {pipeline_mode = #tpu.pipeline_mode<synchronous>, transform_indices = @transform_12, window_bounds = array<i64: 32, 32>}, {pipeline_mode = #tpu.pipeline_mode<synchronous>, transform_indices = @transform_13, window_bounds = array<i64: 1, 32>}, {pipeline_mode = #tpu.pipeline_mode<synchronous>, transform_indices = @transform_14, window_bounds = array<i64: 1, 32>}, {pipeline_mode = #tpu.pipeline_mode<synchronous>, transform_indices = @transform_15, window_bounds = array<i64: 1, 32>}, {pipeline_mode = #tpu.pipeline_mode<synchronous>, transform_indices = @transform_16, window_bounds = array<i64: 32, 32>}, {pipeline_mode = #tpu.pipeline_mode<synchronous>, transform_indices = @transform_17, window_bounds = array<i64: 32, 32>}, {pipeline_mode = #tpu.pipeline_mode<synchronous>, transform_indices = @transform_18, window_bounds = array<i64: 1, 32>}, {pipeline_mode = #tpu.pipeline_mode<synchronous>, transform_indices = @transform_19, window_bounds = array<i64: 1, 32>}, {pipeline_mode = #tpu.pipeline_mode<synchronous>, transform_indices = @transform_20, window_bounds = array<i64: 1, 32>}, {pipeline_mode = #tpu.pipeline_mode<synchronous>, transform_indices = @transform_21, window_bounds = array<i64: 1, 32>}, {pipeline_mode = #tpu.pipeline_mode<synchronous>, transform_indices = @transform_22, window_bounds = array<i64: 1, 1>}, {pipeline_mode = #tpu.pipeline_mode<synchronous>, transform_indices = @transform_23, window_bounds = array<i64: 32, 64>}, {pipeline_mode = #tpu.pipeline_mode<synchronous>, transform_indices = @transform_24, window_bounds = array<i64: 1, 64>}, {pipeline_mode = #tpu.pipeline_mode<synchronous>, transform_indices = @transform_25, window_bounds = array<i64: 64, 32>}, {pipeline_mode = #tpu.pipeline_mode<synchronous>, transform_indices = @transform_26, window_bounds = array<i64: 1, 32>}, {pipeline_mode = #tpu.pipeline_mode<synchronous>, transform_indices = @transform_27, window_bounds = array<i64: 32, 128>}, {pipeline_mode = #tpu.pipeline_mode<synchronous>, transform_indices = @transform_28, window_bounds = array<i64: 1, 128>}, {pipeline_mode = #tpu.pipeline_mode<synchronous>, transform_indices = @transform_29, window_bounds = array<i64: 128, 32>}, {pipeline_mode = #tpu.pipeline_mode<synchronous>, transform_indices = @transform_30, window_bounds = array<i64: 1, 32>}, {transform_indices = @transform_31, window_bounds = array<i64: 1, 64, 32>}]} {
    %c0 = arith.constant 0 : index
    %c0_0 = arith.constant 0 : index
    %c0_1 = arith.constant 0 : index
    %0 = vector.load %arg1[%c0, %c0_0, %c0_1] : memref<1x64x32xf32, #tpu.memory_space<vmem>>, vector<1x64x32xf32>
    %1 = vector.shape_cast %0 : vector<1x64x32xf32> to vector<64x32xf32>
    %c0_2 = arith.constant 0 : index
    %c0_3 = arith.constant 0 : index
    %2 = vector.load %arg2[%c0_2, %c0_3] : memref<4x32xf32, #tpu.memory_space<vmem>>, vector<4x32xf32>
    %cst = arith.constant dense<0.000000e+00> : vector<64xf32>
    %3 = vector.multi_reduction <add>, %1, %cst [1] : vector<64x32xf32> to vector<64xf32>
    %4 = vector.shape_cast %3 : vector<64xf32> to vector<64x1xf32>
    %cst_4 = arith.constant 3.200000e+01 : f32
    %5 = vector.broadcast %cst_4 : f32 to vector<64x1xf32>
    %6 = arith.divf %4, %5 : vector<64x1xf32>
    %7 = vector.broadcast %6 : vector<64x1xf32> to vector<64x32xf32>
    %8 = arith.subf %1, %7 : vector<64x32xf32>
    %9 = arith.mulf %8, %8 : vector<64x32xf32>
    %cst_5 = arith.constant dense<0.000000e+00> : vector<64xf32>
    %10 = vector.multi_reduction <add>, %9, %cst_5 [1] : vector<64x32xf32> to vector<64xf32>
    %11 = vector.shape_cast %10 : vector<64xf32> to vector<64x1xf32>
    %cst_6 = arith.constant 3.200000e+01 : f32
    %12 = vector.broadcast %cst_6 : f32 to vector<64x1xf32>
    %13 = arith.divf %11, %12 : vector<64x1xf32>
    %cst_7 = arith.constant 9.99999974E-6 : f32
    %14 = vector.broadcast %cst_7 : f32 to vector<64x1xf32>
    %15 = arith.addf %13, %14 : vector<64x1xf32>
    %16 = math.rsqrt %15 : vector<64x1xf32>
    %17 = vector.broadcast %16 : vector<64x1xf32> to vector<64x32xf32>
    %18 = arith.mulf %8, %17 : vector<64x32xf32>
    %c0_8 = arith.constant 0 : index
    %c0_9 = arith.constant 0 : index
    %19 = vector.load %arg3[%c0_8, %c0_9] : memref<32x96xbf16, #tpu.memory_space<vmem>>, vector<32x96xbf16>
    %20 = arith.truncf %18 : vector<64x32xf32> to vector<64x32xbf16>
    %cst_10 = arith.constant dense<0.000000e+00> : vector<64x96xf32>
    %21 = tpu.matmul %20, %19, %cst_10 {dimension_numbers = #tpu.dot_dimension_numbers<[1], [0], [0], [1], [0, 0, 1, 1], [], []>} : vector<64x32xbf16>, vector<32x96xbf16>, vector<64x96xf32> -> vector<64x96xf32>
    %c0_11 = arith.constant 0 : index
    %c0_12 = arith.constant 0 : index
    %22 = vector.load %arg4[%c0_11, %c0_12] : memref<1x96xf32, #tpu.memory_space<vmem>>, vector<1x96xf32>
    %23 = vector.broadcast %22 : vector<1x96xf32> to vector<64x96xf32>
    %24 = arith.addf %21, %23 : vector<64x96xf32>
    %25 = vector.extract_strided_slice %24 {offsets = [0, 0], sizes = [64, 32], strides = [1, 1]} : vector<64x96xf32> to vector<64x32xf32>
    %26 = arith.truncf %25 : vector<64x32xf32> to vector<64x32xbf16>
    %27 = vector.extract_strided_slice %24 {offsets = [0, 32], sizes = [64, 32], strides = [1, 1]} : vector<64x96xf32> to vector<64x32xf32>
    %28 = arith.truncf %27 : vector<64x32xf32> to vector<64x32xbf16>
    %29 = vector.extract_strided_slice %24 {offsets = [0, 64], sizes = [64, 32], strides = [1, 1]} : vector<64x96xf32> to vector<64x32xf32>
    %30 = arith.truncf %29 : vector<64x32xf32> to vector<64x32xbf16>
    %31 = vector.extract_strided_slice %26 {offsets = [0, 0], sizes = [64, 8], strides = [1, 1]} : vector<64x32xbf16> to vector<64x8xbf16>
    %32 = vector.extract_strided_slice %28 {offsets = [0, 0], sizes = [64, 8], strides = [1, 1]} : vector<64x32xbf16> to vector<64x8xbf16>
    %cst_13 = arith.constant dense<0.000000e+00> : vector<64x64xf32>
    %33 = tpu.matmul %31, %32, %cst_13 {dimension_numbers = #tpu.dot_dimension_numbers<[1], [1], [0], [0], [0, 0, 1, 0], [], []>} : vector<64x8xbf16>, vector<64x8xbf16>, vector<64x64xf32> -> vector<64x64xf32>
    %cst_14 = arith.constant dense<0xFF800000> : vector<64xf32>
    %34 = vector.multi_reduction <maximumf>, %33, %cst_14 [1] : vector<64x64xf32> to vector<64xf32>
    %35 = vector.shape_cast %34 : vector<64xf32> to vector<64x1xf32>
    %36 = vector.broadcast %35 : vector<64x1xf32> to vector<64x64xf32>
    %37 = arith.subf %33, %36 : vector<64x64xf32>
    %38 = math.exp %37 : vector<64x64xf32>
    %cst_15 = arith.constant dense<0.000000e+00> : vector<64xf32>
    %39 = vector.multi_reduction <add>, %38, %cst_15 [1] : vector<64x64xf32> to vector<64xf32>
    %40 = vector.shape_cast %39 : vector<64xf32> to vector<64x1xf32>
    %41 = tpu.reciprocal %40 {approx = true} : vector<64x1xf32> -> vector<64x1xf32>
    %42 = vector.broadcast %41 : vector<64x1xf32> to vector<64x64xf32>
    %43 = arith.mulf %38, %42 : vector<64x64xf32>
    %44 = vector.extract_strided_slice %30 {offsets = [0, 0], sizes = [64, 8], strides = [1, 1]} : vector<64x32xbf16> to vector<64x8xbf16>
    %45 = arith.truncf %43 : vector<64x64xf32> to vector<64x64xbf16>
    %cst_16 = arith.constant dense<0.000000e+00> : vector<64x8xf32>
    %46 = tpu.matmul %45, %44, %cst_16 {dimension_numbers = #tpu.dot_dimension_numbers<[1], [0], [0], [1], [0, 0, 1, 1], [], []>} : vector<64x64xbf16>, vector<64x8xbf16>, vector<64x8xf32> -> vector<64x8xf32>
    %c0_17 = arith.constant 0 : index
    %c0_18 = arith.constant 0 : index
    %47 = vector.load %arg33[%c0_17, %c0_18] : memref<64x32xf32, #tpu.memory_space<vmem>>, vector<64x8xf32>
    tpu.vector_store %arg33[%c0_17, %c0_18], %46 {strides = array<i32>} : memref<64x32xf32, #tpu.memory_space<vmem>>, vector<64x8xf32>,
    %48 = vector.extract_strided_slice %26 {offsets = [0, 8], sizes = [64, 8], strides = [1, 1]} : vector<64x32xbf16> to vector<64x8xbf16>
    %49 = vector.extract_strided_slice %28 {offsets = [0, 8], sizes = [64, 8], strides = [1, 1]} : vector<64x32xbf16> to vector<64x8xbf16>
    %cst_19 = arith.constant dense<0.000000e+00> : vector<64x64xf32>
    %50 = tpu.matmul %48, %49, %cst_19 {dimension_numbers = #tpu.dot_dimension_numbers<[1], [1], [0], [0], [0, 0, 1, 0], [], []>} : vector<64x8xbf16>, vector<64x8xbf16>, vector<64x64xf32> -> vector<64x64xf32>
    %cst_20 = arith.constant dense<0xFF800000> : vector<64xf32>
    %51 = vector.multi_reduction <maximumf>, %50, %cst_20 [1] : vector<64x64xf32> to vector<64xf32>
    %52 = vector.shape_cast %51 : vector<64xf32> to vector<64x1xf32>
    %53 = vector.broadcast %52 : vector<64x1xf32> to vector<64x64xf32>
    %54 = arith.subf %50, %53 : vector<64x64xf32>
    %55 = math.exp %54 : vector<64x64xf32>
    %cst_21 = arith.constant dense<0.000000e+00> : vector<64xf32>
    %56 = vector.multi_reduction <add>, %55, %cst_21 [1] : vector<64x64xf32> to vector<64xf32>
    %57 = vector.shape_cast %56 : vector<64xf32> to vector<64x1xf32>
    %58 = tpu.reciprocal %57 {approx = true} : vector<64x1xf32> -> vector<64x1xf32>
    %59 = vector.broadcast %58 : vector<64x1xf32> to vector<64x64xf32>
    %60 = arith.mulf %55, %59 : vector<64x64xf32>
    %61 = vector.extract_strided_slice %30 {offsets = [0, 8], sizes = [64, 8], strides = [1, 1]} : vector<64x32xbf16> to vector<64x8xbf16>
    %62 = arith.truncf %60 : vector<64x64xf32> to vector<64x64xbf16>
    %cst_22 = arith.constant dense<0.000000e+00> : vector<64x8xf32>
    %63 = tpu.matmul %62, %61, %cst_22 {dimension_numbers = #tpu.dot_dimension_numbers<[1], [0], [0], [1], [0, 0, 1, 1], [], []>} : vector<64x64xbf16>, vector<64x8xbf16>, vector<64x8xf32> -> vector<64x8xf32>
    %c0_23 = arith.constant 0 : index
    %c8 = arith.constant 8 : index
    %64 = vector.load %arg33[%c0_23, %c8] : memref<64x32xf32, #tpu.memory_space<vmem>>, vector<64x8xf32>
    tpu.vector_store %arg33[%c0_23, %c8], %63 {strides = array<i32>} : memref<64x32xf32, #tpu.memory_space<vmem>>, vector<64x8xf32>,
    %65 = vector.extract_strided_slice %26 {offsets = [0, 16], sizes = [64, 8], strides = [1, 1]} : vector<64x32xbf16> to vector<64x8xbf16>
    %66 = vector.extract_strided_slice %28 {offsets = [0, 16], sizes = [64, 8], strides = [1, 1]} : vector<64x32xbf16> to vector<64x8xbf16>
    %cst_24 = arith.constant dense<0.000000e+00> : vector<64x64xf32>
    %67 = tpu.matmul %65, %66, %cst_24 {dimension_numbers = #tpu.dot_dimension_numbers<[1], [1], [0], [0], [0, 0, 1, 0], [], []>} : vector<64x8xbf16>, vector<64x8xbf16>, vector<64x64xf32> -> vector<64x64xf32>
    %cst_25 = arith.constant dense<0xFF800000> : vector<64xf32>
    %68 = vector.multi_reduction <maximumf>, %67, %cst_25 [1] : vector<64x64xf32> to vector<64xf32>
    %69 = vector.shape_cast %68 : vector<64xf32> to vector<64x1xf32>
    %70 = vector.broadcast %69 : vector<64x1xf32> to vector<64x64xf32>
    %71 = arith.subf %67, %70 : vector<64x64xf32>
    %72 = math.exp %71 : vector<64x64xf32>
    %cst_26 = arith.constant dense<0.000000e+00> : vector<64xf32>
    %73 = vector.multi_reduction <add>, %72, %cst_26 [1] : vector<64x64xf32> to vector<64xf32>
    %74 = vector.shape_cast %73 : vector<64xf32> to vector<64x1xf32>
    %75 = tpu.reciprocal %74 {approx = true} : vector<64x1xf32> -> vector<64x1xf32>
    %76 = vector.broadcast %75 : vector<64x1xf32> to vector<64x64xf32>
    %77 = arith.mulf %72, %76 : vector<64x64xf32>
    %78 = vector.extract_strided_slice %30 {offsets = [0, 16], sizes = [64, 8], strides = [1, 1]} : vector<64x32xbf16> to vector<64x8xbf16>
    %79 = arith.truncf %77 : vector<64x64xf32> to vector<64x64xbf16>
    %cst_27 = arith.constant dense<0.000000e+00> : vector<64x8xf32>
    %80 = tpu.matmul %79, %78, %cst_27 {dimension_numbers = #tpu.dot_dimension_numbers<[1], [0], [0], [1], [0, 0, 1, 1], [], []>} : vector<64x64xbf16>, vector<64x8xbf16>, vector<64x8xf32> -> vector<64x8xf32>
    %c0_28 = arith.constant 0 : index
    %c16 = arith.constant 16 : index
    %81 = vector.load %arg33[%c0_28, %c16] : memref<64x32xf32, #tpu.memory_space<vmem>>, vector<64x8xf32>
    tpu.vector_store %arg33[%c0_28, %c16], %80 {strides = array<i32>} : memref<64x32xf32, #tpu.memory_space<vmem>>, vector<64x8xf32>,
    %82 = vector.extract_strided_slice %26 {offsets = [0, 24], sizes = [64, 8], strides = [1, 1]} : vector<64x32xbf16> to vector<64x8xbf16>
    %83 = vector.extract_strided_slice %28 {offsets = [0, 24], sizes = [64, 8], strides = [1, 1]} : vector<64x32xbf16> to vector<64x8xbf16>
    %cst_29 = arith.constant dense<0.000000e+00> : vector<64x64xf32>
    %84 = tpu.matmul %82, %83, %cst_29 {dimension_numbers = #tpu.dot_dimension_numbers<[1], [1], [0], [0], [0, 0, 1, 0], [], []>} : vector<64x8xbf16>, vector<64x8xbf16>, vector<64x64xf32> -> vector<64x64xf32>
    %cst_30 = arith.constant dense<0xFF800000> : vector<64xf32>
    %85 = vector.multi_reduction <maximumf>, %84, %cst_30 [1] : vector<64x64xf32> to vector<64xf32>
    %86 = vector.shape_cast %85 : vector<64xf32> to vector<64x1xf32>
    %87 = vector.broadcast %86 : vector<64x1xf32> to vector<64x64xf32>
    %88 = arith.subf %84, %87 : vector<64x64xf32>
    %89 = math.exp %88 : vector<64x64xf32>
    %cst_31 = arith.constant dense<0.000000e+00> : vector<64xf32>
    %90 = vector.multi_reduction <add>, %89, %cst_31 [1] : vector<64x64xf32> to vector<64xf32>
    %91 = vector.shape_cast %90 : vector<64xf32> to vector<64x1xf32>
    %92 = tpu.reciprocal %91 {approx = true} : vector<64x1xf32> -> vector<64x1xf32>
    %93 = vector.broadcast %92 : vector<64x1xf32> to vector<64x64xf32>
    %94 = arith.mulf %89, %93 : vector<64x64xf32>
    %95 = vector.extract_strided_slice %30 {offsets = [0, 24], sizes = [64, 8], strides = [1, 1]} : vector<64x32xbf16> to vector<64x8xbf16>
    %96 = arith.truncf %94 : vector<64x64xf32> to vector<64x64xbf16>
    %cst_32 = arith.constant dense<0.000000e+00> : vector<64x8xf32>
    %97 = tpu.matmul %96, %95, %cst_32 {dimension_numbers = #tpu.dot_dimension_numbers<[1], [0], [0], [1], [0, 0, 1, 1], [], []>} : vector<64x64xbf16>, vector<64x8xbf16>, vector<64x8xf32> -> vector<64x8xf32>
    %c0_33 = arith.constant 0 : index
    %c24 = arith.constant 24 : index
    %98 = vector.load %arg33[%c0_33, %c24] : memref<64x32xf32, #tpu.memory_space<vmem>>, vector<64x8xf32>
    tpu.vector_store %arg33[%c0_33, %c24], %97 {strides = array<i32>} : memref<64x32xf32, #tpu.memory_space<vmem>>, vector<64x8xf32>,
    %c0_34 = arith.constant 0 : index
    %c0_35 = arith.constant 0 : index
    %99 = vector.load %arg33[%c0_34, %c0_35] : memref<64x32xf32, #tpu.memory_space<vmem>>, vector<64x32xf32>
    %c0_36 = arith.constant 0 : index
    %c0_37 = arith.constant 0 : index
    %100 = vector.load %arg5[%c0_36, %c0_37] : memref<32x32xbf16, #tpu.memory_space<vmem>>, vector<32x32xbf16>
    %101 = arith.truncf %99 : vector<64x32xf32> to vector<64x32xbf16>
    %cst_38 = arith.constant dense<0.000000e+00> : vector<64x32xf32>
    %102 = tpu.matmul %101, %100, %cst_38 {dimension_numbers = #tpu.dot_dimension_numbers<[1], [0], [0], [1], [0, 0, 1, 1], [], []>} : vector<64x32xbf16>, vector<32x32xbf16>, vector<64x32xf32> -> vector<64x32xf32>
    %103 = arith.addf %1, %102 : vector<64x32xf32>
    %c0_39 = arith.constant 0 : index
    %c0_40 = arith.constant 0 : index
    %104 = vector.load %arg6[%c0_39, %c0_40] : memref<1x32xf32, #tpu.memory_space<vmem>>, vector<1x32xf32>
    %105 = vector.broadcast %104 : vector<1x32xf32> to vector<64x32xf32>
    %106 = arith.addf %103, %105 : vector<64x32xf32>
    %c0_41 = arith.constant 0 : index
    %c0_42 = arith.constant 0 : index
    %107 = vector.load %arg7[%c0_41, %c0_42] : memref<32x32xbf16, #tpu.memory_space<vmem>>, vector<32x32xbf16>
    %108 = arith.truncf %106 : vector<64x32xf32> to vector<64x32xbf16>
    %cst_43 = arith.constant dense<0.000000e+00> : vector<64x32xf32>
    %109 = tpu.matmul %108, %107, %cst_43 {dimension_numbers = #tpu.dot_dimension_numbers<[1], [0], [0], [1], [0, 0, 1, 1], [], []>} : vector<64x32xbf16>, vector<32x32xbf16>, vector<64x32xf32> -> vector<64x32xf32>
    %c0_44 = arith.constant 0 : index
    %c0_45 = arith.constant 0 : index
    %110 = vector.load %arg8[%c0_44, %c0_45] : memref<1x32xf32, #tpu.memory_space<vmem>>, vector<1x32xf32>
    %111 = vector.broadcast %110 : vector<1x32xf32> to vector<64x32xf32>
    %112 = arith.addf %109, %111 : vector<64x32xf32>
    %c0_46 = arith.constant 0 : index
    %c0_47 = arith.constant 0 : index
    %113 = vector.load %arg9[%c0_46, %c0_47] : memref<32x32xbf16, #tpu.memory_space<vmem>>, vector<32x32xbf16>
    %114 = arith.truncf %2 : vector<4x32xf32> to vector<4x32xbf16>
    %cst_48 = arith.constant dense<0.000000e+00> : vector<4x32xf32>
    %115 = tpu.matmul %114, %113, %cst_48 {dimension_numbers = #tpu.dot_dimension_numbers<[1], [0], [0], [1], [0, 0, 1, 1], [], []>} : vector<4x32xbf16>, vector<32x32xbf16>, vector<4x32xf32> -> vector<4x32xf32>
    %c0_49 = arith.constant 0 : index
    %c0_50 = arith.constant 0 : index
    %116 = vector.load %arg10[%c0_49, %c0_50] : memref<1x32xf32, #tpu.memory_space<vmem>>, vector<1x32xf32>
    %117 = vector.broadcast %116 : vector<1x32xf32> to vector<4x32xf32>
    %118 = arith.addf %115, %117 : vector<4x32xf32>
    %c0_51 = arith.constant 0 : index
    %c0_52 = arith.constant 0 : index
    %119 = vector.load %arg11[%c0_51, %c0_52] : memref<32x32xbf16, #tpu.memory_space<vmem>>, vector<32x32xbf16>
    %120 = arith.truncf %2 : vector<4x32xf32> to vector<4x32xbf16>
    %cst_53 = arith.constant dense<0.000000e+00> : vector<4x32xf32>
    %121 = tpu.matmul %120, %119, %cst_53 {dimension_numbers = #tpu.dot_dimension_numbers<[1], [0], [0], [1], [0, 0, 1, 1], [], []>} : vector<4x32xbf16>, vector<32x32xbf16>, vector<4x32xf32> -> vector<4x32xf32>
    %c0_54 = arith.constant 0 : index
    %c0_55 = arith.constant 0 : index
    %122 = vector.load %arg12[%c0_54, %c0_55] : memref<1x32xf32, #tpu.memory_space<vmem>>, vector<1x32xf32>
    %123 = vector.broadcast %122 : vector<1x32xf32> to vector<4x32xf32>
    %124 = arith.addf %121, %123 : vector<4x32xf32>
    %125 = arith.truncf %112 : vector<64x32xf32> to vector<64x32xbf16>
    %126 = arith.truncf %118 : vector<4x32xf32> to vector<4x32xbf16>
    %127 = vector.extract_strided_slice %125 {offsets = [0, 0], sizes = [64, 16], strides = [1, 1]} : vector<64x32xbf16> to vector<64x16xbf16>
    %128 = vector.extract_strided_slice %126 {offsets = [0, 0], sizes = [4, 16], strides = [1, 1]} : vector<4x32xbf16> to vector<4x16xbf16>
    %cst_56 = arith.constant dense<0.000000e+00> : vector<64x4xf32>
    %129 = tpu.matmul %127, %128, %cst_56 {dimension_numbers = #tpu.dot_dimension_numbers<[1], [1], [0], [0], [0, 0, 1, 0], [], []>} : vector<64x16xbf16>, vector<4x16xbf16>, vector<64x4xf32> -> vector<64x4xf32>
    %cst_57 = arith.constant dense<0xFF800000> : vector<64xf32>
    %130 = vector.multi_reduction <maximumf>, %129, %cst_57 [1] : vector<64x4xf32> to vector<64xf32>
    %131 = vector.shape_cast %130 : vector<64xf32> to vector<64x1xf32>
    %132 = vector.broadcast %131 : vector<64x1xf32> to vector<64x4xf32>
    %133 = arith.subf %129, %132 : vector<64x4xf32>
    %134 = math.exp %133 : vector<64x4xf32>
    %cst_58 = arith.constant dense<0.000000e+00> : vector<64xf32>
    %135 = vector.multi_reduction <add>, %134, %cst_58 [1] : vector<64x4xf32> to vector<64xf32>
    %136 = vector.shape_cast %135 : vector<64xf32> to vector<64x1xf32>
    %137 = tpu.reciprocal %136 {approx = true} : vector<64x1xf32> -> vector<64x1xf32>
    %138 = vector.broadcast %137 : vector<64x1xf32> to vector<64x4xf32>
    %139 = arith.mulf %134, %138 : vector<64x4xf32>
    %140 = vector.extract_strided_slice %139 {offsets = [0, 0], sizes = [64, 1], strides = [1, 1]} : vector<64x4xf32> to vector<64x1xf32>
    %141 = vector.extract_strided_slice %124 {offsets = [0, 0], sizes = [1, 16], strides = [1, 1]} : vector<4x32xf32> to vector<1x16xf32>
    %142 = vector.broadcast %140 : vector<64x1xf32> to vector<64x16xf32>
    %143 = vector.broadcast %141 : vector<1x16xf32> to vector<64x16xf32>
    %144 = arith.mulf %142, %143 : vector<64x16xf32>
    %145 = vector.extract_strided_slice %139 {offsets = [0, 1], sizes = [64, 1], strides = [1, 1]} : vector<64x4xf32> to vector<64x1xf32>
    %146 = vector.extract_strided_slice %124 {offsets = [1, 0], sizes = [1, 16], strides = [1, 1]} : vector<4x32xf32> to vector<1x16xf32>
    %147 = vector.broadcast %145 : vector<64x1xf32> to vector<64x16xf32>
    %148 = vector.broadcast %146 : vector<1x16xf32> to vector<64x16xf32>
    %149 = arith.mulf %147, %148 : vector<64x16xf32>
    %150 = arith.addf %144, %149 : vector<64x16xf32>
    %151 = vector.extract_strided_slice %139 {offsets = [0, 2], sizes = [64, 1], strides = [1, 1]} : vector<64x4xf32> to vector<64x1xf32>
    %152 = vector.extract_strided_slice %124 {offsets = [2, 0], sizes = [1, 16], strides = [1, 1]} : vector<4x32xf32> to vector<1x16xf32>
    %153 = vector.broadcast %151 : vector<64x1xf32> to vector<64x16xf32>
    %154 = vector.broadcast %152 : vector<1x16xf32> to vector<64x16xf32>
    %155 = arith.mulf %153, %154 : vector<64x16xf32>
    %156 = arith.addf %150, %155 : vector<64x16xf32>
    %157 = vector.extract_strided_slice %139 {offsets = [0, 3], sizes = [64, 1], strides = [1, 1]} : vector<64x4xf32> to vector<64x1xf32>
    %158 = vector.extract_strided_slice %124 {offsets = [3, 0], sizes = [1, 16], strides = [1, 1]} : vector<4x32xf32> to vector<1x16xf32>
    %159 = vector.broadcast %157 : vector<64x1xf32> to vector<64x16xf32>
    %160 = vector.broadcast %158 : vector<1x16xf32> to vector<64x16xf32>
    %161 = arith.mulf %159, %160 : vector<64x16xf32>
    %162 = arith.addf %156, %161 : vector<64x16xf32>
    %c0_59 = arith.constant 0 : index
    %c0_60 = arith.constant 0 : index
    %163 = vector.load %arg33[%c0_59, %c0_60] : memref<64x32xf32, #tpu.memory_space<vmem>>, vector<64x16xf32>
    tpu.vector_store %arg33[%c0_59, %c0_60], %162 {strides = array<i32>} : memref<64x32xf32, #tpu.memory_space<vmem>>, vector<64x16xf32>,
    %164 = vector.extract_strided_slice %125 {offsets = [0, 16], sizes = [64, 16], strides = [1, 1]} : vector<64x32xbf16> to vector<64x16xbf16>
    %165 = vector.extract_strided_slice %126 {offsets = [0, 16], sizes = [4, 16], strides = [1, 1]} : vector<4x32xbf16> to vector<4x16xbf16>
    %cst_61 = arith.constant dense<0.000000e+00> : vector<64x4xf32>
    %166 = tpu.matmul %164, %165, %cst_61 {dimension_numbers = #tpu.dot_dimension_numbers<[1], [1], [0], [0], [0, 0, 1, 0], [], []>} : vector<64x16xbf16>, vector<4x16xbf16>, vector<64x4xf32> -> vector<64x4xf32>
    %cst_62 = arith.constant dense<0xFF800000> : vector<64xf32>
    %167 = vector.multi_reduction <maximumf>, %166, %cst_62 [1] : vector<64x4xf32> to vector<64xf32>
    %168 = vector.shape_cast %167 : vector<64xf32> to vector<64x1xf32>
    %169 = vector.broadcast %168 : vector<64x1xf32> to vector<64x4xf32>
    %170 = arith.subf %166, %169 : vector<64x4xf32>
    %171 = math.exp %170 : vector<64x4xf32>
    %cst_63 = arith.constant dense<0.000000e+00> : vector<64xf32>
    %172 = vector.multi_reduction <add>, %171, %cst_63 [1] : vector<64x4xf32> to vector<64xf32>
    %173 = vector.shape_cast %172 : vector<64xf32> to vector<64x1xf32>
    %174 = tpu.reciprocal %173 {approx = true} : vector<64x1xf32> -> vector<64x1xf32>
    %175 = vector.broadcast %174 : vector<64x1xf32> to vector<64x4xf32>
    %176 = arith.mulf %171, %175 : vector<64x4xf32>
    %177 = vector.extract_strided_slice %176 {offsets = [0, 0], sizes = [64, 1], strides = [1, 1]} : vector<64x4xf32> to vector<64x1xf32>
    %178 = vector.extract_strided_slice %124 {offsets = [0, 16], sizes = [1, 16], strides = [1, 1]} : vector<4x32xf32> to vector<1x16xf32>
    %179 = vector.broadcast %177 : vector<64x1xf32> to vector<64x16xf32>
    %180 = vector.broadcast %178 : vector<1x16xf32> to vector<64x16xf32>
    %181 = arith.mulf %179, %180 : vector<64x16xf32>
    %182 = vector.extract_strided_slice %176 {offsets = [0, 1], sizes = [64, 1], strides = [1, 1]} : vector<64x4xf32> to vector<64x1xf32>
    %183 = vector.extract_strided_slice %124 {offsets = [1, 16], sizes = [1, 16], strides = [1, 1]} : vector<4x32xf32> to vector<1x16xf32>
    %184 = vector.broadcast %182 : vector<64x1xf32> to vector<64x16xf32>
    %185 = vector.broadcast %183 : vector<1x16xf32> to vector<64x16xf32>
    %186 = arith.mulf %184, %185 : vector<64x16xf32>
    %187 = arith.addf %181, %186 : vector<64x16xf32>
    %188 = vector.extract_strided_slice %176 {offsets = [0, 2], sizes = [64, 1], strides = [1, 1]} : vector<64x4xf32> to vector<64x1xf32>
    %189 = vector.extract_strided_slice %124 {offsets = [2, 16], sizes = [1, 16], strides = [1, 1]} : vector<4x32xf32> to vector<1x16xf32>
    %190 = vector.broadcast %188 : vector<64x1xf32> to vector<64x16xf32>
    %191 = vector.broadcast %189 : vector<1x16xf32> to vector<64x16xf32>
    %192 = arith.mulf %190, %191 : vector<64x16xf32>
    %193 = arith.addf %187, %192 : vector<64x16xf32>
    %194 = vector.extract_strided_slice %176 {offsets = [0, 3], sizes = [64, 1], strides = [1, 1]} : vector<64x4xf32> to vector<64x1xf32>
    %195 = vector.extract_strided_slice %124 {offsets = [3, 16], sizes = [1, 16], strides = [1, 1]} : vector<4x32xf32> to vector<1x16xf32>
    %196 = vector.broadcast %194 : vector<64x1xf32> to vector<64x16xf32>
    %197 = vector.broadcast %195 : vector<1x16xf32> to vector<64x16xf32>
    %198 = arith.mulf %196, %197 : vector<64x16xf32>
    %199 = arith.addf %193, %198 : vector<64x16xf32>
    %c0_64 = arith.constant 0 : index
    %c16_65 = arith.constant 16 : index
    %200 = vector.load %arg33[%c0_64, %c16_65] : memref<64x32xf32, #tpu.memory_space<vmem>>, vector<64x16xf32>
    tpu.vector_store %arg33[%c0_64, %c16_65], %199 {strides = array<i32>} : memref<64x32xf32, #tpu.memory_space<vmem>>, vector<64x16xf32>,
    %c0_66 = arith.constant 0 : index
    %c0_67 = arith.constant 0 : index
    %201 = vector.load %arg33[%c0_66, %c0_67] : memref<64x32xf32, #tpu.memory_space<vmem>>, vector<64x32xf32>
    %c0_68 = arith.constant 0 : index
    %c0_69 = arith.constant 0 : index
    %202 = vector.load %arg13[%c0_68, %c0_69] : memref<32x32xbf16, #tpu.memory_space<vmem>>, vector<32x32xbf16>
    %203 = arith.truncf %201 : vector<64x32xf32> to vector<64x32xbf16>
    %cst_70 = arith.constant dense<0.000000e+00> : vector<64x32xf32>
    %204 = tpu.matmul %203, %202, %cst_70 {dimension_numbers = #tpu.dot_dimension_numbers<[1], [0], [0], [1], [0, 0, 1, 1], [], []>} : vector<64x32xbf16>, vector<32x32xbf16>, vector<64x32xf32> -> vector<64x32xf32>
    %c0_71 = arith.constant 0 : index
    %c0_72 = arith.constant 0 : index
    %205 = vector.load %arg14[%c0_71, %c0_72] : memref<1x32xf32, #tpu.memory_space<vmem>>, vector<1x32xf32>
    %206 = vector.broadcast %205 : vector<1x32xf32> to vector<64x32xf32>
    %207 = arith.addf %204, %206 : vector<64x32xf32>
    %c0_73 = arith.constant 0 : index
    %c0_74 = arith.constant 0 : index
    %208 = vector.load %arg15[%c0_73, %c0_74] : memref<1x32xf32, #tpu.memory_space<vmem>>, vector<1x32xf32>
    %c0_75 = arith.constant 0 : index
    %c0_76 = arith.constant 0 : index
    %209 = vector.load %arg16[%c0_75, %c0_76] : memref<1x32xf32, #tpu.memory_space<vmem>>, vector<1x32xf32>
    %cst_77 = arith.constant dense<0.000000e+00> : vector<64xf32>
    %210 = vector.multi_reduction <add>, %207, %cst_77 [1] : vector<64x32xf32> to vector<64xf32>
    %211 = vector.shape_cast %210 : vector<64xf32> to vector<64x1xf32>
    %cst_78 = arith.constant 3.200000e+01 : f32
    %212 = vector.broadcast %cst_78 : f32 to vector<64x1xf32>
    %213 = arith.divf %211, %212 : vector<64x1xf32>
    %214 = vector.broadcast %213 : vector<64x1xf32> to vector<64x32xf32>
    %215 = arith.subf %207, %214 : vector<64x32xf32>
    %216 = arith.mulf %215, %215 : vector<64x32xf32>
    %cst_79 = arith.constant dense<0.000000e+00> : vector<64xf32>
    %217 = vector.multi_reduction <add>, %216, %cst_79 [1] : vector<64x32xf32> to vector<64xf32>
    %218 = vector.shape_cast %217 : vector<64xf32> to vector<64x1xf32>
    %cst_80 = arith.constant 3.200000e+01 : f32
    %219 = vector.broadcast %cst_80 : f32 to vector<64x1xf32>
    %220 = arith.divf %218, %219 : vector<64x1xf32>
    %cst_81 = arith.constant 9.99999974E-6 : f32
    %221 = vector.broadcast %cst_81 : f32 to vector<64x1xf32>
    %222 = arith.addf %220, %221 : vector<64x1xf32>
    %223 = math.rsqrt %222 : vector<64x1xf32>
    %224 = vector.broadcast %223 : vector<64x1xf32> to vector<64x32xf32>
    %225 = arith.mulf %215, %224 : vector<64x32xf32>
    %226 = vector.broadcast %208 : vector<1x32xf32> to vector<64x32xf32>
    %227 = arith.mulf %225, %226 : vector<64x32xf32>
    %228 = vector.broadcast %209 : vector<1x32xf32> to vector<64x32xf32>
    %229 = arith.addf %227, %228 : vector<64x32xf32>
    %c0_82 = arith.constant 0 : index
    %c0_83 = arith.constant 0 : index
    %230 = vector.load %arg17[%c0_82, %c0_83] : memref<32x32xbf16, #tpu.memory_space<vmem>>, vector<32x32xbf16>
    %231 = arith.truncf %106 : vector<64x32xf32> to vector<64x32xbf16>
    %cst_84 = arith.constant dense<0.000000e+00> : vector<64x32xf32>
    %232 = tpu.matmul %231, %230, %cst_84 {dimension_numbers = #tpu.dot_dimension_numbers<[1], [0], [0], [1], [0, 0, 1, 1], [], []>} : vector<64x32xbf16>, vector<32x32xbf16>, vector<64x32xf32> -> vector<64x32xf32>
    %c0_85 = arith.constant 0 : index
    %c0_86 = arith.constant 0 : index
    %233 = vector.load %arg18[%c0_85, %c0_86] : memref<32x32xbf16, #tpu.memory_space<vmem>>, vector<32x32xbf16>
    %234 = arith.truncf %229 : vector<64x32xf32> to vector<64x32xbf16>
    %cst_87 = arith.constant dense<0.000000e+00> : vector<64x32xf32>
    %235 = tpu.matmul %234, %233, %cst_87 {dimension_numbers = #tpu.dot_dimension_numbers<[1], [0], [0], [1], [0, 0, 1, 1], [], []>} : vector<64x32xbf16>, vector<32x32xbf16>, vector<64x32xf32> -> vector<64x32xf32>
    %236 = arith.addf %232, %235 : vector<64x32xf32>
    %c0_88 = arith.constant 0 : index
    %c0_89 = arith.constant 0 : index
    %237 = vector.load %arg19[%c0_88, %c0_89] : memref<1x32xf32, #tpu.memory_space<vmem>>, vector<1x32xf32>
    %238 = vector.broadcast %237 : vector<1x32xf32> to vector<64x32xf32>
    %239 = arith.addf %236, %238 : vector<64x32xf32>
    %c0_90 = arith.constant 0 : index
    %c0_91 = arith.constant 0 : index
    %240 = vector.load %arg20[%c0_90, %c0_91] : memref<1x32xf32, #tpu.memory_space<vmem>>, vector<1x32xf32>
    %c0_92 = arith.constant 0 : index
    %c0_93 = arith.constant 0 : index
    %241 = vector.load %arg21[%c0_92, %c0_93] : memref<1x32xf32, #tpu.memory_space<vmem>>, vector<1x32xf32>
    %cst_94 = arith.constant dense<0.000000e+00> : vector<64xf32>
    %242 = vector.multi_reduction <add>, %239, %cst_94 [1] : vector<64x32xf32> to vector<64xf32>
    %243 = vector.shape_cast %242 : vector<64xf32> to vector<64x1xf32>
    %cst_95 = arith.constant 3.200000e+01 : f32
    %244 = vector.broadcast %cst_95 : f32 to vector<64x1xf32>
    %245 = arith.divf %243, %244 : vector<64x1xf32>
    %246 = vector.broadcast %245 : vector<64x1xf32> to vector<64x32xf32>
    %247 = arith.subf %239, %246 : vector<64x32xf32>
    %248 = arith.mulf %247, %247 : vector<64x32xf32>
    %cst_96 = arith.constant dense<0.000000e+00> : vector<64xf32>
    %249 = vector.multi_reduction <add>, %248, %cst_96 [1] : vector<64x32xf32> to vector<64xf32>
    %250 = vector.shape_cast %249 : vector<64xf32> to vector<64x1xf32>
    %cst_97 = arith.constant 3.200000e+01 : f32
    %251 = vector.broadcast %cst_97 : f32 to vector<64x1xf32>
    %252 = arith.divf %250, %251 : vector<64x1xf32>
    %cst_98 = arith.constant 9.99999974E-6 : f32
    %253 = vector.broadcast %cst_98 : f32 to vector<64x1xf32>
    %254 = arith.addf %252, %253 : vector<64x1xf32>
    %255 = math.rsqrt %254 : vector<64x1xf32>
    %256 = vector.broadcast %255 : vector<64x1xf32> to vector<64x32xf32>
    %257 = arith.mulf %247, %256 : vector<64x32xf32>
    %258 = vector.broadcast %240 : vector<1x32xf32> to vector<64x32xf32>
    %259 = arith.mulf %257, %258 : vector<64x32xf32>
    %260 = vector.broadcast %241 : vector<1x32xf32> to vector<64x32xf32>
    %261 = arith.addf %259, %260 : vector<64x32xf32>
    %cst_99 = arith.constant 5.000000e-01 : f32
    %262 = vector.broadcast %cst_99 : f32 to vector<64x32xf32>
    %263 = arith.mulf %262, %261 : vector<64x32xf32>
    %cst_100 = arith.constant 0.707106769 : f32
    %264 = vector.broadcast %cst_100 : f32 to vector<64x32xf32>
    %265 = arith.mulf %261, %264 : vector<64x32xf32>
    %cst_101 = arith.constant 0.000000e+00 : f32
    %266 = vector.broadcast %cst_101 : f32 to vector<64x32xf32>
    %267 = arith.cmpf oge, %265, %266 : vector<64x32xf32>
    %cst_102 = arith.constant 1.000000e+00 : f32
    %cst_103 = arith.constant -1.000000e+00 : f32
    %268 = vector.broadcast %cst_102 : f32 to vector<64x32xf32>
    %269 = vector.broadcast %cst_103 : f32 to vector<64x32xf32>
    %270 = arith.select %267, %268, %269 : vector<64x32xi1>, vector<64x32xf32>
    %271 = math.absf %265 : vector<64x32xf32>
    %cst_104 = arith.constant 0.327591091 : f32
    %272 = vector.broadcast %cst_104 : f32 to vector<64x32xf32>
    %273 = arith.mulf %272, %271 : vector<64x32xf32>
    %cst_105 = arith.constant 1.000000e+00 : f32
    %274 = vector.broadcast %cst_105 : f32 to vector<64x32xf32>
    %275 = arith.addf %274, %273 : vector<64x32xf32>
    %cst_106 = arith.constant 1.000000e+00 : f32
    %276 = vector.broadcast %cst_106 : f32 to vector<64x32xf32>
    %277 = arith.divf %276, %275 : vector<64x32xf32>
    %cst_107 = arith.constant 1.06140542 : f32
    %278 = vector.broadcast %cst_107 : f32 to vector<64x32xf32>
    %279 = arith.mulf %278, %277 : vector<64x32xf32>
    %cst_108 = arith.constant -1.45315206 : f32
    %280 = vector.broadcast %cst_108 : f32 to vector<64x32xf32>
    %281 = arith.addf %279, %280 : vector<64x32xf32>
    %282 = arith.mulf %281, %277 : vector<64x32xf32>
    %cst_109 = arith.constant 1.42141378 : f32
    %283 = vector.broadcast %cst_109 : f32 to vector<64x32xf32>
    %284 = arith.addf %282, %283 : vector<64x32xf32>
    %285 = arith.mulf %284, %277 : vector<64x32xf32>
    %cst_110 = arith.constant -0.284496725 : f32
    %286 = vector.broadcast %cst_110 : f32 to vector<64x32xf32>
    %287 = arith.addf %285, %286 : vector<64x32xf32>
    %288 = arith.mulf %287, %277 : vector<64x32xf32>
    %cst_111 = arith.constant 0.254829586 : f32
    %289 = vector.broadcast %cst_111 : f32 to vector<64x32xf32>
    %290 = arith.addf %288, %289 : vector<64x32xf32>
    %291 = arith.mulf %290, %277 : vector<64x32xf32>
    %cst_112 = arith.constant 0.000000e+00 : f32
    %292 = vector.broadcast %cst_112 : f32 to vector<64x32xf32>
    %293 = arith.subf %292, %271 : vector<64x32xf32>
    %294 = arith.mulf %293, %271 : vector<64x32xf32>
    %295 = math.exp %294 : vector<64x32xf32>
    %296 = arith.mulf %291, %295 : vector<64x32xf32>
    %cst_113 = arith.constant 1.000000e+00 : f32
    %297 = vector.broadcast %cst_113 : f32 to vector<64x32xf32>
    %298 = arith.subf %297, %296 : vector<64x32xf32>
    %299 = arith.mulf %270, %298 : vector<64x32xf32>
    %cst_114 = arith.constant 1.000000e+00 : f32
    %300 = vector.broadcast %cst_114 : f32 to vector<64x32xf32>
    %301 = arith.addf %300, %299 : vector<64x32xf32>
    %302 = arith.mulf %263, %301 : vector<64x32xf32>
    %c0_115 = arith.constant 0 : index
    %c0_116 = arith.constant 0 : index
    %303 = vector.load %arg22[%c0_115, %c0_116] : memref<1x32xf32, #tpu.memory_space<vmem>>, vector<1x32xf32>
    %304 = vector.broadcast %303 : vector<1x32xf32> to vector<64x32xf32>
    %305 = arith.mulf %302, %304 : vector<64x32xf32>
    %cst_117 = arith.constant dense<0.000000e+00> : vector<64xf32>
    %306 = vector.multi_reduction <add>, %305, %cst_117 [1] : vector<64x32xf32> to vector<64xf32>
    %307 = vector.shape_cast %306 : vector<64xf32> to vector<64x1xf32>
    %c0_118 = arith.constant 0 : index
    %c0_119 = arith.constant 0 : index
    %308 = vector.load %arg23[%c0_118, %c0_119] : memref<1x1xf32, #tpu.memory_space<vmem>>, vector<1x1xf32>
    %309 = vector.broadcast %308 : vector<1x1xf32> to vector<64x1xf32>
    %310 = arith.addf %307, %309 : vector<64x1xf32>
    %cst_120 = arith.constant 0.000000e+00 : f32
    %311 = vector.broadcast %cst_120 : f32 to vector<64x1xf32>
    %312 = arith.subf %311, %310 : vector<64x1xf32>
    %313 = math.exp %312 : vector<64x1xf32>
    %cst_121 = arith.constant 1.000000e+00 : f32
    %314 = vector.broadcast %cst_121 : f32 to vector<64x1xf32>
    %315 = arith.addf %314, %313 : vector<64x1xf32>
    %cst_122 = arith.constant 1.000000e+00 : f32
    %316 = vector.broadcast %cst_122 : f32 to vector<64x1xf32>
    %317 = arith.divf %316, %315 : vector<64x1xf32>
    %318 = vector.broadcast %317 : vector<64x1xf32> to vector<64x32xf32>
    %319 = arith.mulf %318, %229 : vector<64x32xf32>
    %320 = arith.addf %106, %319 : vector<64x32xf32>
    %cst_123 = arith.constant dense<0.000000e+00> : vector<64xf32>
    %321 = vector.multi_reduction <add>, %320, %cst_123 [1] : vector<64x32xf32> to vector<64xf32>
    %322 = vector.shape_cast %321 : vector<64xf32> to vector<64x1xf32>
    %cst_124 = arith.constant 3.200000e+01 : f32
    %323 = vector.broadcast %cst_124 : f32 to vector<64x1xf32>
    %324 = arith.divf %322, %323 : vector<64x1xf32>
    %325 = vector.broadcast %324 : vector<64x1xf32> to vector<64x32xf32>
    %326 = arith.subf %320, %325 : vector<64x32xf32>
    %327 = arith.mulf %326, %326 : vector<64x32xf32>
    %cst_125 = arith.constant dense<0.000000e+00> : vector<64xf32>
    %328 = vector.multi_reduction <add>, %327, %cst_125 [1] : vector<64x32xf32> to vector<64xf32>
    %329 = vector.shape_cast %328 : vector<64xf32> to vector<64x1xf32>
    %cst_126 = arith.constant 3.200000e+01 : f32
    %330 = vector.broadcast %cst_126 : f32 to vector<64x1xf32>
    %331 = arith.divf %329, %330 : vector<64x1xf32>
    %cst_127 = arith.constant 9.99999974E-6 : f32
    %332 = vector.broadcast %cst_127 : f32 to vector<64x1xf32>
    %333 = arith.addf %331, %332 : vector<64x1xf32>
    %334 = math.rsqrt %333 : vector<64x1xf32>
    %335 = vector.broadcast %334 : vector<64x1xf32> to vector<64x32xf32>
    %336 = arith.mulf %326, %335 : vector<64x32xf32>
    %c0_128 = arith.constant 0 : index
    %c0_129 = arith.constant 0 : index
    %337 = vector.load %arg24[%c0_128, %c0_129] : memref<32x64xbf16, #tpu.memory_space<vmem>>, vector<32x64xbf16>
    %338 = arith.truncf %336 : vector<64x32xf32> to vector<64x32xbf16>
    %cst_130 = arith.constant dense<0.000000e+00> : vector<64x64xf32>
    %339 = tpu.matmul %338, %337, %cst_130 {dimension_numbers = #tpu.dot_dimension_numbers<[1], [0], [0], [1], [0, 0, 1, 1], [], []>} : vector<64x32xbf16>, vector<32x64xbf16>, vector<64x64xf32> -> vector<64x64xf32>
    %c0_131 = arith.constant 0 : index
    %c0_132 = arith.constant 0 : index
    %340 = vector.load %arg25[%c0_131, %c0_132] : memref<1x64xf32, #tpu.memory_space<vmem>>, vector<1x64xf32>
    %341 = vector.broadcast %340 : vector<1x64xf32> to vector<64x64xf32>
    %342 = arith.addf %339, %341 : vector<64x64xf32>
    %cst_133 = arith.constant 5.000000e-01 : f32
    %343 = vector.broadcast %cst_133 : f32 to vector<64x64xf32>
    %344 = arith.mulf %343, %342 : vector<64x64xf32>
    %cst_134 = arith.constant 0.707106769 : f32
    %345 = vector.broadcast %cst_134 : f32 to vector<64x64xf32>
    %346 = arith.mulf %342, %345 : vector<64x64xf32>
    %cst_135 = arith.constant 0.000000e+00 : f32
    %347 = vector.broadcast %cst_135 : f32 to vector<64x64xf32>
    %348 = arith.cmpf oge, %346, %347 : vector<64x64xf32>
    %cst_136 = arith.constant 1.000000e+00 : f32
    %cst_137 = arith.constant -1.000000e+00 : f32
    %349 = vector.broadcast %cst_136 : f32 to vector<64x64xf32>
    %350 = vector.broadcast %cst_137 : f32 to vector<64x64xf32>
    %351 = arith.select %348, %349, %350 : vector<64x64xi1>, vector<64x64xf32>
    %352 = math.absf %346 : vector<64x64xf32>
    %cst_138 = arith.constant 0.327591091 : f32
    %353 = vector.broadcast %cst_138 : f32 to vector<64x64xf32>
    %354 = arith.mulf %353, %352 : vector<64x64xf32>
    %cst_139 = arith.constant 1.000000e+00 : f32
    %355 = vector.broadcast %cst_139 : f32 to vector<64x64xf32>
    %356 = arith.addf %355, %354 : vector<64x64xf32>
    %cst_140 = arith.constant 1.000000e+00 : f32
    %357 = vector.broadcast %cst_140 : f32 to vector<64x64xf32>
    %358 = arith.divf %357, %356 : vector<64x64xf32>
    %cst_141 = arith.constant 1.06140542 : f32
    %359 = vector.broadcast %cst_141 : f32 to vector<64x64xf32>
    %360 = arith.mulf %359, %358 : vector<64x64xf32>
    %cst_142 = arith.constant -1.45315206 : f32
    %361 = vector.broadcast %cst_142 : f32 to vector<64x64xf32>
    %362 = arith.addf %360, %361 : vector<64x64xf32>
    %363 = arith.mulf %362, %358 : vector<64x64xf32>
    %cst_143 = arith.constant 1.42141378 : f32
    %364 = vector.broadcast %cst_143 : f32 to vector<64x64xf32>
    %365 = arith.addf %363, %364 : vector<64x64xf32>
    %366 = arith.mulf %365, %358 : vector<64x64xf32>
    %cst_144 = arith.constant -0.284496725 : f32
    %367 = vector.broadcast %cst_144 : f32 to vector<64x64xf32>
    %368 = arith.addf %366, %367 : vector<64x64xf32>
    %369 = arith.mulf %368, %358 : vector<64x64xf32>
    %cst_145 = arith.constant 0.254829586 : f32
    %370 = vector.broadcast %cst_145 : f32 to vector<64x64xf32>
    %371 = arith.addf %369, %370 : vector<64x64xf32>
    %372 = arith.mulf %371, %358 : vector<64x64xf32>
    %cst_146 = arith.constant 0.000000e+00 : f32
    %373 = vector.broadcast %cst_146 : f32 to vector<64x64xf32>
    %374 = arith.subf %373, %352 : vector<64x64xf32>
    %375 = arith.mulf %374, %352 : vector<64x64xf32>
    %376 = math.exp %375 : vector<64x64xf32>
    %377 = arith.mulf %372, %376 : vector<64x64xf32>
    %cst_147 = arith.constant 1.000000e+00 : f32
    %378 = vector.broadcast %cst_147 : f32 to vector<64x64xf32>
    %379 = arith.subf %378, %377 : vector<64x64xf32>
    %380 = arith.mulf %351, %379 : vector<64x64xf32>
    %cst_148 = arith.constant 1.000000e+00 : f32
    %381 = vector.broadcast %cst_148 : f32 to vector<64x64xf32>
    %382 = arith.addf %381, %380 : vector<64x64xf32>
    %383 = arith.mulf %344, %382 : vector<64x64xf32>
    %c0_149 = arith.constant 0 : index
    %c0_150 = arith.constant 0 : index
    %384 = vector.load %arg26[%c0_149, %c0_150] : memref<64x32xbf16, #tpu.memory_space<vmem>>, vector<64x32xbf16>
    %385 = arith.truncf %383 : vector<64x64xf32> to vector<64x64xbf16>
    %cst_151 = arith.constant dense<0.000000e+00> : vector<64x32xf32>
    %386 = tpu.matmul %385, %384, %cst_151 {dimension_numbers = #tpu.dot_dimension_numbers<[1], [0], [0], [1], [0, 0, 1, 1], [], []>} : vector<64x64xbf16>, vector<64x32xbf16>, vector<64x32xf32> -> vector<64x32xf32>
    %387 = arith.addf %320, %386 : vector<64x32xf32>
    %c0_152 = arith.constant 0 : index
    %c0_153 = arith.constant 0 : index
    %388 = vector.load %arg27[%c0_152, %c0_153] : memref<1x32xf32, #tpu.memory_space<vmem>>, vector<1x32xf32>
    %389 = vector.broadcast %388 : vector<1x32xf32> to vector<64x32xf32>
    %390 = arith.addf %387, %389 : vector<64x32xf32>
    %cst_154 = arith.constant dense<0.000000e+00> : vector<64xf32>
    %391 = vector.multi_reduction <add>, %390, %cst_154 [1] : vector<64x32xf32> to vector<64xf32>
    %392 = vector.shape_cast %391 : vector<64xf32> to vector<64x1xf32>
    %cst_155 = arith.constant 3.200000e+01 : f32
    %393 = vector.broadcast %cst_155 : f32 to vector<64x1xf32>
    %394 = arith.divf %392, %393 : vector<64x1xf32>
    %395 = vector.broadcast %394 : vector<64x1xf32> to vector<64x32xf32>
    %396 = arith.subf %390, %395 : vector<64x32xf32>
    %397 = arith.mulf %396, %396 : vector<64x32xf32>
    %cst_156 = arith.constant dense<0.000000e+00> : vector<64xf32>
    %398 = vector.multi_reduction <add>, %397, %cst_156 [1] : vector<64x32xf32> to vector<64xf32>
    %399 = vector.shape_cast %398 : vector<64xf32> to vector<64x1xf32>
    %cst_157 = arith.constant 3.200000e+01 : f32
    %400 = vector.broadcast %cst_157 : f32 to vector<64x1xf32>
    %401 = arith.divf %399, %400 : vector<64x1xf32>
    %cst_158 = arith.constant 9.99999974E-6 : f32
    %402 = vector.broadcast %cst_158 : f32 to vector<64x1xf32>
    %403 = arith.addf %401, %402 : vector<64x1xf32>
    %404 = math.rsqrt %403 : vector<64x1xf32>
    %405 = vector.broadcast %404 : vector<64x1xf32> to vector<64x32xf32>
    %406 = arith.mulf %396, %405 : vector<64x32xf32>
    %c0_159 = arith.constant 0 : index
    %c0_160 = arith.constant 0 : index
    %407 = vector.load %arg28[%c0_159, %c0_160] : memref<32x128xbf16, #tpu.memory_space<vmem>>, vector<32x128xbf16>
    %408 = arith.truncf %406 : vector<64x32xf32> to vector<64x32xbf16>
    %cst_161 = arith.constant dense<0.000000e+00> : vector<64x128xf32>
    %409 = tpu.matmul %408, %407, %cst_161 {dimension_numbers = #tpu.dot_dimension_numbers<[1], [0], [0], [1], [0, 0, 1, 1], [], []>} : vector<64x32xbf16>, vector<32x128xbf16>, vector<64x128xf32> -> vector<64x128xf32>
    %c0_162 = arith.constant 0 : index
    %c0_163 = arith.constant 0 : index
    %410 = vector.load %arg29[%c0_162, %c0_163] : memref<1x128xf32, #tpu.memory_space<vmem>>, vector<1x128xf32>
    %411 = vector.broadcast %410 : vector<1x128xf32> to vector<64x128xf32>
    %412 = arith.addf %409, %411 : vector<64x128xf32>
    %cst_164 = arith.constant 5.000000e-01 : f32
    %413 = vector.broadcast %cst_164 : f32 to vector<64x128xf32>
    %414 = arith.mulf %413, %412 : vector<64x128xf32>
    %cst_165 = arith.constant 0.707106769 : f32
    %415 = vector.broadcast %cst_165 : f32 to vector<64x128xf32>
    %416 = arith.mulf %412, %415 : vector<64x128xf32>
    %cst_166 = arith.constant 0.000000e+00 : f32
    %417 = vector.broadcast %cst_166 : f32 to vector<64x128xf32>
    %418 = arith.cmpf oge, %416, %417 : vector<64x128xf32>
    %cst_167 = arith.constant 1.000000e+00 : f32
    %cst_168 = arith.constant -1.000000e+00 : f32
    %419 = vector.broadcast %cst_167 : f32 to vector<64x128xf32>
    %420 = vector.broadcast %cst_168 : f32 to vector<64x128xf32>
    %421 = arith.select %418, %419, %420 : vector<64x128xi1>, vector<64x128xf32>
    %422 = math.absf %416 : vector<64x128xf32>
    %cst_169 = arith.constant 0.327591091 : f32
    %423 = vector.broadcast %cst_169 : f32 to vector<64x128xf32>
    %424 = arith.mulf %423, %422 : vector<64x128xf32>
    %cst_170 = arith.constant 1.000000e+00 : f32
    %425 = vector.broadcast %cst_170 : f32 to vector<64x128xf32>
    %426 = arith.addf %425, %424 : vector<64x128xf32>
    %cst_171 = arith.constant 1.000000e+00 : f32
    %427 = vector.broadcast %cst_171 : f32 to vector<64x128xf32>
    %428 = arith.divf %427, %426 : vector<64x128xf32>
    %cst_172 = arith.constant 1.06140542 : f32
    %429 = vector.broadcast %cst_172 : f32 to vector<64x128xf32>
    %430 = arith.mulf %429, %428 : vector<64x128xf32>
    %cst_173 = arith.constant -1.45315206 : f32
    %431 = vector.broadcast %cst_173 : f32 to vector<64x128xf32>
    %432 = arith.addf %430, %431 : vector<64x128xf32>
    %433 = arith.mulf %432, %428 : vector<64x128xf32>
    %cst_174 = arith.constant 1.42141378 : f32
    %434 = vector.broadcast %cst_174 : f32 to vector<64x128xf32>
    %435 = arith.addf %433, %434 : vector<64x128xf32>
    %436 = arith.mulf %435, %428 : vector<64x128xf32>
    %cst_175 = arith.constant -0.284496725 : f32
    %437 = vector.broadcast %cst_175 : f32 to vector<64x128xf32>
    %438 = arith.addf %436, %437 : vector<64x128xf32>
    %439 = arith.mulf %438, %428 : vector<64x128xf32>
    %cst_176 = arith.constant 0.254829586 : f32
    %440 = vector.broadcast %cst_176 : f32 to vector<64x128xf32>
    %441 = arith.addf %439, %440 : vector<64x128xf32>
    %442 = arith.mulf %441, %428 : vector<64x128xf32>
    %cst_177 = arith.constant 0.000000e+00 : f32
    %443 = vector.broadcast %cst_177 : f32 to vector<64x128xf32>
    %444 = arith.subf %443, %422 : vector<64x128xf32>
    %445 = arith.mulf %444, %422 : vector<64x128xf32>
    %446 = math.exp %445 : vector<64x128xf32>
    %447 = arith.mulf %442, %446 : vector<64x128xf32>
    %cst_178 = arith.constant 1.000000e+00 : f32
    %448 = vector.broadcast %cst_178 : f32 to vector<64x128xf32>
    %449 = arith.subf %448, %447 : vector<64x128xf32>
    %450 = arith.mulf %421, %449 : vector<64x128xf32>
    %cst_179 = arith.constant 1.000000e+00 : f32
    %451 = vector.broadcast %cst_179 : f32 to vector<64x128xf32>
    %452 = arith.addf %451, %450 : vector<64x128xf32>
    %453 = arith.mulf %414, %452 : vector<64x128xf32>
    %c0_180 = arith.constant 0 : index
    %c0_181 = arith.constant 0 : index
    %454 = vector.load %arg30[%c0_180, %c0_181] : memref<128x32xbf16, #tpu.memory_space<vmem>>, vector<128x32xbf16>
    %455 = arith.truncf %453 : vector<64x128xf32> to vector<64x128xbf16>
    %cst_182 = arith.constant dense<0.000000e+00> : vector<64x32xf32>
    %456 = tpu.matmul %455, %454, %cst_182 {dimension_numbers = #tpu.dot_dimension_numbers<[1], [0], [0], [1], [0, 0, 1, 1], [], []>} : vector<64x128xbf16>, vector<128x32xbf16>, vector<64x32xf32> -> vector<64x32xf32>
    %457 = arith.addf %390, %456 : vector<64x32xf32>
    %c0_183 = arith.constant 0 : index
    %c0_184 = arith.constant 0 : index
    %458 = vector.load %arg31[%c0_183, %c0_184] : memref<1x32xf32, #tpu.memory_space<vmem>>, vector<1x32xf32>
    %459 = vector.broadcast %458 : vector<1x32xf32> to vector<64x32xf32>
    %460 = arith.addf %457, %459 : vector<64x32xf32>
    %c0_185 = arith.constant 0 : index
    %c0_186 = arith.constant 0 : index
    %c0_187 = arith.constant 0 : index
    %461 = vector.load %arg32[%c0_185, %c0_186, %c0_187] : memref<1x64x32xf32, #tpu.memory_space<vmem>>, vector<1x64x32xf32>
    %462 = vector.shape_cast %461 : vector<1x64x32xf32> to vector<64x32xf32>
    %463 = vector.shape_cast %460 : vector<64x32xf32> to vector<1x64x32xf32>
    tpu.vector_store %arg32[%c0_185, %c0_186, %c0_187], %463 {strides = array<i32>} : memref<1x64x32xf32, #tpu.memory_space<vmem>>, vector<1x64x32xf32>,
    return
  }
  func.func @transform_0(%arg0: i32) -> (i32, i32, i32) {
    %c0_i32 = arith.constant 0 : i32
    %c0_i32_0 = arith.constant 0 : i32
    %c0_i32_1 = arith.constant 0 : i32
    return %arg0, %c0_i32, %c0_i32_0 : i32, i32, i32
  }
  func.func @transform_1(%arg0: i32) -> (i32, i32) {
    %c0_i32 = arith.constant 0 : i32
    %c0_i32_0 = arith.constant 0 : i32
    %c0_i32_1 = arith.constant 0 : i32
    return %c0_i32, %c0_i32_0 : i32, i32
  }
  func.func @transform_2(%arg0: i32) -> (i32, i32) {
    %c0_i32 = arith.constant 0 : i32
    %c0_i32_0 = arith.constant 0 : i32
    %c0_i32_1 = arith.constant 0 : i32
    return %c0_i32, %c0_i32_0 : i32, i32
  }
  func.func @transform_3(%arg0: i32) -> (i32, i32) {
    %c0_i32 = arith.constant 0 : i32
    %c0_i32_0 = arith.constant 0 : i32
    %c0_i32_1 = arith.constant 0 : i32
    return %c0_i32, %c0_i32_0 : i32, i32
  }
  func.func @transform_4(%arg0: i32) -> (i32, i32) {
    %c0_i32 = arith.constant 0 : i32
    %c0_i32_0 = arith.constant 0 : i32
    %c0_i32_1 = arith.constant 0 : i32
    return %c0_i32, %c0_i32_0 : i32, i32
  }
  func.func @transform_5(%arg0: i32) -> (i32, i32) {
    %c0_i32 = arith.constant 0 : i32
    %c0_i32_0 = arith.constant 0 : i32
    %c0_i32_1 = arith.constant 0 : i32
    return %c0_i32, %c0_i32_0 : i32, i32
  }
  func.func @transform_6(%arg0: i32) -> (i32, i32) {
    %c0_i32 = arith.constant 0 : i32
    %c0_i32_0 = arith.constant 0 : i32
    %c0_i32_1 = arith.constant 0 : i32
    return %c0_i32, %c0_i32_0 : i32, i32
  }
  func.func @transform_7(%arg0: i32) -> (i32, i32) {
    %c0_i32 = arith.constant 0 : i32
    %c0_i32_0 = arith.constant 0 : i32
    %c0_i32_1 = arith.constant 0 : i32
    return %c0_i32, %c0_i32_0 : i32, i32
  }
  func.func @transform_8(%arg0: i32) -> (i32, i32) {
    %c0_i32 = arith.constant 0 : i32
    %c0_i32_0 = arith.constant 0 : i32
    %c0_i32_1 = arith.constant 0 : i32
    return %c0_i32, %c0_i32_0 : i32, i32
  }
  func.func @transform_9(%arg0: i32) -> (i32, i32) {
    %c0_i32 = arith.constant 0 : i32
    %c0_i32_0 = arith.constant 0 : i32
    %c0_i32_1 = arith.constant 0 : i32
    return %c0_i32, %c0_i32_0 : i32, i32
  }
  func.func @transform_10(%arg0: i32) -> (i32, i32) {
    %c0_i32 = arith.constant 0 : i32
    %c0_i32_0 = arith.constant 0 : i32
    %c0_i32_1 = arith.constant 0 : i32
    return %c0_i32, %c0_i32_0 : i32, i32
  }
  func.func @transform_11(%arg0: i32) -> (i32, i32) {
    %c0_i32 = arith.constant 0 : i32
    %c0_i32_0 = arith.constant 0 : i32
    %c0_i32_1 = arith.constant 0 : i32
    return %c0_i32, %c0_i32_0 : i32, i32
  }
  func.func @transform_12(%arg0: i32) -> (i32, i32) {
    %c0_i32 = arith.constant 0 : i32
    %c0_i32_0 = arith.constant 0 : i32
    %c0_i32_1 = arith.constant 0 : i32
    return %c0_i32, %c0_i32_0 : i32, i32
  }
  func.func @transform_13(%arg0: i32) -> (i32, i32) {
    %c0_i32 = arith.constant 0 : i32
    %c0_i32_0 = arith.constant 0 : i32
    %c0_i32_1 = arith.constant 0 : i32
    return %c0_i32, %c0_i32_0 : i32, i32
  }
  func.func @transform_14(%arg0: i32) -> (i32, i32) {
    %c0_i32 = arith.constant 0 : i32
    %c0_i32_0 = arith.constant 0 : i32
    %c0_i32_1 = arith.constant 0 : i32
    return %c0_i32, %c0_i32_0 : i32, i32
  }
  func.func @transform_15(%arg0: i32) -> (i32, i32) {
    %c0_i32 = arith.constant 0 : i32
    %c0_i32_0 = arith.constant 0 : i32
    %c0_i32_1 = arith.constant 0 : i32
    return %c0_i32, %c0_i32_0 : i32, i32
  }
  func.func @transform_16(%arg0: i32) -> (i32, i32) {
    %c0_i32 = arith.constant 0 : i32
    %c0_i32_0 = arith.constant 0 : i32
    %c0_i32_1 = arith.constant 0 : i32
    return %c0_i32, %c0_i32_0 : i32, i32
  }
  func.func @transform_17(%arg0: i32) -> (i32, i32) {
    %c0_i32 = arith.constant 0 : i32
    %c0_i32_0 = arith.constant 0 : i32
    %c0_i32_1 = arith.constant 0 : i32
    return %c0_i32, %c0_i32_0 : i32, i32
  }
  func.func @transform_18(%arg0: i32) -> (i32, i32) {
    %c0_i32 = arith.constant 0 : i32
    %c0_i32_0 = arith.constant 0 : i32
    %c0_i32_1 = arith.constant 0 : i32
    return %c0_i32, %c0_i32_0 : i32, i32
  }
  func.func @transform_19(%arg0: i32) -> (i32, i32) {
    %c0_i32 = arith.constant 0 : i32
    %c0_i32_0 = arith.constant 0 : i32
    %c0_i32_1 = arith.constant 0 : i32
    return %c0_i32, %c0_i32_0 : i32, i32
  }
  func.func @transform_20(%arg0: i32) -> (i32, i32) {
    %c0_i32 = arith.constant 0 : i32
    %c0_i32_0 = arith.constant 0 : i32
    %c0_i32_1 = arith.constant 0 : i32
    return %c0_i32, %c0_i32_0 : i32, i32
  }
  func.func @transform_21(%arg0: i32) -> (i32, i32) {
    %c0_i32 = arith.constant 0 : i32
    %c0_i32_0 = arith.constant 0 : i32
    %c0_i32_1 = arith.constant 0 : i32
    return %c0_i32, %c0_i32_0 : i32, i32
  }
  func.func @transform_22(%arg0: i32) -> (i32, i32) {
    %c0_i32 = arith.constant 0 : i32
    %c0_i32_0 = arith.constant 0 : i32
    %c0_i32_1 = arith.constant 0 : i32
    return %c0_i32, %c0_i32_0 : i32, i32
  }
  func.func @transform_23(%arg0: i32) -> (i32, i32) {
    %c0_i32 = arith.constant 0 : i32
    %c0_i32_0 = arith.constant 0 : i32
    %c0_i32_1 = arith.constant 0 : i32
    return %c0_i32, %c0_i32_0 : i32, i32
  }
  func.func @transform_24(%arg0: i32) -> (i32, i32) {
    %c0_i32 = arith.constant 0 : i32
    %c0_i32_0 = arith.constant 0 : i32
    %c0_i32_1 = arith.constant 0 : i32
    return %c0_i32, %c0_i32_0 : i32, i32
  }
  func.func @transform_25(%arg0: i32) -> (i32, i32) {
    %c0_i32 = arith.constant 0 : i32
    %c0_i32_0 = arith.constant 0 : i32
    %c0_i32_1 = arith.constant 0 : i32
    return %c0_i32, %c0_i32_0 : i32, i32
  }
  func.func @transform_26(%arg0: i32) -> (i32, i32) {
    %c0_i32 = arith.constant 0 : i32
    %c0_i32_0 = arith.constant 0 : i32
    %c0_i32_1 = arith.constant 0 : i32
    return %c0_i32, %c0_i32_0 : i32, i32
  }
  func.func @transform_27(%arg0: i32) -> (i32, i32) {
    %c0_i32 = arith.constant 0 : i32
    %c0_i32_0 = arith.constant 0 : i32
    %c0_i32_1 = arith.constant 0 : i32
    return %c0_i32, %c0_i32_0 : i32, i32
  }
  func.func @transform_28(%arg0: i32) -> (i32, i32) {
    %c0_i32 = arith.constant 0 : i32
    %c0_i32_0 = arith.constant 0 : i32
    %c0_i32_1 = arith.constant 0 : i32
    return %c0_i32, %c0_i32_0 : i32, i32
  }
  func.func @transform_29(%arg0: i32) -> (i32, i32) {
    %c0_i32 = arith.constant 0 : i32
    %c0_i32_0 = arith.constant 0 : i32
    %c0_i32_1 = arith.constant 0 : i32
    return %c0_i32, %c0_i32_0 : i32, i32
  }
  func.func @transform_30(%arg0: i32) -> (i32, i32) {
    %c0_i32 = arith.constant 0 : i32
    %c0_i32_0 = arith.constant 0 : i32
    %c0_i32_1 = arith.constant 0 : i32
    return %c0_i32, %c0_i32_0 : i32, i32
  }
  func.func @transform_31(%arg0: i32) -> (i32, i32, i32) {
    %c0_i32 = arith.constant 0 : i32
    %c0_i32_0 = arith.constant 0 : i32
    %c0_i32_1 = arith.constant 0 : i32
    return %arg0, %c0_i32, %c0_i32_0 : i32, i32, i32
  }
}

</mosaic_0001>

<bundles_post_ra>
// kernel: block_forward_pallas.1
= control target key start
LH: loop header
LB: loop body
LE: loop exit
PB: predicated region body
PF: predicated region fallthrough
CT: control target
= control target key end

     0   :  { %s7656_s6 = smov 1   ;;  %s7657_s10 = smov 2   ;;  %s10098_s0 = inlined_call_operand.smem [shape: u32[32], index: -1, kind: input, shape index: {}] }
   0x1   :  { %s7733_s5 = sld [smem:[%s10098_s0]]   ;;  %s7658_s14 = smov 3  }
   0x2   :  { %s7738_s9 = sld [smem:[%s10098_s0 + %s7656_s6]]   ;;  %s7659_s18 = smov 4  }
   0x3   :  { %s7743_s13 = sld [smem:[%s10098_s0 + %s7657_s10]]   ;;  %s7660_s22 = smov 5  }
   0x4   :  { %s7748_s17 = sld [smem:[%s10098_s0 + %s7658_s14]]   ;;  %s7661_s26 = smov 6  }
   0x5   :  { %s7753_s21 = sld [smem:[%s10098_s0 + %s7659_s18]]   ;;  %s7662_s30 = smov 7  }
   0x6   :  { %s7758_s25 = sld [smem:[%s10098_s0 + %s7660_s22]]   ;;  %s7663_s4 = smov 8  }
   0x7   :  { %10126 = sst [smem:[#allocation37_spill]] %s7733_s5  ;;  %s7664_s10 = smov 9  }
   0x8   :  { %10127 = sst [smem:[#allocation38_spill]] %s7738_s9  ;;  %s7665_s15 = smov 10  }
   0x9   :  { %10128 = sst [smem:[#allocation39_spill]] %s7743_s13  ;;  %s7666_s20 = smov 11  }
   0xa   :  { %10129 = sst [smem:[#allocation40_spill]] %s7748_s17  ;;  %s7668_s1 = smov 13  }
   0xb   :  { %10130 = sst [smem:[#allocation41_spill]] %s7753_s21  ;;  %s7669_s7 = smov 14  }
   0xc   :  { %10131 = sst [smem:[#allocation42_spill]] %s7758_s25  ;;  %s7671_s22 = smov 16  }
   0xd   :  { %s7763_s29 = sld [smem:[%s10098_s0 + %s7661_s26]]   ;;  %s7667_s26 = smov 12  }
   0xe   :  { %s7768_s3 = sld [smem:[%s10098_s0 + %s7662_s30]]   ;;  %s7672_s28 = smov 17  }
   0xf   :  { %s7773_s8 = sld [smem:[%s10098_s0 + %s7663_s4]]   ;;  %s7678_s16 = smov 23  }
  0x10   :  { %s7778_s14 = sld [smem:[%s10098_s0 + %s7664_s10]]   ;;  %s7679_s23 = smov 24  }
  0x11   :  { %s7783_s19 = sld [smem:[%s10098_s0 + %s7665_s15]]   ;;  %s7670_s15 = smov 15  }
  0x12   :  { %s7788_s24 = sld [smem:[%s10098_s0 + %s7666_s20]]   ;;  %s7681_s10 = smov 26  }
  0x13   :  { %10132 = sst [smem:[#allocation43_spill]] %s7763_s29 }
  0x14   :  { %10133 = sst [smem:[#allocation44_spill]] %s7768_s3 }
  0x15   :  { %10134 = sst [smem:[#allocation45_spill]] %s7773_s8 }
  0x16   :  { %10135 = sst [smem:[#allocation46_spill]] %s7778_s14 }
  0x17   :  { %10136 = sst [smem:[#allocation47_spill]] %s7783_s19 }
  0x18   :  { %10137 = sst [smem:[#allocation48_spill]] %s7788_s24 }
  0x19   :  { %s7793_s30 = sld [smem:[%s10098_s0 + %s7667_s26]]  }
  0x1a   :  { %s7798_s6 = sld [smem:[%s10098_s0 + %s7668_s1]]   ;;  %s7680_s1 = smov 25  }
  0x1b   :  { %s7803_s12 = sld [smem:[%s10098_s0 + %s7669_s7]]   ;;  %s7673_s7 = smov 18  }
  0x1c   :  { %s7808_s20 = sld [smem:[%s10098_s0 + %s7670_s15]]   ;;  %s7674_s15 = smov 19  }
  0x1d   :  { %s7813_s27 = sld [smem:[%s10098_s0 + %s7671_s22]]   ;;  %s7675_s22 = smov 20  }
  0x1e   :  { %s7818_s4 = sld [smem:[%s10098_s0 + %s7672_s28]]   ;;  %s7676_s28 = smov 21  }
  0x1f   :  { %10138 = sst [smem:[#allocation49_spill]] %s7793_s30 }
  0x20   :  { %10139 = sst [smem:[#allocation50_spill]] %s7798_s6 }
  0x21   :  { %10140 = sst [smem:[#allocation51_spill]] %s7803_s12 }
  0x22   :  { %s7823_s12 = sld [smem:[%s10098_s0 + %s7673_s7]]   ;;  %s7677_s7 = smov 22  }
  0x23   :  { %10141 = sst [smem:[#allocation52_spill]] %s7813_s27 }
  0x24   :  { %10142 = sst [smem:[#allocation53_spill]] %s7818_s4 }
  0x25   :  { %s7828_s30 = sld [smem:[%s10098_s0 + %s7674_s15]]   ;;  %s7686_s15 = smov 31  }
  0x26   :  { %s7833_s24 = sld [smem:[%s10098_s0 + %s7675_s22]]  }
  0x27   :  { %s7838_s27 = sld [smem:[%s10098_s0 + %s7676_s28]]  }
  0x28   :  { %10143 = sst [smem:[#allocation54_spill]] %s7823_s12 }
  0x29   :  { %s6123_s3 = sld [smem:[%s10098_s0 + %s7677_s7]]  }
  0x2a   :  { %s7846_s19 = sld [smem:[%s10098_s0 + %s7678_s16]]   ;;  %s7682_s16 = smov 27  }
  0x2b   :  { %s7851_s14 = sld [smem:[%s10098_s0 + %s7679_s23]]   ;;  %s7683_s23 = smov 28  }
  0x2c   :  { %s7856_s25 = sld [smem:[%s10098_s0 + %s7680_s1]]   ;;  %s7684_s1 = smov 29  }
  0x2d   :  { %s7861_s29 = sld [smem:[%s10098_s0 + %s7681_s10]]   ;;  %s7685_s10 = smov 30  }
  0x2e   :  { %s7866_s8 = sld [smem:[%s10098_s0 + %s7682_s16]]  }
  0x2f   :  { %s7871_s21 = sld [smem:[%s10098_s0 + %s7683_s23]]   ;;  %v68_v0 = vstv %s6123_s3 }
  0x30   :  { %s7876_s7 = sld [smem:[%s10098_s0 + %s7684_s1]]   ;;  %69 = vst [vmem:[#allocation3] sm:$0x1] %v68_v0 }
  0x31   :  { %10144 = sst [smem:[#allocation55_spill]] %s7851_s14 }
  0x32   :  { %10145 = sst [smem:[#allocation56_spill]] %s7856_s25 }
  0x33   :  { %s7881_s16 = sld [smem:[%s10098_s0 + %s7685_s10]]  }
  0x34   :  { %10146 = sst [smem:[#allocation57_spill]] %s7866_s8 }
  0x35   :  { %s7886_s23 = sld [smem:[%s10098_s0 + %s7686_s15]]  }
  0x36   :  { %10147 = sst [smem:[#allocation58_spill]] %s7876_s7 }
  0x39   :  { %10148 = sst [smem:[#allocation59_spill]] %s7881_s16 }
  0x3b   :  { %10149 = sst [smem:[#allocation60_spill]] %s7886_s23 }
  0x3c   :  { %70 = vsyncpa [#allocation5], 0 }
  0x3d   :  { %72 = vsyncpa [#allocation5 + $0x1], 0 }
  0x3e   :  { %73 = vsyncpa [#allocation8], 0 }
  0x3f   :  { %74 = vsyncpa [#allocation11], 0 }
  0x40   :  { %75 = vsyncpa [#allocation14], 0 }
  0x41   :  { %76 = vsyncpa [#allocation17], 0 }
  0x42   :  { %77 = vsyncpa [#allocation20], 0 }
  0x43   :  { %78 = vsyncpa [#allocation23], 0 }
  0x44   :  { %79 = vsyncpa [#allocation26], 0 }
  0x45   :  { %80 = vsyncpa [#allocation6], 0 }
  0x46   :  { %82 = vsyncpa [#allocation6 + $0x1], 0  ;;  %s7888_s25 = smov 0   ;;  %s7890_s3 = smov 0  }
  0x47   :  { %s7892_s22 = smov 0   ;;  %s7894_s8 = smov 0  }
  0x48 LB: > { %s10150_s5 = sld [smem:[#allocation37_spill]]  ;;  %s7912_s26 = sadd.s32 4294967295, %s7654_s8   ;;  %s7650_s22 = sphi %s7892_s22, %s10204_s22   ;;  %s7646_s3 = sphi %s7890_s3, %s10203_s3   ;;  %s7642_s25 = sphi %s7888_s25, %s10202_s25   ;;  %s7654_s8 = sphi %s7894_s8, %s10205_s8  }
  0x49   : > { %s10151_s16 = sld [smem:[#allocation59_spill]]  ;;  %p6135_p0 = scmp.ge.s32.totalorder %s7654_s8, 1 }
  0x4a   : > { %s10152_s14 = sld [smem:[#allocation55_spill]]  ;;  %p10118_p1 = scmp.eq.s32.totalorder %s7912_s26, 0 }
  0x4b   : > { %s10153_s6 = sld [smem:[#allocation50_spill]]  ;;  %p775_p2 = scmp.lt.s32.totalorder %s7654_s8, 3 }
  0x4c   : > { %s10154_s4 = sld [smem:[#allocation53_spill]]  ;;  %s7687_s28 = smov [#allocation7]  }
  0x4d   : > { %s10155_s12 = sld [smem:[#allocation54_spill]]  ;;  %p7917_p3 = pnand %p6135_p0, %p775_p2 }
  0x4e   : > { %s10156_s9 = sld [smem:[#allocation38_spill]]  ;;  %s789_s2 = sshll.u32 %s7687_s28, 4  ;;  %s790_s2 = int_to_ptr.vmem [resolvable:$true] %s789_s2 }
  0x4f   : > { %p6474_p5 = pneg %p7917_p3  ;;  %s847_s10 = sshll.u32 %s7808_s20, 4  ;;  %s7925_s10 = int_to_ptr.hbm [resolvable:$true] %s847_s10 }
  0x50   : > { %s7688_s15 = smov [#allocation10]  }
  0x51   : > { %p7929_p6 = pnand %p6474_p5, %p10118_p1  ;;  %s7933_s18 = sshll.u32 %s7688_s15, 4 }
  0x52   : > { %10159 = sst [smem:[#allocation61_spill]] %s7933_s18 }
  0x53   : > { %s876_s28 = sshll.u32 %s10155_s12, 4  ;;  %p7942_p8 = pneg %p7929_p6  ;;  %s7937_s28 = int_to_ptr.hbm [resolvable:$true] %s876_s28 }
  0x54   : > { %s787_s0 = sshll.u32 %s10156_s9, 4  ;;  %s7147_s15 = scalar_lea.hbm %s10156_s9, 4  ;;  %s7909_s0 = int_to_ptr.hbm [resolvable:$true] %s787_s0 }
  0x55   : > { %s7140_s23 = sshra.s32 %s7909_s0, 4  ;;  %s7141_s23 = int_to_ptr.hbm [resolvable:$true] %s7140_s23 }
  0x56   : > { %s7142_s7 = scalar_lea.hbm %s7141_s23, 4  ;;  %p7148_p11 = scmp.lt.s32.totalorder %s7141_s23, %s10156_s9 }
  0x57   : > { %p7143_p7 = scmp.ne.s32.totalorder %s7141_s23, %s7142_s7  ;;  %p7149_p12 = scmp.lt.s32.totalorder %s7147_s15, %s7142_s7 }
  0x59   : > { %p7145_p9 = pnand %p7942_p8, %p7143_p7  ;;  %p7150_p13 = por %p7149_p12, %p7148_p11 }
  0x5b   : > { %p7146_p10 = pneg %p7145_p9 }
  0x5d   : > { %p7151_p0 = pnand %p7150_p13, %p7146_p10 }
  0x5f   : > { %7154 = shalt.err (!%p7151_p0)
}
  0x60   : > { %6477 = dma.hbm_to_vmem [thread:$0]  (!%p7929_p6), %s7909_s0, 64, %s790_s2, [#allocation8]  }
  0x61   : > { %s7170_s18 = sshra.s32 %s7925_s10, 4  ;;  %s7177_s23 = scalar_lea.hbm %s7808_s20, 1  ;;  %s7171_s18 = int_to_ptr.hbm [resolvable:$true] %s7170_s18 }
  0x62   : > { %s7172_s13 = scalar_lea.hbm %s7171_s18, 1  ;;  %p7178_p9 = scmp.lt.s32.totalorder %s7171_s18, %s7808_s20 }
  0x63   : > { %p7173_p2 = scmp.ne.s32.totalorder %s7171_s18, %s7172_s13  ;;  %p7179_p11 = scmp.lt.s32.totalorder %s7177_s23, %s7172_s13 }
  0x65   : > { %p7175_p5 = pnand %p7173_p2, %p7942_p8  ;;  %p7180_p10 = por %p7179_p11, %p7178_p9 }
  0x67   : > { %p7176_p7 = pneg %p7175_p5 }
  0x69   : > { %p7181_p12 = pnand %p7180_p10, %p7176_p7 }
  0x6b   : > { %7184 = shalt.err (!%p7181_p12)
}
  0x6c   : > { %s10161_s7 = sld [smem:[#allocation61_spill]]  ;;  %s900_s0 = sshll.u32 %s7833_s24, 4  ;;  %s7964_s0 = int_to_ptr.hbm [resolvable:$true] %s900_s0 }
  0x6d   : > { %s7689_s2 = smov [#allocation13]   ;;  %s7200_s13 = sshra.s32 %s7937_s28, 4  ;;  %s7201_s13 = int_to_ptr.hbm [resolvable:$true] %s7200_s13 }
  0x6e   : > { %s878_s9 = sshll.u32 %s7689_s2, 4  ;;  %s7202_s18 = scalar_lea.hbm %s7201_s13, 1  ;;  %s879_s9 = int_to_ptr.vmem [resolvable:$true] %s878_s9 }
  0x6f   : > { %p7203_p13 = scmp.ne.s32.totalorder %s7201_s13, %s7202_s18  ;;  %s7207_s23 = scalar_lea.hbm %s10155_s12, 1 }
  0x70   : > { %p7208_p5 = scmp.lt.s32.totalorder %s7201_s13, %s10155_s12  ;;  %p7209_p7 = scmp.lt.s32.totalorder %s7207_s23, %s7202_s18 }
  0x71   : > { %p7205_p0 = pnand %p7203_p13, %p7942_p8 }
  0x72   : > { %s10162_s15 = int_to_ptr.vmem [resolvable:$true] %s10161_s7  ;;  %p7210_p9 = por %p7209_p7, %p7208_p5 }
  0x73   : > { %6483 = dma.hbm_to_vmem [thread:$0]  (!%p7929_p6), %s7925_s10, 16, %s10162_s15, [#allocation11]  }
  0x74   : > { %p7206_p2 = pneg %p7205_p0 }
  0x76   : > { %p7211_p11 = pnand %p7210_p9, %p7206_p2 }
  0x78   : > { %7214 = shalt.err (!%p7211_p11)
}
  0x79   : > { %6489 = dma.hbm_to_vmem [thread:$0]  (!%p7929_p6), %s7937_s28, 16, %s879_s9, [#allocation14]  }
  0x7a   : > { %s7690_s10 = smov [#allocation16]   ;;  %s7230_s15 = sshra.s32 %s7964_s0, 4  ;;  %s7231_s15 = int_to_ptr.hbm [resolvable:$true] %s7230_s15 }
  0x7b   : > { %s902_s7 = sshll.u32 %s7690_s10, 4  ;;  %s7232_s2 = scalar_lea.hbm %s7231_s15, 1  ;;  %s903_s7 = int_to_ptr.vmem [resolvable:$true] %s902_s7 }
  0x7c   : > { %p7233_p10 = scmp.ne.s32.totalorder %s7231_s15, %s7232_s2  ;;  %s7237_s13 = scalar_lea.hbm %s7833_s24, 1 }
  0x7d   : > { %p7238_p0 = scmp.lt.s32.totalorder %s7231_s15, %s7833_s24  ;;  %p7239_p2 = scmp.lt.s32.totalorder %s7237_s13, %s7232_s2 }
  0x7e   : > { %p7235_p12 = pnand %p7233_p10, %p7942_p8 }
  0x7f   : > { %p7240_p5 = por %p7239_p2, %p7238_p0 }
  0x80   : > { %p7236_p13 = pneg %p7235_p12 }
  0x82   : > { %p7241_p7 = pnand %p7240_p5, %p7236_p13 }
  0x84   : > { %7244 = shalt.err (!%p7241_p7)
}
  0x85   : > { %6495 = dma.hbm_to_vmem [thread:$0]  (!%p7929_p6), %s7964_s0, 16, %s903_s7, [#allocation17]  }
  0x86   : > { %s926_s9 = sshll.u32 %s7846_s19, 4  ;;  %s7691_s28 = smov [#allocation19]   ;;  %s927_s9 = int_to_ptr.hbm [resolvable:$true] %s926_s9 }
  0x87   : > { %s928_s18 = sshll.u32 %s7691_s28, 4  ;;  %s956_s23 = sshll.u32 %s7861_s29, 4  ;;  %s929_s18 = int_to_ptr.vmem [resolvable:$true] %s928_s18  ;;  %s957_s23 = int_to_ptr.hbm [resolvable:$true] %s956_s23 }
  0x88   : > { %s7260_s10 = sshra.s32 %s927_s9, 4  ;;  %s7267_s2 = scalar_lea.hbm %s7846_s19, 16  ;;  %s7261_s10 = int_to_ptr.hbm [resolvable:$true] %s7260_s10 }
  0x89   : > { %s7262_s15 = scalar_lea.hbm %s7261_s10, 16  ;;  %p7268_p12 = scmp.lt.s32.totalorder %s7261_s10, %s7846_s19 }
  0x8a   : > { %p7263_p9 = scmp.ne.s32.totalorder %s7261_s10, %s7262_s15  ;;  %p7269_p13 = scmp.lt.s32.totalorder %s7267_s2, %s7262_s15 }
  0x8c   : > { %p7265_p11 = pnand %p7263_p9, %p7942_p8  ;;  %p7270_p0 = por %p7269_p13, %p7268_p12 }
  0x8e   : > { %p7266_p10 = pneg %p7265_p11 }
  0x90   : > { %p7271_p2 = pnand %p7270_p0, %p7266_p10 }
  0x92   : > { %7274 = shalt.err (!%p7271_p2)
}
  0x93   : > { %s10113_s0 = smov 64   ;;  %s7693_s7 = smov 4  }
  0x94   : > { %6501 = dma.hbm_to_vmem [thread:$0]  (!%p7929_p6), %s927_s9, 256, %s929_s18, [#allocation20], %s10113_s0, %s10113_s0, %s7693_s7  }
  0x95   : > { %s7694_s13 = smov [#allocation22]   ;;  %s832_s10 = sshll.u32 %s10153_s6, 4  ;;  %s7994_s10 = int_to_ptr.hbm [resolvable:$true] %s832_s10 }
  0x96   : > { %s958_s28 = sshll.u32 %s7694_s13, 4  ;;  %s7290_s15 = sshra.s32 %s957_s23, 4  ;;  %s959_s28 = int_to_ptr.vmem [resolvable:$true] %s958_s28  ;;  %s7291_s15 = int_to_ptr.hbm [resolvable:$true] %s7290_s15 }
  0x97   : > { %s7292_s2 = scalar_lea.hbm %s7291_s15, 1  ;;  %s7297_s12 = scalar_lea.hbm %s7861_s29, 1 }
  0x98   : > { %p7293_p5 = scmp.ne.s32.totalorder %s7291_s15, %s7292_s2  ;;  %p7298_p11 = scmp.lt.s32.totalorder %s7291_s15, %s7861_s29 }
  0x99   : > { %p7299_p10 = scmp.lt.s32.totalorder %s7297_s12, %s7292_s2 }
  0x9a   : > { %p7295_p7 = pnand %p7293_p5, %p7942_p8 }
  0x9b   : > { %p7300_p12 = por %p7299_p10, %p7298_p11 }
  0x9c   : > { %p7296_p9 = pneg %p7295_p7 }
  0x9e   : > { %p7301_p13 = pnand %p7300_p12, %p7296_p9 }
  0xa0   : > { %7304 = shalt.err (!%p7301_p13)
}
  0xa1   : > { %6507 = dma.hbm_to_vmem [thread:$0]  (!%p7929_p6), %s957_s23, 16, %s959_s28, [#allocation23]  }
  0xa2   : > { %s861_s9 = sshll.u32 %s10154_s4, 4  ;;  %s7695_s18 = smov [#allocation9]   ;;  %s8003_s9 = int_to_ptr.hbm [resolvable:$true] %s861_s9 }
  0xa3   : > { %s834_s13 = sshll.u32 %s7695_s18, 4  ;;  %s7320_s0 = sshra.s32 %s7994_s10, 4  ;;  %s835_s13 = int_to_ptr.vmem [resolvable:$true] %s834_s13  ;;  %s7321_s0 = int_to_ptr.hbm [resolvable:$true] %s7320_s0 }
  0xa4   : > { %s7322_s12 = scalar_lea.hbm %s7321_s0, 1  ;;  %s7327_s15 = scalar_lea.hbm %s10153_s6, 1 }
  0xa5   : > { %p7323_p0 = scmp.ne.s32.totalorder %s7321_s0, %s7322_s12  ;;  %p7328_p7 = scmp.lt.s32.totalorder %s7321_s0, %s10153_s6 }
  0xa6   : > { %p7329_p9 = scmp.lt.s32.totalorder %s7327_s15, %s7322_s12 }
  0xa7   : > { %p7325_p2 = pnand %p7323_p0, %p7942_p8 }
  0xa8   : > { %p7330_p11 = por %p7329_p9, %p7328_p7 }
  0xa9   : > { %p7326_p5 = pneg %p7325_p2 }
  0xab   : > { %p7331_p10 = pnand %p7330_p11, %p7326_p5 }
  0xad   : > { %7334 = shalt.err (!%p7331_p10)
}
  0xae   : > { %6480 = dma.hbm_to_vmem [thread:$0]  (!%p7929_p6), %s7994_s10, 16, %s835_s13, [#allocation8]  }
  0xaf   : > { %s7696_s23 = smov [#allocation12]   ;;  %s888_s2 = sshll.u32 %s7828_s30, 4  ;;  %s8014_s2 = int_to_ptr.hbm [resolvable:$true] %s888_s2 }
  0xb0   : > { %s863_s28 = sshll.u32 %s7696_s23, 4  ;;  %s7350_s0 = sshra.s32 %s8003_s9, 4  ;;  %s864_s28 = int_to_ptr.vmem [resolvable:$true] %s863_s28  ;;  %s7351_s0 = int_to_ptr.hbm [resolvable:$true] %s7350_s0 }
  0xb1   : > { %s7352_s18 = scalar_lea.hbm %s7351_s0, 16  ;;  %s7357_s12 = scalar_lea.hbm %s10154_s4, 16 }
  0xb2   : > { %p7353_p12 = scmp.ne.s32.totalorder %s7351_s0, %s7352_s18  ;;  %p7358_p2 = scmp.lt.s32.totalorder %s7351_s0, %s10154_s4 }
  0xb3   : > { %p7359_p5 = scmp.lt.s32.totalorder %s7357_s12, %s7352_s18 }
  0xb4   : > { %p7355_p13 = pnand %p7353_p12, %p7942_p8 }
  0xb5   : > { %p7360_p7 = por %p7359_p5, %p7358_p2 }
  0xb6   : > { %p7356_p0 = pneg %p7355_p13 }
  0xb8   : > { %p7361_p9 = pnand %p7360_p7, %p7356_p0 }
  0xba   : > { %7364 = shalt.err (!%p7361_p9)
}
  0xbb   : > { %s10163_s10 = smov 64   ;;  %s912_s13 = sshll.u32 %s7838_s27, 4  ;;  %s8028_s13 = int_to_ptr.hbm [resolvable:$true] %s912_s13 }
  0xbc   : > { %6486 = dma.hbm_to_vmem [thread:$0]  (!%p7929_p6), %s8003_s9, 256, %s864_s28, [#allocation11], %s10163_s10, %s10163_s10, %s7693_s7  }
  0xbd   : > { %s7697_s15 = smov [#allocation15]   ;;  %s7380_s0 = sshra.s32 %s8014_s2, 4  ;;  %s7381_s0 = int_to_ptr.hbm [resolvable:$true] %s7380_s0 }
  0xbe   : > { %s890_s23 = sshll.u32 %s7697_s15, 4  ;;  %s7382_s18 = scalar_lea.hbm %s7381_s0, 1  ;;  %s891_s23 = int_to_ptr.vmem [resolvable:$true] %s890_s23 }
  0xbf   : > { %p7383_p11 = scmp.ne.s32.totalorder %s7381_s0, %s7382_s18  ;;  %s7387_s12 = scalar_lea.hbm %s7828_s30, 1 }
  0xc0   : > { %p7388_p13 = scmp.lt.s32.totalorder %s7381_s0, %s7828_s30  ;;  %p7389_p0 = scmp.lt.s32.totalorder %s7387_s12, %s7382_s18 }
  0xc1   : > { %p7385_p10 = pnand %p7383_p11, %p7942_p8 }
  0xc2   : > { %p7390_p2 = por %p7389_p0, %p7388_p13 }
  0xc3   : > { %p7386_p12 = pneg %p7385_p10 }
  0xc5   : > { %p7391_p5 = pnand %p7390_p2, %p7386_p12 }
  0xc7   : > { %7394 = shalt.err (!%p7391_p5)
}
  0xc8   : > { %6492 = dma.hbm_to_vmem [thread:$0]  (!%p7929_p6), %s8014_s2, 16, %s891_s23, [#allocation14]  }
  0xc9   : > { %s7698_s7 = smov [#allocation18]   ;;  %s941_s28 = sshll.u32 %s10152_s14, 4  ;;  %s8039_s28 = int_to_ptr.hbm [resolvable:$true] %s941_s28 }
  0xca   : > { %s914_s9 = sshll.u32 %s7698_s7, 4  ;;  %s7410_s10 = sshra.s32 %s8028_s13, 4  ;;  %s915_s9 = int_to_ptr.vmem [resolvable:$true] %s914_s9  ;;  %s7411_s10 = int_to_ptr.hbm [resolvable:$true] %s7410_s10 }
  0xcb   : > { %s7412_s15 = scalar_lea.hbm %s7411_s10, 1  ;;  %s7417_s0 = scalar_lea.hbm %s7838_s27, 1 }
  0xcc   : > { %p7413_p7 = scmp.ne.s32.totalorder %s7411_s10, %s7412_s15  ;;  %p7418_p10 = scmp.lt.s32.totalorder %s7411_s10, %s7838_s27 }
  0xcd   : > { %p7419_p12 = scmp.lt.s32.totalorder %s7417_s0, %s7412_s15 }
  0xce   : > { %p7415_p9 = pnand %p7413_p7, %p7942_p8 }
  0xcf   : > { %p7420_p13 = por %p7419_p12, %p7418_p10 }
  0xd0   : > { %p7416_p11 = pneg %p7415_p9 }
  0xd2   : > { %p7421_p0 = pnand %p7420_p13, %p7416_p11 }
  0xd4   : > { %7424 = shalt.err (!%p7421_p0)
}
  0xd5   : > { %6498 = dma.hbm_to_vmem [thread:$0]  (!%p7929_p6), %s8028_s13, 16, %s915_s9, [#allocation17]  }
  0xd6   : > { %s971_s2 = sshll.u32 %s7871_s21, 4  ;;  %s7699_s23 = smov [#allocation21]   ;;  %s8050_s2 = int_to_ptr.hbm [resolvable:$true] %s971_s2 }
  0xd7   : > { %s943_s18 = sshll.u32 %s7699_s23, 4  ;;  %s7440_s12 = sshra.s32 %s8039_s28, 4  ;;  %s944_s18 = int_to_ptr.vmem [resolvable:$true] %s943_s18  ;;  %s7441_s12 = int_to_ptr.hbm [resolvable:$true] %s7440_s12 }
  0xd8   : > { %s7442_s7 = scalar_lea.hbm %s7441_s12, 1  ;;  %s7447_s10 = scalar_lea.hbm %s10152_s14, 1 }
  0xd9   : > { %p7443_p2 = scmp.ne.s32.totalorder %s7441_s12, %s7442_s7  ;;  %p7448_p9 = scmp.lt.s32.totalorder %s7441_s12, %s10152_s14 }
  0xda   : > { %p7449_p11 = scmp.lt.s32.totalorder %s7447_s10, %s7442_s7 }
  0xdb   : > { %p7445_p5 = pnand %p7443_p2, %p7942_p8 }
  0xdc   : > { %p7450_p10 = por %p7449_p11, %p7448_p9 }
  0xdd   : > { %p7446_p7 = pneg %p7445_p5 }
  0xdf   : > { %p7451_p12 = pnand %p7450_p10, %p7446_p7 }
  0xe1   : > { %7454 = shalt.err (!%p7451_p12)
}
  0xe2   : > { %6504 = dma.hbm_to_vmem [thread:$0]  (!%p7929_p6), %s8039_s28, 16, %s944_s18, [#allocation20]  }
  0xe3   : > { %s7700_s13 = smov [#allocation24]   ;;  %s986_s15 = sshll.u32 %s10151_s16, 4  ;;  %s8061_s15 = int_to_ptr.hbm [resolvable:$true] %s986_s15 }
  0xe4   : > { %s973_s9 = sshll.u32 %s7700_s13, 4  ;;  %s7470_s0 = sshra.s32 %s8050_s2, 4  ;;  %s974_s9 = int_to_ptr.vmem [resolvable:$true] %s973_s9  ;;  %s7471_s0 = int_to_ptr.hbm [resolvable:$true] %s7470_s0 }
  0xe5   : > { %s7472_s23 = scalar_lea.hbm %s7471_s0, 1  ;;  %s7477_s12 = scalar_lea.hbm %s7871_s21, 1 }
  0xe6   : > { %p7473_p13 = scmp.ne.s32.totalorder %s7471_s0, %s7472_s23  ;;  %p7478_p5 = scmp.lt.s32.totalorder %s7471_s0, %s7871_s21 }
  0xe7   : > { %p7479_p7 = scmp.lt.s32.totalorder %s7477_s12, %s7472_s23 }
  0xe8   : > { %p7475_p0 = pnand %p7473_p13, %p7942_p8 }
  0xe9   : > { %p7480_p9 = por %p7479_p7, %p7478_p5 }
  0xea   : > { %p7476_p2 = pneg %p7475_p0 }
  0xec   : > { %p7481_p11 = pnand %p7480_p9, %p7476_p2 }
  0xee   : > { %7484 = shalt.err (!%p7481_p11)
}
  0xef   : > { %6510 = dma.hbm_to_vmem [thread:$0]  (!%p7929_p6), %s8050_s2, 16, %s974_s9, [#allocation23]  }
  0xf0   : > { %s7701_s28 = smov [#allocation25]   ;;  %s7500_s7 = sshra.s32 %s8061_s15, 4  ;;  %s7501_s7 = int_to_ptr.hbm [resolvable:$true] %s7500_s7 }
  0xf1   : > { %s988_s18 = sshll.u32 %s7701_s28, 4  ;;  %s7502_s10 = scalar_lea.hbm %s7501_s7, 1  ;;  %s989_s18 = int_to_ptr.vmem [resolvable:$true] %s988_s18 }
  0xf2   : > { %p7503_p10 = scmp.ne.s32.totalorder %s7501_s7, %s7502_s10  ;;  %s7507_s13 = scalar_lea.hbm %s10151_s16, 1 }
  0xf3   : > { %p7508_p0 = scmp.lt.s32.totalorder %s7501_s7, %s10151_s16  ;;  %p7509_p2 = scmp.lt.s32.totalorder %s7507_s13, %s7502_s10 }
  0xf4   : > { %p7505_p12 = pnand %p7503_p10, %p7942_p8 }
  0xf5   : > { %p7510_p5 = por %p7509_p2, %p7508_p0 }
  0xf6   : > { %p7506_p13 = pneg %p7505_p12 }
  0xf8   : > { %p7511_p7 = pnand %p7510_p5, %p7506_p13 }
  0xfa   : > { %7514 = shalt.err (!%p7511_p7)
}
  0xfb   : > { %6513 = dma.hbm_to_vmem [thread:$0]  (!%p7929_p6), %s8061_s15, 16, %s989_s18, [#allocation26]  }
  0xfc   : > { %s6134_s17 = sadd.s32 4294967294, %s7654_s8   ;;  %s8081_s2 = sadd.s32 1, %s7654_s8  }
  0xfd   : > { %s95_s11 = sadd.s32 1, %s7650_s22  ;;  %s92_s9 = ssub.s32 %s7654_s8, %s8081_s2 }
  0xfe   : > { %p102_p8 = scmp.ne.s32.totalorder %s7650_s22, %s7646_s3  ;;  %p93_p9 = scmp.eq.s32.totalorder %s92_s9, 0 }
  0xff   : > { %p103_p11 = scmp.eq.s32.totalorder %s7654_s8, 0  ;;  %p108_p10 = scmp.ne.s32.totalorder %s7646_s3, %s7642_s25 }
 0x100   : > { %p762_p12 = scmp.eq.s32.totalorder %s7912_s26, 1  ;;  %p768_p2 = scmp.eq.s32.totalorder %s6134_s17, 1 }
 0x101   : > { %s8093_s0 = scalar_select %p93_p9, %s7650_s22, %s95_s11  }
 0x102   : > { %p8095_p13 = por %p103_p11, %p102_p8  ;;  %p8101_p6 = por %p10118_p1, %p108_p10 }
 0x103   : > { %p8105_p0 = por %p762_p12, %p102_p8  ;;  %p6535_p5 = scmp.lt.s32.totalorder %s7654_s8, 2 }
 0x104   : > { %s999_s28 = sand.u32 1, %s7650_s22   ;;  %p8111_p7 = por %p768_p2, %p108_p10 }
 0x105   : > { %s6150_s7 = sshll.u32 %s999_s28, 6  ;;  %s6380_s10 = sshll.u32 %s7654_s8, 6 }
 0x106   : > { %s10167_s18 = scalar_select %p8111_p7, 1, 0 }
 0x107   : > { %s1008_s13 = scalar_lea.hbm %s10150_s5, %s6380_s10  ;;  %s1003_s9 = scalar_lea.vmem [#allocation4], %s6150_s7 }
 0x108   : > { %s1009_s11 = sshll.u32 %s1008_s13, 4  ;;  %s1011_s4 = sshll.u32 %s1003_s9, 4  ;;  %s1010_s11 = int_to_ptr.hbm [resolvable:$true] %s1009_s11  ;;  %s1012_s4 = int_to_ptr.vmem [resolvable:$true] %s1011_s4 }
 0x109   : > { %p8119_p8 = pnand %p6535_p5, %p8095_p13  ;;  %s1000_s17 = scalar_lea.sflag [#allocation5], %s999_s28 }
 0x10a   : > { %s7530_s14 = sshra.s32 %s1010_s11, 4  ;;  %s7537_s10 = scalar_lea.hbm %s10150_s5, 128  ;;  %s7531_s14 = int_to_ptr.hbm [resolvable:$true] %s7530_s14 }
 0x10b   : > { %s7532_s16 = scalar_lea.hbm %s7531_s14, 64  ;;  %p7534_p11 = pneg %p8119_p8 }
 0x10c   : > { %p7533_p9 = scmp.ne.s32.totalorder %s7531_s14, %s7532_s16  ;;  %p7538_p2 = scmp.lt.s32.totalorder %s7531_s14, %s10150_s5 }
 0x10d   : > { %p7539_p4 = scmp.lt.s32.totalorder %s7537_s10, %s7532_s16 }
 0x10e   : > { %p7535_p10 = pnand %p7534_p11, %p7533_p9 }
 0x10f   : > { %p7540_p1 = por %p7539_p4, %p7538_p2 }
 0x110   : > { %p7536_p12 = pneg %p7535_p10 }
 0x112   : > { %p7541_p7 = pnand %p7540_p1, %p7536_p12 }
 0x114   : > { %7544 = shalt.err (!%p7541_p7)
}
 0x115   : > { %s7702_s23 = smov 128   ;;  %s7703_s7 = smov 8  }
 0x116   : > { %6517 = dma.hbm_to_vmem [thread:$0]  (!%p8119_p8), %s1010_s11, 1024, %s1012_s4, %s1000_s17, %s7702_s23, %s7702_s23, %s7703_s7  }
 0x117   : > { %1023 = sbr.rel (%p7917_p3) target bundleno = 5674 (0x162a), region = 144  ;;  %s8132_s28 = sand.u32 (!%p7917_p3), 1, %s7646_s3  }
 0x118   : > { %s6154_s14 = sshll.u32 (!%p7917_p3), %s8132_s28, 6  ;;  %s1026_s16 = scalar_lea.sflag (!%p7917_p3), [#allocation5], %s8132_s28 }
 0x119   : > { %s8138_s13 = scalar_lea.vmem (!%p7917_p3), [#allocation4], %s6154_s14 }
 0x11c   : > { %7605 = dma.done.wait (%p8101_p6), %s1026_s16, 1024  }
 0x11d   : > { %7607 = vsyncadd (%p8101_p6), %s1026_s16, 4294966272  ;;  %p10169_p1 = scmp.eq.s32.totalorder %s7912_s26, 0 }
 0x11f   : > { %7609 = dma.done.wait (%p10169_p1), [#allocation8], 80   ;;  %p10170_p3 = pmov %p10169_p1 }
 0x120   : > { %p10171_p4 = pmov %p10169_p1 }
 0x121   : > { %7611 = vsyncadd (%p10170_p3), [#allocation8], 4294967216 }
 0x122   : > { %7613 = dma.done.wait (%p10171_p4), [#allocation11], 272   ;;  %p10172_p13 = pmov %p10169_p1 }
 0x123   : > { %p10173_p5 = pmov %p10169_p1 }
 0x124   : > { %7615 = vsyncadd (%p10172_p13), [#allocation11], 4294967024 }
 0x125   : > { %7617 = dma.done.wait (%p10173_p5), [#allocation14], 32   ;;  %p10174_p7 = pmov %p10169_p1 }
 0x126   : > { %p10175_p6 = pmov %p10169_p1 }
 0x127   : > { %7619 = vsyncadd (%p10174_p7), [#allocation14], 4294967264 }
 0x128   : > { %7621 = dma.done.wait (%p10175_p6), [#allocation17], 32   ;;  %p10176_p8 = pmov %p10169_p1 }
 0x129   : > { %p10177_p9 = pmov %p10169_p1 }
 0x12a   : > { %7623 = vsyncadd (%p10176_p8), [#allocation17], 4294967264 }
 0x12b   : > { %7625 = dma.done.wait (%p10177_p9), [#allocation20], 272   ;;  %p10178_p11 = pmov %p10169_p1 }
 0x12c   : > { %p10179_p10 = pmov %p10169_p1 }
 0x12d   : > { %7627 = vsyncadd (%p10178_p11), [#allocation20], 4294967024 }
 0x12e   : > { %7629 = dma.done.wait (%p10179_p10), [#allocation23], 32   ;;  %p10180_p12 = pmov %p10169_p1 }
 0x12f   : > { %p10181_p2 = pmov %p10169_p1 }
 0x130   : > { %7631 = vsyncadd (%p10180_p12), [#allocation23], 4294967264 }
 0x131   : > { %7633 = dma.done.wait (%p10181_p2), [#allocation26], 16  }
 0x132   : > { %7635 = vsyncadd (%p10169_p1), [#allocation26], 4294967280  ;;  %vm1184_vm0 = vcmask 261120   ;;  %v1179_v1 = vld [vmem:[%s8138_s13 + $0x20] sm:$0xff]  ;;  %v1177_v2 = vld [vmem:[%s8138_s13 + $0x10] sm:$0xff]  ;;  %v7704_v15 = vmov 32.0  }
 0x133   : > { %v1175_v3 = vld [vmem:[%s8138_s13] sm:$0xff]  ;;  %v1197_v4 = vsel %vm1184_vm0, %v1179_v1, 0.0  ;;  %v1191_v5 = vsel %vm1184_vm0, %v1177_v2, 0.0  ;;  %v1180_v7 = vld [vmem:[%s8138_s13 + $0x28] sm:$0xff]  ;;  %v1178_v8 = vld [vmem:[%s8138_s13 + $0x18] sm:$0xff]  ;;  %6730 = vrcp.f32 %v7704_v15  ;;  %s10182_s6 = sld [smem:[#allocation39_spill]] }
 0x134   : > { %v1185_v6 = vsel %vm1184_vm0, %v1175_v3, 0.0  ;;  %v1176_v9 = vld [vmem:[%s8138_s13 + $0x8] sm:$0xff]  ;;  %1198 = vadd.xlane.f32.xlu2 %v1197_v4  ;;  %1192 = vadd.xlane.f32.xlu1 %v1191_v5  ;;  %v1200_v10 = vsel %vm1184_vm0, %v1180_v7, 0.0  ;;  %v1194_v11 = vsel %vm1184_vm0, %v1178_v8, 0.0  ;;  %v1181_v13 = vld [vmem:[%s8138_s13 + $0x30] sm:$0xff]  ;;  %v1182_v37 = vld [vmem:[%s8138_s13 + $0x38] sm:$0xff] }
 0x135   : > { %1186 = vadd.xlane.f32.xlu0 %v1185_v6  ;;  %v1188_v12 = vsel %vm1184_vm0, %v1176_v9, 0.0  ;;  %v1203_v14 = vsel %vm1184_vm0, %v1181_v13, 0.0  ;;  %v1206_v42 = vsel %vm1184_vm0, %v1182_v37, 0.0  ;;  %s10183_s4 = sld [smem:[#allocation40_spill]]  ;;  %s7705_s1 = smov 96  }
 0x136   : > { %s7706_s15 = smov 88   ;;  %s7707_s11 = smov 64  }
 0x137   : > { %s7708_s9 = smov 104   ;;  %s7709_s17 = smov 120  }
 0x138   : > { %s7710_s10 = smov 80   ;;  %s7711_s23 = smov 72  }
 0x139   : > { %v6731_v16 = vpop.eup %6730  ;;  %v6382_v59 = vld [vmem:[%s10182_s6 + $0x8] sm:$0xff]  ;;  %v6381_v60 = vld [vmem:[%s10182_s6] sm:$0xff]  ;;  %s7712_s7 = smov 112   ;;  %s7713_s16 = smov 56  }
 0x13a   : > { %v1210_v17 = vmul.f32 32.0, %v6731_v16  ;;  %vm1214_vm1 = vweird.f32 %v6731_v16  ;;  %1410 = vmatpush.bf16.msra.mxu0 %v6382_v59  ;;  %s5891_s6 = scalar_lea.sflag [#allocation6], %s8132_s28 }
 0x13c   : > { %1201 = vadd.xlane.f32.xlu2 %v1200_v10  ;;  %1195 = vadd.xlane.f32.xlu1 %v1194_v11  ;;  %v1211_v18 = vsub.f32 1.0, %v1210_v17 }
 0x13d   : > { %1189 = vadd.xlane.f32.xlu0 %v1188_v12 }
 0x13e   : > { %v1212_v19 = vmul.f32 %v6731_v16, %v1211_v18  ;;  %1411 = vmatpush.bf16.msra.mxu0 %v6381_v60 }
 0x140   : > { %v1213_v20 = vadd.f32 %v6731_v16, %v1212_v19 }
 0x142   : > { %v8186_v21 = vsel %vm1214_vm1, %v6731_v16, %v1213_v20 }
 0x144   : > { %1204 = vadd.xlane.f32.xlu2 %v1203_v14 }
 0x1a7   : > { %v1199_v22 = vpop.xlane.xlu2 %1198  ;;  %v1193_v23 = vpop.xlane.xlu1 %1192 }
 0x1a8   : > { %v1187_v24 = vpop.xlane.xlu0 %1186  ;;  %v1220_v33 = vmul.f32 %v8186_v21, %v1199_v22  ;;  %v1218_v34 = vmul.f32 %v8186_v21, %v1193_v23 }
 0x1a9   : > { %v1216_v25 = vmul.f32 %v8186_v21, %v1187_v24 }
 0x1aa   : > { %v8205_v40 = vsub.f32 %v1179_v1, %v1220_v33  ;;  %v8207_v41 = vsub.f32 %v1177_v2, %v1218_v34 }
 0x1ab   : > { %v8189_v26 = vsub.f32 %v1175_v3, %v1216_v25 }
 0x1ac   : > { %v1236_v49 = vmul.f32 %v8205_v40, %v8205_v40  ;;  %v1234_v50 = vmul.f32 %v8207_v41, %v8207_v41 }
 0x1ad   : > { %v1232_v27 = vmul.f32 %v8189_v26, %v8189_v26 }
 0x1ae   : > { %v1252_v54 = vsel %vm1184_vm0, %v1236_v49, 0.0  ;;  %v1246_v55 = vsel %vm1184_vm0, %v1234_v50, 0.0 }
 0x1af   : > { %v1202_v28 = vpop.xlane.xlu2 %1201  ;;  %v1196_v29 = vpop.xlane.xlu1 %1195  ;;  %v1240_v30 = vsel %vm1184_vm0, %v1232_v27, 0.0 }
 0x1b0   : > { %v1219_v31 = vmul.f32 %v8186_v21, %v1196_v29  ;;  %1241 = vadd.xlane.f32.xlu0 %v1240_v30  ;;  %v1190_v32 = vpop.xlane.xlu0 %1189  ;;  %v1221_v48 = vmul.f32 %v8186_v21, %v1202_v28 }
 0x1b1   : > { %v1217_v35 = vmul.f32 %v8186_v21, %v1190_v32 }
 0x1b2   : > { %v8198_v36 = vsub.f32 %v1178_v8, %v1219_v31  ;;  %v8224_v53 = vsub.f32 %v1180_v7, %v1221_v48 }
 0x1b3   : > { %v8201_v38 = vsub.f32 %v1176_v9, %v1217_v35 }
 0x1b4   : > { %v1235_v39 = vmul.f32 %v8198_v36, %v8198_v36  ;;  %v1237_v57 = vmul.f32 %v8224_v53, %v8224_v53 }
 0x1b5   : > { %v1233_v43 = vmul.f32 %v8201_v38, %v8201_v38 }
 0x1b6   : > { %v1249_v44 = vsel %vm1184_vm0, %v1235_v39, 0.0  ;;  %v1255_v58 = vsel %vm1184_vm0, %v1237_v57, 0.0 }
 0x1b7   : > { %v1205_v45 = vpop.xlane.xlu2 %1204  ;;  %1250 = vadd.xlane.f32.xlu2 %v1249_v44  ;;  %v1243_v46 = vsel %vm1184_vm0, %v1233_v43, 0.0 }
 0x1b8   : > { %v1222_v47 = vmul.f32 %v8186_v21, %v1205_v45  ;;  %1207 = vadd.xlane.f32.xlu0 %v1206_v42  ;;  %1244 = vadd.xlane.f32.xlu1 %v1243_v46 }
 0x1ba   : > { %v8220_v51 = vsub.f32 %v1181_v13, %v1222_v47 }
 0x1bc   : > { %v1238_v52 = vmul.f32 %v8220_v51, %v8220_v51 }
 0x1be   : > { %v1258_v56 = vsel %vm1184_vm0, %v1238_v52, 0.0 }
 0x1bf   : > { %1259 = vadd.xlane.f32.xlu2 %v1258_v56 }
 0x1c0   : > { %1253 = vadd.xlane.f32.xlu0 %v1252_v54  ;;  %1247 = vadd.xlane.f32.xlu1 %v1246_v55 }
 0x1c8   : > { %1256 = vadd.xlane.f32.xlu1 %v1255_v58 }
 0x223   : > { %v1242_v61 = vpop.xlane.xlu0 %1241 }
 0x224   : > { %v1264_v62 = vmul.f32 %v1242_v61, %v8186_v21 }
 0x226   : > { %v1272_v63 = vadd.f32 1e-05, %v1264_v62 }
 0x228   : > { %6732 = vrsqrt.f32 %v1272_v63  ;;  %vm1286_vm5 = vweird.f32 %v1272_v63 }
 0x22a   : > { %v1251_v0 = vpop.xlane.xlu2 %1250 }
 0x22b   : > { %v1267_v1 = vmul.f32 %v1251_v0, %v8186_v21  ;;  %v1245_v2 = vpop.xlane.xlu1 %1244  ;;  %v1208_v3 = vpop.xlane.xlu0 %1207 }
 0x22c   : > { %v1265_v4 = vmul.f32 %v1245_v2, %v8186_v21  ;;  %v1223_v5 = vmul.f32 %v8186_v21, %v1208_v3 }
 0x22d   : > { %v8238_v7 = vadd.f32 1e-05, %v1267_v1 }
 0x22e   : > { %v6733_v6 = vpop.eup %6732  ;;  %v1273_v8 = vadd.f32 1e-05, %v1265_v4  ;;  %v8240_v9 = vsub.f32 %v1182_v37, %v1223_v5 }
 0x22f   : > { %v1281_v10 = vmul.f32 %v6733_v6, %v1272_v63  ;;  %vm1287_vm2 = vweird.f32 %v6733_v6  ;;  %vm1316_vm10 = vweird.f32 %v8238_v7 }
 0x230   : > { %6734 = vrsqrt.f32 %v1273_v8  ;;  %v1239_v11 = vmul.f32 %v8240_v9, %v8240_v9  ;;  %vm1296_vm3 = vweird.f32 %v1273_v8  ;;  %vm1288_vm6 = vmor %vm1286_vm5, %vm1287_vm2 }
 0x231   : > { %v1282_v12 = vmul.f32 %v6733_v6, %v1281_v10  ;;  %6736 = vrsqrt.f32 %v8238_v7 }
 0x232   : > { %v1261_v13 = vsel %vm1184_vm0, %v1239_v11, 0.0 }
 0x233   : > { %v1283_v14 = vmul.f32 0.5, %v1282_v12  ;;  %v1248_v15 = vpop.xlane.xlu1 %1247  ;;  %1262 = vadd.xlane.f32.xlu0 %v1261_v13  ;;  %v1254_v22 = vpop.xlane.xlu0 %1253 }
 0x234   : > { %v1266_v16 = vmul.f32 %v1248_v15, %v8186_v21  ;;  %v1268_v25 = vmul.f32 %v1254_v22, %v8186_v21  ;;  %v1260_v12 = vpop.xlane.xlu2 %1259 }
 0x235   : > { %v1284_v19 = vsub.f32 1.5, %v1283_v14  ;;  %v1270_v13 = vmul.f32 %v1260_v12, %v8186_v21 }
 0x236   : > { %v6735_v17 = vpop.eup %6734  ;;  %v1274_v18 = vadd.f32 1e-05, %v1266_v16  ;;  %v1276_v34 = vadd.f32 1e-05, %v1268_v25 }
 0x237   : > { %v1291_v20 = vmul.f32 %v6735_v17, %v1273_v8  ;;  %v6737_v23 = vpop.eup %6736  ;;  %vm1297_vm4 = vweird.f32 %v6735_v17  ;;  %v1285_v30 = vmul.f32 %v6733_v6, %v1284_v19  ;;  %v1278_v14 = vadd.f32 1e-05, %v1270_v13 }
 0x238   : > { %6738 = vrsqrt.f32 %v1274_v18  ;;  %v1311_v27 = vmul.f32 %v6737_v23, %v8238_v7  ;;  %vm1298_vm7 = vmor %vm1296_vm3, %vm1297_vm4  ;;  %vm1306_vm8 = vweird.f32 %v1274_v18  ;;  %vm1317_vm11 = vweird.f32 %v6737_v23 }
 0x239   : > { %v1292_v24 = vmul.f32 %v6735_v17, %v1291_v20  ;;  %v1289_v42 = vsel %vm1288_vm6, %v6733_v6, %v1285_v30  ;;  %vm1318_vm13 = vmor %vm1316_vm10, %vm1317_vm11  ;;  %vm1326_vm1 = vweird.f32 %v1276_v34  ;;  %vm1346_vm5 = vweird.f32 %v1278_v14 }
 0x23a   : > { %v1312_v37 = vmul.f32 %v6737_v23, %v1311_v27  ;;  %v1360_v46 = vmul.f32 %v1289_v42, %v8189_v26  ;;  %v6713_v42 = vld [vmem:[%s10183_s4] ss:$0 sm:$0xff]  ;;  %vm1469_vm11 = vcmask 64512   ;;  %s7714_s4 = smov 40  }
 0x23b   : > { %v1293_v28 = vmul.f32 0.5, %v1292_v24  ;;  %v1257_v29 = vpop.xlane.xlu1 %1256 }
 0x23c   : > { %v1269_v31 = vmul.f32 %v1257_v29, %v8186_v21  ;;  %v1313_v48 = vmul.f32 0.5, %v1312_v37 }
 0x23d   : > { %v1294_v32 = vsub.f32 1.5, %v1293_v28 }
 0x23e   : > { %v6739_v33 = vpop.eup %6738  ;;  %v1277_v35 = vadd.f32 1e-05, %v1269_v31  ;;  %v1314_v55 = vsub.f32 1.5, %v1313_v48 }
 0x23f   : > { %v1301_v39 = vmul.f32 %v6739_v33, %v1274_v18  ;;  %v1295_v43 = vmul.f32 %v6735_v17, %v1294_v32  ;;  %vm1307_vm9 = vweird.f32 %v6739_v33 }
 0x240   : > { %6740 = vrsqrt.f32 %v1277_v35  ;;  %vm1308_vm12 = vmor %vm1306_vm8, %vm1307_vm9  ;;  %v1315_v59 = vmul.f32 %v6737_v23, %v1314_v55  ;;  %vm1336_vm14 = vweird.f32 %v1277_v35 }
 0x241   : > { %v1302_v44 = vmul.f32 %v6739_v33, %v1301_v39  ;;  %v1299_v45 = vsel %vm1298_vm7, %v6735_v17, %v1295_v43  ;;  %6742 = vrsqrt.f32 %v1276_v34 }
 0x242   : > { %v1361_v47 = vmul.f32 %v1299_v45, %v8201_v38  ;;  %v1319_v62 = vsel %vm1318_vm13, %v6737_v23, %v1315_v59  ;;  %6744 = vrsqrt.f32 %v1278_v14  ;;  %vm1923_vm13 = vcmask 130112  }
 0x243   : > { %v1303_v49 = vmul.f32 0.5, %v1302_v44  ;;  %v1363_v1 = vmul.f32 %v1319_v62, %v8198_v36 }
 0x244   : > { %v1372_v50 = vpack.c.bf16 %v1361_v47, %v1360_v46 }
 0x245   : > { %v1304_v52 = vsub.f32 1.5, %v1303_v49 }
 0x246   : > { %v6741_v54 = vpop.eup %6740  ;;  %6177 = vmatmul.msk.bf16.vlgmr.msra.gmra.mxu0 %vm1184_vm0, %v1372_v50 }
 0x247   : > { %v6743_v56 = vpop.eup %6742  ;;  %v1331_v57 = vmul.f32 %v6741_v54, %v1277_v35  ;;  %v1305_v58 = vmul.f32 %v6739_v33, %v1304_v52  ;;  %vm1337_vm15 = vweird.f32 %v6741_v54 }
 0x248   : > { %v1321_v26 = vmul.f32 %v6743_v56, %v1276_v34  ;;  %vm1327_vm2 = vweird.f32 %v6743_v56  ;;  %vm1338_vm3 = vmor %vm1336_vm14, %vm1337_vm15  ;;  %v6745_v15 = vpop.eup %6744  ;;  %vm2178_vm14 = vcmask 195712   ;;  %vm2433_vm15 = vcmask 261312  }
 0x249   : > { %v1332_v38 = vmul.f32 %v6741_v54, %v1331_v57  ;;  %v1309_v60 = vsel %vm1308_vm12, %v6739_v33, %v1305_v58  ;;  %vm1328_vm4 = vmor %vm1326_vm1, %vm1327_vm2  ;;  %v1341_v16 = vmul.f32 %v6745_v15, %v1278_v14  ;;  %vm1347_vm6 = vweird.f32 %v6745_v15 }
 0x24a   : > { %v1322_v61 = vmul.f32 %v6743_v56, %v1321_v26  ;;  %v1362_v63 = vmul.f32 %v1309_v60, %v8207_v41  ;;  %vm1348_vm7 = vmor %vm1346_vm5, %vm1347_vm6  ;;  %vm1523_vm12 = vcmask 523264   ;;  %vm2695_vm1 = vcmask 130048  }
 0x24b   : > { %v1333_v0 = vmul.f32 0.5, %v1332_v38  ;;  %v1342_v20 = vmul.f32 %v6745_v15, %v1341_v16  ;;  %vm2740_vm2 = vcmask 31744  }
 0x24c   : > { %v1323_v2 = vmul.f32 0.5, %v1322_v61  ;;  %v1373_v3 = vpack.c.bf16 %v1363_v1, %v1362_v63 }
 0x24d   : > { %v1334_v4 = vsub.f32 1.5, %v1333_v0  ;;  %v1343_v22 = vmul.f32 0.5, %v1342_v20 }
 0x24e   : > { %v1324_v5 = vsub.f32 1.5, %v1323_v2 }
 0x24f   : > { %v1335_v6 = vmul.f32 %v6741_v54, %v1334_v4  ;;  %v1344_v23 = vsub.f32 1.5, %v1343_v22 }
 0x250   : > { %v1325_v7 = vmul.f32 %v6743_v56, %v1324_v5 }
 0x251   : > { %v1339_v8 = vsel %vm1338_vm3, %v6741_v54, %v1335_v6  ;;  %v1345_v27 = vmul.f32 %v6745_v15, %v1344_v23  ;;  %vm3370_vm3 = vcmask 261248  }
 0x252   : > { %v1329_v10 = vsel %vm1328_vm4, %v6743_v56, %v1325_v7  ;;  %v1365_v41 = vmul.f32 %v1339_v8, %v8224_v53 }
 0x253   : > { %v1364_v36 = vmul.f32 %v1329_v10, %v8205_v40  ;;  %v1349_v29 = vsel %vm1348_vm7, %v6745_v15, %v1345_v27 }
 0x254   : > { %v1366_v32 = vmul.f32 %v1349_v29, %v8220_v51 }
 0x255   : > { %v1374_v11 = vpack.c.bf16 %v1365_v41, %v1364_v36 }
 0x256   : > { %6178 = vmatmul.msk.bf16.gmra.mxu0 %vm1184_vm0, %v1373_v3 }
 0x266   : > { %6179 = vmatmul.msk.bf16.gmra.mxu0 %vm1184_vm0, %v1374_v11 }
 0x2a6   : > { %v1263_v17 = vpop.xlane.xlu0 %1262 }
 0x2a7   : > { %v1271_v18 = vmul.f32 %v1263_v17, %v8186_v21 }
 0x2a9   : > { %v1279_v19 = vadd.f32 1e-05, %v1271_v18 }
 0x2ab   : > { %6746 = vrsqrt.f32 %v1279_v19  ;;  %vm1356_vm9 = vweird.f32 %v1279_v19 }
 0x2b1   : > { %v6747_v53 = vpop.eup %6746 }
 0x2b2   : > { %v1351_v40 = vmul.f32 %v6747_v53, %v1279_v19  ;;  %vm1357_vm8 = vweird.f32 %v6747_v53 }
 0x2b3   : > { %vm1358_vm10 = vmor %vm1356_vm9, %vm1357_vm8 }
 0x2b4   : > { %v1352_v24 = vmul.f32 %v6747_v53, %v1351_v40 }
 0x2b6   : > { %v1353_v25 = vmul.f32 0.5, %v1352_v24 }
 0x2b8   : > { %v1354_v28 = vsub.f32 1.5, %v1353_v25 }
 0x2ba   : > { %v1355_v30 = vmul.f32 %v6747_v53, %v1354_v28 }
 0x2bc   : > { %v1359_v31 = vsel %vm1358_vm10, %v6747_v53, %v1355_v30 }
 0x2bd   : > { %v1367_v33 = vmul.f32 %v1359_v31, %v8240_v9 }
 0x2bf   : > { %v1375_v34 = vpack.c.bf16 %v1367_v33, %v1366_v32 }
 0x2c1   : > { %6180 = vmatmul.msk.bf16.gmra.mxu0 %vm1184_vm0, %v1375_v34 }
 0x2c3   : > { %v1413_v35 = vpop.f32.mrf.mxu0 }
 0x2c4   : > { %v1414_v58 = vadd.f32 %v6713_v42, %v1413_v35 }
 0x2c6   : > { %v1433_v61 = vpack.c.bf16 %v1414_v58, %v1414_v58 }
 0x2c8   : > { %v1449_v63 = vunpack.c.l.b16 %v1433_v61 }
 0x2cb   : > { %v1415_v37 = vpop.f32.mrf.mxu0 }
 0x2cc   : > { %v1416_v56 = vadd.f32 %v6713_v42, %v1415_v37 }
 0x2ce   : > { %v1434_v38 = vpack.c.bf16 %v1416_v56, %v1416_v56 }
 0x2d0   : > { %v1450_v62 = vunpack.c.l.b16 %v1434_v38 }
 0x2d2   : > { %v8276_v0 = vpack.c.b16 %v1450_v62, %v1449_v63 }
 0x2d3   : > { %v1418_v39 = vpop.f32.mrf.mxu0 }
 0x2d4   : > { %v1419_v43 = vadd.f32 %v6713_v42, %v1418_v39 }
 0x2d6   : > { %v1435_v45 = vpack.c.bf16 %v1419_v43, %v1419_v43 }
 0x2d8   : > { %v1451_v48 = vunpack.c.l.b16 %v1435_v45 }
 0x2db   : > { %v1420_v44 = vpop.f32.mrf.mxu0 }
 0x2dc   : > { %v1421_v46 = vadd.f32 %v6713_v42, %v1420_v44 }
 0x2de   : > { %v1436_v47 = vpack.c.bf16 %v1421_v46, %v1421_v46 }
 0x2e0   : > { %v1452_v49 = vunpack.c.l.b16 %v1436_v47 }
 0x2e2   : > { %v8266_v50 = vpack.c.b16 %v1452_v49, %v1451_v48 }
 0x2e3   : > { %v1423_v52 = vpop.f32.mrf.mxu0 }
 0x2e4   : > { %1463 = vrot.lane.b32.xlu0 %v8266_v50, %s7705_s1  ;;  %v1424_v51 = vadd.f32 %v6713_v42, %v1423_v52 }
 0x2e6   : > { %v1437_v54 = vpack.c.bf16 %v1424_v51, %v1424_v51 }
 0x2e8   : > { %v1453_v26 = vunpack.c.l.b16 %v1437_v54 }
 0x2eb   : > { %v1425_v9 = vpop.f32.mrf.mxu0 }
 0x2ec   : > { %v1426_v55 = vadd.f32 %v6713_v42, %v1425_v9 }
 0x2ee   : > { %v1438_v57 = vpack.c.bf16 %v1426_v55, %v1426_v55 }
 0x2f0   : > { %v1454_v59 = vunpack.c.l.b16 %v1438_v57 }
 0x2f2   : > { %v8270_v60 = vpack.c.b16 %v1454_v59, %v1453_v26 }
 0x2f4   : > { %1689 = vrot.lane.b32.xlu0 %v8270_v60, %s7706_s15  ;;  %1465 = vrot.lane.b32.xlu2 %v8270_v60, %s7705_s1 }
 0x2fc   : > { %1616 = vrot.lane.b32.xlu0 %v8276_v0, %s7707_s11  ;;  %1461 = vrot.lane.b32.xlu2 %v8276_v0, %s7705_s1 }
 0x304   : > { %2187 = vrot.lane.b32.xlu0 %v8276_v0, %s7708_s9  ;;  %1620 = vrot.lane.b32.xlu2 %v8270_v60, %s7707_s11 }
 0x30c   : > { %1687 = vrot.lane.b32.xlu2 %v8266_v50, %s7706_s15 }
 0x314   : > { %1618 = vrot.lane.b32.xlu2 %v8266_v50, %s7707_s11 }
 0x31c   : > { %1679 = vrot.lane.b32.xlu2 %v8266_v50, %s7709_s17 }
 0x324   : > { %1940 = vrot.lane.b32.xlu2 %v8276_v0, %s7710_s10 }
 0x33e   : > { %v1428_v1 = vpop.f32.mrf.mxu0 }
 0x33f   : > { %v1429_v2 = vadd.f32 %v6713_v42, %v1428_v1 }
 0x341   : > { %v1439_v4 = vpack.c.bf16 %v1429_v2, %v1429_v2 }
 0x343   : > { %v1455_v7 = vunpack.c.l.b16 %v1439_v4 }
 0x346   : > { %v1430_v3 = vpop.f32.mrf.mxu0 }
 0x347   : > { %v1431_v5 = vadd.f32 %v6713_v42, %v1430_v3 }
 0x349   : > { %v1440_v6 = vpack.c.bf16 %v1431_v5, %v1431_v5 }
 0x34b   : > { %v1456_v8 = vunpack.c.l.b16 %v1440_v6 }
 0x34d   : > { %v8289_v10 = vpack.c.b16 %v1456_v8, %v1455_v7 }
 0x34e   : > { %v1466_v41 = vpop.permute.xlu2 %1465 }
 0x34f   : > { %1946 = vrot.lane.b32.xlu0 %v8289_v10, %s7710_s10  ;;  %1622 = vrot.lane.b32.xlu2 %v8289_v10, %s7707_s11  ;;  %v1489_v25 = vsel %vm1469_vm11, %v1466_v41, 0  ;;  %s10184_s11 = sld [smem:[#allocation41_spill]] }
 0x350   : > { %1467 = vrot.lane.b32.xlu1 %v8289_v10, %s7705_s1  ;;  %s7715_s1 = smov 48  }
 0x356   : > { %v1462_v36 = vpop.permute.xlu2 %1461  ;;  %v1464_v15 = vpop.permute.xlu0 %1463 }
 0x357   : > { %1683 = vrot.lane.b32.xlu0 %v8289_v10, %s7709_s17  ;;  %2201 = vrot.lane.b32.xlu2 %v8289_v10, %s7711_s23  ;;  %v1486_v28 = vsel %vm1469_vm11, %v1464_v15, 0  ;;  %v1483_v30 = vsel %vm1469_vm11, %v1462_v36, 0 }
 0x358   : > { %1685 = vrot.lane.b32.xlu1 %v8276_v0, %s7706_s15 }
 0x35e   : > { %v1621_v11 = vpop.permute.xlu2 %1620 }
 0x35f   : > { %1936 = vrot.lane.b32.xlu0 %v8270_v60, %s7712_s7  ;;  %2189 = vrot.lane.b32.xlu2 %v8266_v50, %s7708_s9 }
 0x360   : > { %1677 = vrot.lane.b32.xlu1 %v8276_v0, %s7709_s17 }
 0x366   : > { %v1688_v12 = vpop.permute.xlu2 %1687  ;;  %v1690_v17 = vpop.permute.xlu0 %1689 }
 0x367   : > { %v1712_v46 = vsel %vm1469_vm11, %v1690_v17, 0  ;;  %v1709_v47 = vsel %vm1469_vm11, %v1688_v12, 0 }
 0x368   : > { %1681 = vrot.lane.b32.xlu1 %v8270_v60, %s7709_s17  ;;  %s7718_s17 = smov 24  }
 0x36e   : > { %v1619_v13 = vpop.permute.xlu2 %1618  ;;  %v1617_v19 = vpop.permute.xlu0 %1616 }
 0x370   : > { %1944 = vrot.lane.b32.xlu1 %v8270_v60, %s7710_s10 }
 0x376   : > { %v8310_v14 = vpop.permute.xlu2 %1679  ;;  %v2188_v20 = vpop.permute.xlu0 %2187 }
 0x378   : > { %2199 = vrot.lane.b32.xlu1 %v8270_v60, %s7711_s23 }
 0x37e   : > { %v1941_v16 = vpop.permute.xlu2 %1940 }
 0x37f   : > { %v1961_v39 = vsel %vm1469_vm11, %v1941_v16, 0 }
 0x380   : > { %1942 = vrot.lane.b32.xlu1 %v8266_v50, %s7710_s10  ;;  %s10185_s10 = sld [smem:[#allocation45_spill]] }
 0x388   : > { %2197 = vrot.lane.b32.xlu1 %v8266_v50, %s7711_s23 }
 0x390   : > { %2195 = vrot.lane.b32.xlu1 %v8276_v0, %s7711_s23  ;;  %s10186_s23 = sld [smem:[#allocation43_spill]] }
 0x398   : > { %1932 = vrot.lane.b32.xlu1 %v8276_v0, %s7712_s7 }
 0x3a0   : > { %1691 = vrot.lane.b32.xlu1 %v8289_v10, %s7706_s15  ;;  %s10119_s15 = smov 8  }
 0x3a9   : > { %v1623_v18 = vpop.permute.xlu2 %1622 }
 0x3aa   : > { %1644 = vmatpush.bf16.msra.mxu2 %v1623_v18 }
 0x3ae   : > { %1645 = vmatpush.bf16.msra.mxu2 %v1621_v11 }
 0x3b1   : > { %v2202_v48 = vpop.permute.xlu2 %2201 }
 0x3b2   : > { %1646 = vmatpush.bf16.msra.mxu2 %v1619_v13  ;;  %v2225_v52 = vsel %vm1469_vm11, %v2202_v48, 0 }
 0x3b6   : > { %1647 = vmatpush.bf16.msra.mxu2 %v1617_v19 }
 0x3b9   : > { %v2190_v58 = vpop.permute.xlu2 %2189 }
 0x3c1   : > { %v1947_v22 = vpop.permute.xlu0 %1946 }
 0x3c2   : > { %v1468_v53 = vpop.permute.xlu1 %1467  ;;  %v1970_v23 = vsel %vm1469_vm11, %v1947_v22, 0 }
 0x3c3   : > { %v1492_v40 = vsel %vm1469_vm11, %v1468_v53, 0  ;;  %1976 = vmatpush.bf16.xpose.msrb.mxu2 %v1970_v23 }
 0x3c4   : > { %1498 = vmatpush.bf16.xpose.msra.mxu1 %v1492_v40 }
 0x3c9   : > { %v1684_v54 = vpop.permute.xlu0 %1683 }
 0x3ca   : > { %v1686_v24 = vpop.permute.xlu1 %1685 }
 0x3cb   : > { %v1706_v49 = vsel %vm1469_vm11, %v1686_v24, 0 }
 0x3cc   : > { %1499 = vmatpush.bf16.xpose.msra.mxu1 %v1489_v25 }
 0x3d1   : > { %v8362_v41 = vpop.permute.xlu0 %1936 }
 0x3d2   : > { %v1678_v27 = vpop.permute.xlu1 %1677 }
 0x3d4   : > { %1500 = vmatpush.bf16.xpose.msra.mxu1 %v1486_v28 }
 0x3da   : > { %v1682_v29 = vpop.permute.xlu1 %1681 }
 0x3dc   : > { %1501 = vmatpush.bf16.xpose.msra.mxu1 %v1483_v30 }
 0x3e2   : > { %v1945_v31 = vpop.permute.xlu1 %1944 }
 0x3e3   : > { %6181 = vmatmul.msk.bf16.vlgmr.msra.gmra.mxu1 %vm1469_vm11, %v8276_v0  ;;  %v1967_v32 = vsel %vm1469_vm11, %v1945_v31, 0 }
 0x3e4   : > { %1977 = vmatpush.bf16.xpose.msrb.mxu2 %v1967_v32 }
 0x3ea   : > { %v2200_v33 = vpop.permute.xlu1 %2199 }
 0x3eb   : > { %v2222_v51 = vsel %vm1469_vm11, %v2200_v33, 0 }
 0x3f2   : > { %v1943_v34 = vpop.permute.xlu1 %1942 }
 0x3f3   : > { %6182 = vmatmul.msk.bf16.gmra.mxu1 %vm1469_vm11, %v8266_v50  ;;  %v1964_v35 = vsel %vm1469_vm11, %v1943_v34, 0 }
 0x3f4   : > { %1978 = vmatpush.bf16.xpose.msrb.mxu2 %v1964_v35 }
 0x3fa   : > { %v2198_v37 = vpop.permute.xlu1 %2197 }
 0x3fb   : > { %v2219_v9 = vsel %vm1469_vm11, %v2198_v37, 0 }
 0x3fc   : > { %1979 = vmatpush.bf16.xpose.msrb.mxu2 %v1961_v39 }
 0x402   : > { %v2196_v42 = vpop.permute.xlu1 %2195 }
 0x403   : > { %6183 = vmatmul.msk.bf16.gmra.mxu1 %vm1469_vm11, %v8270_v60  ;;  %v2216_v55 = vsel %vm1469_vm11, %v2196_v42, 0 }
 0x40a   : > { %v8330_v43 = vpop.permute.xlu1 %1932 }
 0x412   : > { %v1692_v44 = vpop.permute.xlu1 %1691 }
 0x413   : > { %6184 = vmatmul.msk.bf16.gmra.mxu1 %vm1469_vm11, %v8289_v10  ;;  %v1715_v45 = vsel %vm1469_vm11, %v1692_v44, 0 }
 0x414   : > { %1721 = vmatpush.bf16.xpose.msrb.mxu0 %v1715_v45  ;;  %6414 = vmatpush.bf16.xpose.msra.mxu3 %v1715_v45 }
 0x41c   : > { %1722 = vmatpush.bf16.xpose.msrb.mxu0 %v1712_v46  ;;  %6415 = vmatpush.bf16.xpose.msra.mxu3 %v1712_v46 }
 0x424   : > { %1723 = vmatpush.bf16.xpose.msrb.mxu0 %v1709_v47  ;;  %6416 = vmatpush.bf16.xpose.msra.mxu3 %v1709_v47 }
 0x42c   : > { %1724 = vmatpush.bf16.xpose.msrb.mxu0 %v1706_v49  ;;  %6417 = vmatpush.bf16.xpose.msra.mxu3 %v1706_v49 }
 0x433   : > { %6189 = vmatmul.msk.bf16.vlgmr.msrb.gmra.mxu0 %vm1469_vm11, %v1678_v27  ;;  %6191 = vmatmul.msk.bf16.vlgmr.msra.gmra.mxu3 %vm1469_vm11, %v1682_v29 }
 0x434   : > { %2231 = vmatpush.bf16.xpose.msrb.mxu3 %v2225_v52 }
 0x43c   : > { %2232 = vmatpush.bf16.xpose.msrb.mxu3 %v2222_v51 }
 0x443   : > { %6190 = vmatmul.msk.bf16.gmra.mxu0 %vm1469_vm11, %v8310_v14  ;;  %6192 = vmatmul.msk.bf16.gmra.mxu3 %vm1469_vm11, %v1684_v54 }
 0x444   : > { %2233 = vmatpush.bf16.xpose.msrb.mxu3 %v2219_v9 }
 0x44c   : > { %2234 = vmatpush.bf16.xpose.msrb.mxu3 %v2216_v55 }
 0x453   : > { %6205 = vmatmul.msk.bf16.vlgmr.msrb.gmra.mxu3 %vm1469_vm11, %v2188_v20 }
 0x460   : > { %v1503_v56 = vpop.f32.mrf.mxu1 }
 0x461   : > { %v1524_v57 = vsel %vm1523_vm12, %v1503_v56, -inf }
 0x462   : > { %1525 = vmax.xlane.f32.xlu1 %v1524_v57 }
 0x463   : > { %6206 = vmatmul.msk.bf16.gmra.mxu3 %vm1469_vm11, %v2190_v58 }
 0x468   : > { %v1505_v26 = vpop.f32.mrf.mxu1 }
 0x469   : > { %v1527_v59 = vsel %vm1523_vm12, %v1505_v26, -inf }
 0x46a   : > { %1528 = vmax.xlane.f32.xlu0 %v1527_v59 }
 0x470   : > { %v1508_v38 = vpop.f32.mrf.mxu1 }
 0x471   : > { %v1530_v61 = vsel %vm1523_vm12, %v1508_v38, -inf }
 0x472   : > { %1531 = vmax.xlane.f32.xlu2 %v1530_v61 }
 0x478   : > { %v1510_v62 = vpop.f32.mrf.mxu1 }
 0x479   : > { %v1533_v8 = vsel %vm1523_vm12, %v1510_v62, -inf }
 0x47b   : > { %1934 = vrot.lane.b32.xlu1 %v8266_v50, %s7712_s7 }
 0x480   : > { %v1513_v63 = vpop.f32.mrf.mxu1 }
 0x481   : > { %v1536_v1 = vsel %vm1523_vm12, %v1513_v63, -inf }
 0x482   : > { %1537 = vmax.xlane.f32.xlu0 %v1536_v1 }
 0x488   : > { %v1515_v2 = vpop.f32.mrf.mxu1 }
 0x489   : > { %v1539_v3 = vsel %vm1523_vm12, %v1515_v2, -inf }
 0x48a   : > { %1540 = vmax.xlane.f32.xlu2 %v1539_v3 }
 0x490   : > { %v8356_v4 = vpop.f32.mrf.mxu1 }
 0x491   : > { %v1542_v5 = vsel %vm1523_vm12, %v8356_v4, -inf }
 0x492   : > { %1543 = vmax.xlane.f32.xlu2 %v1542_v5 }
 0x498   : > { %v1520_v6 = vpop.f32.mrf.mxu1 }
 0x499   : > { %v1545_v7 = vsel %vm1523_vm12, %v1520_v6, -inf }
 0x49a   : > { %1546 = vmax.xlane.f32.xlu2 %v1545_v7 }
 0x4a5   : > { %1534 = vmax.xlane.f32.xlu1 %v1533_v8 }
 0x4b0   : > { %v8394_v46 = vpop.f32.mrf.mxu0 }
 0x4b1   : > { %v1746_v55 = vsel %vm1523_vm12, %v8394_v46, -inf }
 0x4b6   : > { %v8400_v51 = vpop.f32.mrf.mxu3 }
 0x4b7   : > { %v1758_v3 = vsel %vm1523_vm12, %v8400_v51, -inf }
 0x4b8   : > { %v8396_v48 = vpop.f32.mrf.mxu0 }
 0x4be   : > { %v8408_v57 = vpop.f32.mrf.mxu3 }
 0x4c0   : > { %v8402_v54 = vpop.f32.mrf.mxu0 }
 0x4c8   : > { %v8410_v58 = vpop.f32.mrf.mxu0 }
 0x4c9   : > { %v1755_v59 = vsel %vm1523_vm12, %v8410_v58, -inf }
 0x4d5   : > { %v1526_v36 = vpop.xlane.xlu1 %1525 }
 0x4d6   : > { %v1548_v11 = vsub.f32 %v1503_v56, %v1526_v36 }
 0x4d8   : > { %v1556_v12 = vmul.f32 1.442695, %v1548_v11 }
 0x4da   : > { %6748 = vpow2.f32 %v1556_v12 }
 0x4dd   : > { %v1529_v13 = vpop.xlane.xlu0 %1528 }
 0x4de   : > { %v1549_v14 = vsub.f32 %v1505_v26, %v1529_v13 }
 0x4e0   : > { %v8364_v15 = vpop.eup %6748  ;;  %v1558_v16 = vmul.f32 1.442695, %v1549_v14 }
 0x4e1   : > { %v1572_v17 = vsel %vm1523_vm12, %v8364_v15, 0.0 }
 0x4e2   : > { %6750 = vpow2.f32 %v1558_v16  ;;  %1573 = vadd.xlane.f32.xlu0 %v1572_v17  ;;  %v1752_v16 = vsel %vm1523_vm12, %v8402_v54, -inf  ;;  %v1761_v17 = vsel %vm1523_vm12, %v8408_v57, -inf }
 0x4e5   : > { %v1532_v18 = vpop.xlane.xlu2 %1531 }
 0x4e6   : > { %v1550_v19 = vsub.f32 %v1508_v38, %v1532_v18  ;;  %v8416_v38 = vpop.f32.mrf.mxu3 }
 0x4e8   : > { %v8368_v20 = vpop.eup %6750  ;;  %v1560_v22 = vmul.f32 1.442695, %v1550_v19 }
 0x4e9   : > { %v1575_v53 = vsel %vm1523_vm12, %v8368_v20, 0.0 }
 0x4ea   : > { %6752 = vpow2.f32 %v1560_v22  ;;  %1576 = vadd.xlane.f32.xlu1 %v1575_v53 }
 0x4ed   : > { %v8384_v35 = vpop.permute.xlu1 %1934 }
 0x4f0   : > { %v8372_v23 = vpop.eup %6752 }
 0x4f1   : > { %v1578_v40 = vsel %vm1523_vm12, %v8372_v23, 0.0 }
 0x4f2   : > { %1579 = vadd.xlane.f32.xlu2 %v1578_v40 }
 0x4f5   : > { %v1538_v24 = vpop.xlane.xlu0 %1537 }
 0x4f6   : > { %v1552_v25 = vsub.f32 %v1513_v63, %v1538_v24  ;;  %v1764_v63 = vsel %vm1523_vm12, %v8416_v38, -inf }
 0x4f8   : > { %v1564_v27 = vmul.f32 1.442695, %v1552_v25 }
 0x4fa   : > { %6754 = vpow2.f32 %v1564_v27 }
 0x4fd   : > { %v1541_v28 = vpop.xlane.xlu2 %1540 }
 0x4fe   : > { %v1553_v29 = vsub.f32 %v1515_v2, %v1541_v28 }
 0x500   : > { %v8376_v30 = vpop.eup %6754  ;;  %v1566_v31 = vmul.f32 1.442695, %v1553_v29 }
 0x501   : > { %v1584_v32 = vsel %vm1523_vm12, %v8376_v30, 0.0 }
 0x502   : > { %6756 = vpow2.f32 %v1566_v31  ;;  %1585 = vadd.xlane.f32.xlu1 %v1584_v32 }
 0x505   : > { %v1544_v47 = vpop.xlane.xlu2 %1543 }
 0x506   : > { %v1554_v61 = vsub.f32 %v8356_v4, %v1544_v47  ;;  %v8427_v4 = vpop.f32.mrf.mxu3 }
 0x507   : > { %v1767_v36 = vsel %vm1523_vm12, %v8427_v4, -inf }
 0x508   : > { %v8380_v33 = vpop.eup %6756  ;;  %v1568_v1 = vmul.f32 1.442695, %v1554_v61 }
 0x509   : > { %v1587_v34 = vsel %vm1523_vm12, %v8380_v33, 0.0 }
 0x50a   : > { %1588 = vadd.xlane.f32.xlu2 %v1587_v34 }
 0x50d   : > { %v1547_v49 = vpop.xlane.xlu2 %1546 }
 0x50e   : > { %v1555_v52 = vsub.f32 %v1520_v6, %v1547_v49  ;;  %v8448_v29 = vpop.f32.mrf.mxu3 }
 0x510   : > { %v1570_v9 = vmul.f32 1.442695, %v1555_v52 }
 0x518   : > { %v1535_v37 = vpop.xlane.xlu1 %1534 }
 0x519   : > { %v1551_v39 = vsub.f32 %v1510_v62, %v1535_v37  ;;  %v1749_v62 = vsel %vm1523_vm12, %v8396_v48, -inf }
 0x51b   : > { %v1562_v42 = vmul.f32 1.442695, %v1551_v39  ;;  %2191 = vrot.lane.b32.xlu1 %v8270_v60, %s7708_s9  ;;  %v8454_v39 = vpop.f32.mrf.mxu3 }
 0x51d   : > { %6758 = vpow2.f32 %v1562_v42 }
 0x51e   : > { %6760 = vpow2.f32 %v1570_v9 }
 0x51f   : > { %6762 = vpow2.f32 %v1568_v1 }
 0x522   : > { %1938 = vrot.lane.b32.xlu2 %v8289_v10, %s7712_s7 }
 0x523   : > { %v8390_v44 = vpop.eup %6758 }
 0x524   : > { %v1581_v45 = vsel %vm1523_vm12, %v8390_v44, 0.0  ;;  %v8406_v56 = vpop.eup %6760 }
 0x525   : > { %1582 = vadd.xlane.f32.xlu0 %v1581_v45  ;;  %v1593_v26 = vsel %vm1523_vm12, %v8406_v56, 0.0  ;;  %v8425_v6 = vpop.eup %6762  ;;  %v2259_v45 = vsel %vm1523_vm12, %v8454_v39, -inf }
 0x526   : > { %v1590_v8 = vsel %vm1523_vm12, %v8425_v6, 0.0 }
 0x539   : > { %2193 = vrot.lane.b32.xlu0 %v8289_v10, %s7708_s9  ;;  %s7717_s9 = smov 16  }
 0x545   : > { %1747 = vmax.xlane.f32.xlu1 %v1746_v55 }
 0x54b   : > { %1594 = vadd.xlane.f32.xlu2 %v1593_v26 }
 0x54d   : > { %1756 = vmax.xlane.f32.xlu1 %v1755_v59 }
 0x553   : > { %1750 = vmax.xlane.f32.xlu2 %v1749_v62 }
 0x555   : > { %1765 = vmax.xlane.f32.xlu1 %v1764_v63  ;;  %v1574_v2 = vpop.xlane.xlu0 %1573 }
 0x556   : > { %6764 = vrcp.f32 %v1574_v2 }
 0x55b   : > { %1759 = vmax.xlane.f32.xlu2 %v1758_v3 }
 0x55c   : > { %v6765_v7 = vpop.eup %6764 }
 0x55d   : > { %v1577_v5 = vpop.xlane.xlu1 %1576  ;;  %v1604_v12 = vmul.f32 %v6765_v7, %v8364_v15 }
 0x55e   : > { %6766 = vrcp.f32 %v1577_v5 }
 0x563   : > { %1591 = vadd.xlane.f32.xlu0 %v1590_v8  ;;  %1768 = vmax.xlane.f32.xlu2 %v1767_v36 }
 0x564   : > { %v6767_v11 = vpop.eup %6766 }
 0x565   : > { %v1605_v13 = vmul.f32 %v6767_v11, %v8368_v20  ;;  %v1580_v15 = vpop.xlane.xlu2 %1579 }
 0x566   : > { %6768 = vrcp.f32 %v1580_v15 }
 0x567   : > { %v1612_v14 = vpack.c.bf16 %v1605_v13, %v1604_v12 }
 0x569   : > { %6185 = vmatmul.msk.bf16.vlgmr.msra.gmra.mxu2 %vm1523_vm12, %v1612_v14 }
 0x56b   : > { %1753 = vmax.xlane.f32.xlu0 %v1752_v16 }
 0x56c   : > { %v6769_v22 = vpop.eup %6768 }
 0x56d   : > { %v1606_v40 = vmul.f32 %v6769_v22, %v8372_v23  ;;  %v8496_v22 = vpop.f32.mrf.mxu3 }
 0x573   : > { %1762 = vmax.xlane.f32.xlu0 %v1761_v17 }
 0x575   : > { %v1586_v18 = vpop.xlane.xlu1 %1585 }
 0x57d   : > { %v1589_v25 = vpop.xlane.xlu2 %1588 }
 0x585   : > { %v8456_v42 = vpop.permute.xlu2 %1938 }
 0x587   : > { %1844 = vrot.lane.b32.xlu0 %v8289_v10, %s7713_s16 }
 0x58d   : > { %v2192_v19 = vpop.permute.xlu1 %2191 }
 0x58e   : > { %6207 = vmatmul.msk.bf16.gmra.mxu3 %vm1469_vm11, %v2192_v19 }
 0x58f   : > { %1838 = vrot.lane.b32.xlu0 %v8276_v0, %s7713_s16 }
 0x598   : > { %v1583_v20 = vpop.xlane.xlu0 %1582 }
 0x599   : > { %6770 = vrcp.f32 %v1583_v20 }
 0x59a   : > { %6772 = vrcp.f32 %v1589_v25 }
 0x59b   : > { %6774 = vrcp.f32 %v1586_v18 }
 0x59f   : > { %v6771_v53 = vpop.eup %6770 }
 0x5a0   : > { %v1607_v24 = vmul.f32 %v6771_v53, %v8390_v44  ;;  %v6773_v28 = vpop.eup %6772 }
 0x5a1   : > { %v6775_v32 = vpop.eup %6774  ;;  %v1609_v34 = vmul.f32 %v6773_v28, %v8380_v33 }
 0x5a2   : > { %v1613_v27 = vpack.c.bf16 %v1607_v24, %v1606_v40  ;;  %v1608_v37 = vmul.f32 %v6775_v32, %v8376_v30  ;;  %v2256_v40 = vsel %vm1523_vm12, %v8448_v29, -inf  ;;  %v8503_v24 = vpop.f32.mrf.mxu3 }
 0x5a3   : > { %v2265_v25 = vsel %vm1523_vm12, %v8503_v24, -inf }
 0x5a4   : > { %6186 = vmatmul.msk.bf16.gmra.mxu2 %vm1523_vm12, %v1613_v27  ;;  %v1614_v23 = vpack.c.bf16 %v1609_v34, %v1608_v37  ;;  %v2262_v37 = vsel %vm1523_vm12, %v8496_v22, -inf }
 0x5ab   : > { %v2194_v31 = vpop.permute.xlu0 %2193 }
 0x5ac   : > { %6208 = vmatmul.msk.bf16.gmra.mxu3 %vm1469_vm11, %v2194_v31 }
 0x5b4   : > { %6187 = vmatmul.msk.bf16.gmra.mxu2 %vm1523_vm12, %v1614_v23 }
 0x5b8   : > { %v1748_v44 = vpop.xlane.xlu1 %1747 }
 0x5b9   : > { %v1770_v47 = vsub.f32 %v8394_v46, %v1748_v44  ;;  %2260 = vmax.xlane.f32.xlu0 %v2259_v45 }
 0x5bb   : > { %v1778_v49 = vmul.f32 1.442695, %v1770_v47 }
 0x5bd   : > { %6776 = vpow2.f32 %v1778_v49 }
 0x5be   : > { %v1595_v52 = vpop.xlane.xlu2 %1594 }
 0x5c0   : > { %v1757_v63 = vpop.xlane.xlu1 %1756 }
 0x5c1   : > { %v1773_v53 = vsub.f32 %v8410_v58, %v1757_v63 }
 0x5c3   : > { %v8461_v33 = vpop.eup %6776 }
 0x5c4   : > { %v1794_v30 = vsel %vm1523_vm12, %v8461_v33, 0.0 }
 0x5c5   : > { %1795 = vadd.xlane.f32.xlu1 %v1794_v30 }
 0x5c6   : > { %v1751_v9 = vpop.xlane.xlu2 %1750 }
 0x5c7   : > { %v1771_v55 = vsub.f32 %v8396_v48, %v1751_v9 }
 0x5c8   : > { %v1766_v13 = vpop.xlane.xlu1 %1765 }
 0x5c9   : > { %v1780_v26 = vmul.f32 1.442695, %v1771_v55  ;;  %v1776_v16 = vsub.f32 %v8416_v38, %v1766_v13 }
 0x5cb   : > { %6778 = vpow2.f32 %v1780_v26 }
 0x5cc   : > { %6780 = vrcp.f32 %v1595_v52 }
 0x5ce   : > { %v1760_v2 = vpop.xlane.xlu2 %1759 }
 0x5cf   : > { %v1774_v36 = vsub.f32 %v8400_v51, %v1760_v2  ;;  %v1790_v51 = vmul.f32 1.442695, %v1776_v16 }
 0x5d1   : > { %v8466_v59 = vpop.eup %6778  ;;  %v1786_v12 = vmul.f32 1.442695, %v1774_v36 }
 0x5d2   : > { %v1797_v46 = vsel %vm1523_vm12, %v8466_v59, 0.0  ;;  %v6781_v62 = vpop.eup %6780 }
 0x5d3   : > { %1798 = vadd.xlane.f32.xlu2 %v1797_v46  ;;  %v1611_v5 = vmul.f32 %v6781_v62, %v8406_v56 }
 0x5d6   : > { %v1592_v61 = vpop.xlane.xlu0 %1591 }
 0x5d7   : > { %6782 = vrcp.f32 %v1592_v61 }
 0x5dd   : > { %v6783_v1 = vpop.eup %6782 }
 0x5de   : > { %1842 = vrot.lane.b32.xlu1 %v8270_v60, %s7713_s16  ;;  %v1754_v3 = vpop.xlane.xlu0 %1753  ;;  %v1610_v48 = vmul.f32 %v6783_v1, %v8425_v6 }
 0x5df   : > { %v1772_v7 = vsub.f32 %v8402_v54, %v1754_v3 }
 0x5e0   : > { %v1615_v8 = vpack.c.bf16 %v1611_v5, %v1610_v48 }
 0x5e1   : > { %v1782_v11 = vmul.f32 1.442695, %v1772_v7 }
 0x5e2   : > { %6188 = vmatmul.msk.bf16.gmra.mxu2 %vm1523_vm12, %v1615_v8 }
 0x5e3   : > { %6784 = vpow2.f32 %v1782_v11 }
 0x5e4   : > { %6786 = vpow2.f32 %v1786_v12 }
 0x5e5   : > { %6788 = vpow2.f32 %v1790_v51 }
 0x5e6   : > { %v1763_v17 = vpop.xlane.xlu0 %1762 }
 0x5e7   : > { %v1775_v58 = vsub.f32 %v8408_v57, %v1763_v17  ;;  %v1769_v57 = vpop.xlane.xlu2 %1768 }
 0x5e9   : > { %v8477_v14 = vpop.eup %6784  ;;  %v1788_v31 = vmul.f32 1.442695, %v1775_v58 }
 0x5ea   : > { %v1800_v6 = vsel %vm1523_vm12, %v8477_v14, 0.0  ;;  %v8485_v56 = vpop.eup %6786 }
 0x5eb   : > { %1840 = vrot.lane.b32.xlu2 %v8266_v50, %s7713_s16  ;;  %1801 = vadd.xlane.f32.xlu0 %v1800_v6  ;;  %v1806_v38 = vsel %vm1523_vm12, %v8485_v56, 0.0  ;;  %v8492_v19 = vpop.eup %6788  ;;  %s10187_s16 = sld [smem:[#allocation42_spill]] }
 0x5ec   : > { %v1649_v54 = vpop.f32.mrf.mxu2  ;;  %v1812_v20 = vsel %vm1523_vm12, %v8492_v19, 0.0 }
 0x5ed   : > { %1669 = vst.msk [vmem:[#allocation2] sm:$0xff] %vm1469_vm11, %v1649_v54 }
 0x5f2   : > { %6197 = vmatmul.msk.bf16.vlgmr.msrb.gmra.mxu2 %vm1469_vm11, %v8330_v43  ;;  %v1784_v43 = vmul.f32 1.442695, %v1773_v53 }
 0x5f3   : > { %1807 = vadd.xlane.f32.xlu0 %v1806_v38 }
 0x5f4   : > { %v1651_v18 = vpop.f32.mrf.mxu2  ;;  %6790 = vpow2.f32 %v1784_v43 }
 0x5f5   : > { %1670 = vst.msk [vmem:[#allocation2 + $0x8] sm:$0xff] %vm1469_vm11, %v1651_v18  ;;  %6792 = vpow2.f32 %v1788_v31 }
 0x5f9   : > { %v1845_v15 = vpop.permute.xlu0 %1844 }
 0x5fa   : > { %1866 = vmatpush.bf16.msra.mxu0 %v1845_v15  ;;  %v8507_v27 = vpop.eup %6790 }
 0x5fb   : > { %1813 = vadd.xlane.f32.xlu0 %v1812_v20  ;;  %v8522_v23 = vpop.eup %6792 }
 0x5fc   : > { %v1809_v44 = vsel %vm1523_vm12, %v8522_v23, 0.0 }
 0x601   : > { %v1839_v7 = vpop.permute.xlu0 %1838 }
 0x602   : > { %6198 = vmatmul.msk.bf16.gmra.mxu2 %vm1469_vm11, %v8384_v35  ;;  %v1803_v35 = vsel %vm1523_vm12, %v8507_v27, 0.0 }
 0x608   : > { %2257 = vmax.xlane.f32.xlu1 %v2256_v40 }
 0x610   : > { %2266 = vmax.xlane.f32.xlu1 %v2265_v25 }
 0x611   : > { %v8509_v28 = vpop.f32.mrf.mxu3 }
 0x612   : > { %6199 = vmatmul.msk.bf16.gmra.mxu2 %vm1469_vm11, %v8362_v41  ;;  %v1777_v41 = vsub.f32 %v8427_v4, %v1769_v57  ;;  %v2268_v49 = vsel %vm1523_vm12, %v8509_v28, -inf }
 0x614   : > { %1804 = vadd.xlane.f32.xlu2 %v1803_v35  ;;  %v1792_v45 = vmul.f32 1.442695, %v1777_v41 }
 0x616   : > { %6794 = vpow2.f32 %v1792_v45 }
 0x619   : > { %v8516_v32 = vpop.f32.mrf.mxu3 }
 0x61a   : > { %v2271_v34 = vsel %vm1523_vm12, %v8516_v32, -inf }
 0x61b   : > { %2272 = vmax.xlane.f32.xlu1 %v2271_v34 }
 0x61c   : > { %2263 = vmax.xlane.f32.xlu2 %v2262_v37  ;;  %v8534_v4 = vpop.eup %6794 }
 0x61d   : > { %v1815_v9 = vsel %vm1523_vm12, %v8534_v4, 0.0 }
 0x622   : > { %6200 = vmatmul.msk.bf16.gmra.mxu2 %vm1469_vm11, %v8456_v42 }
 0x624   : > { %1810 = vadd.xlane.f32.xlu2 %v1809_v44 }
 0x627   : > { %v1654_v47 = vpop.f32.mrf.mxu2 }
 0x628   : > { %1671 = vst.msk [vmem:[#allocation2 + $0x10] sm:$0xff] %vm1469_vm11, %v1654_v47 }
 0x62c   : > { %2269 = vmax.xlane.f32.xlu2 %v2268_v49  ;;  %v2261_v13 = vpop.xlane.xlu0 %2260 }
 0x62f   : > { %v1656_v52 = vpop.f32.mrf.mxu2  ;;  %v8532_v30 = vpop.f32.mrf.mxu3 }
 0x630   : > { %1672 = vst.msk [vmem:[#allocation2 + $0x18] sm:$0xff] %vm1469_vm11, %v1656_v52  ;;  %v2274_v42 = vsel %vm1523_vm12, %v8532_v30, -inf }
 0x631   : > { %2275 = vmax.xlane.f32.xlu1 %v2274_v42 }
 0x634   : > { %1816 = vadd.xlane.f32.xlu2 %v1815_v9 }
 0x637   : > { %v1659_v55 = vpop.f32.mrf.mxu2  ;;  %v8541_v26 = vpop.f32.mrf.mxu3 }
 0x638   : > { %1673 = vst.msk [vmem:[#allocation2 + $0x20] sm:$0xff] %vm1469_vm11, %v1659_v55  ;;  %v2277_v46 = vsel %vm1523_vm12, %v8541_v26, -inf  ;;  %v1796_v62 = vpop.xlane.xlu1 %1795 }
 0x639   : > { %2278 = vmax.xlane.f32.xlu0 %v2277_v46 }
 0x63f   : > { %v1661_v61 = vpop.f32.mrf.mxu2 }
 0x640   : > { %1674 = vst.msk [vmem:[#allocation2 + $0x28] sm:$0xff] %vm1469_vm11, %v1661_v61 }
 0x646   : > { %v1799_v63 = vpop.xlane.xlu2 %1798 }
 0x647   : > { %6796 = vrcp.f32 %v1799_v63 }
 0x648   : > { %6798 = vrcp.f32 %v1796_v62 }
 0x64a   : > { %2354 = vrot.lane.b32.xlu1 %v8289_v10, %s7714_s4 }
 0x64c   : > { %2099 = vrot.lane.b32.xlu2 %v8289_v10, %s7715_s1 }
 0x64d   : > { %v6797_v2 = vpop.eup %6796 }
 0x64e   : > { %v1841_v3 = vpop.permute.xlu2 %1840  ;;  %v6799_v48 = vpop.eup %6798  ;;  %v1827_v5 = vmul.f32 %v6797_v2, %v8466_v59 }
 0x64f   : > { %v1826_v8 = vmul.f32 %v6799_v48, %v8461_v33 }
 0x650   : > { %v1843_v1 = vpop.permute.xlu1 %1842 }
 0x651   : > { %1867 = vmatpush.bf16.msra.mxu0 %v1843_v1  ;;  %v1834_v36 = vpack.c.bf16 %v1827_v5, %v1826_v8 }
 0x652   : > { %2352 = vrot.lane.b32.xlu1 %v8270_v60, %s7714_s4 }
 0x655   : > { %1868 = vmatpush.bf16.msra.mxu0 %v1841_v3 }
 0x659   : > { %1869 = vmatpush.bf16.msra.mxu0 %v1839_v7 }
 0x65a   : > { %2350 = vrot.lane.b32.xlu1 %v8266_v50, %s7714_s4 }
 0x65c   : > { %6193 = vmatmul.msk.bf16.vlgmr.msra.gmra.mxu0 %vm1523_vm12, %v1834_v36 }
 0x65e   : > { %v1802_v17 = vpop.xlane.xlu0 %1801 }
 0x665   : > { %v1664_v10 = vpop.f32.mrf.mxu2 }
 0x666   : > { %1675 = vst.msk [vmem:[#allocation2 + $0x30] sm:$0xff] %vm1469_vm11, %v1664_v10  ;;  %v1808_v34 = vpop.xlane.xlu0 %1807 }
 0x66d   : > { %v1666_v11 = vpop.f32.mrf.mxu2 }
 0x66e   : > { %1676 = vst.msk [vmem:[#allocation2 + $0x38] sm:$0xff] %vm1469_vm11, %v1666_v11  ;;  %v1814_v42 = vpop.xlane.xlu0 %1813 }
 0x675   : > { %v8560_v12 = vpop.f32.mrf.mxu2 }
 0x676   : > { %v2001_v59 = vsel %vm1523_vm12, %v8560_v12, -inf }
 0x677   : > { %2002 = vmax.xlane.f32.xlu0 %v2001_v59 }
 0x67b   : > { %v2258_v33 = vpop.xlane.xlu1 %2257 }
 0x67c   : > { %v2280_v16 = vsub.f32 %v8448_v29, %v2258_v33 }
 0x67d   : > { %v8565_v6 = vpop.f32.mrf.mxu2 }
 0x67e   : > { %v2288_v54 = vmul.f32 1.442695, %v2280_v16  ;;  %v2004_v51 = vsel %vm1523_vm12, %v8565_v6, -inf }
 0x67f   : > { %2005 = vmax.xlane.f32.xlu2 %v2004_v51 }
 0x680   : > { %6800 = vpow2.f32 %v2288_v54 }
 0x681   : > { %6802 = vrcp.f32 %v1802_v17 }
 0x683   : > { %v2267_v9 = vpop.xlane.xlu1 %2266 }
 0x685   : > { %v8569_v38 = vpop.f32.mrf.mxu2 }
 0x686   : > { %v8571_v18 = vpop.eup %6800  ;;  %v2007_v15 = vsel %vm1523_vm12, %v8569_v38, -inf }
 0x687   : > { %v1805_v20 = vpop.xlane.xlu2 %1804  ;;  %2008 = vmax.xlane.f32.xlu1 %v2007_v15  ;;  %v2304_v29 = vsel %vm1523_vm12, %v8571_v18, 0.0  ;;  %v6803_v53 = vpop.eup %6802 }
 0x688   : > { %2305 = vadd.xlane.f32.xlu0 %v2304_v29  ;;  %6804 = vrcp.f32 %v1805_v20  ;;  %v1828_v58 = vmul.f32 %v6803_v53, %v8477_v14 }
 0x689   : > { %6806 = vrcp.f32 %v1808_v34 }
 0x68d   : > { %v8577_v43 = vpop.f32.mrf.mxu2 }
 0x68e   : > { %v6805_v40 = vpop.eup %6804  ;;  %v8601_v61 = vpop.xlane.xlu1 %2272 }
 0x68f   : > { %v2264_v25 = vpop.xlane.xlu2 %2263  ;;  %v1829_v35 = vmul.f32 %v6805_v40, %v8507_v27  ;;  %v6807_v44 = vpop.eup %6806 }
 0x690   : > { %v1830_v47 = vmul.f32 %v6807_v44, %v8485_v56  ;;  %v2282_v5 = vsub.f32 %v8496_v22, %v2264_v25  ;;  %v2010_v22 = vsel %vm1523_vm12, %v8577_v43, -inf }
 0x691   : > { %v1835_v31 = vpack.c.bf16 %v1829_v35, %v1828_v58 }
 0x692   : > { %v2292_v7 = vmul.f32 1.442695, %v2282_v5  ;;  %v2285_v5 = vsub.f32 %v8516_v32, %v8601_v61 }
 0x693   : > { %6194 = vmatmul.msk.bf16.gmra.mxu0 %vm1523_vm12, %v1835_v31 }
 0x695   : > { %v8582_v37 = vpop.f32.mrf.mxu2 }
 0x696   : > { %v2013_v57 = vsel %vm1523_vm12, %v8582_v37, -inf }
 0x697   : > { %2014 = vmax.xlane.f32.xlu1 %v2013_v57  ;;  %2097 = vrot.lane.b32.xlu2 %v8270_v60, %s7715_s1  ;;  %v1811_v41 = vpop.xlane.xlu2 %1810 }
 0x698   : > { %6808 = vrcp.f32 %v1811_v41 }
 0x699   : > { %6810 = vrcp.f32 %v1814_v42 }
 0x69c   : > { %2095 = vrot.lane.b32.xlu0 %v8266_v50, %s7715_s1 }
 0x69d   : > { %v8590_v14 = vpop.f32.mrf.mxu2 }
 0x69e   : > { %v6809_v27 = vpop.eup %6808 }
 0x69f   : > { %v8592_v45 = vpop.xlane.xlu2 %2269  ;;  %v1831_v49 = vmul.f32 %v6809_v27, %v8522_v23  ;;  %v6811_v46 = vpop.eup %6810  ;;  %v2281_v23 = vsub.f32 %v8454_v39, %v2261_v13  ;;  %v2283_v39 = vsub.f32 %v8503_v24, %v2267_v9  ;;  %v2016_v13 = vsel %vm1523_vm12, %v8590_v14, -inf }
 0x6a0   : > { %v1832_v63 = vmul.f32 %v6811_v46, %v8492_v19 }
 0x6a1   : > { %v1836_v52 = vpack.c.bf16 %v1831_v49, %v1830_v47  ;;  %v2290_v3 = vmul.f32 1.442695, %v2281_v23 }
 0x6a3   : > { %6195 = vmatmul.msk.bf16.gmra.mxu0 %vm1523_vm12, %v1836_v52 }
 0x6a4   : > { %v8606_v48 = vpop.xlane.xlu1 %2275 }
 0x6a5   : > { %v8597_v60 = vpop.f32.mrf.mxu2 }
 0x6a6   : > { %v2019_v50 = vsel %vm1523_vm12, %v8597_v60, -inf }
 0x6a7   : > { %2020 = vmax.xlane.f32.xlu1 %v2019_v50  ;;  %v1817_v55 = vpop.xlane.xlu2 %1816 }
 0x6a8   : > { %6812 = vrcp.f32 %v1817_v55 }
 0x6a9   : > { %6814 = vpow2.f32 %v2290_v3 }
 0x6aa   : > { %6816 = vpow2.f32 %v2292_v7 }
 0x6ac   : > { %v2279_v17 = vpop.xlane.xlu0 %2278 }
 0x6ad   : > { %v8629_v54 = vpop.f32.mrf.mxu2 }
 0x6ae   : > { %v6813_v56 = vpop.eup %6812  ;;  %v2022_v51 = vsel %vm1523_vm12, %v8629_v54, -inf }
 0x6af   : > { %v2100_v62 = vpop.permute.xlu2 %2099  ;;  %v1833_v1 = vmul.f32 %v6813_v56, %v8534_v4  ;;  %v8610_v8 = vpop.eup %6814  ;;  %v2294_v4 = vmul.f32 1.442695, %v2283_v39 }
 0x6b0   : > { %2121 = vmatpush.bf16.msrb.mxu1 %v2100_v62  ;;  %v2307_v19 = vsel %vm1523_vm12, %v8610_v8, 0.0  ;;  %v8617_v10 = vpop.eup %6816 }
 0x6b1   : > { %v1837_v2 = vpack.c.bf16 %v1833_v1, %v1832_v63  ;;  %6818 = vpow2.f32 %v2294_v4  ;;  %v2310_v24 = vsel %vm1523_vm12, %v8617_v10, 0.0 }
 0x6b3   : > { %6196 = vmatmul.msk.bf16.gmra.mxu0 %vm1523_vm12, %v1837_v2 }
 0x6b7   : > { %v8623_v59 = vpop.eup %6818 }
 0x6b8   : > { %v2313_v16 = vsel %vm1523_vm12, %v8623_v59, 0.0 }
 0x6bc   : > { %v2355_v36 = vpop.permute.xlu1 %2354 }
 0x6bd   : > { %2376 = vmatpush.bf16.msrb.mxu0 %v2355_v36  ;;  %v2287_v36 = vsub.f32 %v8541_v26, %v2279_v17  ;;  %v2286_v26 = vsub.f32 %v8532_v30, %v8606_v48 }
 0x6c0   : > { %2093 = vrot.lane.b32.xlu1 %v8276_v0, %s7715_s1  ;;  %2308 = vadd.xlane.f32.xlu2 %v2307_v19  ;;  %v2302_v19 = vmul.f32 1.442695, %v2287_v36  ;;  %s10189_s1 = sld [smem:[#allocation47_spill]] }
 0x6c4   : > { %v2353_v11 = vpop.permute.xlu1 %2352 }
 0x6c5   : > { %2377 = vmatpush.bf16.msrb.mxu0 %v2353_v11 }
 0x6c6   : > { %2011 = vmax.xlane.f32.xlu0 %v2010_v22 }
 0x6c8   : > { %2311 = vadd.xlane.f32.xlu2 %v2310_v24 }
 0x6cc   : > { %v2351_v33 = vpop.permute.xlu1 %2350 }
 0x6cd   : > { %2378 = vmatpush.bf16.msrb.mxu0 %v2351_v33  ;;  %v2300_v33 = vmul.f32 1.442695, %v2286_v26 }
 0x6ce   : > { %2017 = vmax.xlane.f32.xlu0 %v2016_v13 }
 0x6d0   : > { %2314 = vadd.xlane.f32.xlu2 %v2313_v16 }
 0x6d6   : > { %2023 = vmax.xlane.f32.xlu0 %v2022_v51 }
 0x6ea   : > { %v2003_v15 = vpop.xlane.xlu0 %2002 }
 0x6eb   : > { %v2025_v20 = vsub.f32 %v8560_v12, %v2003_v15  ;;  %v2284_v12 = vsub.f32 %v8509_v28, %v8592_v45 }
 0x6ed   : > { %v2033_v29 = vmul.f32 1.442695, %v2025_v20  ;;  %v2296_v27 = vmul.f32 1.442695, %v2284_v12 }
 0x6ef   : > { %6820 = vpow2.f32 %v2033_v29  ;;  %v1871_v29 = vpop.f32.mrf.mxu0 }
 0x6f2   : > { %v2006_v53 = vpop.xlane.xlu2 %2005 }
 0x6f3   : > { %v2026_v40 = vsub.f32 %v8565_v6, %v2006_v53 }
 0x6f5   : > { %v8635_v25 = vpop.eup %6820  ;;  %v2035_v58 = vmul.f32 1.442695, %v2026_v40 }
 0x6f6   : > { %v2049_v35 = vsel %vm1523_vm12, %v8635_v25, 0.0 }
 0x6f7   : > { %6822 = vpow2.f32 %v2035_v58  ;;  %2050 = vadd.xlane.f32.xlu0 %v2049_v35  ;;  %v1873_v58 = vpop.f32.mrf.mxu0 }
 0x6fa   : > { %v2009_v31 = vpop.xlane.xlu1 %2008  ;;  %v2098_v34 = vpop.permute.xlu2 %2097 }
 0x6fb   : > { %v2027_v57 = vsub.f32 %v8569_v38, %v2009_v31  ;;  %2122 = vmatpush.bf16.msrb.mxu1 %v2098_v34  ;;  %v8648_v49 = vpop.xlane.xlu0 %2305 }
 0x6fd   : > { %v8640_v41 = vpop.eup %6822  ;;  %v2037_v44 = vmul.f32 1.442695, %v2027_v57 }
 0x6fe   : > { %v2052_v6 = vsel %vm1523_vm12, %v8640_v41, 0.0 }
 0x6ff   : > { %6824 = vpow2.f32 %v2037_v44  ;;  %2053 = vadd.xlane.f32.xlu0 %v2052_v6 }
 0x700   : > { %6826 = vpow2.f32 %v2296_v27 }
 0x705   : > { %v8646_v47 = vpop.eup %6824 }
 0x706   : > { %v2055_v38 = vsel %vm1523_vm12, %v8646_v47, 0.0  ;;  %v8652_v42 = vpop.eup %6826 }
 0x707   : > { %2056 = vadd.xlane.f32.xlu1 %v2055_v38  ;;  %v2316_v50 = vsel %vm1523_vm12, %v8652_v42, 0.0 }
 0x70a   : > { %v2015_v52 = vpop.xlane.xlu1 %2014 }
 0x70b   : > { %v2029_v28 = vsub.f32 %v8582_v37, %v2015_v52 }
 0x70d   : > { %v2041_v45 = vmul.f32 1.442695, %v2029_v28 }
 0x70e   : > { %v2096_v9 = vpop.permute.xlu0 %2095 }
 0x70f   : > { %6828 = vpow2.f32 %v2041_v45  ;;  %2317 = vadd.xlane.f32.xlu1 %v2316_v50  ;;  %2123 = vmatpush.bf16.msrb.mxu1 %v2096_v9 }
 0x713   : > { %2348 = vrot.lane.b32.xlu0 %v8276_v0, %s7714_s4  ;;  %s10188_s4 = sld [smem:[#allocation46_spill]] }
 0x715   : > { %v8659_v55 = vpop.eup %6828 }
 0x716   : > { %v2061_v46 = vsel %vm1523_vm12, %v8659_v55, 0.0 }
 0x717   : > { %2062 = vadd.xlane.f32.xlu2 %v2061_v46 }
 0x71a   : > { %v2021_v56 = vpop.xlane.xlu1 %2020 }
 0x71b   : > { %v2031_v63 = vsub.f32 %v8597_v60, %v2021_v56  ;;  %v2298_v60 = vmul.f32 1.442695, %v2285_v5  ;;  %v1876_v5 = vpop.f32.mrf.mxu0 }
 0x71d   : > { %v2045_v2 = vmul.f32 1.442695, %v2031_v63 }
 0x732   : > { %v2094_v23 = vpop.permute.xlu1 %2093 }
 0x733   : > { %2124 = vmatpush.bf16.msrb.mxu1 %v2094_v23  ;;  %v2309_v40 = vpop.xlane.xlu2 %2308 }
 0x739   : > { %v2012_v37 = vpop.xlane.xlu0 %2011 }
 0x73a   : > { %v2028_v62 = vsub.f32 %v8577_v43, %v2012_v37 }
 0x73b   : > { %v2312_v44 = vpop.xlane.xlu2 %2311 }
 0x73c   : > { %v2039_v1 = vmul.f32 1.442695, %v2028_v62 }
 0x73e   : > { %6830 = vpow2.f32 %v2039_v1 }
 0x73f   : > { %6832 = vpow2.f32 %v2045_v2 }
 0x741   : > { %v2018_v3 = vpop.xlane.xlu0 %2017 }
 0x742   : > { %v2030_v0 = vsub.f32 %v8590_v14, %v2018_v3 }
 0x743   : > { %v2315_v9 = vpop.xlane.xlu2 %2314 }
 0x744   : > { %v8668_v7 = vpop.eup %6830  ;;  %v2043_v39 = vmul.f32 1.442695, %v2030_v0 }
 0x745   : > { %v2058_v43 = vsel %vm1523_vm12, %v8668_v7, 0.0  ;;  %v8673_v11 = vpop.eup %6832 }
 0x746   : > { %6834 = vpow2.f32 %v2043_v39  ;;  %2059 = vadd.xlane.f32.xlu0 %v2058_v43  ;;  %v2067_v22 = vsel %vm1523_vm12, %v8673_v11, 0.0 }
 0x747   : > { %6836 = vpow2.f32 %v2298_v60 }
 0x748   : > { %6838 = vpow2.f32 %v2302_v19 }
 0x749   : > { %v2024_v4 = vpop.xlane.xlu0 %2023 }
 0x74a   : > { %v2032_v14 = vsub.f32 %v8629_v54, %v2024_v4 }
 0x74c   : > { %v8676_v32 = vpop.eup %6834  ;;  %v2047_v61 = vmul.f32 1.442695, %v2032_v14 }
 0x74d   : > { %v2064_v24 = vsel %vm1523_vm12, %v8676_v32, 0.0  ;;  %v8684_v13 = vpop.eup %6836 }
 0x74e   : > { %6840 = vpow2.f32 %v2047_v61  ;;  %2068 = vadd.xlane.f32.xlu0 %v2067_v22  ;;  %2065 = vadd.xlane.f32.xlu2 %v2064_v24  ;;  %v8686_v16 = vpop.eup %6838  ;;  %v2319_v48 = vsel %vm1523_vm12, %v8684_v13, 0.0  ;;  %v1878_v24 = vpop.f32.mrf.mxu0 }
 0x74f   : > { %6842 = vpow2.f32 %v2300_v33  ;;  %v2325_v30 = vsel %vm1523_vm12, %v8686_v16, 0.0 }
 0x754   : > { %v8688_v54 = vpop.eup %6840 }
 0x755   : > { %v2070_v51 = vsel %vm1523_vm12, %v8688_v54, 0.0  ;;  %v8696_v17 = vpop.eup %6842 }
 0x756   : > { %2326 = vadd.xlane.f32.xlu0 %v2325_v30  ;;  %2320 = vadd.xlane.f32.xlu2 %v2319_v48  ;;  %v2322_v15 = vsel %vm1523_vm12, %v8696_v17, 0.0 }
 0x757   : > { %2071 = vadd.xlane.f32.xlu1 %v2070_v51  ;;  %v1881_v51 = vpop.f32.mrf.mxu0 }
 0x75e   : > { %2323 = vadd.xlane.f32.xlu2 %v2322_v15 }
 0x76a   : > { %v2051_v20 = vpop.xlane.xlu0 %2050 }
 0x76b   : > { %6844 = vrcp.f32 %v2051_v20 }
 0x770   : > { %1899 = vrot.lane.b32.xlu1 %v1871_v29, %s10119_s15 }
 0x771   : > { %v6845_v35 = vpop.eup %6844 }
 0x772   : > { %v2054_v53 = vpop.xlane.xlu0 %2053  ;;  %v2081_v34 = vmul.f32 %v6845_v35, %v8635_v25 }
 0x773   : > { %6846 = vrcp.f32 %v2054_v53 }
 0x774   : > { %6848 = vrcp.f32 %v2309_v40 }
 0x775   : > { %6850 = vrcp.f32 %v8648_v49 }
 0x776   : > { %1901 = vrot.lane.b32.xlu2 %v1873_v58, %s10119_s15  ;;  %6852 = vrcp.f32 %v2315_v9  ;;  %v1883_v58 = vpop.f32.mrf.mxu0 }
 0x777   : > { %6854 = vrcp.f32 %v2312_v44 }
 0x779   : > { %v6847_v31 = vpop.eup %6846 }
 0x77a   : > { %v2082_v57 = vmul.f32 %v6847_v31, %v8640_v41  ;;  %v6849_v6 = vpop.eup %6848 }
 0x77b   : > { %v6851_v27 = vpop.eup %6850  ;;  %v2337_v38 = vmul.f32 %v6849_v6, %v8610_v8  ;;  %v2057_v8 = vpop.xlane.xlu1 %2056 }
 0x77c   : > { %v2089_v12 = vpack.c.bf16 %v2082_v57, %v2081_v34  ;;  %v2336_v52 = vmul.f32 %v6851_v27, %v8571_v18  ;;  %v6853_v25 = vpop.eup %6852  ;;  %6856 = vrcp.f32 %v2057_v8  ;;  %v6384_v57 = vld [vmem:[%s10184_s11 + $0x8] sm:$0xff] }
 0x77d   : > { %v6855_v41 = vpop.eup %6854  ;;  %v2339_v49 = vmul.f32 %v6853_v25, %v8623_v59  ;;  %2488 = vmatpush.bf16.msra.mxu2 %v6384_v57 }
 0x77e   : > { %6201 = vmatmul.msk.bf16.vlgmr.msrb.gmra.mxu1 %vm1523_vm12, %v2089_v12  ;;  %v2344_v45 = vpack.c.bf16 %v2337_v38, %v2336_v52  ;;  %v2338_v50 = vmul.f32 %v6855_v41, %v8617_v10  ;;  %v1886_v35 = vpop.f32.mrf.mxu0  ;;  %v6383_v52 = vld [vmem:[%s10184_s11] sm:$0xff] }
 0x780   : > { %v2345_v46 = vpack.c.bf16 %v2339_v49, %v2338_v50 }
 0x781   : > { %2489 = vmatpush.bf16.msra.mxu2 %v6383_v52 }
 0x782   : > { %v6857_v23 = vpop.eup %6856 }
 0x783   : > { %v2083_v63 = vmul.f32 %v6857_v23, %v8646_v47  ;;  %v2318_v3 = vpop.xlane.xlu1 %2317 }
 0x785   : > { %v2349_v28 = vpop.permute.xlu0 %2348 }
 0x786   : > { %2379 = vmatpush.bf16.msrb.mxu0 %v2349_v28 }
 0x789   : > { %6209 = vmatmul.msk.bf16.vlgmr.msrb.gmra.mxu0 %vm1523_vm12, %v2344_v45 }
 0x78a   : > { %v2063_v18 = vpop.xlane.xlu2 %2062 }
 0x799   : > { %6210 = vmatmul.msk.bf16.gmra.mxu0 %vm1523_vm12, %v2345_v46 }
 0x7b9   : > { %v2060_v56 = vpop.xlane.xlu0 %2059 }
 0x7ba   : > { %6858 = vrcp.f32 %v2060_v56 }
 0x7c0   : > { %v6859_v37 = vpop.eup %6858 }
 0x7c1   : > { %v2066_v62 = vpop.xlane.xlu2 %2065  ;;  %v2084_v1 = vmul.f32 %v6859_v37, %v8668_v7  ;;  %v2069_v59 = vpop.xlane.xlu0 %2068 }
 0x7c2   : > { %6860 = vrcp.f32 %v2066_v62 }
 0x7c3   : > { %v2090_v2 = vpack.c.bf16 %v2084_v1, %v2083_v63  ;;  %6862 = vrcp.f32 %v2318_v3 }
 0x7c4   : > { %6864 = vrcp.f32 %v2063_v18 }
 0x7c5   : > { %6202 = vmatmul.msk.bf16.gmra.mxu1 %vm1523_vm12, %v2090_v2 }
 0x7c8   : > { %v6861_v0 = vpop.eup %6860 }
 0x7c9   : > { %v2321_v10 = vpop.xlane.xlu2 %2320  ;;  %v6863_v36 = vpop.eup %6862  ;;  %v2086_v43 = vmul.f32 %v6861_v0, %v8676_v32  ;;  %v6388_v0 = vld [vmem:[%s10185_s10 + $0x8] sm:$0xff] }
 0x7ca   : > { %6866 = vrcp.f32 %v2321_v10  ;;  %v6865_v39 = vpop.eup %6864  ;;  %v2340_v47 = vmul.f32 %v6863_v36, %v8652_v42  ;;  %v2072_v14 = vpop.xlane.xlu1 %2071  ;;  %2626 = vmatpush.bf16.msra.mxu3 %v6388_v0 }
 0x7cb   : > { %v2085_v4 = vmul.f32 %v6865_v39, %v8659_v55  ;;  %6868 = vrcp.f32 %v2072_v14  ;;  %v2327_v22 = vpop.xlane.xlu0 %2326 }
 0x7cd   : > { %v2091_v26 = vpack.c.bf16 %v2086_v43, %v2085_v4  ;;  %v1183_v4 = vld [vmem:[#allocation7] sm:$0xf] }
 0x7d0   : > { %v6867_v60 = vpop.eup %6866 }
 0x7d1   : > { %v2341_v7 = vmul.f32 %v6867_v60, %v8684_v13  ;;  %v2324_v19 = vpop.xlane.xlu2 %2323  ;;  %v6869_v32 = vpop.eup %6868 }
 0x7d2   : > { %6870 = vrcp.f32 %v2324_v19  ;;  %v2088_v48 = vmul.f32 %v6869_v32, %v8688_v54  ;;  %v1888_v54 = vpop.f32.mrf.mxu0  ;;  %v6387_v19 = vld [vmem:[%s10185_s10] sm:$0xff] }
 0x7d3   : > { %v2346_v61 = vpack.c.bf16 %v2341_v7, %v2340_v47  ;;  %6872 = vrcp.f32 %v2069_v59  ;;  %v6386_v7 = vld [vmem:[%s10186_s23 + $0x8] sm:$0xff]  ;;  %2627 = vmatpush.bf16.msra.mxu3 %v6387_v19 }
 0x7d4   : > { %6874 = vrcp.f32 %v2327_v22  ;;  %2573 = vmatpush.bf16.msra.mxu1 %v6386_v7 }
 0x7d5   : > { %6203 = vmatmul.msk.bf16.gmra.mxu1 %vm1523_vm12, %v2091_v26  ;;  %6211 = vmatmul.msk.bf16.gmra.mxu0 %vm1523_vm12, %v2346_v61  ;;  %v8772_v26 = vpack.c.bf16 %v1183_v4, %v1183_v4 }
 0x7d7   : > { %6245 = vmatmul.msk.bf16.vlgmr.msra.gmra.mxu3 %vm1184_vm0, %v8772_v26 }
 0x7d8   : > { %v6871_v33 = vpop.eup %6870 }
 0x7d9   : > { %v1902_v42 = vpop.permute.xlu2 %1901  ;;  %v6873_v55 = vpop.eup %6872  ;;  %v2342_v30 = vmul.f32 %v6871_v33, %v8696_v17 }
 0x7da   : > { %1925 = vst.msk [vmem:[#allocation2 + $0x8] sm:$0xff] %vm1923_vm13, %v1902_v42  ;;  %v6875_v13 = vpop.eup %6874  ;;  %v2087_v20 = vmul.f32 %v6873_v55, %v8673_v11 }
 0x7db   : > { %v2343_v15 = vmul.f32 %v6875_v13, %v8686_v16 }
 0x7dc   : > { %v2092_v53 = vpack.c.bf16 %v2088_v48, %v2087_v20 }
 0x7dd   : > { %v2347_v40 = vpack.c.bf16 %v2343_v15, %v2342_v30 }
 0x7e2   : > { %v1900_v29 = vpop.permute.xlu1 %1899 }
 0x7e3   : > { %1924 = vst.msk [vmem:[#allocation2] sm:$0xff] %vm1923_vm13, %v1900_v29  ;;  %v6385_v29 = vld [vmem:[%s10186_s23] sm:$0xff] }
 0x7e4   : > { %2574 = vmatpush.bf16.msra.mxu1 %v6385_v29 }
 0x7e5   : > { %6204 = vmatmul.msk.bf16.gmra.mxu1 %vm1523_vm12, %v2092_v53  ;;  %6212 = vmatmul.msk.bf16.gmra.mxu0 %vm1523_vm12, %v2347_v40  ;;  %v7132_v40 = vld [vmem:[%s8138_s13] sm:$0xff] }
 0x7fb   : > { %v2126_v31 = vpop.f32.mrf.mxu1 }
 0x7fc   : > { %2154 = vrot.lane.b32.xlu0 %v2126_v31, %s7717_s9 }
 0x803   : > { %v2128_v16 = vpop.f32.mrf.mxu1 }
 0x804   : > { %2156 = vrot.lane.b32.xlu1 %v2128_v16, %s7717_s9 }
 0x806   : > { %v2381_v11 = vpop.f32.mrf.mxu0 }
 0x807   : > { %2409 = vrot.lane.b32.xlu0 %v2381_v11, %s7718_s17 }
 0x80c   : > { %1903 = vrot.lane.b32.xlu1 %v1876_v5, %s10119_s15 }
 0x80e   : > { %v2383_v17 = vpop.f32.mrf.mxu0 }
 0x80f   : > { %1905 = vrot.lane.b32.xlu0 %v1878_v24, %s10119_s15  ;;  %2411 = vrot.lane.b32.xlu2 %v2383_v17, %s7718_s17 }
 0x816   : > { %v2386_v34 = vpop.f32.mrf.mxu0 }
 0x817   : > { %2413 = vrot.lane.b32.xlu0 %v2386_v34, %s7718_s17 }
 0x81e   : > { %v2388_v44 = vpop.f32.mrf.mxu0 }
 0x81f   : > { %1909 = vrot.lane.b32.xlu0 %v1883_v58, %s10119_s15 }
 0x842   : > { %v2131_v12 = vpop.f32.mrf.mxu1 }
 0x843   : > { %2158 = vrot.lane.b32.xlu2 %v2131_v12, %s7717_s9  ;;  %v6715_v12 = vld [vmem:[%s10188_s4] ss:$0 sm:$0xff]  ;;  %s10195_s4 = sld [smem:[#allocation56_spill]] }
 0x84a   : > { %v2133_v6 = vpop.f32.mrf.mxu1 }
 0x84b   : > { %2415 = vrot.lane.b32.xlu2 %v2388_v44, %s7718_s17  ;;  %2160 = vrot.lane.b32.xlu1 %v2133_v6, %s7717_s9 }
 0x852   : > { %v2136_v27 = vpop.f32.mrf.mxu1  ;;  %v2391_v38 = vpop.f32.mrf.mxu0 }
 0x853   : > { %2417 = vrot.lane.b32.xlu0 %v2391_v38, %s7718_s17  ;;  %1907 = vrot.lane.b32.xlu1 %v1881_v51, %s10119_s15 }
 0x854   : > { %2162 = vrot.lane.b32.xlu2 %v2136_v27, %s7717_s9  ;;  %v7134_v27 = vld [vmem:[%s8138_s13 + $0x10] sm:$0xff] }
 0x85a   : > { %v2138_v28 = vpop.f32.mrf.mxu1  ;;  %v2393_v45 = vpop.f32.mrf.mxu0 }
 0x85b   : > { %1913 = vrot.lane.b32.xlu0 %v1888_v54, %s10119_s15  ;;  %2164 = vrot.lane.b32.xlu1 %v2138_v28, %s7717_s9  ;;  %v7133_v54 = vld [vmem:[%s8138_s13 + $0x8] sm:$0xff]  ;;  %v2629_v44 = vpop.f32.mrf.mxu3 }
 0x85c   : > { %2419 = vrot.lane.b32.xlu2 %v2393_v45, %s7718_s17  ;;  %v2630_v6 = vadd.f32 %v6715_v12, %v2629_v44  ;;  %v7135_v45 = vld [vmem:[%s8138_s13 + $0x18] sm:$0xff] }
 0x85e   : > { %v2674_v28 = vpack.c.bf16 %v2630_v6, %v2630_v6 }
 0x862   : > { %v2141_v9 = vpop.f32.mrf.mxu1  ;;  %v2396_v25 = vpop.f32.mrf.mxu0 }
 0x863   : > { %1911 = vrot.lane.b32.xlu1 %v1886_v35, %s10119_s15  ;;  %2421 = vrot.lane.b32.xlu0 %v2396_v25, %s7718_s17  ;;  %v6714_v35 = vld [vmem:[%s10187_s16] ss:$0 sm:$0xff]  ;;  %v3042_v25 = vunpack.c.l.b16 %v2674_v28  ;;  %s10194_s16 = sld [smem:[#allocation51_spill]]  ;;  %s6413_s15 = sshll.u32 %s7912_s26, 6 }
 0x864   : > { %2166 = vrot.lane.b32.xlu2 %v2141_v9, %s7717_s9 }
 0x869   : > { %v2412_v8 = vpop.permute.xlu2 %2411 }
 0x86a   : > { %v2143_v41 = vpop.f32.mrf.mxu1  ;;  %v2398_v49 = vpop.f32.mrf.mxu0 }
 0x86b   : > { %2168 = vrot.lane.b32.xlu1 %v2143_v41, %s7717_s9  ;;  %s10190_s9 = sld [smem:[#allocation44_spill]] }
 0x86c   : > { %2423 = vrot.lane.b32.xlu2 %v2398_v49, %s7718_s17  ;;  %s10193_s17 = sld [smem:[#allocation49_spill]] }
 0x86e   : > { %v2155_v50 = vpop.permute.xlu0 %2154 }
 0x86f   : > { %2179 = vst.msk [vmem:[#allocation2] sm:$0xff] %vm2178_vm14, %v2155_v50  ;;  %v6390_v50 = vld [vmem:[%s10189_s1 + $0x8] sm:$0xff] }
 0x870   : > { %2659 = vmatpush.bf16.msrb.mxu3 %v6390_v50 }
 0x876   : > { %v2157_v46 = vpop.permute.xlu1 %2156 }
 0x877   : > { %2180 = vst.msk [vmem:[#allocation2 + $0x8] sm:$0xff] %vm2178_vm14, %v2157_v46  ;;  %v3043_v46 = vpack.c.b16 %v3042_v25, %v3042_v25 }
 0x878   : > { %2435 = vst.msk [vmem:[#allocation2 + $0x8] sm:$0xff] %vm2433_vm15, %v2412_v8 }
 0x879   : > { %v2410_v18 = vpop.permute.xlu0 %2409  ;;  %3044 = vrot.lane.b32.xlu1 %v3043_v46, %s7712_s7 }
 0x87a   : > { %2434 = vst.msk [vmem:[#allocation2] sm:$0xff] %vm2433_vm15, %v2410_v18  ;;  %v2631_v18 = vpop.f32.mrf.mxu3 }
 0x87e   : > { %v1904_v56 = vpop.permute.xlu1 %1903 }
 0x87f   : > { %1926 = vst.msk [vmem:[#allocation2 + $0x10] sm:$0xff] %vm1923_vm13, %v1904_v56  ;;  %v2443_v62 = vld [vmem:[#allocation2 + $0x8] sm:$0xff]  ;;  %v2709_v56 = vsel %vm2695_vm1, %v2674_v28, 0 }
 0x881   : > { %v1906_v23 = vpop.permute.xlu0 %1905  ;;  %v2442_v37 = vld [vmem:[#allocation2] sm:$0xff] }
 0x882   : > { %1927 = vst.msk [vmem:[#allocation2 + $0x18] sm:$0xff] %vm1923_vm13, %v1906_v23  ;;  %v2454_v63 = vpack.c.bf16 %v2443_v62, %v2442_v37  ;;  %v6389_v23 = vld [vmem:[%s10189_s1] sm:$0xff] }
 0x883   : > { %2660 = vmatpush.bf16.msrb.mxu3 %v6389_v23  ;;  %v7136_v62 = vld [vmem:[%s8138_s13 + $0x20] sm:$0xff] }
 0x884   : > { %6221 = vmatmul.msk.bf16.vlgmr.msra.gmra.mxu2 %vm1184_vm0, %v2454_v63 }
 0x886   : > { %6254 = vmatmul.msk.bf16.vlgmr.msrb.gmra.mxu3 %vm1184_vm0, %v8772_v26  ;;  %v6716_v26 = vld [vmem:[%s10190_s9] ss:$0 sm:$0xff]  ;;  %s10196_s9 = sld [smem:[#allocation57_spill]] }
 0x887   : > { %2718 = vmatpush.bf16.xpose.msra.mxu3 %v2709_v56 }
 0x889   : > { %v2414_v1 = vpop.permute.xlu0 %2413 }
 0x891   : > { %v1910_v2 = vpop.permute.xlu0 %1909 }
 0x892   : > { %1929 = vst.msk [vmem:[#allocation2 + $0x28] sm:$0xff] %vm1923_vm13, %v1910_v2  ;;  %v7137_v2 = vld [vmem:[%s8138_s13 + $0x28] sm:$0xff] }
 0x89d   : > { %v2159_v3 = vpop.permute.xlu2 %2158 }
 0x89e   : > { %2181 = vst.msk [vmem:[#allocation2 + $0x10] sm:$0xff] %vm2178_vm14, %v2159_v3 }
 0x89f   : > { %2436 = vst.msk [vmem:[#allocation2 + $0x10] sm:$0xff] %vm2433_vm15, %v2414_v1 }
 0x8a5   : > { %v2416_v10 = vpop.permute.xlu2 %2415 }
 0x8a6   : > { %v2444_v43 = vld [vmem:[#allocation2 + $0x10] sm:$0xff] }
 0x8ae   : > { %v2163_v5 = vpop.permute.xlu2 %2162 }
 0x8b6   : > { %v2420_v14 = vpop.permute.xlu2 %2419 }
 0x8bd   : > { %v2161_v59 = vpop.permute.xlu1 %2160 }
 0x8be   : > { %2182 = vst.msk [vmem:[#allocation2 + $0x18] sm:$0xff] %vm2178_vm14, %v2161_v59  ;;  %v2167_v24 = vpop.permute.xlu2 %2166 }
 0x8bf   : > { %2437 = vst.msk [vmem:[#allocation2 + $0x18] sm:$0xff] %vm2433_vm15, %v2416_v10 }
 0x8c5   : > { %v1908_v36 = vpop.permute.xlu1 %1907  ;;  %v2418_v39 = vpop.permute.xlu0 %2417 }
 0x8c6   : > { %1928 = vst.msk [vmem:[#allocation2 + $0x20] sm:$0xff] %vm1923_vm13, %v1908_v36  ;;  %v2445_v60 = vld [vmem:[#allocation2 + $0x18] sm:$0xff]  ;;  %v2424_v48 = vpop.permute.xlu2 %2423 }
 0x8c7   : > { %2183 = vst.msk [vmem:[#allocation2 + $0x20] sm:$0xff] %vm2178_vm14, %v2163_v5  ;;  %v2455_v47 = vpack.c.bf16 %v2445_v60, %v2444_v43  ;;  %v7138_v36 = vld [vmem:[%s8138_s13 + $0x30] sm:$0xff]  ;;  %v7139_v60 = vld [vmem:[%s8138_s13 + $0x38] sm:$0xff]  ;;  %s10191_s13 = sld [smem:[#allocation52_spill]] }
 0x8c8   : > { %2438 = vst.msk [vmem:[#allocation2 + $0x20] sm:$0xff] %vm2433_vm15, %v2418_v39 }
 0x8c9   : > { %6222 = vmatmul.msk.bf16.gmra.mxu2 %vm1184_vm0, %v2455_v47 }
 0x8cd   : > { %v2165_v61 = vpop.permute.xlu1 %2164  ;;  %v1914_v22 = vpop.permute.xlu0 %1913 }
 0x8ce   : > { %2184 = vst.msk [vmem:[#allocation2 + $0x28] sm:$0xff] %vm2178_vm14, %v2165_v61 }
 0x8cf   : > { %2439 = vst.msk [vmem:[#allocation2 + $0x28] sm:$0xff] %vm2433_vm15, %v2420_v14  ;;  %v2446_v32 = vld [vmem:[#allocation2 + $0x20] sm:$0xff] }
 0x8d0   : > { %1931 = vst.msk [vmem:[#allocation2 + $0x38] sm:$0xff] %vm1923_vm13, %v1914_v22 }
 0x8d5   : > { %v1912_v42 = vpop.permute.xlu1 %1911  ;;  %v2422_v55 = vpop.permute.xlu0 %2421 }
 0x8d6   : > { %1930 = vst.msk [vmem:[#allocation2 + $0x30] sm:$0xff] %vm1923_vm13, %v1912_v42  ;;  %v2447_v33 = vld [vmem:[#allocation2 + $0x28] sm:$0xff] }
 0x8d7   : > { %2185 = vst.msk [vmem:[#allocation2 + $0x30] sm:$0xff] %vm2178_vm14, %v2167_v24  ;;  %v2456_v13 = vpack.c.bf16 %v2447_v33, %v2446_v32 }
 0x8d8   : > { %2440 = vst.msk [vmem:[#allocation2 + $0x30] sm:$0xff] %vm2433_vm15, %v2422_v55 }
 0x8d9   : > { %6223 = vmatmul.msk.bf16.gmra.mxu2 %vm1184_vm0, %v2456_v13 }
 0x8dd   : > { %v2169_v30 = vpop.permute.xlu1 %2168 }
 0x8de   : > { %2186 = vst.msk [vmem:[#allocation2 + $0x38] sm:$0xff] %vm2178_vm14, %v2169_v30 }
 0x8df   : > { %2441 = vst.msk [vmem:[#allocation2 + $0x38] sm:$0xff] %vm2433_vm15, %v2424_v48  ;;  %v2448_v51 = vld [vmem:[#allocation2 + $0x30] sm:$0xff] }
 0x8e6   : > { %v2449_v15 = vld [vmem:[#allocation2 + $0x38] sm:$0xff] }
 0x8e7   : > { %v2457_v20 = vpack.c.bf16 %v2449_v15, %v2448_v51 }
 0x8e9   : > { %6224 = vmatmul.msk.bf16.gmra.mxu2 %vm1184_vm0, %v2457_v20 }
 0x8eb   : > { %v3045_v30 = vpop.permute.xlu1 %3044 }
 0x8ec   : > { %v3059_v51 = vsel %vm2695_vm1, %v3045_v30, 0 }
 0x8ed   : > { %3068 = vmatpush.bf16.xpose.msra.mxu0 %v3059_v51 }
 0x907   : > { %v2491_v53 = vpop.f32.mrf.mxu2 }
 0x908   : > { %v2511_v58 = vadd.f32 %v7132_v40, %v2491_v53 }
 0x90a   : > { %v8790_v11 = vadd.f32 %v6714_v35, %v2511_v58 }
 0x90f   : > { %v2493_v31 = vpop.f32.mrf.mxu2 }
 0x910   : > { %v2512_v16 = vadd.f32 %v7133_v54, %v2493_v31 }
 0x912   : > { %v8792_v17 = vadd.f32 %v6714_v35, %v2512_v16  ;;  %v6394_v16 = vld [vmem:[%s10191_s13 + $0x8] sm:$0xff] }
 0x913   : > { %3735 = vmatpush.bf16.msrb.mxu3 %v6394_v16 }
 0x914   : > { %v8796_v34 = vpack.c.bf16 %v8792_v17, %v8790_v11 }
 0x916   : > { %6233 = vmatmul.msk.bf16.vlgmr.msra.gmra.mxu1 %vm1184_vm0, %v8796_v34 }
 0x94c   : > { %v2496_v57 = vpop.f32.mrf.mxu2 }
 0x94d   : > { %v2513_v38 = vadd.f32 %v7134_v27, %v2496_v57  ;;  %v6393_v57 = vld [vmem:[%s10191_s13] sm:$0xff] }
 0x94e   : > { %3736 = vmatpush.bf16.msrb.mxu3 %v6393_v57 }
 0x94f   : > { %v8803_v41 = vadd.f32 %v6714_v35, %v2513_v38 }
 0x954   : > { %v2498_v52 = vpop.f32.mrf.mxu2 }
 0x955   : > { %v2514_v9 = vadd.f32 %v7135_v45, %v2498_v52  ;;  %v8851_v45 = vpop.f32.mrf.mxu3 }
 0x957   : > { %v8805_v49 = vadd.f32 %v6714_v35, %v2514_v9 }
 0x959   : > { %v8810_v8 = vpack.c.bf16 %v8805_v49, %v8803_v41 }
 0x95b   : > { %6234 = vmatmul.msk.bf16.gmra.mxu1 %vm1184_vm0, %v8810_v8 }
 0x95c   : > { %v2501_v37 = vpop.f32.mrf.mxu2 }
 0x95d   : > { %v2515_v63 = vadd.f32 %v7136_v62, %v2501_v37  ;;  %v2664_v46 = vpop.f32.mrf.mxu3 }
 0x95f   : > { %v8821_v10 = vadd.f32 %v6714_v35, %v2515_v63 }
 0x964   : > { %v2503_v1 = vpop.f32.mrf.mxu2 }
 0x965   : > { %v2516_v3 = vadd.f32 %v7137_v2, %v2503_v1 }
 0x967   : > { %v8823_v59 = vadd.f32 %v6714_v35, %v2516_v3 }
 0x969   : > { %v8827_v0 = vpack.c.bf16 %v8823_v59, %v8821_v10 }
 0x96b   : > { %6235 = vmatmul.msk.bf16.gmra.mxu1 %vm1184_vm0, %v8827_v0 }
 0x96c   : > { %v2506_v5 = vpop.f32.mrf.mxu2 }
 0x96d   : > { %v2517_v39 = vadd.f32 %v7138_v36, %v2506_v5 }
 0x96f   : > { %v8833_v7 = vadd.f32 %v6714_v35, %v2517_v39 }
 0x974   : > { %v2508_v43 = vpop.f32.mrf.mxu2 }
 0x975   : > { %v2518_v47 = vadd.f32 %v7139_v60, %v2508_v43 }
 0x977   : > { %v8835_v19 = vadd.f32 %v6714_v35, %v2518_v47 }
 0x979   : > { %v8839_v4 = vpack.c.bf16 %v8835_v19, %v8833_v7 }
 0x97b   : > { %6236 = vmatmul.msk.bf16.gmra.mxu1 %vm1184_vm0, %v8839_v4 }
 0x993   : > { %v2576_v14 = vpop.f32.mrf.mxu1 }
 0x994   : > { %v2577_v61 = vadd.f32 %v6716_v26, %v2576_v14 }
 0x996   : > { %v2666_v24 = vpack.c.bf16 %v2577_v61, %v2577_v61 }
 0x998   : > { %v2683_v33 = vunpack.c.l.b16 %v2666_v24 }
 0x99b   : > { %v2578_v22 = vpop.f32.mrf.mxu1 }
 0x99c   : > { %v2579_v42 = vadd.f32 %v6716_v26, %v2578_v22 }
 0x99e   : > { %v2667_v32 = vpack.c.bf16 %v2579_v42, %v2579_v42 }
 0x9a0   : > { %v2684_v55 = vunpack.c.l.b16 %v2667_v32 }
 0x9a2   : > { %v2691_v13 = vpack.c.b16 %v2684_v55, %v2683_v33 }
 0x9a4   : > { %3033 = vrot.lane.b32.xlu0 %v2691_v13, %s7712_s7  ;;  %6255 = vmatmul.msk.bf16.vlgmr.msra.gmra.mxu3 %vm2695_vm1, %v2691_v13 }
 0x9d8   : > { %v2581_v48 = vpop.f32.mrf.mxu1 }
 0x9d9   : > { %v2582_v15 = vadd.f32 %v6716_v26, %v2581_v48 }
 0x9db   : > { %v2668_v29 = vpack.c.bf16 %v2582_v15, %v2582_v15 }
 0x9dd   : > { %v2685_v58 = vunpack.c.l.b16 %v2668_v29 }
 0x9e0   : > { %v2583_v20 = vpop.f32.mrf.mxu1 }
 0x9e1   : > { %v2584_v53 = vadd.f32 %v6716_v26, %v2583_v20 }
 0x9e3   : > { %v2669_v40 = vpack.c.bf16 %v2584_v53, %v2584_v53 }
 0x9e5   : > { %v2686_v35 = vunpack.c.l.b16 %v2669_v40 }
 0x9e7   : > { %v2692_v31 = vpack.c.b16 %v2686_v35, %v2685_v58 }
 0x9e8   : > { %v2586_v54 = vpop.f32.mrf.mxu1 }
 0x9e9   : > { %3035 = vrot.lane.b32.xlu2 %v2692_v31, %s7712_s7  ;;  %6256 = vmatmul.msk.bf16.gmra.mxu3 %vm2695_vm1, %v2692_v31  ;;  %v2587_v12 = vadd.f32 %v6716_v26, %v2586_v54 }
 0x9eb   : > { %v2670_v6 = vpack.c.bf16 %v2587_v12, %v2587_v12 }
 0x9ed   : > { %v2687_v52 = vunpack.c.l.b16 %v2670_v6 }
 0x9f0   : > { %v2588_v44 = vpop.f32.mrf.mxu1 }
 0x9f1   : > { %v2589_v27 = vadd.f32 %v6716_v26, %v2588_v44 }
 0x9f3   : > { %v2671_v38 = vpack.c.bf16 %v2589_v27, %v2589_v27 }
 0x9f5   : > { %v2688_v28 = vunpack.c.l.b16 %v2671_v38 }
 0x9f7   : > { %v2693_v9 = vpack.c.b16 %v2688_v28, %v2687_v52 }
 0x9f8   : > { %v2591_v25 = vpop.f32.mrf.mxu1 }
 0x9f9   : > { %3037 = vrot.lane.b32.xlu1 %v2693_v9, %s7712_s7  ;;  %6257 = vmatmul.msk.bf16.gmra.mxu3 %vm2695_vm1, %v2693_v9  ;;  %v2592_v50 = vadd.f32 %v6716_v26, %v2591_v25 }
 0x9fb   : > { %v2672_v56 = vpack.c.bf16 %v2592_v50, %v2592_v50 }
 0x9fd   : > { %v2689_v62 = vunpack.c.l.b16 %v2672_v56 }
 0xa00   : > { %v2593_v18 = vpop.f32.mrf.mxu1 }
 0xa01   : > { %v2594_v23 = vadd.f32 %v6716_v26, %v2593_v18 }
 0xa03   : > { %v2673_v37 = vpack.c.bf16 %v2594_v23, %v2594_v23 }
 0xa05   : > { %v2690_v63 = vunpack.c.l.b16 %v2673_v37 }
 0xa07   : > { %v2694_v1 = vpack.c.b16 %v2690_v63, %v2689_v62 }
 0xa09   : > { %3039 = vrot.lane.b32.xlu0 %v2694_v1, %s7712_s7  ;;  %6258 = vmatmul.msk.bf16.gmra.mxu3 %vm2695_vm1, %v2694_v1  ;;  %s10192_s7 = sld [smem:[#allocation48_spill]] }
 0xa16   : > { %v3034_v2 = vpop.permute.xlu0 %3033 }
 0xa17   : > { %6259 = vmatmul.msk.bf16.vlgmr.msra.gmra.mxu0 %vm2695_vm1, %v3034_v2 }
 0xa19   : > { %6295 = vmatmul.msk.bf16.vlgmr.msrb.gmra.mxu3 %vm1184_vm0, %v8796_v34 }
 0xa27   : > { %v2720_v3 = vpop.f32.mrf.mxu3 }
 0xa28   : > { %v2741_v5 = vsel %vm2740_vm2, %v2720_v3, -inf }
 0xa29   : > { %2742 = vmax.xlane.f32.xlu2 %v2741_v5  ;;  %6296 = vmatmul.msk.bf16.gmra.mxu3 %vm1184_vm0, %v8810_v8 }
 0xa2f   : > { %v2722_v36 = vpop.f32.mrf.mxu3 }
 0xa30   : > { %v2744_v39 = vsel %vm2740_vm2, %v2722_v36, -inf }
 0xa31   : > { %2745 = vmax.xlane.f32.xlu1 %v2744_v39 }
 0xa39   : > { %6297 = vmatmul.msk.bf16.gmra.mxu3 %vm1184_vm0, %v8827_v0 }
 0xa43   : > { %v3036_v43 = vpop.permute.xlu2 %3035 }
 0xa44   : > { %6260 = vmatmul.msk.bf16.gmra.mxu0 %vm2695_vm1, %v3036_v43 }
 0xa49   : > { %6298 = vmatmul.msk.bf16.gmra.mxu3 %vm1184_vm0, %v8839_v4 }
 0xa6b   : > { %v3038_v34 = vpop.permute.xlu1 %3037 }
 0xa6c   : > { %v2725_v60 = vpop.f32.mrf.mxu3  ;;  %6261 = vmatmul.msk.bf16.gmra.mxu0 %vm2695_vm1, %v3038_v34 }
 0xa6d   : > { %v2747_v47 = vsel %vm2740_vm2, %v2725_v60, -inf }
 0xa6e   : > { %2748 = vmax.xlane.f32.xlu1 %v2747_v47 }
 0xa74   : > { %v2727_v8 = vpop.f32.mrf.mxu3 }
 0xa75   : > { %v2750_v14 = vsel %vm2740_vm2, %v2727_v8, -inf }
 0xa76   : > { %2751 = vmax.xlane.f32.xlu2 %v2750_v14 }
 0xa7b   : > { %v3040_v26 = vpop.permute.xlu0 %3039 }
 0xa7c   : > { %v2730_v61 = vpop.f32.mrf.mxu3  ;;  %6262 = vmatmul.msk.bf16.gmra.mxu0 %vm2695_vm1, %v3040_v26 }
 0xa7d   : > { %v2753_v0 = vsel %vm2740_vm2, %v2730_v61, -inf }
 0xa7e   : > { %2754 = vmax.xlane.f32.xlu2 %v2753_v0 }
 0xa84   : > { %v8874_v22 = vpop.f32.mrf.mxu3 }
 0xa85   : > { %v2756_v4 = vsel %vm2740_vm2, %v8874_v22, -inf }
 0xa86   : > { %2757 = vmax.xlane.f32.xlu0 %v2756_v4  ;;  %v7719_v4 = vmov 0  }
 0xa87   : > { %6651 = vset.pattern.permute.xlu0 %v7719_v4  ;;  %6655 = vset.pattern.permute.xlu1 %v7719_v4 }
 0xa8c   : > { %v8878_v24 = vpop.f32.mrf.mxu3 }
 0xa8d   : > { %v2759_v42 = vsel %vm2740_vm2, %v8878_v24, -inf }
 0xa8e   : > { %2760 = vmax.xlane.f32.xlu0 %v2759_v42 }
 0xa94   : > { %v8882_v32 = vpop.f32.mrf.mxu3  ;;  %v8884_v33 = vpop.f32.mrf.mxu0 }
 0xa95   : > { %v2762_v55 = vsel %vm2740_vm2, %v8882_v32, -inf  ;;  %v3090_v13 = vsel %vm2740_vm2, %v8884_v33, -inf }
 0xa96   : > { %2763 = vmax.xlane.f32.xlu1 %v2762_v55  ;;  %3091 = vmax.xlane.f32.xlu0 %v3090_v13 }
 0xa9c   : > { %v2743_v30 = vpop.xlane.xlu2 %2742  ;;  %v8890_v48 = vpop.f32.mrf.mxu0 }
 0xa9d   : > { %v2765_v51 = vsub.f32 %v2720_v3, %v2743_v30  ;;  %v3093_v15 = vsel %vm2740_vm2, %v8890_v48, -inf }
 0xa9e   : > { %3094 = vmax.xlane.f32.xlu2 %v3093_v15 }
 0xa9f   : > { %v2773_v20 = vmul.f32 1.442695, %v2765_v51 }
 0xaa1   : > { %6876 = vpow2.f32 %v2773_v20  ;;  %v7720_v20 = vmov 1  }
 0xaa2   : > { %6652 = vset.pattern.permute.xlu2 %v7720_v20 }
 0xaa4   : > { %v2746_v29 = vpop.xlane.xlu1 %2745 }
 0xaa5   : > { %v2766_v53 = vsub.f32 %v2722_v36, %v2746_v29 }
 0xaa7   : > { %v8894_v40 = vpop.eup %6876  ;;  %v2775_v58 = vmul.f32 1.442695, %v2766_v53 }
 0xaa8   : > { %v2789_v35 = vsel %vm2740_vm2, %v8894_v40, 0.0 }
 0xaa9   : > { %6878 = vpow2.f32 %v2775_v58  ;;  %2790 = vadd.xlane.f32.xlu1 %v2789_v35 }
 0xaaf   : > { %v8898_v31 = vpop.eup %6878 }
 0xab0   : > { %v2792_v54 = vsel %vm2740_vm2, %v8898_v31, 0.0 }
 0xab1   : > { %2793 = vadd.xlane.f32.xlu2 %v2792_v54 }
 0xac1   : > { %v8902_v16 = vpop.f32.mrf.mxu0 }
 0xac2   : > { %v3096_v57 = vsel %vm2740_vm2, %v8902_v16, -inf }
 0xac3   : > { %3097 = vmax.xlane.f32.xlu0 %v3096_v57 }
 0xac9   : > { %v8906_v12 = vpop.f32.mrf.mxu0 }
 0xaca   : > { %v3099_v44 = vsel %vm2740_vm2, %v8906_v12, -inf }
 0xacb   : > { %3100 = vmax.xlane.f32.xlu1 %v3099_v44 }
 0xae1   : > { %v2749_v6 = vpop.xlane.xlu1 %2748 }
 0xae2   : > { %v2767_v27 = vsub.f32 %v2725_v60, %v2749_v6 }
 0xae4   : > { %v2777_v38 = vmul.f32 1.442695, %v2767_v27 }
 0xae6   : > { %6880 = vpow2.f32 %v2777_v38 }
 0xae9   : > { %v2752_v52 = vpop.xlane.xlu2 %2751  ;;  %v8910_v28 = vpop.f32.mrf.mxu0 }
 0xaea   : > { %v2768_v9 = vsub.f32 %v2727_v8, %v2752_v52  ;;  %v3102_v25 = vsel %vm2740_vm2, %v8910_v28, -inf }
 0xaeb   : > { %3103 = vmax.xlane.f32.xlu1 %v3102_v25 }
 0xaec   : > { %v8914_v50 = vpop.eup %6880  ;;  %v2779_v46 = vmul.f32 1.442695, %v2768_v9 }
 0xaed   : > { %v2795_v18 = vsel %vm2740_vm2, %v8914_v50, 0.0 }
 0xaee   : > { %6882 = vpow2.f32 %v2779_v46  ;;  %2796 = vadd.xlane.f32.xlu2 %v2795_v18  ;;  %v7721_v46 = vmov 2  }
 0xaf1   : > { %v2755_v56 = vpop.xlane.xlu2 %2754  ;;  %v8918_v23 = vpop.f32.mrf.mxu0 }
 0xaf2   : > { %v2769_v37 = vsub.f32 %v2730_v61, %v2755_v56  ;;  %v3105_v2 = vsel %vm2740_vm2, %v8918_v23, -inf }
 0xaf4   : > { %v8920_v62 = vpop.eup %6882  ;;  %v2781_v63 = vmul.f32 1.442695, %v2769_v37 }
 0xaf5   : > { %v2798_v1 = vsel %vm2740_vm2, %v8920_v62, 0.0 }
 0xaf6   : > { %6884 = vpow2.f32 %v2781_v63  ;;  %2799 = vadd.xlane.f32.xlu0 %v2798_v1  ;;  %3106 = vmax.xlane.f32.xlu2 %v3105_v2  ;;  %v7722_v63 = vmov 3  }
 0xaf9   : > { %v8926_v3 = vpop.f32.mrf.mxu0  ;;  %v2758_v5 = vpop.xlane.xlu0 %2757 }
 0xafa   : > { %v2770_v36 = vsub.f32 %v8874_v22, %v2758_v5  ;;  %v3108_v60 = vsel %vm2740_vm2, %v8926_v3, -inf }
 0xafc   : > { %v8929_v39 = vpop.eup %6884  ;;  %v2783_v43 = vmul.f32 1.442695, %v2770_v36 }
 0xafd   : > { %v2801_v34 = vsel %vm2740_vm2, %v8929_v39, 0.0 }
 0xafe   : > { %6886 = vpow2.f32 %v2783_v43  ;;  %2802 = vadd.xlane.f32.xlu0 %v2801_v34  ;;  %3109 = vmax.xlane.f32.xlu2 %v3108_v60 }
 0xb01   : > { %v2761_v47 = vpop.xlane.xlu0 %2760  ;;  %v8935_v8 = vpop.f32.mrf.mxu0 }
 0xb02   : > { %v2771_v14 = vsub.f32 %v8878_v24, %v2761_v47  ;;  %v3111_v0 = vsel %vm2740_vm2, %v8935_v8, -inf }
 0xb04   : > { %v8938_v26 = vpop.eup %6886  ;;  %v2785_v61 = vmul.f32 1.442695, %v2771_v14 }
 0xb05   : > { %v2804_v22 = vsel %vm2740_vm2, %v8938_v26, 0.0 }
 0xb06   : > { %6888 = vpow2.f32 %v2785_v61  ;;  %3112 = vmax.xlane.f32.xlu0 %v3111_v0  ;;  %2805 = vadd.xlane.f32.xlu1 %v2804_v22 }
 0xb09   : > { %v2764_v42 = vpop.xlane.xlu1 %2763  ;;  %v3092_v55 = vpop.xlane.xlu0 %3091 }
 0xb0a   : > { %v2772_v24 = vsub.f32 %v8882_v32, %v2764_v42  ;;  %v3114_v13 = vsub.f32 %v8884_v33, %v3092_v55 }
 0xb0c   : > { %v8948_v30 = vpop.eup %6888  ;;  %v2787_v51 = vmul.f32 1.442695, %v2772_v24  ;;  %v3122_v15 = vmul.f32 1.442695, %v3114_v13 }
 0xb0d   : > { %v2807_v29 = vsel %vm2740_vm2, %v8948_v30, 0.0 }
 0xb0e   : > { %6890 = vpow2.f32 %v2787_v51  ;;  %2808 = vadd.xlane.f32.xlu1 %v2807_v29 }
 0xb0f   : > { %6892 = vpow2.f32 %v3122_v15 }
 0xb11   : > { %v3095_v53 = vpop.xlane.xlu2 %3094 }
 0xb12   : > { %v3115_v58 = vsub.f32 %v8890_v48, %v3095_v53 }
 0xb14   : > { %v8954_v35 = vpop.eup %6890  ;;  %v3124_v32 = vmul.f32 1.442695, %v3115_v58 }
 0xb15   : > { %v8956_v33 = vpop.eup %6892  ;;  %v2810_v54 = vsel %vm2740_vm2, %v8954_v35, 0.0 }
 0xb16   : > { %6894 = vpow2.f32 %v3124_v32  ;;  %2811 = vadd.xlane.f32.xlu2 %v2810_v54  ;;  %v3138_v57 = vsel %vm2740_vm2, %v8956_v33, 0.0  ;;  %v6717_v54 = vld [vmem:[%s10192_s7] ss:$0 sm:$0xff]  ;;  %s10197_s7 = sld [smem:[#allocation58_spill]] }
 0xb17   : > { %3139 = vadd.xlane.f32.xlu0 %v3138_v57  ;;  %v2663_v57 = vadd.f32 %v6717_v54, %v8851_v45 }
 0xb1c   : > { %v8962_v44 = vpop.eup %6894  ;;  %v2791_v6 = vpop.xlane.xlu1 %2790 }
 0xb1d   : > { %v3141_v48 = vsel %vm2740_vm2, %v8962_v44, 0.0  ;;  %6896 = vrcp.f32 %v2791_v6 }
 0xb1e   : > { %3142 = vadd.xlane.f32.xlu1 %v3141_v48 }
 0xb23   : > { %v6897_v27 = vpop.eup %6896 }
 0xb24   : > { %v2794_v38 = vpop.xlane.xlu2 %2793  ;;  %v2821_v52 = vmul.f32 %v6897_v27, %v8894_v40  ;;  %v9012_v27 = vperm.slane %v2663_v57, 0 }
 0xb25   : > { %6898 = vrcp.f32 %v2794_v38  ;;  %v9014_v38 = vperm.slane %v2663_v57, 1 }
 0xb2b   : > { %2831 = vperm.xlu0 %6651, %v2821_v52   ;;  %v6899_v9 = vpop.eup %6898 }
 0xb2c   : > { %v2822_v25 = vmul.f32 %v6899_v9, %v8898_v31  ;;  %v9016_v9 = vperm.slane %v2663_v57, 2 }
 0xb2e   : > { %2879 = vperm.xlu2 %6652, %v2821_v52  }
 0xb33   : > { %6657 = vset.pattern.permute.xlu0 %v7721_v46 }
 0xb34   : > { %2932 = vperm.xlu0 %6657, %v2822_v25  }
 0xb36   : > { %6653 = vset.pattern.permute.xlu2 %v7721_v46  ;;  %v3098_v18 = vpop.xlane.xlu0 %3097 }
 0xb37   : > { %v3116_v56 = vsub.f32 %v8902_v16, %v3098_v18  ;;  %2928 = vperm.xlu2 %6653, %v2821_v52  }
 0xb39   : > { %v3126_v37 = vmul.f32 1.442695, %v3116_v56  ;;  %v9020_v56 = vperm.slane %v2663_v57, 3 }
 0xb3b   : > { %6900 = vpow2.f32 %v3126_v37 }
 0xb3c   : > { %6658 = vset.pattern.permute.xlu0 %v7722_v63 }
 0xb3d   : > { %2981 = vperm.xlu0 %6658, %v2822_v25  }
 0xb3e   : > { %v3101_v16 = vpop.xlane.xlu1 %3100 }
 0xb3f   : > { %6654 = vset.pattern.permute.xlu2 %v7722_v63  ;;  %v3117_v1 = vsub.f32 %v8906_v12, %v3101_v16 }
 0xb40   : > { %2977 = vperm.xlu2 %6654, %v2821_v52  }
 0xb41   : > { %v8973_v40 = vpop.eup %6900  ;;  %v3128_v2 = vmul.f32 1.442695, %v3117_v1 }
 0xb42   : > { %v3144_v31 = vsel %vm2740_vm2, %v8973_v40, 0.0 }
 0xb43   : > { %3145 = vadd.xlane.f32.xlu1 %v3144_v31  ;;  %6902 = vpow2.f32 %v3128_v2 }
 0xb45   : > { %6660 = vset.pattern.permute.xlu0 %v7720_v20 }
 0xb48   : > { %6659 = vset.pattern.permute.xlu2 %v7719_v4 }
 0xb49   : > { %v8982_v60 = vpop.eup %6902 }
 0xb4a   : > { %v3147_v14 = vsel %vm2740_vm2, %v8982_v60, 0.0 }
 0xb5c   : > { %2836 = vperm.xlu1 %6655, %v2822_v25  }
 0xb5e   : > { %v3104_v5 = vpop.xlane.xlu1 %3103 }
 0xb5f   : > { %v3118_v36 = vsub.f32 %v8910_v28, %v3104_v5 }
 0xb61   : > { %v2797_v43 = vpop.xlane.xlu2 %2796  ;;  %v3130_v34 = vmul.f32 1.442695, %v3118_v36 }
 0xb62   : > { %6904 = vrcp.f32 %v2797_v43 }
 0xb63   : > { %6906 = vpow2.f32 %v3130_v34 }
 0xb64   : > { %6656 = vset.pattern.permute.xlu1 %v7720_v20 }
 0xb65   : > { %2883 = vperm.xlu1 %6656, %v2822_v25  }
 0xb68   : > { %v6905_v47 = vpop.eup %6904 }
 0xb69   : > { %3148 = vadd.xlane.f32.xlu2 %v3147_v14  ;;  %v2800_v12 = vpop.xlane.xlu0 %2799  ;;  %v2823_v61 = vmul.f32 %v6905_v47, %v8914_v50  ;;  %v8987_v28 = vpop.eup %6906 }
 0xb6a   : > { %6908 = vrcp.f32 %v2800_v12  ;;  %v3150_v0 = vsel %vm2740_vm2, %v8987_v28, 0.0  ;;  %v3107_v55 = vpop.xlane.xlu2 %3106 }
 0xb6b   : > { %2887 = vperm.xlu0 %6660, %v2823_v61   ;;  %v3119_v51 = vsub.f32 %v8918_v23, %v3107_v55 }
 0xb6d   : > { %6662 = vset.pattern.permute.xlu1 %v7722_v63  ;;  %v3132_v29 = vmul.f32 1.442695, %v3119_v51 }
 0xb6e   : > { %2985 = vperm.xlu1 %6662, %v2823_v61  }
 0xb70   : > { %v6909_v22 = vpop.eup %6908 }
 0xb71   : > { %3151 = vadd.xlane.f32.xlu2 %v3150_v0  ;;  %v2824_v42 = vmul.f32 %v6909_v22, %v8920_v62  ;;  %v2803_v50 = vpop.xlane.xlu0 %2802 }
 0xb72   : > { %6910 = vrcp.f32 %v2803_v50  ;;  %v8996_v24 = vpop.xlane.xlu2 %3109 }
 0xb73   : > { %6672 = vset.pattern.permute.xlu0 %v7721_v46  ;;  %6912 = vpow2.f32 %v3132_v29  ;;  %v3120_v22 = vsub.f32 %v8926_v3, %v8996_v24 }
 0xb76   : > { %6663 = vset.pattern.permute.xlu1 %v7719_v4 }
 0xb77   : > { %2846 = vperm.xlu1 %6663, %v2824_v42  }
 0xb78   : > { %v6911_v13 = vpop.eup %6910 }
 0xb79   : > { %v9000_v15 = vmul.f32 %v6911_v13, %v8929_v39  ;;  %v3113_v53 = vpop.xlane.xlu0 %3112  ;;  %v9004_v58 = vpop.eup %6912 }
 0xb7a   : > { %v3153_v23 = vsel %vm2740_vm2, %v9004_v58, 0.0  ;;  %v2806_v48 = vpop.xlane.xlu1 %2805  ;;  %v3121_v45 = vsub.f32 %v8935_v8, %v3113_v53 }
 0xb7b   : > { %6914 = vrcp.f32 %v2806_v48 }
 0xb7c   : > { %v3136_v36 = vmul.f32 1.442695, %v3121_v45 }
 0xb7f   : > { %6665 = vset.pattern.permute.xlu1 %v7721_v46 }
 0xb80   : > { %2940 = vperm.xlu1 %6665, %v2824_v42  }
 0xb81   : > { %v6915_v5 = vpop.eup %6914 }
 0xb82   : > { %v2826_v34 = vmul.f32 %v6915_v5, %v8938_v26 }
 0xb88   : > { %2944 = vperm.xlu1 %6665, %v9000_v15  }
 0xb89   : > { %2841 = vperm.xlu2 %6659, %v2823_v61   ;;  %v2812_v62 = vpop.xlane.xlu2 %2811 }
 0xb8a   : > { %v3140_v39 = vpop.xlane.xlu0 %3139  ;;  %6916 = vrcp.f32 %v2812_v62 }
 0xb8b   : > { %6918 = vpow2.f32 %v3136_v36 }
 0xb8c   : > { %6920 = vrcp.f32 %v3140_v39 }
 0xb90   : > { %6670 = vset.pattern.permute.xlu1 %v7719_v4  ;;  %v6917_v8 = vpop.eup %6916 }
 0xb91   : > { %6661 = vset.pattern.permute.xlu2 %v7721_v46  ;;  %v2880_v32 = vpop.permute.xlu2 %2879  ;;  %v9029_v47 = vpop.eup %6918  ;;  %v9032_v14 = vmul.f32 %v6917_v8, %v8954_v35 }
 0xb92   : > { %2936 = vperm.xlu2 %6661, %v2823_v61   ;;  %v2911_v25 = vmul.f32 %v9014_v38, %v2880_v32  ;;  %v3159_v12 = vsel %vm2740_vm2, %v9029_v47, 0.0  ;;  %v6921_v26 = vpop.eup %6920  ;;  %v2809_v61 = vpop.xlane.xlu1 %2808 }
 0xb93   : > { %v9039_v0 = vmul.f32 %v6921_v26, %v8956_v33 }
 0xb95   : > { %3154 = vadd.xlane.f32.xlu0 %v3153_v23 }
 0xb99   : > { %v2929_v6 = vpop.permute.xlu2 %2928 }
 0xb9a   : > { %6664 = vset.pattern.permute.xlu2 %v7720_v20  ;;  %v2960_v37 = vmul.f32 %v9016_v9, %v2929_v6  ;;  %v3143_v35 = vpop.xlane.xlu1 %3142 }
 0xb9b   : > { %2891 = vperm.xlu2 %6664, %v2824_v42   ;;  %6922 = vrcp.f32 %v3143_v35 }
 0xb9d   : > { %v2832_v52 = vpop.permute.xlu0 %2831 }
 0xb9e   : > { %v2870_v18 = vmul.f32 %v9012_v27, %v2832_v52 }
 0xba0   : > { %v2919_v31 = vadd.f32 %v2911_v25, %v2870_v18 }
 0xba1   : > { %v2978_v16 = vpop.permute.xlu2 %2977  ;;  %v6923_v50 = vpop.eup %6922 }
 0xba2   : > { %v2968_v1 = vadd.f32 %v2960_v37, %v2919_v31  ;;  %v3009_v2 = vmul.f32 %v9020_v56, %v2978_v16  ;;  %v9050_v33 = vmul.f32 %v6923_v50, %v8962_v44 }
 0xba3   : > { %6666 = vset.pattern.permute.xlu2 %v7722_v63 }
 0xba4   : > { %v3017_v43 = vadd.f32 %v3009_v2, %v2968_v1  ;;  %2989 = vperm.xlu2 %6666, %v2824_v42   ;;  %v3134_v42 = vmul.f32 1.442695, %v3120_v22 }
 0xba6   : > { %3025 = vst.msk [vmem:[#allocation2] sm:$0xff] %vm2695_vm1, %v3017_v43  ;;  %6924 = vpow2.f32 %v3134_v42  ;;  %v2933_v51 = vpop.permute.xlu0 %2932 }
 0xba7   : > { %v2961_v32 = vmul.f32 %v9016_v9, %v2933_v51  ;;  %6926 = vrcp.f32 %v2809_v61 }
 0xba9   : > { %2948 = vperm.xlu0 %6672, %v2826_v34  }
 0xbac   : > { %6667 = vset.pattern.permute.xlu2 %v7719_v4  ;;  %v9047_v13 = vpop.eup %6924 }
 0xbad   : > { %v3156_v3 = vsel %vm2740_vm2, %v9047_v13, 0.0  ;;  %v6927_v48 = vpop.eup %6926 }
 0xbae   : > { %v9068_v18 = vmul.f32 %v6927_v48, %v8948_v30  ;;  %v6391_v48 = vld [vmem:[%s10193_s17] sm:$0xff] }
 0xbaf   : > { %v2982_v53 = vpop.permute.xlu0 %2981 }
 0xbb0   : > { %v3010_v23 = vmul.f32 %v9020_v56, %v2982_v53 }
 0xbb1   : > { %6677 = vset.pattern.permute.xlu0 %v7720_v20 }
 0xbb2   : > { %2907 = vperm.xlu0 %6677, %v9032_v14   ;;  %3160 = vadd.xlane.f32.xlu1 %v3159_v12 }
 0xbb6   : > { %v3146_v55 = vpop.xlane.xlu1 %3145 }
 0xbb7   : > { %6928 = vrcp.f32 %v3146_v55 }
 0xbba   : > { %6678 = vset.pattern.permute.xlu0 %v7719_v4 }
 0xbbb   : > { %3180 = vperm.xlu0 %6678, %v9039_v0  }
 0xbbd   : > { %v6929_v52 = vpop.eup %6928 }
 0xbbe   : > { %v9073_v45 = vmul.f32 %v6929_v52, %v8973_v40 }
 0xbc3   : > { %6679 = vset.pattern.permute.xlu0 %v7720_v20 }
 0xbc4   : > { %3227 = vperm.xlu0 %6679, %v9039_v0  }
 0xbcb   : > { %2856 = vperm.xlu1 %6670, %v2826_v34  }
 0xbcc   : > { %6682 = vset.pattern.permute.xlu0 %v7719_v4 }
 0xbcd   : > { %3157 = vadd.xlane.f32.xlu2 %v3156_v3  ;;  %3185 = vperm.xlu0 %6682, %v9050_v33  }
 0xbce   : > { %v2837_v24 = vpop.permute.xlu1 %2836 }
 0xbcf   : > { %v2871_v44 = vmul.f32 %v9012_v27, %v2837_v24 }
 0xbd3   : > { %6671 = vset.pattern.permute.xlu1 %v7720_v20 }
 0xbd4   : > { %2899 = vperm.xlu1 %6671, %v2826_v34  }
 0xbd5   : > { %6683 = vset.pattern.permute.xlu0 %v7720_v20 }
 0xbd6   : > { %3231 = vperm.xlu0 %6683, %v9050_v33  }
 0xbd7   : > { %v2884_v29 = vpop.permute.xlu1 %2883 }
 0xbd8   : > { %v2912_v62 = vmul.f32 %v9014_v38, %v2884_v29 }
 0xbda   : > { %v2920_v54 = vadd.f32 %v2912_v62, %v2871_v44 }
 0xbdc   : > { %v2969_v39 = vadd.f32 %v2961_v32, %v2920_v54  ;;  %v3149_v57 = vpop.xlane.xlu2 %3148  ;;  %6673 = vset.pattern.permute.xlu1 %v7722_v63 }
 0xbdd   : > { %2997 = vperm.xlu1 %6673, %v2826_v34   ;;  %6930 = vrcp.f32 %v3149_v57  ;;  %v2888_v40 = vpop.permute.xlu0 %2887 }
 0xbde   : > { %v3018_v6 = vadd.f32 %v3010_v23, %v2969_v39  ;;  %6684 = vset.pattern.permute.xlu0 %v7721_v46  ;;  %v2913_v2 = vmul.f32 %v9014_v38, %v2888_v40 }
 0xbdf   : > { %3279 = vperm.xlu0 %6684, %v9050_v33  }
 0xbe0   : > { %3026 = vst.msk [vmem:[#allocation2 + $0x8] sm:$0xff] %vm2695_vm1, %v3018_v6  ;;  %v2986_v31 = vpop.permute.xlu1 %2985 }
 0xbe1   : > { %v3011_v8 = vmul.f32 %v9020_v56, %v2986_v31 }
 0xbe3   : > { %v6931_v37 = vpop.eup %6930 }
 0xbe4   : > { %v3152_v25 = vpop.xlane.xlu2 %3151  ;;  %v3173_v30 = vmul.f32 %v6931_v37, %v8982_v60 }
 0xbe5   : > { %2851 = vperm.xlu2 %6667, %v9000_v15   ;;  %6674 = vset.pattern.permute.xlu1 %v7719_v4  ;;  %6932 = vrcp.f32 %v3152_v25 }
 0xbe6   : > { %2861 = vperm.xlu1 %6674, %v9068_v18  }
 0xbe7   : > { %3283 = vperm.xlu0 %6684, %v9073_v45  }
 0xbe9   : > { %v2847_v34 = vpop.permute.xlu1 %2846 }
 0xbea   : > { %v2873_v35 = vmul.f32 %v9012_v27, %v2847_v34 }
 0xbeb   : > { %v6933_v61 = vpop.eup %6932 }
 0xbec   : > { %v2842_v16 = vpop.permute.xlu2 %2841 }
 0xbed   : > { %6668 = vset.pattern.permute.xlu2 %v7720_v20  ;;  %v2872_v1 = vmul.f32 %v9012_v27, %v2842_v16 }
 0xbee   : > { %2895 = vperm.xlu2 %6668, %v9000_v15   ;;  %6675 = vset.pattern.permute.xlu1 %v7720_v20 }
 0xbef   : > { %2903 = vperm.xlu1 %6675, %v9068_v18   ;;  %6690 = vset.pattern.permute.xlu0 %v7720_v20  ;;  %v2921_v36 = vadd.f32 %v2913_v2, %v2872_v1 }
 0xbf0   : > { %3239 = vperm.xlu0 %6690, %v3173_v30  }
 0xbf2   : > { %v2941_v42 = vpop.permute.xlu1 %2940 }
 0xbf3   : > { %v2963_v50 = vmul.f32 %v9016_v9, %v2941_v42 }
 0xbf4   : > { %v2937_v5 = vpop.permute.xlu2 %2936 }
 0xbf5   : > { %v2962_v43 = vmul.f32 %v9016_v9, %v2937_v5 }
 0xbf6   : > { %6669 = vset.pattern.permute.xlu2 %v7722_v63 }
 0xbf7   : > { %v2970_v60 = vadd.f32 %v2962_v43, %v2921_v36  ;;  %2993 = vperm.xlu2 %6669, %v9000_v15   ;;  %6680 = vset.pattern.permute.xlu1 %v7721_v46  ;;  %v3174_v15 = vmul.f32 %v6933_v61, %v8987_v28 }
 0xbf8   : > { %3275 = vperm.xlu1 %6680, %v9039_v0   ;;  %6692 = vset.pattern.permute.xlu0 %v7722_v63 }
 0xbf9   : > { %v3019_v12 = vadd.f32 %v3011_v8, %v2970_v60  ;;  %3335 = vperm.xlu0 %6692, %v3173_v30  }
 0xbfa   : > { %v2945_v62 = vpop.permute.xlu1 %2944 }
 0xbfb   : > { %3027 = vst.msk [vmem:[#allocation2 + $0x10] sm:$0xff] %vm2695_vm1, %v3019_v12 }
 0xbfc   : > { %v2892_v26 = vpop.permute.xlu2 %2891 }
 0xbfd   : > { %v2914_v22 = vmul.f32 %v9014_v38, %v2892_v26  ;;  %v2964_v26 = vmul.f32 %v9016_v9, %v2945_v62 }
 0xbff   : > { %6676 = vset.pattern.permute.xlu2 %v7719_v4  ;;  %v2922_v55 = vadd.f32 %v2914_v22, %v2873_v35 }
 0xc00   : > { %2866 = vperm.xlu2 %6676, %v9032_v14   ;;  %6685 = vset.pattern.permute.xlu1 %v7722_v63 }
 0xc01   : > { %3327 = vperm.xlu1 %6685, %v9050_v33   ;;  %6693 = vset.pattern.permute.xlu0 %v7719_v4  ;;  %v2971_v24 = vadd.f32 %v2963_v50, %v2922_v55  ;;  %v6392_v33 = vld [vmem:[%s10193_s17 + $0x8] sm:$0xff] }
 0xc02   : > { %3200 = vperm.xlu0 %6693, %v3174_v15   ;;  %3429 = vmatpush.bf16.msrb.mxu2 %v6392_v33 }
 0xc04   : > { %v2990_v3 = vpop.permute.xlu2 %2989 }
 0xc05   : > { %v3012_v51 = vmul.f32 %v9020_v56, %v2990_v3 }
 0xc06   : > { %3430 = vmatpush.bf16.msrb.mxu2 %v6391_v48 }
 0xc07   : > { %v3020_v29 = vadd.f32 %v3012_v51, %v2971_v24 }
 0xc08   : > { %6681 = vset.pattern.permute.xlu2 %v7722_v63  ;;  %v3155_v28 = vpop.xlane.xlu0 %3154 }
 0xc09   : > { %3028 = vst.msk [vmem:[#allocation2 + $0x18] sm:$0xff] %vm2695_vm1, %v3020_v29  ;;  %3323 = vperm.xlu2 %6681, %v9039_v0   ;;  %6686 = vset.pattern.permute.xlu1 %v7719_v4  ;;  %6934 = vrcp.f32 %v3155_v28 }
 0xc0a   : > { %3190 = vperm.xlu1 %6686, %v9073_v45   ;;  %6695 = vset.pattern.permute.xlu0 %v7722_v63 }
 0xc0b   : > { %3339 = vperm.xlu0 %6695, %v3174_v15  }
 0xc0f   : > { %v6935_v32 = vpop.eup %6934 }
 0xc10   : > { %v3175_v54 = vmul.f32 %v6935_v32, %v9004_v58 }
 0xc11   : > { %6689 = vset.pattern.permute.xlu2 %v7719_v4 }
 0xc12   : > { %3195 = vperm.xlu2 %6689, %v3173_v30   ;;  %6687 = vset.pattern.permute.xlu1 %v7720_v20 }
 0xc13   : > { %3235 = vperm.xlu1 %6687, %v9073_v45   ;;  %6696 = vset.pattern.permute.xlu0 %v7721_v46 }
 0xc14   : > { %2952 = vperm.xlu0 %6696, %v9068_v18  }
 0xc1a   : > { %6691 = vset.pattern.permute.xlu2 %v7721_v46 }
 0xc1b   : > { %3287 = vperm.xlu2 %6691, %v3173_v30   ;;  %6688 = vset.pattern.permute.xlu1 %v7722_v63  ;;  %v2949_v0 = vpop.permute.xlu0 %2948 }
 0xc1c   : > { %3331 = vperm.xlu1 %6688, %v9073_v45   ;;  %6698 = vset.pattern.permute.xlu0 %v7722_v63  ;;  %v2965_v40 = vmul.f32 %v9016_v9, %v2949_v0 }
 0xc1d   : > { %3005 = vperm.xlu0 %6698, %v9032_v14  }
 0xc23   : > { %3291 = vperm.xlu2 %6691, %v3174_v15  }
 0xc24   : > { %6694 = vset.pattern.permute.xlu1 %v7720_v20  ;;  %v9121_v44 = vpop.permute.xlu0 %2907 }
 0xc25   : > { %3243 = vperm.xlu1 %6694, %v3174_v15   ;;  %6712 = vset.pattern.permute.xlu0 %v7719_v4  ;;  %v3161_v23 = vpop.xlane.xlu1 %3160 }
 0xc2b   : > { %2956 = vperm.xlu2 %6691, %v9032_v14  }
 0xc2d   : > { %6697 = vset.pattern.permute.xlu1 %v7722_v63  ;;  %v9126_v53 = vpop.permute.xlu0 %3180 }
 0xc2e   : > { %3001 = vperm.xlu1 %6697, %v9068_v18   ;;  %v3218_v29 = vmul.f32 %v9126_v53, %v9012_v27 }
 0xc33   : > { %6699 = vset.pattern.permute.xlu2 %v7719_v4 }
 0xc34   : > { %3205 = vperm.xlu2 %6699, %v3175_v54  }
 0xc36   : > { %6701 = vset.pattern.permute.xlu1 %v7721_v46  ;;  %v3228_v39 = vpop.permute.xlu0 %3227 }
 0xc37   : > { %3295 = vperm.xlu1 %6701, %v3175_v54   ;;  %v3258_v24 = vmul.f32 %v3228_v39, %v9014_v38 }
 0xc39   : > { %v3266_v28 = vadd.f32 %v3258_v24, %v3218_v29 }
 0xc3c   : > { %6700 = vset.pattern.permute.xlu2 %v7720_v20 }
 0xc3d   : > { %v2857_v14 = vpop.permute.xlu1 %2856  ;;  %3247 = vperm.xlu2 %6700, %v3175_v54  }
 0xc3e   : > { %v2875_v31 = vmul.f32 %v9012_v27, %v2857_v14 }
 0xc3f   : > { %v9133_v57 = vpop.permute.xlu0 %3185 }
 0xc40   : > { %v3158_v6 = vpop.xlane.xlu2 %3157  ;;  %v3219_v53 = vmul.f32 %v9133_v57, %v9012_v27 }
 0xc41   : > { %6936 = vrcp.f32 %v3158_v6 }
 0xc42   : > { %6938 = vrcp.f32 %v3161_v23 }
 0xc45   : > { %6702 = vset.pattern.permute.xlu2 %v7722_v63 }
 0xc46   : > { %v2900_v58 = vpop.permute.xlu1 %2899  ;;  %3343 = vperm.xlu2 %6702, %v3175_v54  }
 0xc47   : > { %v6937_v52 = vpop.eup %6936  ;;  %v2916_v25 = vmul.f32 %v9014_v38, %v2900_v58 }
 0xc48   : > { %v2852_v18 = vpop.permute.xlu2 %2851  ;;  %v3232_v45 = vpop.permute.xlu0 %3231  ;;  %v3176_v37 = vmul.f32 %v6937_v52, %v9047_v13 }
 0xc49   : > { %v2924_v16 = vadd.f32 %v2916_v25, %v2875_v31  ;;  %v6939_v30 = vpop.eup %6938  ;;  %v2874_v60 = vmul.f32 %v9012_v27, %v2852_v18  ;;  %v3259_v32 = vmul.f32 %v3232_v45, %v9014_v38 }
 0xc4a   : > { %3299 = vperm.xlu1 %6701, %v3176_v37   ;;  %v3177_v13 = vmul.f32 %v6939_v30, %v9029_v47 }
 0xc4b   : > { %v2973_v2 = vadd.f32 %v2965_v40, %v2924_v16  ;;  %v3267_v39 = vadd.f32 %v3259_v32, %v3219_v53 }
 0xc4e   : > { %6703 = vset.pattern.permute.xlu2 %v7719_v4 }
 0xc4f   : > { %v2998_v1 = vpop.permute.xlu1 %2997  ;;  %3210 = vperm.xlu2 %6703, %v3176_v37  }
 0xc50   : > { %v3014_v5 = vmul.f32 %v9020_v56, %v2998_v1  ;;  %v2896_v36 = vpop.permute.xlu2 %2895 }
 0xc51   : > { %v2915_v43 = vmul.f32 %v9014_v38, %v2896_v36  ;;  %v3280_v34 = vpop.permute.xlu0 %3279 }
 0xc52   : > { %v3022_v8 = vadd.f32 %v3014_v5, %v2973_v2  ;;  %6705 = vset.pattern.permute.xlu1 %v7719_v4 }
 0xc53   : > { %3215 = vperm.xlu1 %6705, %v3177_v13   ;;  %v2923_v12 = vadd.f32 %v2915_v43, %v2874_v60 }
 0xc54   : > { %3030 = vst.msk [vmem:[#allocation2 + $0x28] sm:$0xff] %vm2695_vm1, %v3022_v8 }
 0xc55   : > { %v2972_v35 = vadd.f32 %v2964_v26, %v2923_v12 }
 0xc57   : > { %6704 = vset.pattern.permute.xlu2 %v7720_v20 }
 0xc58   : > { %v2994_v61 = vpop.permute.xlu2 %2993  ;;  %v9150_v22 = vpop.permute.xlu1 %2861  ;;  %3251 = vperm.xlu2 %6704, %v3176_v37  }
 0xc59   : > { %v3013_v47 = vmul.f32 %v9020_v56, %v2994_v61  ;;  %v9153_v42 = vpop.permute.xlu0 %3283  ;;  %v2918_v61 = vmul.f32 %v9014_v38, %v9121_v44 }
 0xc5b   : > { %v3021_v15 = vadd.f32 %v3013_v47, %v2972_v35  ;;  %6706 = vset.pattern.permute.xlu1 %v7720_v20  ;;  %v3308_v47 = vmul.f32 %v9153_v42, %v9016_v9 }
 0xc5c   : > { %3255 = vperm.xlu1 %6706, %v3177_v13  }
 0xc5d   : > { %3029 = vst.msk [vmem:[#allocation2 + $0x20] sm:$0xff] %vm2695_vm1, %v3021_v15 }
 0xc60   : > { %v2867_v55 = vpop.permute.xlu2 %2866  ;;  %6707 = vset.pattern.permute.xlu2 %v7721_v46 }
 0xc61   : > { %v9158_v50 = vpop.permute.xlu1 %2903  ;;  %3303 = vperm.xlu2 %6707, %v3177_v13   ;;  %v2877_v12 = vmul.f32 %v9012_v27, %v2867_v55 }
 0xc62   : > { %v3240_v3 = vpop.permute.xlu0 %3239 }
 0xc63   : > { %v3261_v18 = vmul.f32 %v3240_v3, %v9014_v38  ;;  %v2926_v15 = vadd.f32 %v2918_v61, %v2877_v12 }
 0xc64   : > { %6709 = vset.pattern.permute.xlu1 %v7722_v63 }
 0xc65   : > { %3351 = vperm.xlu1 %6709, %v3177_v13  }
 0xc68   : > { %v3324_v51 = vpop.permute.xlu2 %3323 }
 0xc69   : > { %6708 = vset.pattern.permute.xlu2 %v7722_v63  ;;  %v3354_v33 = vmul.f32 %v3324_v51, %v9020_v56  ;;  %v3307_v63 = vmul.f32 %v3280_v34, %v9016_v9 }
 0xc6a   : > { %v3276_v20 = vpop.permute.xlu1 %3275  ;;  %3347 = vperm.xlu2 %6708, %v3176_v37  }
 0xc6b   : > { %v3306_v46 = vmul.f32 %v3276_v20, %v9016_v9  ;;  %v3336_v0 = vpop.permute.xlu0 %3335  ;;  %v3315_v6 = vadd.f32 %v3307_v63, %v3267_v39 }
 0xc6c   : > { %v3357_v31 = vmul.f32 %v3336_v0, %v9020_v56 }
 0xc6d   : > { %v3314_v62 = vadd.f32 %v3306_v46, %v3266_v28  ;;  %6710 = vset.pattern.permute.xlu1 %v7719_v4 }
 0xc6f   : > { %v3362_v54 = vadd.f32 %v3354_v33, %v3314_v62 }
 0xc70   : > { %v3196_v23 = vpop.permute.xlu2 %3195 }
 0xc71   : > { %3371 = vst.msk [vmem:[#allocation2] sm:$0xff] %vm3370_vm3, %v3362_v54  ;;  %v3221_v52 = vmul.f32 %v3196_v23, %v9012_v27  ;;  %v2917_v23 = vmul.f32 %v9014_v38, %v9158_v50 }
 0xc72   : > { %6711 = vset.pattern.permute.xlu2 %v7719_v4 }
 0xc73   : > { %v3328_v14 = vpop.permute.xlu1 %3327  ;;  %v3269_v45 = vadd.f32 %v3261_v18, %v3221_v52 }
 0xc74   : > { %v3355_v48 = vmul.f32 %v3328_v14, %v9020_v56  ;;  %v3201_v58 = vpop.permute.xlu0 %3200 }
 0xc75   : > { %v3222_v33 = vmul.f32 %v3201_v58, %v9012_v27 }
 0xc76   : > { %v3363_v25 = vadd.f32 %v3355_v48, %v3315_v6  ;;  %v2876_v48 = vmul.f32 %v9012_v27, %v9150_v22 }
 0xc78   : > { %3372 = vst.msk [vmem:[#allocation2 + $0x8] sm:$0xff] %vm3370_vm3, %v3363_v25  ;;  %v3288_v57 = vpop.permute.xlu2 %3287  ;;  %v3379_v1 = vld [vmem:[#allocation2] sm:$0xff]  ;;  %v2925_v25 = vadd.f32 %v2917_v23, %v2876_v48 }
 0xc79   : > { %v3309_v37 = vmul.f32 %v3288_v57, %v9016_v9 }
 0xc7b   : > { %v3317_v16 = vadd.f32 %v3309_v37, %v3269_v45 }
 0xc7c   : > { %v3191_v4 = vpop.permute.xlu1 %3190 }
 0xc7d   : > { %v3365_v30 = vadd.f32 %v3357_v31, %v3317_v16  ;;  %v3340_v40 = vpop.permute.xlu0 %3339  ;;  %v3220_v60 = vmul.f32 %v3191_v4, %v9012_v27 }
 0xc7e   : > { %v3358_v14 = vmul.f32 %v3340_v40, %v9020_v56 }
 0xc7f   : > { %3374 = vst.msk [vmem:[#allocation2 + $0x18] sm:$0xff] %vm3370_vm3, %v3365_v30  ;;  %v3380_v2 = vld [vmem:[#allocation2 + $0x8] sm:$0xff] }
 0xc80   : > { %v3292_v5 = vpop.permute.xlu2 %3291  ;;  %v3391_v36 = vpack.c.bf16 %v3380_v2, %v3379_v1 }
 0xc81   : > { %v3310_v32 = vmul.f32 %v3292_v5, %v9016_v9 }
 0xc82   : > { %6271 = vmatmul.msk.bf16.vlgmr.msrb.gmra.mxu2 %vm1184_vm0, %v3391_v36 }
 0xc85   : > { %v3236_v43 = vpop.permute.xlu1 %3235 }
 0xc86   : > { %v2953_v34 = vpop.permute.xlu0 %2952  ;;  %v3260_v13 = vmul.f32 %v3236_v43, %v9014_v38  ;;  %v3382_v63 = vld [vmem:[#allocation2 + $0x18] sm:$0xff] }
 0xc87   : > { %v2966_v58 = vmul.f32 %v9016_v9, %v2953_v34 }
 0xc88   : > { %v2957_v8 = vpop.permute.xlu2 %2956  ;;  %v3268_v26 = vadd.f32 %v3260_v13, %v3220_v60 }
 0xc89   : > { %v2967_v35 = vmul.f32 %v9016_v9, %v2957_v8  ;;  %v2974_v45 = vadd.f32 %v2966_v58, %v2925_v25 }
 0xc8a   : > { %v3316_v24 = vadd.f32 %v3308_v47, %v3268_v26 }
 0xc8b   : > { %v2975_v20 = vadd.f32 %v2967_v35, %v2926_v15 }
 0xc8e   : > { %v3332_v3 = vpop.permute.xlu1 %3331 }
 0xc8f   : > { %v3356_v51 = vmul.f32 %v3332_v3, %v9020_v56  ;;  %v3006_v29 = vpop.permute.xlu0 %3005 }
 0xc90   : > { %v3016_v28 = vmul.f32 %v9020_v56, %v3006_v29  ;;  %v3206_v46 = vpop.permute.xlu2 %3205 }
 0xc91   : > { %v3364_v55 = vadd.f32 %v3356_v51, %v3316_v24  ;;  %v3223_v22 = vmul.f32 %v3206_v46, %v9012_v27 }
 0xc92   : > { %v3024_v0 = vadd.f32 %v3016_v28, %v2975_v20 }
 0xc93   : > { %3373 = vst.msk [vmem:[#allocation2 + $0x10] sm:$0xff] %vm3370_vm3, %v3364_v55 }
 0xc94   : > { %3032 = vst.msk [vmem:[#allocation2 + $0x38] sm:$0xff] %vm2695_vm1, %v3024_v0 }
 0xc97   : > { %v3244_v44 = vpop.permute.xlu1 %3243 }
 0xc98   : > { %v3262_v42 = vmul.f32 %v3244_v44, %v9014_v38  ;;  %v3248_v62 = vpop.permute.xlu2 %3247 }
 0xc99   : > { %v3263_v31 = vmul.f32 %v3248_v62, %v9014_v38 }
 0xc9a   : > { %v3270_v54 = vadd.f32 %v3262_v42, %v3222_v33  ;;  %v3381_v53 = vld [vmem:[#allocation2 + $0x10] sm:$0xff] }
 0xc9b   : > { %v3392_v39 = vpack.c.bf16 %v3382_v63, %v3381_v53  ;;  %v3271_v30 = vadd.f32 %v3263_v31, %v3223_v22  ;;  %v6718_v53 = vld [vmem:[#allocation9] ss:$0 sm:$0xff] }
 0xc9c   : > { %v3318_v6 = vadd.f32 %v3310_v32, %v3270_v54 }
 0xc9d   : > { %6272 = vmatmul.msk.bf16.gmra.mxu2 %vm1184_vm0, %v3392_v39 }
 0xc9e   : > { %v3366_v52 = vadd.f32 %v3358_v14, %v3318_v6 }
 0xca0   : > { %3375 = vst.msk [vmem:[#allocation2 + $0x20] sm:$0xff] %vm3370_vm3, %v3366_v52  ;;  %v3002_v18 = vpop.permute.xlu1 %3001  ;;  %v3344_v57 = vpop.permute.xlu2 %3343 }
 0xca1   : > { %v3015_v50 = vmul.f32 %v9020_v56, %v3002_v18  ;;  %v3359_v1 = vmul.f32 %v3344_v57, %v9020_v56 }
 0xca3   : > { %v3023_v37 = vadd.f32 %v3015_v50, %v2974_v45 }
 0xca5   : > { %3031 = vst.msk [vmem:[#allocation2 + $0x30] sm:$0xff] %vm2695_vm1, %v3023_v37 }
 0xca7   : > { %v3383_v43 = vld [vmem:[#allocation2 + $0x20] sm:$0xff] }
 0xca9   : > { %v3296_v16 = vpop.permute.xlu1 %3295  ;;  %v3211_v4 = vpop.permute.xlu2 %3210 }
 0xcaa   : > { %v3311_v40 = vmul.f32 %v3296_v16, %v9016_v9  ;;  %v3224_v26 = vmul.f32 %v3211_v4, %v9012_v27 }
 0xcac   : > { %v3319_v2 = vadd.f32 %v3311_v40, %v3271_v30 }
 0xcae   : > { %v3367_v5 = vadd.f32 %v3359_v1, %v3319_v2 }
 0xcb0   : > { %3376 = vst.msk [vmem:[#allocation2 + $0x28] sm:$0xff] %vm3370_vm3, %v3367_v5 }
 0xcb2   : > { %v3252_v36 = vpop.permute.xlu2 %3251 }
 0xcb3   : > { %v3264_v12 = vmul.f32 %v3252_v36, %v9014_v38 }
 0xcb5   : > { %v3272_v35 = vadd.f32 %v3264_v12, %v3224_v26 }
 0xcb7   : > { %v3384_v34 = vld [vmem:[#allocation2 + $0x28] sm:$0xff] }
 0xcb8   : > { %v3393_v13 = vpack.c.bf16 %v3384_v34, %v3383_v43 }
 0xcba   : > { %6273 = vmatmul.msk.bf16.gmra.mxu2 %vm1184_vm0, %v3393_v13 }
 0xcbb   : > { %v3304_v8 = vpop.permute.xlu2 %3303 }
 0xcbc   : > { %v3300_v60 = vpop.permute.xlu1 %3299  ;;  %v3313_v55 = vmul.f32 %v3304_v8, %v9016_v9 }
 0xcbd   : > { %v3312_v61 = vmul.f32 %v3300_v60, %v9016_v9 }
 0xcbf   : > { %v3320_v15 = vadd.f32 %v3312_v61, %v3272_v35 }
 0xcc4   : > { %v3348_v47 = vpop.permute.xlu2 %3347 }
 0xcc5   : > { %v3360_v3 = vmul.f32 %v3348_v47, %v9020_v56  ;;  %v3216_v24 = vpop.permute.xlu1 %3215 }
 0xcc6   : > { %v3225_v28 = vmul.f32 %v3216_v24, %v9012_v27 }
 0xcc7   : > { %v3368_v51 = vadd.f32 %v3360_v3, %v3320_v15 }
 0xcc9   : > { %3377 = vst.msk [vmem:[#allocation2 + $0x30] sm:$0xff] %vm3370_vm3, %v3368_v51 }
 0xcce   : > { %v3256_v29 = vpop.permute.xlu1 %3255 }
 0xccf   : > { %v3265_v20 = vmul.f32 %v3256_v29, %v9014_v38 }
 0xcd0   : > { %v3385_v62 = vld [vmem:[#allocation2 + $0x30] sm:$0xff] }
 0xcd1   : > { %v3273_v46 = vadd.f32 %v3265_v20, %v3225_v28  ;;  %v6396_v20 = vld [vmem:[#allocation12 + $0x8] sm:$0xff] }
 0xcd2   : > { %3694 = vmatpush.bf16.msrb.mxu1 %v6396_v20 }
 0xcd3   : > { %v3321_v44 = vadd.f32 %v3313_v55, %v3273_v46 }
 0xcd7   : > { %v3352_v0 = vpop.permute.xlu1 %3351 }
 0xcd8   : > { %v3361_v33 = vmul.f32 %v3352_v0, %v9020_v56 }
 0xcda   : > { %v3369_v42 = vadd.f32 %v3361_v33, %v3321_v44 }
 0xcdc   : > { %3378 = vst.msk [vmem:[#allocation2 + $0x38] sm:$0xff] %vm3370_vm3, %v3369_v42 }
 0xce3   : > { %v3386_v32 = vld [vmem:[#allocation2 + $0x38] sm:$0xff] }
 0xce4   : > { %v3394_v54 = vpack.c.bf16 %v3386_v32, %v3385_v62 }
 0xce6   : > { %6274 = vmatmul.msk.bf16.gmra.mxu2 %vm1184_vm0, %v3394_v54 }
 0xd05   : > { %v3432_v63 = vpop.f32.mrf.mxu2 }
 0xd06   : > { %v3433_v38 = vadd.f32 %v6718_v53, %v3432_v63 }
 0xd08   : > { %v3454_v27 = vsel %vm1184_vm0, %v3433_v38, 0.0 }
 0xd09   : > { %3455 = vadd.xlane.f32.xlu2 %v3454_v27 }
 0xd0d   : > { %v3434_v23 = vpop.f32.mrf.mxu2 }
 0xd0e   : > { %v3435_v9 = vadd.f32 %v6718_v53, %v3434_v23 }
 0xd10   : > { %v3457_v39 = vsel %vm1184_vm0, %v3435_v9, 0.0 }
 0xd11   : > { %3458 = vadd.xlane.f32.xlu1 %v3457_v39  ;;  %v6395_v39 = vld [vmem:[#allocation12] sm:$0xff] }
 0xd12   : > { %3695 = vmatpush.bf16.msrb.mxu1 %v6395_v39 }
 0xd20   : > { %v3437_v56 = vpop.f32.mrf.mxu2 }
 0xd21   : > { %v3438_v14 = vadd.f32 %v6718_v53, %v3437_v56 }
 0xd23   : > { %v3460_v6 = vsel %vm1184_vm0, %v3438_v14, 0.0 }
 0xd24   : > { %3461 = vadd.xlane.f32.xlu0 %v3460_v6 }
 0xd28   : > { %v3439_v48 = vpop.f32.mrf.mxu2 }
 0xd29   : > { %v3440_v58 = vadd.f32 %v6718_v53, %v3439_v48 }
 0xd2b   : > { %v3463_v52 = vsel %vm1184_vm0, %v3440_v58, 0.0 }
 0xd2c   : > { %3464 = vadd.xlane.f32.xlu2 %v3463_v52 }
 0xd3d   : > { %v3442_v25 = vpop.f32.mrf.mxu2 }
 0xd3e   : > { %v3443_v18 = vadd.f32 %v6718_v53, %v3442_v25 }
 0xd40   : > { %v3466_v57 = vsel %vm1184_vm0, %v3443_v18, 0.0 }
 0xd41   : > { %3467 = vadd.xlane.f32.xlu1 %v3466_v57 }
 0xd45   : > { %v3444_v45 = vpop.f32.mrf.mxu2 }
 0xd46   : > { %v3445_v50 = vadd.f32 %v6718_v53, %v3444_v45 }
 0xd48   : > { %v3469_v37 = vsel %vm1184_vm0, %v3445_v50, 0.0 }
 0xd49   : > { %3470 = vadd.xlane.f32.xlu2 %v3469_v37 }
 0xd69   : > { %v3447_v31 = vpop.f32.mrf.mxu2 }
 0xd6a   : > { %v3448_v22 = vadd.f32 %v6718_v53, %v3447_v31 }
 0xd6c   : > { %v3472_v16 = vsel %vm1184_vm0, %v3448_v22, 0.0 }
 0xd6d   : > { %3473 = vadd.xlane.f32.xlu2 %v3472_v16 }
 0xd71   : > { %v3449_v5 = vpop.f32.mrf.mxu2 }
 0xd72   : > { %v3450_v34 = vadd.f32 %v6718_v53, %v3449_v5 }
 0xd74   : > { %v3475_v12 = vsel %vm1184_vm0, %v3450_v34, 0.0 }
 0xd7c   : > { %v3456_v4 = vpop.xlane.xlu2 %3455 }
 0xd7d   : > { %v3478_v30 = vmul.f32 %v3456_v4, %v8186_v21 }
 0xd7f   : > { %v9232_v40 = vsub.f32 %v3433_v38, %v3478_v30 }
 0xd81   : > { %v3494_v1 = vmul.f32 %v9232_v40, %v9232_v40 }
 0xd83   : > { %v3502_v2 = vsel %vm1184_vm0, %v3494_v1, 0.0 }
 0xd84   : > { %v3459_v36 = vpop.xlane.xlu1 %3458  ;;  %3503 = vadd.xlane.f32.xlu0 %v3502_v2 }
 0xd85   : > { %v3479_v43 = vmul.f32 %v3459_v36, %v8186_v21 }
 0xd87   : > { %v9238_v13 = vsub.f32 %v3435_v9, %v3479_v43 }
 0xd89   : > { %v3495_v8 = vmul.f32 %v9238_v13, %v9238_v13 }
 0xd8b   : > { %v3505_v60 = vsel %vm1184_vm0, %v3495_v8, 0.0  ;;  %v9283_v8 = vld [vmem:[%s10194_s16] ss:$0 sm:$0xff]  ;;  %s10044_s16 = scalar_lea.vmem [#allocation27], %s6154_s14  ;;  %s10198_s14 = sld [smem:[#allocation60_spill]] }
 0xd8c   : > { %3506 = vadd.xlane.f32.xlu1 %v3505_v60  ;;  %3476 = vadd.xlane.f32.xlu0 %v3475_v12 }
 0xd91   : > { %s5902_s1 = scalar_lea.hbm %s10198_s14, %s6413_s15  ;;  %s7580_s15 = scalar_lea.hbm %s10198_s14, 128 }
 0xd92   : > { %s5905_s5 = sshll.u32 %s5902_s1, 4  ;;  %s5906_s5 = int_to_ptr.hbm [resolvable:$true] %s5905_s5 }
 0xd97   : > { %v3462_v26 = vpop.xlane.xlu0 %3461 }
 0xd98   : > { %v3480_v61 = vmul.f32 %v3462_v26, %v8186_v21 }
 0xd9a   : > { %v9245_v35 = vsub.f32 %v3438_v14, %v3480_v61 }
 0xd9c   : > { %v3496_v47 = vmul.f32 %v9245_v35, %v9245_v35 }
 0xd9e   : > { %v3508_v15 = vsel %vm1184_vm0, %v3496_v47, 0.0 }
 0xd9f   : > { %v3465_v3 = vpop.xlane.xlu2 %3464  ;;  %3509 = vadd.xlane.f32.xlu1 %v3508_v15 }
 0xda0   : > { %v3481_v24 = vmul.f32 %v3465_v3, %v8186_v21  ;;  %v9287_v3 = vld [vmem:[#allocation10] ss:$0 sm:$0xff] }
 0xda2   : > { %v9251_v51 = vsub.f32 %v3440_v58, %v3481_v24 }
 0xda4   : > { %v3497_v29 = vmul.f32 %v9251_v51, %v9251_v51 }
 0xda6   : > { %v3511_v28 = vsel %vm1184_vm0, %v3497_v29, 0.0 }
 0xda7   : > { %3512 = vadd.xlane.f32.xlu2 %v3511_v28 }
 0xdb4   : > { %v3468_v46 = vpop.xlane.xlu1 %3467 }
 0xdb5   : > { %v3482_v55 = vmul.f32 %v3468_v46, %v8186_v21 }
 0xdb7   : > { %v9257_v0 = vsub.f32 %v3443_v18, %v3482_v55 }
 0xdb9   : > { %v3498_v44 = vmul.f32 %v9257_v0, %v9257_v0 }
 0xdbb   : > { %v3514_v33 = vsel %vm1184_vm0, %v3498_v44, 0.0 }
 0xdbc   : > { %v3471_v42 = vpop.xlane.xlu2 %3470  ;;  %3515 = vadd.xlane.f32.xlu0 %v3514_v33 }
 0xdbd   : > { %v3483_v62 = vmul.f32 %v3471_v42, %v8186_v21 }
 0xdbf   : > { %v9263_v32 = vsub.f32 %v3445_v50, %v3483_v62 }
 0xdc1   : > { %v3499_v54 = vmul.f32 %v9263_v32, %v9263_v32 }
 0xdc3   : > { %v3517_v53 = vsel %vm1184_vm0, %v3499_v54, 0.0 }
 0xdc4   : > { %3518 = vadd.xlane.f32.xlu1 %v3517_v53 }
 0xde0   : > { %v3474_v63 = vpop.xlane.xlu2 %3473 }
 0xde1   : > { %v3484_v38 = vmul.f32 %v3474_v63, %v8186_v21 }
 0xde3   : > { %v9269_v27 = vsub.f32 %v3448_v22, %v3484_v38 }
 0xde5   : > { %v3500_v23 = vmul.f32 %v9269_v27, %v9269_v27 }
 0xde7   : > { %v3520_v9 = vsel %vm1184_vm0, %v3500_v23, 0.0 }
 0xde8   : > { %3521 = vadd.xlane.f32.xlu2 %v3520_v9 }
 0xdf7   : > { %v3504_v56 = vpop.xlane.xlu0 %3503 }
 0xdf8   : > { %v3526_v14 = vmul.f32 %v3504_v56, %v8186_v21 }
 0xdfa   : > { %v3534_v6 = vadd.f32 1e-05, %v3526_v14 }
 0xdfc   : > { %6940 = vrsqrt.f32 %v3534_v6  ;;  %vm3548_vm5 = vweird.f32 %v3534_v6 }
 0xdff   : > { %v3507_v48 = vpop.xlane.xlu1 %3506  ;;  %v3477_v58 = vpop.xlane.xlu0 %3476 }
 0xe00   : > { %v3527_v52 = vmul.f32 %v3507_v48, %v8186_v21  ;;  %v3485_v25 = vmul.f32 %v3477_v58, %v8186_v21 }
 0xe02   : > { %v6941_v18 = vpop.eup %6940  ;;  %v3535_v57 = vadd.f32 1e-05, %v3527_v52  ;;  %v9277_v45 = vsub.f32 %v3450_v34, %v3485_v25 }
 0xe03   : > { %v3543_v50 = vmul.f32 %v6941_v18, %v3534_v6  ;;  %vm3549_vm4 = vweird.f32 %v6941_v18 }
 0xe04   : > { %6942 = vrsqrt.f32 %v3535_v57  ;;  %v3501_v37 = vmul.f32 %v9277_v45, %v9277_v45  ;;  %vm3550_vm6 = vmor %vm3548_vm5, %vm3549_vm4  ;;  %vm3558_vm8 = vweird.f32 %v3535_v57 }
 0xe05   : > { %v3544_v31 = vmul.f32 %v6941_v18, %v3543_v50 }
 0xe06   : > { %v3523_v22 = vsel %vm1184_vm0, %v3501_v37, 0.0 }
 0xe07   : > { %v3545_v16 = vmul.f32 0.5, %v3544_v31  ;;  %3524 = vadd.xlane.f32.xlu0 %v3523_v22 }
 0xe09   : > { %v3546_v4 = vsub.f32 1.5, %v3545_v16 }
 0xe0a   : > { %v6943_v30 = vpop.eup %6942 }
 0xe0b   : > { %v3547_v1 = vmul.f32 %v6941_v18, %v3546_v4  ;;  %v3553_v2 = vmul.f32 %v6943_v30, %v3535_v57  ;;  %vm3559_vm7 = vweird.f32 %v6943_v30 }
 0xe0c   : > { %vm3560_vm9 = vmor %vm3558_vm8, %vm3559_vm7 }
 0xe0d   : > { %v3554_v5 = vmul.f32 %v6943_v30, %v3553_v2  ;;  %v3551_v36 = vsel %vm3550_vm6, %v6941_v18, %v3547_v1 }
 0xe0e   : > { %v3622_v60 = vmul.f32 %v3551_v36, %v9232_v40 }
 0xe0f   : > { %v3555_v43 = vmul.f32 0.5, %v3554_v5 }
 0xe10   : > { %v3633_v24 = vmul.f32 %v9283_v8, %v3622_v60 }
 0xe11   : > { %v3556_v34 = vsub.f32 1.5, %v3555_v43 }
 0xe12   : > { %v3510_v12 = vpop.xlane.xlu1 %3509  ;;  %v9293_v28 = vadd.f32 %v9287_v3, %v3633_v24 }
 0xe13   : > { %v3557_v26 = vmul.f32 %v6943_v30, %v3556_v34  ;;  %v3528_v61 = vmul.f32 %v3510_v12, %v8186_v21 }
 0xe15   : > { %v3561_v47 = vsel %vm3560_vm9, %v6943_v30, %v3557_v26  ;;  %v3536_v15 = vadd.f32 1e-05, %v3528_v61 }
 0xe16   : > { %v3623_v29 = vmul.f32 %v3561_v47, %v9238_v13 }
 0xe17   : > { %6944 = vrsqrt.f32 %v3536_v15  ;;  %vm3568_vm11 = vweird.f32 %v3536_v15 }
 0xe18   : > { %v3634_v20 = vmul.f32 %v9283_v8, %v3623_v29 }
 0xe1a   : > { %v9296_v40 = vadd.f32 %v9287_v3, %v3634_v20  ;;  %v3513_v46 = vpop.xlane.xlu2 %3512 }
 0xe1b   : > { %v3529_v55 = vmul.f32 %v3513_v46, %v8186_v21 }
 0xe1c   : > { %v3660_v44 = vpack.c.bf16 %v9296_v40, %v9293_v28 }
 0xe1d   : > { %v6945_v33 = vpop.eup %6944  ;;  %v3537_v42 = vadd.f32 1e-05, %v3529_v55 }
 0xe1e   : > { %v3563_v62 = vmul.f32 %v6945_v33, %v3536_v15  ;;  %6283 = vmatmul.msk.bf16.vlgmr.msrb.gmra.mxu1 %vm1184_vm0, %v3660_v44  ;;  %vm3569_vm10 = vweird.f32 %v6945_v33 }
 0xe1f   : > { %6946 = vrsqrt.f32 %v3537_v42  ;;  %vm3570_vm13 = vmor %vm3568_vm11, %vm3569_vm10  ;;  %vm3578_vm15 = vweird.f32 %v3537_v42 }
 0xe20   : > { %v3564_v13 = vmul.f32 %v6945_v33, %v3563_v62 }
 0xe22   : > { %v3565_v54 = vmul.f32 0.5, %v3564_v13 }
 0xe24   : > { %v3566_v53 = vsub.f32 1.5, %v3565_v54 }
 0xe25   : > { %v6947_v63 = vpop.eup %6946 }
 0xe26   : > { %v3567_v38 = vmul.f32 %v6945_v33, %v3566_v53  ;;  %v3573_v23 = vmul.f32 %v6947_v63, %v3537_v42  ;;  %vm3579_vm14 = vweird.f32 %v6947_v63 }
 0xe27   : > { %vm3580_vm1 = vmor %vm3578_vm15, %vm3579_vm14 }
 0xe28   : > { %v3574_v9 = vmul.f32 %v6947_v63, %v3573_v23  ;;  %v3571_v39 = vsel %vm3570_vm13, %v6945_v33, %v3567_v38 }
 0xe29   : > { %v3624_v6 = vmul.f32 %v3571_v39, %v9245_v35 }
 0xe2a   : > { %v3575_v56 = vmul.f32 0.5, %v3574_v9 }
 0xe2b   : > { %v3635_v57 = vmul.f32 %v9283_v8, %v3624_v6 }
 0xe2c   : > { %v3576_v14 = vsub.f32 1.5, %v3575_v56 }
 0xe2d   : > { %v9308_v31 = vadd.f32 %v9287_v3, %v3635_v57 }
 0xe2e   : > { %v3577_v48 = vmul.f32 %v6947_v63, %v3576_v14 }
 0xe2f   : > { %v3516_v58 = vpop.xlane.xlu0 %3515 }
 0xe30   : > { %v3581_v52 = vsel %vm3580_vm1, %v6947_v63, %v3577_v48  ;;  %v3530_v25 = vmul.f32 %v3516_v58, %v8186_v21 }
 0xe31   : > { %v3625_v18 = vmul.f32 %v3581_v52, %v9251_v51 }
 0xe32   : > { %v3538_v50 = vadd.f32 1e-05, %v3530_v25 }
 0xe33   : > { %v3636_v37 = vmul.f32 %v9283_v8, %v3625_v18 }
 0xe34   : > { %6948 = vrsqrt.f32 %v3538_v50  ;;  %vm3588_vm3 = vweird.f32 %v3538_v50 }
 0xe35   : > { %v9311_v35 = vadd.f32 %v9287_v3, %v3636_v37 }
 0xe37   : > { %v3519_v22 = vpop.xlane.xlu1 %3518  ;;  %v3661_v16 = vpack.c.bf16 %v9311_v35, %v9308_v31 }
 0xe38   : > { %v3531_v4 = vmul.f32 %v3519_v22, %v8186_v21 }
 0xe39   : > { %6284 = vmatmul.msk.bf16.gmra.mxu1 %vm1184_vm0, %v3661_v16 }
 0xe3a   : > { %v6949_v51 = vpop.eup %6948  ;;  %v3539_v30 = vadd.f32 1e-05, %v3531_v4 }
 0xe3b   : > { %v3583_v1 = vmul.f32 %v6949_v51, %v3538_v50  ;;  %vm3589_vm2 = vweird.f32 %v6949_v51 }
 0xe3c   : > { %6950 = vrsqrt.f32 %v3539_v30  ;;  %vm3590_vm4 = vmor %vm3588_vm3, %vm3589_vm2  ;;  %vm3598_vm6 = vweird.f32 %v3539_v30 }
 0xe3d   : > { %v3584_v2 = vmul.f32 %v6949_v51, %v3583_v1  ;;  %v6721_v1 = vld [vmem:[#allocation13] ss:$0 sm:$0xff] }
 0xe3f   : > { %v3585_v5 = vmul.f32 0.5, %v3584_v2 }
 0xe41   : > { %v3586_v36 = vsub.f32 1.5, %v3585_v5 }
 0xe42   : > { %v6951_v43 = vpop.eup %6950 }
 0xe43   : > { %v3587_v34 = vmul.f32 %v6949_v51, %v3586_v36  ;;  %v3593_v60 = vmul.f32 %v6951_v43, %v3539_v30  ;;  %vm3599_vm5 = vweird.f32 %v6951_v43 }
 0xe44   : > { %vm3600_vm7 = vmor %vm3598_vm6, %vm3599_vm5 }
 0xe45   : > { %v3594_v12 = vmul.f32 %v6951_v43, %v3593_v60  ;;  %v3591_v26 = vsel %vm3590_vm4, %v6949_v51, %v3587_v34 }
 0xe46   : > { %v3626_v15 = vmul.f32 %v3591_v26, %v9257_v0 }
 0xe47   : > { %v3595_v61 = vmul.f32 0.5, %v3594_v12 }
 0xe48   : > { %v3637_v46 = vmul.f32 %v9283_v8, %v3626_v15 }
 0xe49   : > { %v3596_v47 = vsub.f32 1.5, %v3595_v61 }
 0xe4a   : > { %v9322_v44 = vadd.f32 %v9287_v3, %v3637_v46 }
 0xe4b   : > { %v3597_v24 = vmul.f32 %v6951_v43, %v3596_v47 }
 0xe4d   : > { %v3601_v29 = vsel %vm3600_vm7, %v6951_v43, %v3597_v24 }
 0xe4e   : > { %v3627_v20 = vmul.f32 %v3601_v29, %v9263_v32 }
 0xe50   : > { %v3638_v55 = vmul.f32 %v9283_v8, %v3627_v20 }
 0xe52   : > { %v9325_v33 = vadd.f32 %v9287_v3, %v3638_v55 }
 0xe54   : > { %v3662_v42 = vpack.c.bf16 %v9325_v33, %v9322_v44 }
 0xe56   : > { %6285 = vmatmul.msk.bf16.gmra.mxu1 %vm1184_vm0, %v3662_v42 }
 0xe5b   : > { %v3522_v0 = vpop.xlane.xlu2 %3521 }
 0xe5c   : > { %v3532_v62 = vmul.f32 %v3522_v0, %v8186_v21 }
 0xe5e   : > { %v3540_v13 = vadd.f32 1e-05, %v3532_v62 }
 0xe60   : > { %6952 = vrsqrt.f32 %v3540_v13  ;;  %vm3608_vm9 = vweird.f32 %v3540_v13 }
 0xe66   : > { %v6953_v32 = vpop.eup %6952 }
 0xe67   : > { %v3603_v54 = vmul.f32 %v6953_v32, %v3540_v13  ;;  %vm3609_vm8 = vweird.f32 %v6953_v32 }
 0xe68   : > { %vm3610_vm10 = vmor %vm3608_vm9, %vm3609_vm8 }
 0xe69   : > { %v3604_v53 = vmul.f32 %v6953_v32, %v3603_v54 }
 0xe6b   : > { %v3605_v9 = vmul.f32 0.5, %v3604_v53 }
 0xe6d   : > { %v3606_v39 = vsub.f32 1.5, %v3605_v9 }
 0xe6f   : > { %v3607_v14 = vmul.f32 %v6953_v32, %v3606_v39 }
 0xe71   : > { %v3611_v58 = vsel %vm3610_vm10, %v6953_v32, %v3607_v14 }
 0xe72   : > { %v3628_v18 = vmul.f32 %v3611_v58, %v9269_v27  ;;  %v3738_v27 = vpop.f32.mrf.mxu3 }
 0xe74   : > { %v3639_v22 = vmul.f32 %v9283_v8, %v3628_v18 }
 0xe76   : > { %v9337_v4 = vadd.f32 %v9287_v3, %v3639_v22 }
 0xe7a   : > { %v3525_v63 = vpop.xlane.xlu0 %3524 }
 0xe7b   : > { %v3533_v38 = vmul.f32 %v3525_v63, %v8186_v21 }
 0xe7d   : > { %v3541_v23 = vadd.f32 1e-05, %v3533_v38 }
 0xe7f   : > { %6954 = vrsqrt.f32 %v3541_v23  ;;  %vm3618_vm13 = vweird.f32 %v3541_v23 }
 0xe85   : > { %v6955_v56 = vpop.eup %6954 }
 0xe86   : > { %v3613_v6 = vmul.f32 %v6955_v56, %v3541_v23  ;;  %vm3619_vm11 = vweird.f32 %v6955_v56 }
 0xe87   : > { %vm3620_vm14 = vmor %vm3618_vm13, %vm3619_vm11 }
 0xe88   : > { %v3614_v48 = vmul.f32 %v6955_v56, %v3613_v6 }
 0xe8a   : > { %v3615_v52 = vmul.f32 0.5, %v3614_v48 }
 0xe8c   : > { %v3616_v25 = vsub.f32 1.5, %v3615_v52 }
 0xe8e   : > { %v3617_v57 = vmul.f32 %v6955_v56, %v3616_v25 }
 0xe90   : > { %v3621_v50 = vsel %vm3620_vm14, %v6955_v56, %v3617_v57 }
 0xe91   : > { %v3629_v37 = vmul.f32 %v3621_v50, %v9277_v45 }
 0xe93   : > { %v3640_v16 = vmul.f32 %v9283_v8, %v3629_v37  ;;  %v3740_v8 = vpop.f32.mrf.mxu3 }
 0xe95   : > { %v9340_v51 = vadd.f32 %v9287_v3, %v3640_v16 }
 0xe97   : > { %v3663_v30 = vpack.c.bf16 %v9340_v51, %v9337_v4 }
 0xe99   : > { %6286 = vmatmul.msk.bf16.gmra.mxu1 %vm1184_vm0, %v3663_v30 }
 0xe9b   : > { %v3697_v2 = vpop.f32.mrf.mxu1  ;;  %v3743_v12 = vpop.f32.mrf.mxu3 }
 0xe9c   : > { %v3739_v5 = vadd.f32 %v3738_v27, %v3697_v2 }
 0xe9e   : > { %v3762_v45 = vadd.f32 %v6721_v1, %v3739_v5 }
 0xea0   : > { %v3772_v36 = vsel %vm1184_vm0, %v3762_v45, 0.0 }
 0xea1   : > { %3773 = vadd.xlane.f32.xlu1 %v3772_v36 }
 0xea3   : > { %v3699_v43 = vpop.f32.mrf.mxu1  ;;  %v3745_v24 = vpop.f32.mrf.mxu3 }
 0xea4   : > { %v3741_v34 = vadd.f32 %v3740_v8, %v3699_v43 }
 0xea6   : > { %v3763_v60 = vadd.f32 %v6721_v1, %v3741_v34 }
 0xea8   : > { %v3775_v3 = vsel %vm1184_vm0, %v3763_v60, 0.0 }
 0xea9   : > { %3776 = vadd.xlane.f32.xlu2 %v3775_v3 }
 0xeab   : > { %v3748_v42 = vpop.f32.mrf.mxu3 }
 0xeb3   : > { %v3750_v54 = vpop.f32.mrf.mxu3 }
 0xeb6   : > { %v3702_v26 = vpop.f32.mrf.mxu1 }
 0xeb7   : > { %v3744_v61 = vadd.f32 %v3743_v12, %v3702_v26 }
 0xeb9   : > { %v3764_v47 = vadd.f32 %v6721_v1, %v3744_v61 }
 0xebb   : > { %v3778_v15 = vsel %vm1184_vm0, %v3764_v47, 0.0  ;;  %v3753_v9 = vpop.f32.mrf.mxu3 }
 0xebc   : > { %3779 = vadd.xlane.f32.xlu0 %v3778_v15 }
 0xebe   : > { %v3704_v29 = vpop.f32.mrf.mxu1 }
 0xebf   : > { %v3746_v20 = vadd.f32 %v3745_v24, %v3704_v29 }
 0xec1   : > { %v3765_v46 = vadd.f32 %v6721_v1, %v3746_v20 }
 0xec3   : > { %v3781_v55 = vsel %vm1184_vm0, %v3765_v46, 0.0  ;;  %v3755_v37 = vpop.f32.mrf.mxu3 }
 0xec4   : > { %3782 = vadd.xlane.f32.xlu1 %v3781_v55 }
 0xed3   : > { %v3707_v0 = vpop.f32.mrf.mxu1 }
 0xed4   : > { %v3749_v62 = vadd.f32 %v3748_v42, %v3707_v0 }
 0xed6   : > { %v3766_v13 = vadd.f32 %v6721_v1, %v3749_v62 }
 0xed8   : > { %v3784_v32 = vsel %vm1184_vm0, %v3766_v13, 0.0 }
 0xed9   : > { %3785 = vadd.xlane.f32.xlu2 %v3784_v32 }
 0xedb   : > { %v3709_v53 = vpop.f32.mrf.mxu1 }
 0xedc   : > { %v3751_v63 = vadd.f32 %v3750_v54, %v3709_v53 }
 0xede   : > { %v3767_v38 = vadd.f32 %v6721_v1, %v3751_v63 }
 0xee0   : > { %v3787_v23 = vsel %vm1184_vm0, %v3767_v38, 0.0 }
 0xee1   : > { %3788 = vadd.xlane.f32.xlu0 %v3787_v23 }
 0xf14   : > { %v3774_v39 = vpop.xlane.xlu1 %3773 }
 0xf15   : > { %v3796_v56 = vmul.f32 %v3774_v39, %v8186_v21 }
 0xf16   : > { %v3712_v14 = vpop.f32.mrf.mxu1 }
 0xf17   : > { %v9352_v6 = vsub.f32 %v3762_v45, %v3796_v56  ;;  %v3754_v48 = vadd.f32 %v3753_v9, %v3712_v14 }
 0xf19   : > { %v3768_v58 = vadd.f32 %v6721_v1, %v3754_v48  ;;  %v3812_v52 = vmul.f32 %v9352_v6, %v9352_v6 }
 0xf1b   : > { %v3820_v25 = vsel %vm1184_vm0, %v3812_v52, 0.0  ;;  %v3790_v18 = vsel %vm1184_vm0, %v3768_v58, 0.0 }
 0xf1c   : > { %v3777_v57 = vpop.xlane.xlu2 %3776  ;;  %3821 = vadd.xlane.f32.xlu1 %v3820_v25  ;;  %3791 = vadd.xlane.f32.xlu0 %v3790_v18 }
 0xf1d   : > { %v3797_v50 = vmul.f32 %v3777_v57, %v8186_v21 }
 0xf1e   : > { %v3714_v22 = vpop.f32.mrf.mxu1 }
 0xf1f   : > { %v9359_v16 = vsub.f32 %v3763_v60, %v3797_v50  ;;  %v3756_v30 = vadd.f32 %v3755_v37, %v3714_v22 }
 0xf21   : > { %v3769_v27 = vadd.f32 %v6721_v1, %v3756_v30  ;;  %v3813_v2 = vmul.f32 %v9359_v16, %v9359_v16 }
 0xf23   : > { %v3823_v5 = vsel %vm1184_vm0, %v3813_v2, 0.0  ;;  %v3793_v45 = vsel %vm1184_vm0, %v3769_v27, 0.0 }
 0xf24   : > { %3824 = vadd.xlane.f32.xlu2 %v3823_v5  ;;  %3794 = vadd.xlane.f32.xlu1 %v3793_v45 }
 0xf2f   : > { %v3780_v36 = vpop.xlane.xlu0 %3779 }
 0xf30   : > { %v3798_v8 = vmul.f32 %v3780_v36, %v8186_v21  ;;  %v9403_v36 = vld [vmem:[#allocation15] ss:$0 sm:$0xff] }
 0xf32   : > { %v9366_v43 = vsub.f32 %v3764_v47, %v3798_v8 }
 0xf34   : > { %v3814_v34 = vmul.f32 %v9366_v43, %v9366_v43 }
 0xf36   : > { %v3826_v60 = vsel %vm1184_vm0, %v3814_v34, 0.0 }
 0xf37   : > { %v3783_v1 = vpop.xlane.xlu1 %3782  ;;  %3827 = vadd.xlane.f32.xlu2 %v3826_v60  ;;  %v9406_v60 = vld [vmem:[#allocation16] ss:$0 sm:$0xff] }
 0xf38   : > { %v3799_v3 = vmul.f32 %v3783_v1, %v8186_v21 }
 0xf3a   : > { %v9372_v12 = vsub.f32 %v3765_v46, %v3799_v3 }
 0xf3c   : > { %v3815_v26 = vmul.f32 %v9372_v12, %v9372_v12 }
 0xf3e   : > { %v3829_v61 = vsel %vm1184_vm0, %v3815_v26, 0.0 }
 0xf3f   : > { %3830 = vadd.xlane.f32.xlu0 %v3829_v61 }
 0xf4c   : > { %v3786_v15 = vpop.xlane.xlu2 %3785 }
 0xf4d   : > { %v3800_v47 = vmul.f32 %v3786_v15, %v8186_v21 }
 0xf4f   : > { %v9378_v24 = vsub.f32 %v3766_v13, %v3800_v47 }
 0xf51   : > { %v3816_v29 = vmul.f32 %v9378_v24, %v9378_v24 }
 0xf53   : > { %v3832_v20 = vsel %vm1184_vm0, %v3816_v29, 0.0 }
 0xf54   : > { %3833 = vadd.xlane.f32.xlu1 %v3832_v20  ;;  %v3789_v55 = vpop.xlane.xlu0 %3788 }
 0xf55   : > { %v3801_v46 = vmul.f32 %v3789_v55, %v8186_v21 }
 0xf57   : > { %v9384_v42 = vsub.f32 %v3767_v38, %v3801_v46 }
 0xf59   : > { %v3817_v0 = vmul.f32 %v9384_v42, %v9384_v42 }
 0xf5b   : > { %v3835_v62 = vsel %vm1184_vm0, %v3817_v0, 0.0 }
 0xf5c   : > { %3836 = vadd.xlane.f32.xlu2 %v3835_v62 }
 0xf8f   : > { %v3822_v32 = vpop.xlane.xlu1 %3821  ;;  %v3792_v13 = vpop.xlane.xlu0 %3791 }
 0xf90   : > { %v3844_v54 = vmul.f32 %v3822_v32, %v8186_v21  ;;  %v3802_v53 = vmul.f32 %v3792_v13, %v8186_v21 }
 0xf92   : > { %v3852_v63 = vadd.f32 1e-05, %v3844_v54  ;;  %v9391_v23 = vsub.f32 %v3768_v58, %v3802_v53 }
 0xf94   : > { %6956 = vrsqrt.f32 %v3852_v63  ;;  %v3818_v38 = vmul.f32 %v9391_v23, %v9391_v23  ;;  %vm3866_vm1 = vweird.f32 %v3852_v63 }
 0xf96   : > { %v3838_v9 = vsel %vm1184_vm0, %v3818_v38, 0.0 }
 0xf97   : > { %v3825_v39 = vpop.xlane.xlu2 %3824  ;;  %v3795_v56 = vpop.xlane.xlu1 %3794  ;;  %3839 = vadd.xlane.f32.xlu0 %v3838_v9 }
 0xf98   : > { %v3845_v14 = vmul.f32 %v3825_v39, %v8186_v21  ;;  %v3803_v48 = vmul.f32 %v3795_v56, %v8186_v21 }
 0xf9a   : > { %v6957_v52 = vpop.eup %6956  ;;  %v3853_v25 = vadd.f32 1e-05, %v3845_v14  ;;  %v9398_v18 = vsub.f32 %v3769_v27, %v3803_v48 }
 0xf9b   : > { %v3861_v57 = vmul.f32 %v6957_v52, %v3852_v63  ;;  %vm3867_vm15 = vweird.f32 %v6957_v52 }
 0xf9c   : > { %6958 = vrsqrt.f32 %v3853_v25  ;;  %v3819_v58 = vmul.f32 %v9398_v18, %v9398_v18  ;;  %vm3868_vm2 = vmor %vm3866_vm1, %vm3867_vm15  ;;  %vm3876_vm4 = vweird.f32 %v3853_v25 }
 0xf9d   : > { %v3862_v50 = vmul.f32 %v6957_v52, %v3861_v57 }
 0xf9e   : > { %v3841_v37 = vsel %vm1184_vm0, %v3819_v58, 0.0 }
 0xf9f   : > { %v3863_v22 = vmul.f32 0.5, %v3862_v50  ;;  %3842 = vadd.xlane.f32.xlu1 %v3841_v37 }
 0xfa1   : > { %v3864_v30 = vsub.f32 1.5, %v3863_v22 }
 0xfa2   : > { %v6959_v2 = vpop.eup %6958 }
 0xfa3   : > { %v3865_v5 = vmul.f32 %v6957_v52, %v3864_v30  ;;  %v3871_v45 = vmul.f32 %v6959_v2, %v3853_v25  ;;  %vm3877_vm3 = vweird.f32 %v6959_v2 }
 0xfa4   : > { %vm3878_vm5 = vmor %vm3876_vm4, %vm3877_vm3 }
 0xfa5   : > { %v3869_v27 = vsel %vm3868_vm2, %v6957_v52, %v3865_v5  ;;  %v3872_v8 = vmul.f32 %v6959_v2, %v3871_v45 }
 0xfa6   : > { %v3940_v34 = vmul.f32 %v3869_v27, %v9352_v6 }
 0xfa7   : > { %v3873_v1 = vmul.f32 0.5, %v3872_v8 }
 0xfa8   : > { %v3951_v3 = vmul.f32 %v9403_v36, %v3940_v34 }
 0xfa9   : > { %v3874_v26 = vsub.f32 1.5, %v3873_v1 }
 0xfaa   : > { %v3828_v61 = vpop.xlane.xlu2 %3827  ;;  %v9410_v15 = vadd.f32 %v9406_v60, %v3951_v3 }
 0xfab   : > { %v3875_v47 = vmul.f32 %v6959_v2, %v3874_v26  ;;  %v3846_v29 = vmul.f32 %v3828_v61, %v8186_v21 }
 0xfac   : > { %v9414_v20 = vmul.f32 0.70710677, %v9410_v15 }
 0xfad   : > { %v3879_v6 = vsel %vm3878_vm5, %v6959_v2, %v3875_v47  ;;  %v3854_v55 = vadd.f32 1e-05, %v3846_v29 }
 0xfae   : > { %v3941_v46 = vmul.f32 %v3879_v6, %v9359_v16  ;;  %v4002_v0 = vand.u32 2147483647, %v9414_v20 }
 0xfaf   : > { %6960 = vrsqrt.f32 %v3854_v55  ;;  %vm3886_vm7 = vweird.f32 %v3854_v55 }
 0xfb0   : > { %v4010_v62 = vmul.f32 0.3275911, %v4002_v0  ;;  %v3952_v32 = vmul.f32 %v9403_v36, %v3941_v46  ;;  %v4218_v46 = vsub.f32 0.0, %v4002_v0 }
 0xfb2   : > { %v3831_v13 = vpop.xlane.xlu0 %3830  ;;  %v4018_v54 = vadd.f32 1.0, %v4010_v62  ;;  %v9421_v63 = vadd.f32 %v9406_v60, %v3952_v32 }
 0xfb3   : > { %v3847_v53 = vmul.f32 %v3831_v13, %v8186_v21 }
 0xfb4   : > { %6962 = vrcp.f32 %v4018_v54  ;;  %v9424_v16 = vmul.f32 0.70710677, %v9421_v63  ;;  %v4037_v5 = vand.u32 2147483648, %v4018_v54  ;;  %v4035_v27 = vand.u32 2147483647, %v4018_v54 }
 0xfb5   : > { %v6961_v38 = vpop.eup %6960  ;;  %v3855_v9 = vadd.f32 1e-05, %v3847_v53  ;;  %vm4031_vm10 = vweird.f32 %v4018_v54 }
 0xfb6   : > { %v3881_v39 = vmul.f32 %v6961_v38, %v3854_v55  ;;  %v9427_v14 = vand.u32 2147483647, %v9424_v16  ;;  %vm3887_vm6 = vweird.f32 %v6961_v38  ;;  %v4038_v61 = vor.u32 1.1754944e-38, %v4037_v5 }
 0xfb7   : > { %6964 = vrsqrt.f32 %v3855_v9  ;;  %vm3888_vm8 = vmor %vm3886_vm7, %vm3887_vm6  ;;  %vm4036_vm13 = vcmp.eq.f32.partialorder %v4035_v27, 8.507059e+37  ;;  %vm3896_vm15 = vweird.f32 %v3855_v9  ;;  %vm3986_vm6 = vcmp.ge.f32.partialorder %v9414_v20, 0.0 }
 0xfb8   : > { %v3882_v56 = vmul.f32 %v6961_v38, %v3881_v39  ;;  %v4011_v57 = vmul.f32 0.3275911, %v9427_v14  ;;  %v4219_v27 = vsub.f32 0.0, %v9427_v14 }
 0xfba   : > { %v6963_v48 = vpop.eup %6962  ;;  %v3883_v52 = vmul.f32 0.5, %v3882_v56  ;;  %v4019_v22 = vadd.f32 1.0, %v4011_v57 }
 0xfbb   : > { %v4027_v25 = vmul.f32 %v6963_v48, %v4018_v54  ;;  %vm4032_vm9 = vweird.f32 %v6963_v48 }
 0xfbc   : > { %v3884_v58 = vsub.f32 1.5, %v3883_v52  ;;  %6966 = vrcp.f32 %v4019_v22  ;;  %vm4033_vm11 = vmor %vm4031_vm10, %vm4032_vm9  ;;  %v4226_v52 = vmul.f32 %v4218_v46, %v4002_v0  ;;  %v4050_v5 = vand.u32 2147483647, %v4019_v22 }
 0xfbd   : > { %v6965_v50 = vpop.eup %6964  ;;  %v4028_v37 = vsub.f32 1.0, %v4027_v25  ;;  %vm4046_vm3 = vweird.f32 %v4019_v22  ;;  %v4227_v46 = vmul.f32 %v4219_v27, %v9427_v14 }
 0xfbe   : > { %v3885_v30 = vmul.f32 %v6961_v38, %v3884_v58  ;;  %v3891_v2 = vmul.f32 %v6965_v50, %v3855_v9  ;;  %vm3897_vm14 = vweird.f32 %v6965_v50  ;;  %vm4051_vm5 = vcmp.eq.f32.partialorder %v4050_v5, 8.507059e+37 }
 0xfbf   : > { %v4029_v45 = vmul.f32 %v6963_v48, %v4028_v37  ;;  %vm3898_vm1 = vmor %vm3896_vm15, %vm3897_vm14  ;;  %v4052_v37 = vand.u32 2147483648, %v4019_v22  ;;  %v3970_v5 = vmul.f32 0.5, %v9410_v15 }
 0xfc0   : > { %v3889_v8 = vsel %vm3888_vm8, %v6961_v38, %v3885_v30  ;;  %v3892_v34 = vmul.f32 %v6965_v50, %v3891_v2 }
 0xfc1   : > { %v3942_v1 = vmul.f32 %v3889_v8, %v9366_v43  ;;  %v4030_v3 = vadd.f32 %v6963_v48, %v4029_v45 }
 0xfc2   : > { %v3893_v26 = vmul.f32 0.5, %v3892_v34  ;;  %v6967_v62 = vpop.eup %6966 }
 0xfc3   : > { %v4034_v47 = vsel %vm4033_vm11, %v6963_v48, %v4030_v3  ;;  %v3953_v29 = vmul.f32 %v9403_v36, %v3942_v1  ;;  %v4042_v43 = vmul.f32 %v6967_v62, %v4019_v22  ;;  %vm4047_vm2 = vweird.f32 %v6967_v62 }
 0xfc4   : > { %v3894_v6 = vsub.f32 1.5, %v3893_v26  ;;  %v4039_v55 = vsel %vm4036_vm13, %v4038_v61, %v4034_v47  ;;  %vm4048_vm4 = vmor %vm4046_vm3, %vm4047_vm2  ;;  %v4053_v1 = vor.u32 1.1754944e-38, %v4052_v37 }
 0xfc5   : > { %v4146_v32 = vmul.f32 1.0614054, %v4039_v55  ;;  %v9433_v13 = vadd.f32 %v9406_v60, %v3953_v29  ;;  %v4043_v25 = vsub.f32 1.0, %v4042_v43 }
 0xfc6   : > { %v3895_v53 = vmul.f32 %v6965_v50, %v3894_v6 }
 0xfc7   : > { %v3834_v54 = vpop.xlane.xlu1 %3833  ;;  %v4154_v38 = vadd.f32 -1.4531521, %v4146_v32  ;;  %v9436_v39 = vmul.f32 0.70710677, %v9433_v13  ;;  %v4044_v2 = vmul.f32 %v6967_v62, %v4043_v25 }
 0xfc8   : > { %v3899_v56 = vsel %vm3898_vm1, %v6965_v50, %v3895_v53  ;;  %v3848_v48 = vmul.f32 %v3834_v54, %v8186_v21  ;;  %vm3987_vm1 = vcmp.ge.f32.partialorder %v9424_v16, 0.0 }
 0xfc9   : > { %v3943_v57 = vmul.f32 %v3899_v56, %v9372_v12  ;;  %v4162_v58 = vmul.f32 %v4154_v38, %v4039_v55  ;;  %v9441_v30 = vand.u32 2147483647, %v9436_v39  ;;  %v4234_v12 = vmul.f32 1.442695, %v4226_v52 }
 0xfca   : > { %v9443_v9 = vadd.f32 1e-05, %v3848_v48  ;;  %v4045_v8 = vadd.f32 %v6967_v62, %v4044_v2  ;;  %v4236_v48 = vmul.f32 1.442695, %v4227_v46 }
 0xfcb   : > { %v4170_v45 = vadd.f32 1.4214138, %v4162_v58  ;;  %v4012_v50 = vmul.f32 0.3275911, %v9441_v30  ;;  %v3954_v0 = vmul.f32 %v9403_v36, %v3943_v57 }
 0xfcc   : > { %6968 = vrsqrt.f32 %v9443_v9  ;;  %v4049_v61 = vsel %vm4048_vm4, %v6967_v62, %v4045_v8  ;;  %vm3906_vm9 = vweird.f32 %v9443_v9 }
 0xfcd   : > { %v4178_v34 = vmul.f32 %v4170_v45, %v4039_v55  ;;  %v9449_v3 = vadd.f32 1.0, %v4012_v50  ;;  %v9452_v26 = vadd.f32 %v9406_v60, %v3954_v0  ;;  %v9454_v6 = vsel %vm4051_vm5, %v4053_v1, %v4049_v61 }
 0xfce   : > { %v4147_v32 = vmul.f32 1.0614054, %v9454_v6  ;;  %v7723_v45 = vmov -1.0   ;;  %v4220_v61 = vsub.f32 0.0, %v9441_v30 }
 0xfcf   : > { %v3837_v47 = vpop.xlane.xlu2 %3836  ;;  %v4186_v29 = vadd.f32 -0.28449672, %v4178_v34  ;;  %6970 = vrcp.f32 %v9449_v3  ;;  %v9461_v43 = vmul.f32 0.70710677, %v9452_v26  ;;  %v3994_v27 = vsel %vm3986_vm6, 1.0, %v7723_v45 }
 0xfd0   : > { %v3849_v22 = vmul.f32 %v3837_v47, %v8186_v21  ;;  %6972 = vpow2.f32 %v4234_v12  ;;  %v4155_v38 = vadd.f32 -1.4531521, %v4147_v32  ;;  %v4067_v1 = vand.u32 2147483648, %v9449_v3 }
 0xfd1   : > { %v4194_v53 = vmul.f32 %v4186_v29, %v4039_v55  ;;  %v9470_v37 = vand.u32 2147483647, %v9461_v43  ;;  %vm4061_vm11 = vweird.f32 %v9449_v3 }
 0xfd2   : > { %v6969_v54 = vpop.eup %6968  ;;  %v9463_v62 = vadd.f32 1e-05, %v3849_v22  ;;  %v4163_v52 = vmul.f32 %v4155_v38, %v9454_v6 }
 0xfd3   : > { %v3901_v56 = vmul.f32 %v6969_v54, %v9443_v9  ;;  %v4202_v14 = vadd.f32 0.2548296, %v4194_v53  ;;  %v4013_v8 = vmul.f32 0.3275911, %v9470_v37  ;;  %vm3907_vm7 = vweird.f32 %v6969_v54 }
 0xfd4   : > { %6974 = vrsqrt.f32 %v9463_v62  ;;  %v4171_v50 = vadd.f32 1.4214138, %v4163_v52  ;;  %v4065_v53 = vand.u32 2147483647, %v9449_v3  ;;  %vm3908_vm10 = vmor %vm3906_vm9, %vm3907_vm7  ;;  %v4068_v9 = vor.u32 1.1754944e-38, %v4067_v1 }
 0xfd5   : > { %v6971_v25 = vpop.eup %6970  ;;  %v3902_v57 = vmul.f32 %v6969_v54, %v3901_v56  ;;  %v4210_v58 = vmul.f32 %v4202_v14, %v4039_v55  ;;  %6976 = vpow2.f32 %v4236_v48  ;;  %v9479_v29 = vadd.f32 1.0, %v4013_v8 }
 0xfd6   : > { %v6973_v2 = vpop.eup %6972  ;;  %v4057_v20 = vmul.f32 %v6971_v25, %v9449_v3  ;;  %v4179_v34 = vmul.f32 %v4171_v50, %v9454_v6  ;;  %vm4062_vm8 = vweird.f32 %v6971_v25  ;;  %vm4066_vm14 = vcmp.eq.f32.partialorder %v4065_v53, 8.507059e+37 }
 0xfd7   : > { %v3903_v0 = vmul.f32 0.5, %v3902_v57  ;;  %v4250_v12 = vmul.f32 %v6973_v2, %v4210_v58  ;;  %6978 = vrcp.f32 %v9479_v29  ;;  %vm4063_vm13 = vmor %vm4061_vm11, %vm4062_vm8  ;;  %vm3916_vm2 = vweird.f32 %v9463_v62 }
 0xfd8   : > { %v4058_v55 = vsub.f32 1.0, %v4057_v20  ;;  %v4187_v22 = vadd.f32 -0.28449672, %v4179_v34  ;;  %v9487_v20 = vld [vmem:[#allocation18] ss:$0 sm:$0xff]  ;;  %vm4076_vm5 = vweird.f32 %v9479_v29  ;;  %vm3988_vm8 = vcmp.ge.f32.partialorder %v9436_v39, 0.0 }
 0xfd9   : > { %v3904_v47 = vsub.f32 1.5, %v3903_v0  ;;  %v4258_v15 = vsub.f32 1.0, %v4250_v12  ;;  %vm3989_vm11 = vcmp.ge.f32.partialorder %v9461_v43, 0.0 }
 0xfda   : > { %v6975_v46 = vpop.eup %6974  ;;  %v4059_v32 = vmul.f32 %v6971_v25, %v4058_v55  ;;  %v4195_v48 = vmul.f32 %v4187_v22, %v9454_v6 }
 0xfdb   : > { %v3905_v38 = vmul.f32 %v6969_v54, %v3904_v47  ;;  %v3911_v56 = vmul.f32 %v6975_v46, %v9463_v62  ;;  %v4266_v14 = vmul.f32 %v4258_v15, %v3994_v27  ;;  %v6977_v57 = vpop.eup %6976  ;;  %vm3917_vm15 = vweird.f32 %v6975_v46 }
 0xfdc   : > { %v4060_v52 = vadd.f32 %v6971_v25, %v4059_v32  ;;  %v4203_v27 = vadd.f32 0.2548296, %v4195_v48  ;;  %vm3918_vm3 = vmor %vm3916_vm2, %vm3917_vm15 }
 0xfdd   : > { %v3909_v58 = vsel %vm3908_vm10, %v6969_v54, %v3905_v38  ;;  %v3912_v2 = vmul.f32 %v6975_v46, %v3911_v56  ;;  %v4274_v50 = vadd.f32 1.0, %v4266_v14  ;;  %v4228_v54 = vmul.f32 %v4220_v61, %v9441_v30  ;;  %v6979_v1 = vpop.eup %6978 }
 0xfde   : > { %v3944_v0 = vmul.f32 %v3909_v58, %v9378_v24  ;;  %v4064_v12 = vsel %vm4063_vm13, %v6971_v25, %v4060_v52  ;;  %v4211_v3 = vmul.f32 %v4203_v27, %v9454_v6  ;;  %v4072_v6 = vmul.f32 %v6979_v1, %v9479_v29 }
 0xfdf   : > { %v3913_v8 = vmul.f32 0.5, %v3912_v2  ;;  %v4282_v34 = vmul.f32 %v4274_v50, %v3970_v5  ;;  %v4069_v55 = vsel %vm4066_vm14, %v4068_v9, %v4064_v12  ;;  %v3995_v14 = vsel %vm3987_vm1, 1.0, %v7723_v45 }
 0xfe0   : > { %v4148_v47 = vmul.f32 1.0614054, %v4069_v55  ;;  %v3955_v32 = vmul.f32 %v9403_v36, %v3944_v0  ;;  %v4251_v24 = vmul.f32 %v6977_v57, %v4211_v3  ;;  %v4238_v16 = vmul.f32 1.442695, %v4228_v54 }
 0xfe1   : > { %v3914_v15 = vsub.f32 1.5, %v3913_v8  ;;  %v4294_v22 = vmul.f32 %v9487_v20, %v4282_v34  ;;  %v4073_v48 = vsub.f32 1.0, %v4072_v6  ;;  %v4082_v58 = vand.u32 2147483648, %v9479_v29 }
 0xfe2   : > { %v4156_v25 = vadd.f32 -1.4531521, %v4148_v47  ;;  %v4259_v30 = vsub.f32 1.0, %v4251_v24  ;;  %v9500_v38 = vadd.f32 %v9406_v60, %v3955_v32  ;;  %vm4077_vm4 = vweird.f32 %v6979_v1 }
 0xfe3   : > { %v3915_v53 = vmul.f32 %v6975_v46, %v3914_v15  ;;  %v4302_v5 = vsel %vm1184_vm0, %v4294_v22, 0.0  ;;  %v4074_v2 = vmul.f32 %v6979_v1, %v4073_v48  ;;  %v4080_v50 = vand.u32 2147483647, %v9479_v29  ;;  %vm4078_vm6 = vmor %vm4076_vm5, %vm4077_vm4 }
 0xfe4   : > { %4303 = vadd.xlane.f32.xlu2 %v4302_v5  ;;  %v4164_v61 = vmul.f32 %v4156_v25, %v4069_v55  ;;  %v4267_v57 = vmul.f32 %v4259_v30, %v3995_v14  ;;  %v9507_v9 = vmul.f32 0.70710677, %v9500_v38  ;;  %v3971_v0 = vmul.f32 0.5, %v9421_v63 }
 0xfe5   : > { %v3919_v56 = vsel %vm3918_vm3, %v6975_v46, %v3915_v53  ;;  %v4075_v8 = vadd.f32 %v6979_v1, %v4074_v2  ;;  %v4083_v47 = vor.u32 1.1754944e-38, %v4082_v58  ;;  %6980 = vpow2.f32 %v4238_v16 }
 0xfe6   : > { %v3945_v52 = vmul.f32 %v3919_v56, %v9384_v42  ;;  %v4172_v62 = vadd.f32 1.4214138, %v4164_v61  ;;  %v4275_v46 = vadd.f32 1.0, %v4267_v57  ;;  %v9513_v42 = vand.u32 2147483647, %v9507_v9 }
 0xfe7   : > { %v4079_v15 = vsel %vm4078_vm6, %v6979_v1, %v4075_v8  ;;  %vm4081_vm7 = vcmp.eq.f32.partialorder %v4080_v50, 8.507059e+37  ;;  %v4221_v29 = vsub.f32 0.0, %v9470_v37  ;;  %v3972_v8 = vmul.f32 0.5, %v9433_v13 }
 0xfe8   : > { %v4180_v27 = vmul.f32 %v4172_v62, %v4069_v55  ;;  %v3956_v12 = vmul.f32 %v9403_v36, %v3945_v52  ;;  %v4283_v34 = vmul.f32 %v4275_v46, %v3971_v0  ;;  %v4014_v63 = vmul.f32 0.3275911, %v9513_v42 }
 0xfe9   : > { %v4084_v24 = vsel %vm4081_vm7, %v4083_v47, %v4079_v15  ;;  %v4229_v56 = vmul.f32 %v4221_v29, %v9470_v37  ;;  %v3996_v0 = vsel %vm3988_vm8, 1.0, %v7723_v45  ;;  %vm3990_vm4 = vcmp.ge.f32.partialorder %v9507_v9, 0.0 }
 0xfea   : > { %v4188_v3 = vadd.f32 -0.28449672, %v4180_v27  ;;  %v9516_v54 = vadd.f32 %v9406_v60, %v3956_v12  ;;  %v4295_v22 = vmul.f32 %v9487_v20, %v4283_v34  ;;  %v4149_v25 = vmul.f32 1.0614054, %v4084_v24 }
 0xfeb   : > { %v4022_v53 = vadd.f32 1.0, %v4014_v63  ;;  %v6981_v14 = vpop.eup %6980  ;;  %v4240_v2 = vmul.f32 1.442695, %v4229_v56 }
 0xfec   : > { %v4196_v32 = vmul.f32 %v4188_v3, %v4069_v55  ;;  %v9522_v5 = vmul.f32 0.70710677, %v9516_v54  ;;  %v4305_v6 = vsel %vm1184_vm0, %v4295_v22, 0.0  ;;  %v4157_v61 = vadd.f32 -1.4531521, %v4149_v25 }
 0xfed   : > { %4306 = vadd.xlane.f32.xlu0 %v4305_v6  ;;  %6982 = vrcp.f32 %v4022_v53  ;;  %v4097_v47 = vand.u32 2147483648, %v4022_v53  ;;  %v4095_v22 = vand.u32 2147483647, %v4022_v53  ;;  %vm4091_vm10 = vweird.f32 %v4022_v53 }
 0xfee   : > { %v4204_v30 = vadd.f32 0.2548296, %v4196_v32  ;;  %v4165_v16 = vmul.f32 %v4157_v61, %v4084_v24  ;;  %v9527_v48 = vand.u32 2147483647, %v9522_v5  ;;  %vm3991_vm5 = vcmp.ge.f32.partialorder %v9522_v5, 0.0 }
 0xfef   : > { %v4098_v13 = vor.u32 1.1754944e-38, %v4097_v47  ;;  %vm4096_vm14 = vcmp.eq.f32.partialorder %v4095_v22, 8.507059e+37 }
 0xff0   : > { %v4212_v1 = vmul.f32 %v4204_v30, %v4069_v55  ;;  %v4173_v57 = vadd.f32 1.4214138, %v4165_v16  ;;  %v4015_v62 = vmul.f32 0.3275911, %v9527_v48 }
 0xff2   : > { %v4252_v52 = vmul.f32 %v6981_v14, %v4212_v1  ;;  %v4181_v46 = vmul.f32 %v4173_v57, %v4084_v24  ;;  %v4023_v55 = vadd.f32 1.0, %v4015_v62  ;;  %v4222_v57 = vsub.f32 0.0, %v9513_v42 }
 0xff3   : > { %v6983_v50 = vpop.eup %6982 }
 0xff4   : > { %v4260_v58 = vsub.f32 1.0, %v4252_v52  ;;  %v4087_v37 = vmul.f32 %v6983_v50, %v4022_v53  ;;  %v4189_v12 = vadd.f32 -0.28449672, %v4181_v46  ;;  %6984 = vrcp.f32 %v4023_v55 }
 0xff5   : > { %6986 = vpow2.f32 %v4240_v2  ;;  %vm4092_vm9 = vweird.f32 %v6983_v50  ;;  %v3997_v53 = vsel %vm3989_vm11, 1.0, %v7723_v45  ;;  %v4112_v43 = vand.u32 2147483648, %v4023_v55 }
 0xff6   : > { %v4268_v27 = vmul.f32 %v4260_v58, %v3996_v0  ;;  %v4088_v39 = vsub.f32 1.0, %v4087_v37  ;;  %v4197_v3 = vmul.f32 %v4189_v12, %v4084_v24  ;;  %vm4093_vm13 = vmor %vm4091_vm10, %vm4092_vm9  ;;  %v4110_v46 = vand.u32 2147483647, %v4023_v55 }
 0xff7   : > { %vm4106_vm1 = vweird.f32 %v4023_v55 }
 0xff8   : > { %v4276_v34 = vadd.f32 1.0, %v4268_v27  ;;  %v4089_v63 = vmul.f32 %v6983_v50, %v4088_v39  ;;  %v4205_v32 = vadd.f32 0.2548296, %v4197_v3  ;;  %v4113_v39 = vor.u32 1.1754944e-38, %v4112_v43 }
 0xff9   : > { %vm4111_vm3 = vcmp.eq.f32.partialorder %v4110_v46, 8.507059e+37 }
 0xffa   : > { %v4284_v15 = vmul.f32 %v4276_v34, %v3972_v8  ;;  %v4090_v25 = vadd.f32 %v6983_v50, %v4089_v63  ;;  %v6985_v6 = vpop.eup %6984  ;;  %v4213_v30 = vmul.f32 %v4205_v32, %v4084_v24  ;;  %v3973_v8 = vmul.f32 0.5, %v9452_v26 }
 0xffb   : > { %v6987_v61 = vpop.eup %6986  ;;  %v4102_v14 = vmul.f32 %v6985_v6, %v4023_v55  ;;  %vm4107_vm15 = vweird.f32 %v6985_v6  ;;  %v4223_v32 = vsub.f32 0.0, %v9527_v48 }
 0xffc   : > { %v4296_v29 = vmul.f32 %v9487_v20, %v4284_v15  ;;  %v4094_v56 = vsel %vm4093_vm13, %v6983_v50, %v4090_v25  ;;  %v4253_v16 = vmul.f32 %v6987_v61, %v4213_v30  ;;  %v4230_v50 = vmul.f32 %v4222_v57, %v9513_v42  ;;  %vm4108_vm2 = vmor %vm4106_vm1, %vm4107_vm15 }
 0xffd   : > { %v4099_v52 = vsel %vm4096_vm14, %v4098_v13, %v4094_v56  ;;  %v4103_v58 = vsub.f32 1.0, %v4102_v14 }
 0xffe   : > { %v4308_v1 = vsel %vm1184_vm0, %v4296_v29, 0.0  ;;  %v4150_v62 = vmul.f32 1.0614054, %v4099_v52  ;;  %v4261_v2 = vsub.f32 1.0, %v4253_v16  ;;  %v4242_v63 = vmul.f32 1.442695, %v4230_v50 }
 0xfff   : > { %4309 = vadd.xlane.f32.xlu1 %v4308_v1  ;;  %v4104_v0 = vmul.f32 %v6985_v6, %v4103_v58 }
0x1000   : > { %v4158_v24 = vadd.f32 -1.4531521, %v4150_v62  ;;  %v4269_v27 = vmul.f32 %v4261_v2, %v3997_v53  ;;  %6988 = vpow2.f32 %v4242_v63 }
0x1001   : > { %v4105_v12 = vadd.f32 %v6985_v6, %v4104_v0 }
0x1002   : > { %v4166_v37 = vmul.f32 %v4158_v24, %v4099_v52  ;;  %v4277_v34 = vadd.f32 1.0, %v4269_v27 }
0x1003   : > { %v4109_v47 = vsel %vm4108_vm2, %v6985_v6, %v4105_v12  ;;  %v4231_v6 = vmul.f32 %v4223_v32, %v9527_v48  ;;  %v3998_v12 = vsel %vm3990_vm4, 1.0, %v7723_v45 }
0x1004   : > { %v4174_v3 = vadd.f32 1.4214138, %v4166_v37  ;;  %v4285_v15 = vmul.f32 %v4277_v34, %v3973_v8  ;;  %v4114_v22 = vsel %vm4111_vm3, %v4113_v39, %v4109_v47 }
0x1005   : > { %v4151_v25 = vmul.f32 1.0614054, %v4114_v22  ;;  %v4244_v62 = vmul.f32 1.442695, %v4231_v6 }
0x1006   : > { %v4182_v29 = vmul.f32 %v4174_v3, %v4099_v52  ;;  %v4297_v42 = vmul.f32 %v9487_v20, %v4285_v15  ;;  %v6989_v2 = vpop.eup %6988  ;;  %v3974_v3 = vmul.f32 0.5, %v9500_v38 }
0x1007   : > { %v4159_v55 = vadd.f32 -1.4531521, %v4151_v25 }
0x1008   : > { %v4190_v13 = vadd.f32 -0.28449672, %v4182_v29  ;;  %v4311_v26 = vsel %vm1184_vm0, %v4297_v42, 0.0 }
0x1009   : > { %4312 = vadd.xlane.f32.xlu2 %v4311_v26  ;;  %v4167_v56 = vmul.f32 %v4159_v55, %v4114_v22  ;;  %v3999_v55 = vsel %vm3991_vm5, 1.0, %v7723_v45 }
0x100a   : > { %v3840_v30 = vpop.xlane.xlu0 %3839  ;;  %v4198_v1 = vmul.f32 %v4190_v13, %v4099_v52 }
0x100b   : > { %v3850_v61 = vmul.f32 %v3840_v30, %v8186_v21  ;;  %v4175_v57 = vadd.f32 1.4214138, %v4167_v56  ;;  %v3975_v56 = vmul.f32 0.5, %v9516_v54 }
0x100c   : > { %v4206_v16 = vadd.f32 0.2548296, %v4198_v1 }
0x100d   : > { %v3858_v14 = vadd.f32 1e-05, %v3850_v61  ;;  %v4183_v53 = vmul.f32 %v4175_v57, %v4114_v22 }
0x100e   : > { %v4214_v58 = vmul.f32 %v4206_v16, %v4099_v52 }
0x100f   : > { %6990 = vrsqrt.f32 %v3858_v14  ;;  %v4191_v0 = vadd.f32 -0.28449672, %v4183_v53  ;;  %vm3926_vm7 = vweird.f32 %v3858_v14 }
0x1010   : > { %v4254_v24 = vmul.f32 %v6989_v2, %v4214_v58  ;;  %6992 = vpow2.f32 %v4244_v62 }
0x1011   : > { %v4199_v27 = vmul.f32 %v4191_v0, %v4114_v22 }
0x1012   : > { %v3843_v43 = vpop.xlane.xlu1 %3842  ;;  %v4262_v48 = vsub.f32 1.0, %v4254_v24 }
0x1013   : > { %v3851_v46 = vmul.f32 %v3843_v43, %v8186_v21  ;;  %v4207_v39 = vadd.f32 0.2548296, %v4199_v27 }
0x1014   : > { %v4270_v34 = vmul.f32 %v4262_v48, %v3998_v12 }
0x1015   : > { %v6991_v50 = vpop.eup %6990  ;;  %v3859_v37 = vadd.f32 1e-05, %v3851_v46  ;;  %v4215_v9 = vmul.f32 %v4207_v39, %v4114_v22 }
0x1016   : > { %v3921_v8 = vmul.f32 %v6991_v50, %v3858_v14  ;;  %v4278_v47 = vadd.f32 1.0, %v4270_v34  ;;  %v6993_v15 = vpop.eup %6992  ;;  %vm3927_vm6 = vweird.f32 %v6991_v50 }
0x1017   : > { %6994 = vrsqrt.f32 %v3859_v37  ;;  %v4255_v29 = vmul.f32 %v6993_v15, %v4215_v9  ;;  %vm3928_vm8 = vmor %vm3926_vm7, %vm3927_vm6  ;;  %vm3936_vm10 = vweird.f32 %v3859_v37 }
0x1018   : > { %v3922_v52 = vmul.f32 %v6991_v50, %v3921_v8  ;;  %v4286_v32 = vmul.f32 %v4278_v47, %v3974_v3 }
0x1019   : > { %v4263_v30 = vsub.f32 1.0, %v4255_v29 }
0x101a   : > { %v3923_v63 = vmul.f32 0.5, %v3922_v52  ;;  %v4298_v42 = vmul.f32 %v9487_v20, %v4286_v32 }
0x101b   : > { %v4271_v22 = vmul.f32 %v4263_v30, %v3999_v55 }
0x101c   : > { %v3924_v25 = vsub.f32 1.5, %v3923_v63  ;;  %v4314_v38 = vsel %vm1184_vm0, %v4298_v42, 0.0 }
0x101d   : > { %v6995_v13 = vpop.eup %6994  ;;  %4315 = vadd.xlane.f32.xlu0 %v4314_v38  ;;  %v4279_v16 = vadd.f32 1.0, %v4271_v22 }
0x101e   : > { %v3925_v26 = vmul.f32 %v6991_v50, %v3924_v25  ;;  %v3931_v61 = vmul.f32 %v6995_v13, %v3859_v37  ;;  %vm3937_vm9 = vweird.f32 %v6995_v13 }
0x101f   : > { %v4287_v62 = vmul.f32 %v4279_v16, %v3975_v56  ;;  %vm3938_vm11 = vmor %vm3936_vm10, %vm3937_vm9 }
0x1020   : > { %v3929_v6 = vsel %vm3928_vm8, %v6991_v50, %v3925_v26  ;;  %v3932_v1 = vmul.f32 %v6995_v13, %v3931_v61 }
0x1021   : > { %v3946_v5 = vmul.f32 %v3929_v6, %v9391_v23  ;;  %v4299_v14 = vmul.f32 %v9487_v20, %v4287_v62 }
0x1022   : > { %v3933_v57 = vmul.f32 0.5, %v3932_v1 }
0x1023   : > { %v3957_v58 = vmul.f32 %v9403_v36, %v3946_v5  ;;  %v4317_v24 = vsel %vm1184_vm0, %v4299_v14, 0.0 }
0x1024   : > { %v3934_v53 = vsub.f32 1.5, %v3933_v57  ;;  %4318 = vadd.xlane.f32.xlu1 %v4317_v24 }
0x1025   : > { %v9558_v2 = vadd.f32 %v9406_v60, %v3957_v58 }
0x1026   : > { %v3935_v43 = vmul.f32 %v6995_v13, %v3934_v53 }
0x1027   : > { %v9562_v23 = vmul.f32 0.70710677, %v9558_v2 }
0x1028   : > { %v3939_v54 = vsel %vm3938_vm11, %v6995_v13, %v3935_v43 }
0x1029   : > { %v3947_v0 = vmul.f32 %v3939_v54, %v9398_v18  ;;  %v4008_v46 = vand.u32 2147483647, %v9562_v23  ;;  %vm3992_vm6 = vcmp.ge.f32.partialorder %v9562_v23, 0.0 }
0x102b   : > { %v4016_v48 = vmul.f32 0.3275911, %v4008_v46  ;;  %v3958_v27 = vmul.f32 %v9403_v36, %v3947_v0  ;;  %v4224_v25 = vsub.f32 0.0, %v4008_v46 }
0x102d   : > { %v4024_v50 = vadd.f32 1.0, %v4016_v48  ;;  %v9568_v12 = vadd.f32 %v9406_v60, %v3958_v27  ;;  %v4232_v61 = vmul.f32 %v4224_v25, %v4008_v46 }
0x102f   : > { %6996 = vrcp.f32 %v4024_v50  ;;  %v9571_v37 = vmul.f32 0.70710677, %v9568_v12  ;;  %v4127_v47 = vand.u32 2147483648, %v4024_v50  ;;  %v4125_v36 = vand.u32 2147483647, %v4024_v50 }
0x1030   : > { %vm4121_vm14 = vweird.f32 %v4024_v50  ;;  %v4246_v16 = vmul.f32 1.442695, %v4232_v61 }
0x1031   : > { %v4009_v8 = vand.u32 2147483647, %v9571_v37  ;;  %v4128_v60 = vor.u32 1.1754944e-38, %v4127_v47  ;;  %vm4126_vm1 = vcmp.eq.f32.partialorder %v4125_v36, 8.507059e+37  ;;  %v9575_v47 = vld [vmem:[#allocation3] ss:$0 sm:$0xff] }
0x1032   : > { %v4000_v36 = vsel %vm3992_vm6, 1.0, %v7723_v45  ;;  %vm3993_vm7 = vcmp.ge.f32.partialorder %v9571_v37, 0.0 }
0x1033   : > { %v4017_v34 = vmul.f32 0.3275911, %v4009_v8  ;;  %v4225_v53 = vsub.f32 0.0, %v4009_v8 }
0x1035   : > { %v6997_v39 = vpop.eup %6996  ;;  %v4025_v3 = vadd.f32 1.0, %v4017_v34  ;;  %v4233_v0 = vmul.f32 %v4225_v53, %v4009_v8 }
0x1036   : > { %v4117_v52 = vmul.f32 %v6997_v39, %v4024_v50  ;;  %vm4122_vm13 = vweird.f32 %v6997_v39 }
0x1037   : > { %6998 = vrcp.f32 %v4025_v3  ;;  %vm4123_vm15 = vmor %vm4121_vm14, %vm4122_vm13  ;;  %v4142_v26 = vand.u32 2147483648, %v4025_v3  ;;  %v4140_v22 = vand.u32 2147483647, %v4025_v3  ;;  %vm4136_vm3 = vweird.f32 %v4025_v3 }
0x1038   : > { %v4118_v18 = vsub.f32 1.0, %v4117_v52  ;;  %7000 = vpow2.f32 %v4246_v16  ;;  %v4248_v34 = vmul.f32 1.442695, %v4233_v0 }
0x1039   : > { %v4143_v56 = vor.u32 1.1754944e-38, %v4142_v26  ;;  %vm4141_vm5 = vcmp.eq.f32.partialorder %v4140_v22, 8.507059e+37 }
0x103a   : > { %v4119_v9 = vmul.f32 %v6997_v39, %v4118_v18  ;;  %7002 = vpow2.f32 %v4248_v34 }
0x103c   : > { %v4120_v15 = vadd.f32 %v6997_v39, %v4119_v9 }
0x103d   : > { %v6999_v63 = vpop.eup %6998 }
0x103e   : > { %v4124_v32 = vsel %vm4123_vm15, %v6997_v39, %v4120_v15  ;;  %v4132_v42 = vmul.f32 %v6999_v63, %v4025_v3  ;;  %vm4137_vm2 = vweird.f32 %v6999_v63  ;;  %v7001_v39 = vpop.eup %7000 }
0x103f   : > { %v4129_v29 = vsel %vm4126_vm1, %v4128_v60, %v4124_v32  ;;  %vm4138_vm4 = vmor %vm4136_vm3, %vm4137_vm2 }
0x1040   : > { %v4152_v30 = vmul.f32 1.0614054, %v4129_v29  ;;  %v4133_v13 = vsub.f32 1.0, %v4132_v42 }
0x1042   : > { %v4160_v55 = vadd.f32 -1.4531521, %v4152_v30  ;;  %v4134_v38 = vmul.f32 %v6999_v63, %v4133_v13  ;;  %v7003_v30 = vpop.eup %7002 }
0x1044   : > { %v4168_v6 = vmul.f32 %v4160_v55, %v4129_v29  ;;  %v4135_v1 = vadd.f32 %v6999_v63, %v4134_v38 }
0x1046   : > { %v4176_v5 = vadd.f32 1.4214138, %v4168_v6  ;;  %v4139_v57 = vsel %vm4138_vm4, %v6999_v63, %v4135_v1  ;;  %v4001_v6 = vsel %vm3993_vm7, 1.0, %v7723_v45 }
0x1047   : > { %v4144_v58 = vsel %vm4141_vm5, %v4143_v56, %v4139_v57 }
0x1048   : > { %v4184_v62 = vmul.f32 %v4176_v5, %v4129_v29  ;;  %v4153_v14 = vmul.f32 1.0614054, %v4144_v58 }
0x104a   : > { %v4192_v43 = vadd.f32 -0.28449672, %v4184_v62  ;;  %v4161_v24 = vadd.f32 -1.4531521, %v4153_v14 }
0x104c   : > { %v4200_v54 = vmul.f32 %v4192_v43, %v4129_v29  ;;  %v4169_v46 = vmul.f32 %v4161_v24, %v4144_v58 }
0x104e   : > { %v4208_v48 = vadd.f32 0.2548296, %v4200_v54  ;;  %v4177_v27 = vadd.f32 1.4214138, %v4169_v46 }
0x1050   : > { %v4216_v50 = vmul.f32 %v4208_v48, %v4129_v29  ;;  %v4185_v52 = vmul.f32 %v4177_v27, %v4144_v58  ;;  %v3976_v29 = vmul.f32 0.5, %v9558_v2  ;;  %v3977_v2 = vmul.f32 0.5, %v9568_v12 }
0x1052   : > { %v4256_v3 = vmul.f32 %v7001_v39, %v4216_v50  ;;  %v4193_v18 = vadd.f32 -0.28449672, %v4185_v52 }
0x1054   : > { %v4264_v9 = vsub.f32 1.0, %v4256_v3  ;;  %v4201_v15 = vmul.f32 %v4193_v18, %v4144_v58 }
0x1056   : > { %v4272_v60 = vmul.f32 %v4264_v9, %v4000_v36  ;;  %v4209_v63 = vadd.f32 0.2548296, %v4201_v15 }
0x1057   : > { %v4304_v8 = vpop.xlane.xlu2 %4303 }
0x1058   : > { %v4330_v32 = vadd.f32 %v9575_v47, %v4304_v8  ;;  %v4280_v25 = vadd.f32 1.0, %v4272_v60  ;;  %v4217_v42 = vmul.f32 %v4209_v63, %v4144_v58 }
0x105a   : > { %v4338_v23 = vsub.f32 0.0, %v4330_v32  ;;  %v4288_v13 = vmul.f32 %v4280_v25, %v3976_v29  ;;  %v4257_v55 = vmul.f32 %v7003_v30, %v4217_v42 }
0x105c   : > { %v4346_v26 = vmul.f32 1.442695, %v4338_v23  ;;  %v4300_v61 = vmul.f32 %v9487_v20, %v4288_v13  ;;  %v4265_v38 = vsub.f32 1.0, %v4257_v55 }
0x105e   : > { %7004 = vpow2.f32 %v4346_v26  ;;  %v4320_v22 = vsel %vm1184_vm0, %v4300_v61, 0.0  ;;  %v4273_v1 = vmul.f32 %v4265_v38, %v4001_v6 }
0x105f   : > { %4321 = vadd.xlane.f32.xlu2 %v4320_v22 }
0x1060   : > { %v4281_v5 = vadd.f32 1.0, %v4273_v1  ;;  %v4307_v56 = vpop.xlane.xlu0 %4306 }
0x1061   : > { %v4331_v16 = vadd.f32 %v9575_v47, %v4307_v56 }
0x1062   : > { %v4289_v57 = vmul.f32 %v4281_v5, %v3977_v2 }
0x1063   : > { %v4339_v58 = vsub.f32 0.0, %v4331_v16 }
0x1064   : > { %v7005_v37 = vpop.eup %7004  ;;  %v4301_v53 = vmul.f32 %v9487_v20, %v4289_v57 }
0x1065   : > { %v4362_v62 = vadd.f32 1.0, %v7005_v37  ;;  %v4348_v14 = vmul.f32 1.442695, %v4339_v58 }
0x1066   : > { %v4323_v43 = vsel %vm1184_vm0, %v4301_v53, 0.0 }
0x1067   : > { %7006 = vrcp.f32 %v4362_v62  ;;  %4324 = vadd.xlane.f32.xlu0 %v4323_v43  ;;  %v4381_v48 = vand.u32 2147483648, %v4362_v62  ;;  %v4379_v34 = vand.u32 2147483647, %v4362_v62  ;;  %vm4375_vm9 = vweird.f32 %v4362_v62 }
0x1068   : > { %7008 = vpow2.f32 %v4348_v14 }
0x1069   : > { %v4382_v3 = vor.u32 1.1754944e-38, %v4381_v48  ;;  %vm4380_vm11 = vcmp.eq.f32.partialorder %v4379_v34, 8.507059e+37 }
0x106d   : > { %v7007_v24 = vpop.eup %7006 }
0x106e   : > { %v4371_v54 = vmul.f32 %v7007_v24, %v4362_v62  ;;  %v7009_v0 = vpop.eup %7008  ;;  %vm4376_vm8 = vweird.f32 %v7007_v24 }
0x106f   : > { %v4363_v12 = vadd.f32 1.0, %v7009_v0  ;;  %vm4377_vm10 = vmor %vm4375_vm9, %vm4376_vm8 }
0x1070   : > { %v4372_v46 = vsub.f32 1.0, %v4371_v54 }
0x1071   : > { %7010 = vrcp.f32 %v4363_v12  ;;  %v4396_v63 = vand.u32 2147483648, %v4363_v12  ;;  %v4394_v29 = vand.u32 2147483647, %v4363_v12  ;;  %vm4390_vm14 = vweird.f32 %v4363_v12 }
0x1072   : > { %v4310_v27 = vpop.xlane.xlu1 %4309  ;;  %v4373_v50 = vmul.f32 %v7007_v24, %v4372_v46 }
0x1073   : > { %v4332_v39 = vadd.f32 %v9575_v47, %v4310_v27  ;;  %v4397_v55 = vor.u32 1.1754944e-38, %v4396_v63  ;;  %vm4395_vm1 = vcmp.eq.f32.partialorder %v4394_v29, 8.507059e+37 }
0x1074   : > { %v4374_v20 = vadd.f32 %v7007_v24, %v4373_v50 }
0x1075   : > { %v4340_v52 = vsub.f32 0.0, %v4332_v39 }
0x1076   : > { %v4378_v18 = vsel %vm4377_vm10, %v7007_v24, %v4374_v20 }
0x1077   : > { %v4350_v9 = vmul.f32 1.442695, %v4340_v52  ;;  %v4383_v36 = vsel %vm4380_vm11, %v4382_v3, %v4378_v18  ;;  %v7011_v15 = vpop.eup %7010 }
0x1078   : > { %4492 = vperm.xlu1 %6710, %v4383_v36   ;;  %v4386_v60 = vmul.f32 %v7011_v15, %v4363_v12  ;;  %vm4391_vm13 = vweird.f32 %v7011_v15 }
0x1079   : > { %7012 = vpow2.f32 %v4350_v9  ;;  %vm4392_vm15 = vmor %vm4390_vm14, %vm4391_vm13 }
0x107a   : > { %v4387_v8 = vsub.f32 1.0, %v4386_v60 }
0x107c   : > { %v4388_v32 = vmul.f32 %v7011_v15, %v4387_v8  ;;  %v4313_v42 = vpop.xlane.xlu2 %4312 }
0x107d   : > { %v4333_v13 = vadd.f32 %v9575_v47, %v4313_v42 }
0x107e   : > { %v4389_v30 = vadd.f32 %v7011_v15, %v4388_v32 }
0x107f   : > { %v7013_v25 = vpop.eup %7012  ;;  %v4341_v61 = vsub.f32 0.0, %v4333_v13 }
0x1080   : > { %v4364_v23 = vadd.f32 1.0, %v7013_v25  ;;  %v4393_v26 = vsel %vm4392_vm15, %v7011_v15, %v4389_v30 }
0x1081   : > { %v4398_v38 = vsel %vm4395_vm1, %v4397_v55, %v4393_v26  ;;  %v4352_v22 = vmul.f32 1.442695, %v4341_v61 }
0x1082   : > { %7014 = vrcp.f32 %v4364_v23  ;;  %4497 = vperm.xlu2 %6711, %v4398_v38   ;;  %v4411_v56 = vand.u32 2147483648, %v4364_v23  ;;  %v4409_v37 = vand.u32 2147483647, %v4364_v23  ;;  %vm4405_vm3 = vweird.f32 %v4364_v23 }
0x1083   : > { %7016 = vpow2.f32 %v4352_v22 }
0x1084   : > { %v4412_v58 = vor.u32 1.1754944e-38, %v4411_v56  ;;  %vm4410_vm5 = vcmp.eq.f32.partialorder %v4409_v37, 8.507059e+37 }
0x1088   : > { %v7015_v6 = vpop.eup %7014 }
0x1089   : > { %v4401_v1 = vmul.f32 %v7015_v6, %v4364_v23  ;;  %v7017_v5 = vpop.eup %7016  ;;  %vm4406_vm2 = vweird.f32 %v7015_v6 }
0x108a   : > { %v4365_v16 = vadd.f32 1.0, %v7017_v5  ;;  %vm4407_vm4 = vmor %vm4405_vm3, %vm4406_vm2 }
0x108b   : > { %v4402_v2 = vsub.f32 1.0, %v4401_v1 }
0x108c   : > { %7018 = vrcp.f32 %v4365_v16  ;;  %v4426_v27 = vand.u32 2147483648, %v4365_v16  ;;  %v4424_v34 = vand.u32 2147483647, %v4365_v16  ;;  %vm4420_vm7 = vweird.f32 %v4365_v16 }
0x108d   : > { %v4403_v57 = vmul.f32 %v7015_v6, %v4402_v2 }
0x108e   : > { %v4427_v3 = vor.u32 1.1754944e-38, %v4426_v27  ;;  %vm4425_vm9 = vcmp.eq.f32.partialorder %v4424_v34, 8.507059e+37 }
0x108f   : > { %v4404_v62 = vadd.f32 %v7015_v6, %v4403_v57 }
0x1090   : > { %v4316_v14 = vpop.xlane.xlu0 %4315 }
0x1091   : > { %v4408_v53 = vsel %vm4407_vm4, %v7015_v6, %v4404_v62  ;;  %v4334_v24 = vadd.f32 %v9575_v47, %v4316_v14 }
0x1092   : > { %v4413_v43 = vsel %vm4410_vm5, %v4412_v58, %v4408_v53  ;;  %v7019_v54 = vpop.eup %7018 }
0x1093   : > { %4502 = vperm.xlu0 %6712, %v4413_v43   ;;  %v4342_v0 = vsub.f32 0.0, %v4334_v24  ;;  %v4416_v12 = vmul.f32 %v7019_v54, %v4365_v16  ;;  %vm4421_vm6 = vweird.f32 %v7019_v54 }
0x1094   : > { %vm4422_vm8 = vmor %vm4420_vm7, %vm4421_vm6 }
0x1095   : > { %v4354_v46 = vmul.f32 1.442695, %v4342_v0  ;;  %v4417_v48 = vsub.f32 1.0, %v4416_v12 }
0x1097   : > { %7020 = vpow2.f32 %v4354_v46  ;;  %v4418_v50 = vmul.f32 %v7019_v54, %v4417_v48  ;;  %v4319_v39 = vpop.xlane.xlu1 %4318 }
0x1098   : > { %v4335_v20 = vadd.f32 %v9575_v47, %v4319_v39 }
0x1099   : > { %v4419_v52 = vadd.f32 %v7019_v54, %v4418_v50 }
0x109a   : > { %v4343_v18 = vsub.f32 0.0, %v4335_v20 }
0x109b   : > { %v4423_v9 = vsel %vm4422_vm8, %v7019_v54, %v4419_v52 }
0x109c   : > { %v4428_v15 = vsel %vm4425_vm9, %v4427_v3, %v4423_v9  ;;  %v4356_v8 = vmul.f32 1.442695, %v4343_v18 }
0x109d   : > { %v7021_v36 = vpop.eup %7020  ;;  %4507 = vperm.xlu1 %6710, %v4428_v15  }
0x109e   : > { %v4366_v60 = vadd.f32 1.0, %v7021_v36 }
0x10a0   : > { %7022 = vrcp.f32 %v4366_v60  ;;  %v4441_v30 = vand.u32 2147483648, %v4366_v60  ;;  %v4439_v13 = vand.u32 2147483647, %v4366_v60  ;;  %vm4435_vm11 = vweird.f32 %v4366_v60 }
0x10a1   : > { %7024 = vpow2.f32 %v4356_v8 }
0x10a2   : > { %v4442_v26 = vor.u32 1.1754944e-38, %v4441_v30  ;;  %vm4440_vm14 = vcmp.eq.f32.partialorder %v4439_v13, 8.507059e+37 }
0x10a6   : > { %v7023_v63 = vpop.eup %7022 }
0x10a7   : > { %v7025_v32 = vpop.eup %7024  ;;  %v4431_v29 = vmul.f32 %v7023_v63, %v4366_v60  ;;  %vm4436_vm10 = vweird.f32 %v7023_v63 }
0x10a8   : > { %v4367_v25 = vadd.f32 1.0, %v7025_v32  ;;  %vm4437_vm13 = vmor %vm4435_vm11, %vm4436_vm10 }
0x10a9   : > { %v4432_v42 = vsub.f32 1.0, %v4431_v29 }
0x10aa   : > { %7026 = vrcp.f32 %v4367_v25  ;;  %v4456_v2 = vand.u32 2147483648, %v4367_v25  ;;  %v4454_v56 = vand.u32 2147483647, %v4367_v25  ;;  %vm4450_vm1 = vweird.f32 %v4367_v25 }
0x10ab   : > { %v4433_v23 = vmul.f32 %v7023_v63, %v4432_v42 }
0x10ac   : > { %v4457_v57 = vor.u32 1.1754944e-38, %v4456_v2  ;;  %vm4455_vm3 = vcmp.eq.f32.partialorder %v4454_v56, 8.507059e+37 }
0x10ad   : > { %v4434_v55 = vadd.f32 %v7023_v63, %v4433_v23 }
0x10af   : > { %v4438_v61 = vsel %vm4437_vm13, %v7023_v63, %v4434_v55 }
0x10b0   : > { %v7027_v38 = vpop.eup %7026  ;;  %v4443_v22 = vsel %vm4440_vm14, %v4442_v26, %v4438_v61 }
0x10b1   : > { %4512 = vperm.xlu2 %6711, %v4443_v22   ;;  %v4446_v6 = vmul.f32 %v7027_v38, %v4367_v25  ;;  %vm4451_vm15 = vweird.f32 %v7027_v38 }
0x10b2   : > { %vm4452_vm2 = vmor %vm4450_vm1, %vm4451_vm15 }
0x10b3   : > { %v4447_v1 = vsub.f32 1.0, %v4446_v6 }
0x10b5   : > { %v4448_v5 = vmul.f32 %v7027_v38, %v4447_v1 }
0x10b7   : > { %v4449_v16 = vadd.f32 %v7027_v38, %v4448_v5 }
0x10b9   : > { %v4453_v37 = vsel %vm4452_vm2, %v7027_v38, %v4449_v16 }
0x10ba   : > { %v4458_v62 = vsel %vm4455_vm3, %v4457_v57, %v4453_v37 }
0x10bb   : > { %4517 = vperm.xlu1 %6710, %v4458_v62  }
0x10d2   : > { %v4322_v58 = vpop.xlane.xlu2 %4321 }
0x10d3   : > { %v4336_v53 = vadd.f32 %v9575_v47, %v4322_v58 }
0x10d5   : > { %v4344_v14 = vsub.f32 0.0, %v4336_v53 }
0x10d7   : > { %v4358_v43 = vmul.f32 1.442695, %v4344_v14 }
0x10d9   : > { %7028 = vpow2.f32 %v4358_v43 }
0x10da   : > { %v4325_v24 = vpop.xlane.xlu0 %4324 }
0x10db   : > { %v4337_v54 = vadd.f32 %v9575_v47, %v4325_v24 }
0x10dc   : > { %v4498_v0 = vpop.permute.xlu2 %4497 }
0x10dd   : > { %v4531_v12 = vmul.f32 %v4498_v0, %v9296_v40  ;;  %v4345_v46 = vsub.f32 0.0, %v4337_v54 }
0x10df   : > { %v7029_v48 = vpop.eup %7028  ;;  %v4360_v50 = vmul.f32 1.442695, %v4345_v46  ;;  %v9596_v34 = vadd.f32 %v4531_v12, %v8792_v17 }
0x10e0   : > { %v4368_v27 = vadd.f32 1.0, %v7029_v48 }
0x10e1   : > { %v4549_v39 = vsel %vm1184_vm0, %v9596_v34, 0.0 }
0x10e2   : > { %7030 = vrcp.f32 %v4368_v27  ;;  %v4471_v36 = vand.u32 2147483648, %v4368_v27  ;;  %v4469_v60 = vand.u32 2147483647, %v4368_v27  ;;  %vm4465_vm5 = vweird.f32 %v4368_v27 }
0x10e3   : > { %7032 = vpow2.f32 %v4360_v50 }
0x10e4   : > { %v4472_v32 = vor.u32 1.1754944e-38, %v4471_v36  ;;  %vm4470_vm7 = vcmp.eq.f32.partialorder %v4469_v60, 8.507059e+37 }
0x10e5   : > { %4550 = vadd.xlane.f32.xlu1 %v4549_v39 }
0x10e8   : > { %v7031_v20 = vpop.eup %7030 }
0x10e9   : > { %v7033_v52 = vpop.eup %7032  ;;  %v4461_v3 = vmul.f32 %v7031_v20, %v4368_v27  ;;  %vm4466_vm4 = vweird.f32 %v7031_v20 }
0x10ea   : > { %v4369_v47 = vadd.f32 1.0, %v7033_v52  ;;  %v4493_v18 = vpop.permute.xlu1 %4492  ;;  %vm4467_vm6 = vmor %vm4465_vm5, %vm4466_vm4 }
0x10eb   : > { %v4530_v40 = vmul.f32 %v4493_v18, %v9293_v28  ;;  %v4462_v9 = vsub.f32 1.0, %v4461_v3 }
0x10ec   : > { %7034 = vrcp.f32 %v4369_v47  ;;  %v4484_v13 = vand.u32 2147483647, %v4369_v47  ;;  %vm4480_vm9 = vweird.f32 %v4369_v47 }
0x10ed   : > { %v9602_v15 = vadd.f32 %v4530_v40, %v8790_v11  ;;  %v4463_v17 = vmul.f32 %v7031_v20, %v4462_v9  ;;  %v4486_v11 = vand.u32 2147483648, %v4369_v47 }
0x10ee   : > { %vm4485_vm11 = vcmp.eq.f32.partialorder %v4484_v13, 8.507059e+37 }
0x10ef   : > { %v4546_v8 = vsel %vm1184_vm0, %v9602_v15, 0.0  ;;  %v4464_v63 = vadd.f32 %v7031_v20, %v4463_v17  ;;  %v4487_v26 = vor.u32 1.1754944e-38, %v4486_v11  ;;  %v6398_v17 = vld [vmem:[#allocation19 + $0x8] sm:$0xff] }
0x10f0   : > { %4547 = vadd.xlane.f32.xlu2 %v4546_v8  ;;  %4764 = vmatpush.bf16.msrb.mxu0 %v6398_v17 }
0x10f1   : > { %v4468_v29 = vsel %vm4467_vm6, %v7031_v20, %v4464_v63 }
0x10f2   : > { %v7035_v28 = vpop.eup %7034  ;;  %v4473_v25 = vsel %vm4470_vm7, %v4472_v32, %v4468_v29 }
0x10f3   : > { %4522 = vperm.xlu0 %6712, %v4473_v25   ;;  %v4476_v42 = vmul.f32 %v7035_v28, %v4369_v47  ;;  %vm4481_vm8 = vweird.f32 %v7035_v28 }
0x10f4   : > { %vm4482_vm10 = vmor %vm4480_vm9, %vm4481_vm8 }
0x10f5   : > { %v4477_v30 = vsub.f32 1.0, %v4476_v42 }
0x10f7   : > { %v4478_v23 = vmul.f32 %v7035_v28, %v4477_v30 }
0x10f9   : > { %v4479_v55 = vadd.f32 %v7035_v28, %v4478_v23 }
0x10fb   : > { %v4483_v61 = vsel %vm4482_vm10, %v7035_v28, %v4479_v55 }
0x10fc   : > { %v4488_v38 = vsel %vm4485_vm11, %v4487_v26, %v4483_v61  ;;  %v6397_v26 = vld [vmem:[#allocation19] sm:$0xff] }
0x10fd   : > { %4527 = vperm.xlu0 %6712, %v4488_v38   ;;  %4765 = vmatpush.bf16.msrb.mxu0 %v6397_v26 }
0x1105   : > { %v4503_v37 = vpop.permute.xlu0 %4502 }
0x110b   : > { %v4513_v22 = vpop.permute.xlu2 %4512 }
0x110c   : > { %v4534_v6 = vmul.f32 %v4513_v22, %v9322_v44  ;;  %v4532_v44 = vmul.f32 %v4503_v37, %v9308_v31 }
0x110e   : > { %v9608_v1 = vadd.f32 %v4534_v6, %v8821_v10  ;;  %v9620_v10 = vadd.f32 %v4532_v44, %v8803_v41 }
0x110f   : > { %v4508_v2 = vpop.permute.xlu1 %4507 }
0x1110   : > { %v4558_v5 = vsel %vm1184_vm0, %v9608_v1, 0.0  ;;  %v4533_v56 = vmul.f32 %v4508_v2, %v9311_v35  ;;  %v4552_v62 = vsel %vm1184_vm0, %v9620_v10, 0.0 }
0x1111   : > { %4559 = vadd.xlane.f32.xlu1 %v4558_v5 }
0x1112   : > { %v9614_v16 = vadd.f32 %v4533_v56, %v8805_v49 }
0x1114   : > { %v4555_v57 = vsel %vm1184_vm0, %v9614_v16, 0.0 }
0x1115   : > { %4556 = vadd.xlane.f32.xlu2 %v4555_v57 }
0x1127   : > { %4553 = vadd.xlane.f32.xlu0 %v4552_v62 }
0x112d   : > { %v4518_v58 = vpop.permute.xlu1 %4517 }
0x112e   : > { %v4535_v35 = vmul.f32 %v4518_v58, %v9325_v33 }
0x1130   : > { %v9626_v49 = vadd.f32 %v4535_v35, %v8823_v59 }
0x1132   : > { %v4561_v53 = vsel %vm1184_vm0, %v9626_v49, 0.0 }
0x1133   : > { %4562 = vadd.xlane.f32.xlu2 %v4561_v53 }
0x1158   : > { %v4551_v14 = vpop.xlane.xlu1 %4550 }
0x1159   : > { %v4571_v31 = vmul.f32 %v4551_v14, %v8186_v21 }
0x115b   : > { %v9632_v41 = vsub.f32 %v9596_v34, %v4571_v31 }
0x115d   : > { %v4587_v43 = vmul.f32 %v9632_v41, %v9632_v41 }
0x115f   : > { %v4597_v24 = vsel %vm1184_vm0, %v4587_v43, 0.0 }
0x1160   : > { %4598 = vadd.xlane.f32.xlu2 %v4597_v24 }
0x1163   : > { %v4548_v33 = vpop.xlane.xlu2 %4547 }
0x1164   : > { %v4570_v59 = vmul.f32 %v4548_v33, %v8186_v21 }
0x1165   : > { %v4523_v54 = vpop.permute.xlu0 %4522 }
0x1166   : > { %v9639_v0 = vsub.f32 %v9602_v15, %v4570_v59  ;;  %v4536_v46 = vmul.f32 %v4523_v54, %v9337_v4 }
0x1168   : > { %v4586_v12 = vmul.f32 %v9639_v0, %v9639_v0  ;;  %v9646_v27 = vadd.f32 %v4536_v46, %v8833_v7 }
0x116a   : > { %v4594_v48 = vsel %vm1184_vm0, %v4586_v12, 0.0  ;;  %v4564_v52 = vsel %vm1184_vm0, %v9646_v27, 0.0 }
0x116b   : > { %4595 = vadd.xlane.f32.xlu1 %v4594_v48 }
0x116f   : > { %v4528_v50 = vpop.permute.xlu0 %4527 }
0x1170   : > { %v4537_v39 = vmul.f32 %v4528_v50, %v9340_v51 }
0x1172   : > { %v9650_v20 = vadd.f32 %v4537_v39, %v8835_v19 }
0x1173   : > { %4565 = vadd.xlane.f32.xlu1 %v4564_v52 }
0x1174   : > { %v4567_v3 = vsel %vm1184_vm0, %v9650_v20, 0.0 }
0x1175   : > { %4568 = vadd.xlane.f32.xlu2 %v4567_v3 }
0x1184   : > { %v4560_v4 = vpop.xlane.xlu1 %4559 }
0x1185   : > { %v4574_v47 = vmul.f32 %v4560_v4, %v8186_v21 }
0x1187   : > { %v9658_v7 = vsub.f32 %v9608_v1, %v4574_v47 }
0x1188   : > { %v4557_v18 = vpop.xlane.xlu2 %4556 }
0x1189   : > { %v4590_v51 = vmul.f32 %v9658_v7, %v9658_v7  ;;  %v4573_v19 = vmul.f32 %v4557_v18, %v8186_v21 }
0x118b   : > { %v4606_v40 = vsel %vm1184_vm0, %v4590_v51, 0.0  ;;  %v9665_v9 = vsub.f32 %v9614_v16, %v4573_v19 }
0x118c   : > { %4607 = vadd.xlane.f32.xlu2 %v4606_v40 }
0x118d   : > { %v4589_v36 = vmul.f32 %v9665_v9, %v9665_v9 }
0x118f   : > { %v4603_v60 = vsel %vm1184_vm0, %v4589_v36, 0.0 }
0x1190   : > { %4604 = vadd.xlane.f32.xlu1 %v4603_v60 }
0x119a   : > { %v4554_v8 = vpop.xlane.xlu0 %4553 }
0x119b   : > { %v4572_v63 = vmul.f32 %v4554_v8, %v8186_v21 }
0x119d   : > { %v9672_v32 = vsub.f32 %v9620_v10, %v4572_v63 }
0x119f   : > { %v4588_v29 = vmul.f32 %v9672_v32, %v9672_v32 }
0x11a1   : > { %v4600_v28 = vsel %vm1184_vm0, %v4588_v29, 0.0 }
0x11a2   : > { %4601 = vadd.xlane.f32.xlu0 %v4600_v28 }
0x11a6   : > { %v4563_v25 = vpop.xlane.xlu2 %4562 }
0x11a7   : > { %v4575_v42 = vmul.f32 %v4563_v25, %v8186_v21 }
0x11a9   : > { %v9679_v30 = vsub.f32 %v9626_v49, %v4575_v42 }
0x11ab   : > { %v4591_v11 = vmul.f32 %v9679_v30, %v9679_v30 }
0x11ad   : > { %v4609_v23 = vsel %vm1184_vm0, %v4591_v11, 0.0 }
0x11ae   : > { %4610 = vadd.xlane.f32.xlu0 %v4609_v23 }
0x11d3   : > { %v4599_v13 = vpop.xlane.xlu2 %4598 }
0x11d4   : > { %v4619_v55 = vmul.f32 %v4599_v13, %v8186_v21 }
0x11d6   : > { %v4627_v61 = vadd.f32 1e-05, %v4619_v55 }
0x11d8   : > { %7036 = vrsqrt.f32 %v4627_v61  ;;  %vm4650_vm14 = vweird.f32 %v4627_v61 }
0x11de   : > { %v4596_v38 = vpop.xlane.xlu1 %4595  ;;  %v7037_v6 = vpop.eup %7036 }
0x11df   : > { %v4618_v22 = vmul.f32 %v4596_v38, %v8186_v21  ;;  %v4645_v2 = vmul.f32 %v7037_v6, %v4627_v61  ;;  %vm4651_vm13 = vweird.f32 %v7037_v6 }
0x11e0   : > { %vm4652_vm1 = vmor %vm4650_vm14, %vm4651_vm13 }
0x11e1   : > { %v4626_v5 = vadd.f32 1e-05, %v4618_v22  ;;  %v4646_v56 = vmul.f32 %v7037_v6, %v4645_v2 }
0x11e3   : > { %7038 = vrsqrt.f32 %v4626_v5  ;;  %v4647_v57 = vmul.f32 0.5, %v4646_v56  ;;  %vm4640_vm2 = vweird.f32 %v4626_v5 }
0x11e5   : > { %v4648_v14 = vsub.f32 1.5, %v4647_v57 }
0x11e6   : > { %v4566_v37 = vpop.xlane.xlu1 %4565 }
0x11e7   : > { %v4576_v44 = vmul.f32 %v4566_v37, %v8186_v21  ;;  %v4649_v12 = vmul.f32 %v7037_v6, %v4648_v14 }
0x11e8   : > { %v4569_v62 = vpop.xlane.xlu2 %4568 }
0x11e9   : > { %v7039_v58 = vpop.eup %7038  ;;  %v9688_v35 = vsub.f32 %v9646_v27, %v4576_v44  ;;  %v4577_v53 = vmul.f32 %v4569_v62, %v8186_v21  ;;  %v4653_v39 = vsel %vm4652_vm1, %v7037_v6, %v4649_v12 }
0x11ea   : > { %v4635_v31 = vmul.f32 %v7039_v58, %v4626_v5  ;;  %vm4641_vm15 = vweird.f32 %v7039_v58  ;;  %v4715_v4 = vmul.f32 %v4653_v39, %v9632_v41 }
0x11eb   : > { %v9692_v43 = vsub.f32 %v9650_v20, %v4577_v53  ;;  %v4592_v24 = vmul.f32 %v9688_v35, %v9688_v35  ;;  %vm4642_vm3 = vmor %vm4640_vm2, %vm4641_vm15 }
0x11ec   : > { %v4636_v33 = vmul.f32 %v7039_v58, %v4635_v31 }
0x11ed   : > { %v4612_v59 = vsel %vm1184_vm0, %v4592_v24, 0.0  ;;  %v4593_v54 = vmul.f32 %v9692_v43, %v9692_v43 }
0x11ee   : > { %v4637_v46 = vmul.f32 0.5, %v4636_v33  ;;  %4613 = vadd.xlane.f32.xlu1 %v4612_v59 }
0x11ef   : > { %v4615_v48 = vsel %vm1184_vm0, %v4593_v54, 0.0 }
0x11f0   : > { %v4638_v50 = vsub.f32 1.5, %v4637_v46  ;;  %4616 = vadd.xlane.f32.xlu2 %v4615_v48 }
0x11f2   : > { %v4639_v52 = vmul.f32 %v7039_v58, %v4638_v50 }
0x11f4   : > { %v4643_v3 = vsel %vm4642_vm3, %v7039_v58, %v4639_v52 }
0x11f5   : > { %v4714_v47 = vmul.f32 %v4643_v3, %v9639_v0 }
0x11f7   : > { %v4726_v18 = vpack.c.bf16 %v4715_v4, %v4714_v47 }
0x11f9   : > { %6307 = vmatmul.msk.bf16.vlgmr.msrb.gmra.mxu0 %vm1184_vm0, %v4726_v18 }
0x11ff   : > { %v4608_v36 = vpop.xlane.xlu2 %4607 }
0x1200   : > { %v4622_v60 = vmul.f32 %v4608_v36, %v8186_v21 }
0x1202   : > { %v4630_v28 = vadd.f32 1e-05, %v4622_v60 }
0x1203   : > { %v4605_v51 = vpop.xlane.xlu1 %4604 }
0x1204   : > { %v4621_v19 = vmul.f32 %v4605_v51, %v8186_v21  ;;  %vm4680_vm13 = vweird.f32 %v4630_v28 }
0x1206   : > { %v4629_v40 = vadd.f32 1e-05, %v4621_v19 }
0x1208   : > { %7040 = vrsqrt.f32 %v4629_v40  ;;  %vm4670_vm5 = vweird.f32 %v4629_v40 }
0x120e   : > { %v7041_v17 = vpop.eup %7040 }
0x120f   : > { %v4665_v8 = vmul.f32 %v7041_v17, %v4629_v40  ;;  %vm4671_vm4 = vweird.f32 %v7041_v17 }
0x1210   : > { %vm4672_vm7 = vmor %vm4670_vm5, %vm4671_vm4 }
0x1211   : > { %v4666_v25 = vmul.f32 %v7041_v17, %v4665_v8 }
0x1213   : > { %v4667_v0 = vmul.f32 0.5, %v4666_v25 }
0x1215   : > { %v4602_v63 = vpop.xlane.xlu0 %4601  ;;  %v4668_v11 = vsub.f32 1.5, %v4667_v0 }
0x1216   : > { %v4620_v29 = vmul.f32 %v4602_v63, %v8186_v21 }
0x1217   : > { %v4669_v22 = vmul.f32 %v7041_v17, %v4668_v11 }
0x1218   : > { %v4628_v41 = vadd.f32 1e-05, %v4620_v29 }
0x1219   : > { %v4673_v57 = vsel %vm4672_vm7, %v7041_v17, %v4669_v22 }
0x121a   : > { %7042 = vrsqrt.f32 %v4628_v41  ;;  %vm4660_vm8 = vweird.f32 %v4628_v41  ;;  %v4717_v58 = vmul.f32 %v4673_v57, %v9665_v9 }
0x121b   : > { %7044 = vrsqrt.f32 %v4630_v28 }
0x1220   : > { %v7043_v42 = vpop.eup %7042 }
0x1221   : > { %v4655_v23 = vmul.f32 %v7043_v42, %v4628_v41  ;;  %v7045_v13 = vpop.eup %7044  ;;  %v4611_v26 = vpop.xlane.xlu0 %4610  ;;  %vm4661_vm6 = vweird.f32 %v7043_v42 }
0x1222   : > { %v4623_v61 = vmul.f32 %v4611_v26, %v8186_v21  ;;  %v4675_v38 = vmul.f32 %v7045_v13, %v4630_v28  ;;  %vm4662_vm9 = vmor %vm4660_vm8, %vm4661_vm6  ;;  %vm4681_vm10 = vweird.f32 %v7045_v13  ;;  %v9715_v28 = vld [vmem:[#allocation21] ss:$0 sm:$0xff] }
0x1223   : > { %v4656_v55 = vmul.f32 %v7043_v42, %v4655_v23  ;;  %vm4682_vm14 = vmor %vm4680_vm13, %vm4681_vm10 }
0x1224   : > { %v4631_v2 = vadd.f32 1e-05, %v4623_v61  ;;  %v4676_v56 = vmul.f32 %v7045_v13, %v4675_v38 }
0x1225   : > { %v4657_v6 = vmul.f32 0.5, %v4656_v55 }
0x1226   : > { %7046 = vrsqrt.f32 %v4631_v2  ;;  %v4677_v53 = vmul.f32 0.5, %v4676_v56  ;;  %vm4690_vm15 = vweird.f32 %v4631_v2 }
0x1227   : > { %v4658_v5 = vsub.f32 1.5, %v4657_v6 }
0x1228   : > { %v4678_v33 = vsub.f32 1.5, %v4677_v53 }
0x1229   : > { %v4659_v37 = vmul.f32 %v7043_v42, %v4658_v5 }
0x122a   : > { %v4679_v12 = vmul.f32 %v7045_v13, %v4678_v33 }
0x122b   : > { %v4663_v44 = vsel %vm4662_vm9, %v7043_v42, %v4659_v37 }
0x122c   : > { %v4716_v62 = vmul.f32 %v4663_v44, %v9672_v32  ;;  %v7047_v14 = vpop.eup %7046  ;;  %v4683_v32 = vsel %vm4682_vm14, %v7045_v13, %v4679_v12  ;;  %v6402_v12 = vld [vmem:[%s10195_s4 + $0x18] sm:$0xff] }
0x122d   : > { %v4685_v24 = vmul.f32 %v7047_v14, %v4631_v2  ;;  %vm4691_vm11 = vweird.f32 %v7047_v14  ;;  %v4718_v39 = vmul.f32 %v4683_v32, %v9658_v7  ;;  %5159 = vmatpush.bf16.msra.mxu2 %v6402_v12 }
0x122e   : > { %v4727_v31 = vpack.c.bf16 %v4717_v58, %v4716_v62  ;;  %vm4692_vm1 = vmor %vm4690_vm15, %vm4691_vm11 }
0x122f   : > { %v4686_v59 = vmul.f32 %v7047_v14, %v4685_v24 }
0x1230   : > { %6308 = vmatmul.msk.bf16.gmra.mxu0 %vm1184_vm0, %v4727_v31 }
0x1231   : > { %v4687_v54 = vmul.f32 0.5, %v4686_v59 }
0x1233   : > { %v4688_v46 = vsub.f32 1.5, %v4687_v54 }
0x1235   : > { %v4689_v48 = vmul.f32 %v7047_v14, %v4688_v46 }
0x1237   : > { %v4693_v9 = vsel %vm4692_vm1, %v7047_v14, %v4689_v48 }
0x1238   : > { %v4719_v50 = vmul.f32 %v4693_v9, %v9679_v30 }
0x123a   : > { %v4728_v52 = vpack.c.bf16 %v4719_v50, %v4718_v39 }
0x1240   : > { %6309 = vmatmul.msk.bf16.gmra.mxu0 %vm1184_vm0, %v4728_v52 }
0x1261   : > { %v4614_v3 = vpop.xlane.xlu1 %4613 }
0x1262   : > { %v4624_v4 = vmul.f32 %v4614_v3, %v8186_v21  ;;  %v6401_v3 = vld [vmem:[%s10195_s4 + $0x10] sm:$0xff] }
0x1263   : > { %v4617_v47 = vpop.xlane.xlu2 %4616  ;;  %5160 = vmatpush.bf16.msra.mxu2 %v6401_v3 }
0x1264   : > { %v4632_v18 = vadd.f32 1e-05, %v4624_v4  ;;  %v4625_v51 = vmul.f32 %v4617_v47, %v8186_v21 }
0x1266   : > { %7048 = vrsqrt.f32 %v4632_v18  ;;  %v4633_v19 = vadd.f32 1e-05, %v4625_v51  ;;  %vm4700_vm3 = vweird.f32 %v4632_v18 }
0x1268   : > { %7050 = vrsqrt.f32 %v4633_v19  ;;  %vm4710_vm6 = vweird.f32 %v4633_v19 }
0x126c   : > { %v7049_v40 = vpop.eup %7048 }
0x126d   : > { %v4695_v36 = vmul.f32 %v7049_v40, %v4632_v18  ;;  %vm4701_vm2 = vweird.f32 %v7049_v40 }
0x126e   : > { %v7051_v17 = vpop.eup %7050  ;;  %vm4702_vm5 = vmor %vm4700_vm3, %vm4701_vm2 }
0x126f   : > { %v4696_v60 = vmul.f32 %v7049_v40, %v4695_v36  ;;  %v4705_v30 = vmul.f32 %v7051_v17, %v4633_v19  ;;  %vm4711_vm4 = vweird.f32 %v7051_v17 }
0x1270   : > { %vm4712_vm7 = vmor %vm4710_vm6, %vm4711_vm4 }
0x1271   : > { %v4697_v8 = vmul.f32 0.5, %v4696_v60  ;;  %v4706_v7 = vmul.f32 %v7051_v17, %v4705_v30 }
0x1273   : > { %v4698_v63 = vsub.f32 1.5, %v4697_v8  ;;  %v4707_v29 = vmul.f32 0.5, %v4706_v7 }
0x1275   : > { %v4699_v41 = vmul.f32 %v7049_v40, %v4698_v63  ;;  %v4708_v25 = vsub.f32 1.5, %v4707_v29 }
0x1276   : > { %v4767_v0 = vpop.f32.mrf.mxu0 }
0x1277   : > { %v4703_v42 = vsel %vm4702_vm5, %v7049_v40, %v4699_v41  ;;  %v4709_v11 = vmul.f32 %v7051_v17, %v4708_v25  ;;  %v9718_v23 = vadd.f32 %v9715_v28, %v4767_v0  ;;  %v6400_v40 = vld [vmem:[%s10195_s4 + $0x8] sm:$0xff]  ;;  %v6399_v25 = vld [vmem:[%s10195_s4] sm:$0xff]  ;;  %s5903_s4 = sshll.u32 %s10044_s16, 4  ;;  %s5904_s4 = int_to_ptr.vmem [resolvable:$true] %s5903_s4 }
0x1278   : > { %v4720_v13 = vmul.f32 %v4703_v42, %v9688_v35  ;;  %5161 = vmatpush.bf16.msra.mxu2 %v6400_v40 }
0x1279   : > { %v4713_v55 = vsel %vm4712_vm7, %v7051_v17, %v4709_v11  ;;  %v9722_v26 = vmul.f32 0.70710677, %v9718_v23 }
0x127a   : > { %v4721_v61 = vmul.f32 %v4713_v55, %v9692_v43 }
0x127b   : > { %v4819_v38 = vand.u32 2147483647, %v9722_v26  ;;  %vm4803_vm2 = vcmp.ge.f32.partialorder %v9722_v26, 0.0 }
0x127c   : > { %v4729_v22 = vpack.c.bf16 %v4721_v61, %v4720_v13  ;;  %5162 = vmatpush.bf16.msra.mxu2 %v6399_v25 }
0x127d   : > { %v4827_v6 = vmul.f32 0.3275911, %v4819_v38  ;;  %v5035_v9 = vsub.f32 0.0, %v4819_v38 }
0x127e   : > { %6310 = vmatmul.msk.bf16.gmra.mxu0 %vm1184_vm0, %v4729_v22  ;;  %v4769_v2 = vpop.f32.mrf.mxu0 }
0x127f   : > { %v4835_v5 = vadd.f32 1.0, %v4827_v6  ;;  %v9728_v56 = vadd.f32 %v9715_v28, %v4769_v2  ;;  %v5043_v51 = vmul.f32 %v5035_v9, %v4819_v38 }
0x1281   : > { %7052 = vrcp.f32 %v4835_v5  ;;  %v9731_v35 = vmul.f32 0.70710677, %v9728_v56  ;;  %v4854_v53 = vand.u32 2147483648, %v4835_v5  ;;  %v4852_v31 = vand.u32 2147483647, %v4835_v5 }
0x1282   : > { %vm4848_vm9 = vweird.f32 %v4835_v5  ;;  %v5051_v8 = vmul.f32 1.442695, %v5043_v51  ;;  %v4788_v9 = vmul.f32 0.5, %v9728_v56 }
0x1283   : > { %v4820_v57 = vand.u32 2147483647, %v9731_v35  ;;  %v4855_v33 = vor.u32 1.1754944e-38, %v4854_v53  ;;  %vm4853_vm11 = vcmp.eq.f32.partialorder %v4852_v31, 8.507059e+37  ;;  %vm4804_vm3 = vcmp.ge.f32.partialorder %v9731_v35, 0.0 }
0x1285   : > { %v4828_v37 = vmul.f32 0.3275911, %v4820_v57  ;;  %v5036_v63 = vsub.f32 0.0, %v4820_v57 }
0x1287   : > { %v7053_v44 = vpop.eup %7052  ;;  %v4836_v62 = vadd.f32 1.0, %v4828_v37  ;;  %v5044_v11 = vmul.f32 %v5036_v63, %v4820_v57  ;;  %v4811_v57 = vsel %vm4803_vm2, 1.0, %v7723_v45 }
0x1288   : > { %v4844_v43 = vmul.f32 %v7053_v44, %v4835_v5  ;;  %vm4849_vm8 = vweird.f32 %v7053_v44 }
0x1289   : > { %7054 = vrcp.f32 %v4836_v62  ;;  %vm4850_vm10 = vmor %vm4848_vm9, %vm4849_vm8  ;;  %v4869_v52 = vand.u32 2147483648, %v4836_v62  ;;  %v4867_v47 = vand.u32 2147483647, %v4836_v62  ;;  %vm4863_vm14 = vweird.f32 %v4836_v62 }
0x128a   : > { %v4845_v58 = vsub.f32 1.0, %v4844_v43  ;;  %7056 = vpow2.f32 %v5051_v8  ;;  %v5053_v22 = vmul.f32 1.442695, %v5044_v11 }
0x128b   : > { %v4870_v17 = vor.u32 1.1754944e-38, %v4869_v52  ;;  %vm4868_vm1 = vcmp.eq.f32.partialorder %v4867_v47, 8.507059e+37 }
0x128c   : > { %v4846_v14 = vmul.f32 %v7053_v44, %v4845_v58  ;;  %7058 = vpow2.f32 %v5053_v22 }
0x128e   : > { %v4847_v24 = vadd.f32 %v7053_v44, %v4846_v14 }
0x128f   : > { %v7055_v59 = vpop.eup %7054 }
0x1290   : > { %v4851_v54 = vsel %vm4850_vm10, %v7053_v44, %v4847_v24  ;;  %v4859_v48 = vmul.f32 %v7055_v59, %v4836_v62  ;;  %vm4864_vm13 = vweird.f32 %v7055_v59  ;;  %v7057_v2 = vpop.eup %7056 }
0x1291   : > { %v4856_v46 = vsel %vm4853_vm11, %v4855_v33, %v4851_v54  ;;  %vm4865_vm15 = vmor %vm4863_vm14, %vm4864_vm13  ;;  %v4812_v54 = vsel %vm4804_vm3, 1.0, %v7723_v45 }
0x1292   : > { %v4963_v32 = vmul.f32 1.0614054, %v4856_v46  ;;  %v4860_v50 = vsub.f32 1.0, %v4859_v48  ;;  %v7059_v53 = vpop.eup %7058 }
0x1294   : > { %v4971_v39 = vadd.f32 -1.4531521, %v4963_v32  ;;  %v4861_v4 = vmul.f32 %v7055_v59, %v4860_v50  ;;  %v4787_v32 = vmul.f32 0.5, %v9718_v23 }
0x1296   : > { %v4979_v18 = vmul.f32 %v4971_v39, %v4856_v46  ;;  %v4862_v19 = vadd.f32 %v7055_v59, %v4861_v4 }
0x1298   : > { %v4987_v36 = vadd.f32 1.4214138, %v4979_v18  ;;  %v4866_v60 = vsel %vm4865_vm15, %v7055_v59, %v4862_v19 }
0x1299   : > { %v4871_v7 = vsel %vm4868_vm1, %v4870_v17, %v4866_v60 }
0x129a   : > { %v4995_v30 = vmul.f32 %v4987_v36, %v4856_v46  ;;  %v4964_v29 = vmul.f32 1.0614054, %v4871_v7 }
0x129c   : > { %v5003_v41 = vadd.f32 -0.28449672, %v4995_v30  ;;  %v4972_v0 = vadd.f32 -1.4531521, %v4964_v29 }
0x129e   : > { %v5011_v42 = vmul.f32 %v5003_v41, %v4856_v46  ;;  %v4980_v13 = vmul.f32 %v4972_v0, %v4871_v7 }
0x12a0   : > { %v5019_v55 = vadd.f32 0.2548296, %v5011_v42  ;;  %v4988_v61 = vadd.f32 1.4214138, %v4980_v13 }
0x12a2   : > { %v5027_v38 = vmul.f32 %v5019_v55, %v4856_v46  ;;  %v4996_v6 = vmul.f32 %v4988_v61, %v4871_v7 }
0x12a4   : > { %v5067_v5 = vmul.f32 %v7057_v2, %v5027_v38  ;;  %v5004_v37 = vadd.f32 -0.28449672, %v4996_v6 }
0x12a6   : > { %v5012_v44 = vmul.f32 %v5004_v37, %v4871_v7  ;;  %v5075_v43 = vsub.f32 1.0, %v5067_v5 }
0x12a8   : > { %v5020_v62 = vadd.f32 0.2548296, %v5012_v44  ;;  %v5083_v14 = vmul.f32 %v5075_v43, %v4811_v57 }
0x12aa   : > { %v5028_v58 = vmul.f32 %v5020_v62, %v4871_v7  ;;  %v5091_v26 = vadd.f32 1.0, %v5083_v14 }
0x12ac   : > { %v5068_v31 = vmul.f32 %v7059_v53, %v5028_v58  ;;  %v5099_v39 = vmul.f32 %v5091_v26, %v4787_v32 }
0x12ad   : > { %v4772_v24 = vpop.f32.mrf.mxu0 }
0x12ae   : > { %v9742_v33 = vadd.f32 %v9715_v28, %v4772_v24  ;;  %v5076_v59 = vsub.f32 1.0, %v5068_v31 }
0x12b0   : > { %v9746_v12 = vmul.f32 0.70710677, %v9742_v33  ;;  %v5084_v46 = vmul.f32 %v5076_v59, %v4812_v54 }
0x12b2   : > { %v4821_v48 = vand.u32 2147483647, %v9746_v12  ;;  %v5092_v35 = vadd.f32 1.0, %v5084_v46 }
0x12b4   : > { %v4829_v50 = vmul.f32 0.3275911, %v4821_v48  ;;  %v5100_v52 = vmul.f32 %v5092_v35, %v4788_v9  ;;  %v5037_v5 = vsub.f32 0.0, %v4821_v48 }
0x12b5   : > { %v4774_v3 = vpop.f32.mrf.mxu0 }
0x12b6   : > { %v4837_v4 = vadd.f32 1.0, %v4829_v50  ;;  %v9752_v47 = vadd.f32 %v9715_v28, %v4774_v3  ;;  %v5115_v18 = vpack.c.bf16 %v5100_v52, %v5099_v39  ;;  %v5045_v31 = vmul.f32 %v5037_v5, %v4821_v48 }
0x12b8   : > { %7060 = vrcp.f32 %v4837_v4  ;;  %v9755_v51 = vmul.f32 0.70710677, %v9752_v47  ;;  %6327 = vmatmul.msk.bf16.vlgmr.msra.gmra.mxu2 %vm1523_vm12, %v5115_v18  ;;  %v4884_v7 = vand.u32 2147483648, %v4837_v4  ;;  %v4882_v41 = vand.u32 2147483647, %v4837_v4 }
0x12b9   : > { %vm4878_vm5 = vweird.f32 %v4837_v4  ;;  %v5055_v52 = vmul.f32 1.442695, %v5045_v31 }
0x12ba   : > { %v9759_v23 = vand.u32 2147483647, %v9755_v51  ;;  %v4885_v11 = vor.u32 1.1754944e-38, %v4884_v7  ;;  %vm4883_vm7 = vcmp.eq.f32.partialorder %v4882_v41, 8.507059e+37 }
0x12bc   : > { %v4830_v56 = vmul.f32 0.3275911, %v9759_v23  ;;  %v5038_v35 = vsub.f32 0.0, %v9759_v23 }
0x12bd   : > { %v4777_v19 = vpop.f32.mrf.mxu0 }
0x12be   : > { %v7061_v40 = vpop.eup %7060  ;;  %v9763_v36 = vadd.f32 %v9715_v28, %v4777_v19  ;;  %v4838_v60 = vadd.f32 1.0, %v4830_v56 }
0x12bf   : > { %v4874_v17 = vmul.f32 %v7061_v40, %v4837_v4  ;;  %vm4879_vm4 = vweird.f32 %v7061_v40 }
0x12c0   : > { %v9766_v30 = vmul.f32 0.70710677, %v9763_v36  ;;  %7062 = vrcp.f32 %v4838_v60  ;;  %vm4880_vm6 = vmor %vm4878_vm5, %vm4879_vm4  ;;  %v4899_v62 = vand.u32 2147483648, %v4838_v60  ;;  %v4897_v53 = vand.u32 2147483647, %v4838_v60 }
0x12c1   : > { %v4875_v8 = vsub.f32 1.0, %v4874_v17  ;;  %vm4893_vm9 = vweird.f32 %v4838_v60  ;;  %vm4805_vm4 = vcmp.ge.f32.partialorder %v9746_v12, 0.0 }
0x12c2   : > { %v9769_v63 = vand.u32 2147483647, %v9766_v30  ;;  %v4900_v46 = vor.u32 1.1754944e-38, %v4899_v62  ;;  %vm4898_vm11 = vcmp.eq.f32.partialorder %v4897_v53, 8.507059e+37 }
0x12c3   : > { %v4876_v29 = vmul.f32 %v7061_v40, %v4875_v8 }
0x12c4   : > { %v4831_v25 = vmul.f32 0.3275911, %v9769_v63 }
0x12c5   : > { %v4877_v0 = vadd.f32 %v7061_v40, %v4876_v29  ;;  %v4779_v42 = vpop.f32.mrf.mxu0 }
0x12c6   : > { %v4839_v13 = vadd.f32 1.0, %v4831_v25  ;;  %v9773_v55 = vadd.f32 %v9715_v28, %v4779_v42  ;;  %v7063_v61 = vpop.eup %7062 }
0x12c7   : > { %v4881_v38 = vsel %vm4880_vm6, %v7061_v40, %v4877_v0  ;;  %v4889_v6 = vmul.f32 %v7063_v61, %v4838_v60  ;;  %vm4894_vm8 = vweird.f32 %v7063_v61  ;;  %v5046_v60 = vmul.f32 %v5038_v35, %v9759_v23 }
0x12c8   : > { %v4886_v22 = vsel %vm4883_vm7, %v4885_v11, %v4881_v38  ;;  %7064 = vrcp.f32 %v4839_v13  ;;  %v9776_v44 = vmul.f32 0.70710677, %v9773_v55  ;;  %vm4895_vm10 = vmor %vm4893_vm9, %vm4894_vm8  ;;  %v4914_v48 = vand.u32 2147483648, %v4839_v13 }
0x12c9   : > { %v4965_v2 = vmul.f32 1.0614054, %v4886_v22  ;;  %v4890_v37 = vsub.f32 1.0, %v4889_v6  ;;  %v4912_v40 = vand.u32 2147483647, %v4839_v13  ;;  %vm4908_vm14 = vweird.f32 %v4839_v13 }
0x12ca   : > { %v9779_v57 = vand.u32 2147483647, %v9776_v44  ;;  %v4915_v41 = vor.u32 1.1754944e-38, %v4914_v48  ;;  %v5039_v23 = vsub.f32 0.0, %v9769_v63  ;;  %vm4806_vm7 = vcmp.ge.f32.partialorder %v9755_v51, 0.0 }
0x12cb   : > { %v4973_v43 = vadd.f32 -1.4531521, %v4965_v2  ;;  %v4891_v58 = vmul.f32 %v7063_v61, %v4890_v37  ;;  %vm4913_vm1 = vcmp.eq.f32.partialorder %v4912_v40, 8.507059e+37  ;;  %vm4807_vm8 = vcmp.ge.f32.partialorder %v9766_v30, 0.0 }
0x12cc   : > { %v4832_v54 = vmul.f32 0.3275911, %v9779_v57  ;;  %vm4808_vm9 = vcmp.ge.f32.partialorder %v9776_v44, 0.0 }
0x12cd   : > { %v4981_v14 = vmul.f32 %v4973_v43, %v4886_v22  ;;  %v4892_v59 = vadd.f32 %v7063_v61, %v4891_v58 }
0x12ce   : > { %v7065_v24 = vpop.eup %7064  ;;  %v4840_v50 = vadd.f32 1.0, %v4832_v54 }
0x12cf   : > { %v4989_v26 = vadd.f32 1.4214138, %v4981_v14  ;;  %v4904_v32 = vmul.f32 %v7065_v24, %v4839_v13  ;;  %v4896_v9 = vsel %vm4895_vm10, %v7063_v61, %v4892_v59  ;;  %vm4909_vm13 = vweird.f32 %v7065_v24 }
0x12d0   : > { %v4901_v3 = vsel %vm4898_vm11, %v4900_v46, %v4896_v9  ;;  %7066 = vrcp.f32 %v4840_v50  ;;  %vm4910_vm15 = vmor %vm4908_vm14, %vm4909_vm13  ;;  %v5057_v61 = vmul.f32 1.442695, %v5046_v60  ;;  %v4929_v14 = vand.u32 2147483648, %v4840_v50 }
0x12d1   : > { %v4997_v39 = vmul.f32 %v4989_v26, %v4886_v22  ;;  %v4905_v4 = vsub.f32 1.0, %v4904_v32  ;;  %v4966_v18 = vmul.f32 1.0614054, %v4901_v3  ;;  %7068 = vpow2.f32 %v5055_v52 }
0x12d2   : > { %7070 = vpow2.f32 %v5057_v61  ;;  %v4927_v59 = vand.u32 2147483647, %v4840_v50  ;;  %v5047_v26 = vmul.f32 %v5039_v23, %v9769_v63  ;;  %vm4923_vm3 = vweird.f32 %v4840_v50 }
0x12d3   : > { %v5005_v56 = vadd.f32 -0.28449672, %v4997_v39  ;;  %v4906_v19 = vmul.f32 %v7065_v24, %v4905_v4  ;;  %v4974_v17 = vadd.f32 -1.4531521, %v4966_v18  ;;  %v4930_v35 = vor.u32 1.1754944e-38, %v4929_v14 }
0x12d4   : > { %vm4928_vm6 = vcmp.eq.f32.partialorder %v4927_v59, 8.507059e+37  ;;  %v5059_v48 = vmul.f32 1.442695, %v5047_v26  ;;  %v4813_v63 = vsel %vm4805_vm4, 1.0, %v7723_v45  ;;  %v4816_v26 = vsel %vm4808_vm9, 1.0, %v7723_v45 }
0x12d5   : > { %v5013_v8 = vmul.f32 %v5005_v56, %v4886_v22  ;;  %v4907_v7 = vadd.f32 %v7065_v24, %v4906_v19  ;;  %v4982_v29 = vmul.f32 %v4974_v17, %v4901_v3  ;;  %v5040_v19 = vsub.f32 0.0, %v9779_v57 }
0x12d6   : > { %v7067_v42 = vpop.eup %7066  ;;  %7072 = vpow2.f32 %v5059_v48 }
0x12d7   : > { %v5021_v25 = vadd.f32 0.2548296, %v5013_v8  ;;  %v4911_v0 = vsel %vm4910_vm15, %v7065_v24, %v4907_v7  ;;  %v4990_v11 = vadd.f32 1.4214138, %v4982_v29  ;;  %v4919_v5 = vmul.f32 %v7067_v42, %v4840_v50  ;;  %v7069_v43 = vpop.eup %7068 }
0x12d8   : > { %v4916_v38 = vsel %vm4913_vm1, %v4915_v41, %v4911_v0  ;;  %vm4924_vm2 = vweird.f32 %v7067_v42  ;;  %v7071_v4 = vpop.eup %7070  ;;  %v5048_v29 = vmul.f32 %v5040_v19, %v9779_v57 }
0x12d9   : > { %v5029_v6 = vmul.f32 %v5021_v25, %v4886_v22  ;;  %v4967_v2 = vmul.f32 1.0614054, %v4916_v38  ;;  %v4998_v37 = vmul.f32 %v4990_v11, %v4901_v3  ;;  %v4920_v58 = vsub.f32 1.0, %v4919_v5  ;;  %vm4925_vm5 = vmor %vm4923_vm3, %vm4924_vm2 }
0x12da   : > { %v5061_v5 = vmul.f32 1.442695, %v5048_v29 }
0x12db   : > { %v4975_v62 = vadd.f32 -1.4531521, %v4967_v2  ;;  %v5069_v13 = vmul.f32 %v7069_v43, %v5029_v6  ;;  %v5006_v53 = vadd.f32 -0.28449672, %v4998_v37  ;;  %v4921_v24 = vmul.f32 %v7067_v42, %v4920_v58 }
0x12dc   : > { %v4789_v6 = vmul.f32 0.5, %v9742_v33  ;;  %v4790_v2 = vmul.f32 0.5, %v9752_v47  ;;  %v7073_v23 = vpop.eup %7072  ;;  %7074 = vpow2.f32 %v5061_v5  ;;  %v4815_v47 = vsel %vm4807_vm8, 1.0, %v7723_v45 }
0x12dd   : > { %v4983_v31 = vmul.f32 %v4975_v62, %v4916_v38  ;;  %v5014_v54 = vmul.f32 %v5006_v53, %v4901_v3  ;;  %v4922_v46 = vadd.f32 %v7067_v42, %v4921_v24  ;;  %v5077_v32 = vsub.f32 1.0, %v5069_v13 }
0x12df   : > { %v4991_v22 = vadd.f32 1.4214138, %v4983_v31  ;;  %v5022_v9 = vadd.f32 0.2548296, %v5014_v54  ;;  %v4926_v52 = vsel %vm4925_vm5, %v7067_v42, %v4922_v46  ;;  %v5085_v50 = vmul.f32 %v5077_v32, %v4813_v63 }
0x12e0   : > { %v4931_v56 = vsel %vm4928_vm6, %v4930_v35, %v4926_v52  ;;  %v4791_v32 = vmul.f32 0.5, %v9763_v36 }
0x12e1   : > { %v4999_v39 = vmul.f32 %v4991_v22, %v4916_v38  ;;  %v5030_v18 = vmul.f32 %v5022_v9, %v4901_v3  ;;  %v4968_v17 = vmul.f32 1.0614054, %v4931_v56  ;;  %v4814_v3 = vsel %vm4806_vm7, 1.0, %v7723_v45 }
0x12e2   : > { %v5093_v0 = vadd.f32 1.0, %v5085_v50  ;;  %v7075_v31 = vpop.eup %7074  ;;  %v4792_v9 = vmul.f32 0.5, %v9773_v55 }
0x12e3   : > { %v5007_v40 = vadd.f32 -0.28449672, %v4999_v39  ;;  %v5070_v12 = vmul.f32 %v7071_v4, %v5030_v18  ;;  %v4976_v8 = vadd.f32 -1.4531521, %v4968_v17 }
0x12e4   : > { %v5101_v43 = vmul.f32 %v5093_v0, %v4789_v6 }
0x12e5   : > { %v5015_v60 = vmul.f32 %v5007_v40, %v4916_v38  ;;  %v5078_v7 = vsub.f32 1.0, %v5070_v12  ;;  %v4984_v25 = vmul.f32 %v4976_v8, %v4931_v56 }
0x12e7   : > { %v5023_v41 = vadd.f32 0.2548296, %v5015_v60  ;;  %v5086_v42 = vmul.f32 %v5078_v7, %v4814_v3  ;;  %v4992_v61 = vadd.f32 1.4214138, %v4984_v25 }
0x12e9   : > { %v5031_v11 = vmul.f32 %v5023_v41, %v4916_v38  ;;  %v5094_v51 = vadd.f32 1.0, %v5086_v42  ;;  %v5000_v37 = vmul.f32 %v4992_v61, %v4931_v56 }
0x12eb   : > { %v5102_v62 = vmul.f32 %v5094_v51, %v4790_v2  ;;  %v5071_v58 = vmul.f32 %v7073_v23, %v5031_v11  ;;  %v5008_v57 = vadd.f32 -0.28449672, %v5000_v37 }
0x12ed   : > { %v5116_v13 = vpack.c.bf16 %v5102_v62, %v5101_v43  ;;  %v5016_v53 = vmul.f32 %v5008_v57, %v4931_v56  ;;  %v5079_v38 = vsub.f32 1.0, %v5071_v58 }
0x12ef   : > { %6328 = vmatmul.msk.bf16.gmra.mxu2 %vm1523_vm12, %v5116_v13  ;;  %v5024_v14 = vadd.f32 0.2548296, %v5016_v53  ;;  %v5087_v24 = vmul.f32 %v5079_v38, %v4815_v47 }
0x12f1   : > { %v5032_v33 = vmul.f32 %v5024_v14, %v4931_v56  ;;  %v5095_v22 = vadd.f32 1.0, %v5087_v24 }
0x12f3   : > { %v5072_v59 = vmul.f32 %v7075_v31, %v5032_v33  ;;  %v5103_v52 = vmul.f32 %v5095_v22, %v4791_v32 }
0x12f5   : > { %v5080_v54 = vsub.f32 1.0, %v5072_v59 }
0x12f7   : > { %v5088_v46 = vmul.f32 %v5080_v54, %v4816_v26 }
0x12f9   : > { %v5096_v30 = vadd.f32 1.0, %v5088_v46 }
0x12fb   : > { %v4782_v35 = vpop.f32.mrf.mxu0  ;;  %v5104_v4 = vmul.f32 %v5096_v30, %v4792_v9 }
0x12fc   : > { %v9802_v39 = vadd.f32 %v9715_v28, %v4782_v35 }
0x12fd   : > { %v5117_v44 = vpack.c.bf16 %v5104_v4, %v5103_v52 }
0x12fe   : > { %v9805_v18 = vmul.f32 0.70710677, %v9802_v39 }
0x12ff   : > { %6329 = vmatmul.msk.bf16.gmra.mxu2 %vm1523_vm12, %v5117_v44 }
0x1300   : > { %v4825_v48 = vand.u32 2147483647, %v9805_v18  ;;  %vm4809_vm4 = vcmp.ge.f32.partialorder %v9805_v18, 0.0 }
0x1302   : > { %v4833_v56 = vmul.f32 0.3275911, %v4825_v48  ;;  %v5041_v6 = vsub.f32 0.0, %v4825_v48 }
0x1303   : > { %v4784_v19 = vpop.f32.mrf.mxu0 }
0x1304   : > { %v4841_v36 = vadd.f32 1.0, %v4833_v56  ;;  %v9810_v55 = vadd.f32 %v9715_v28, %v4784_v19  ;;  %v5049_v62 = vmul.f32 %v5041_v6, %v4825_v48 }
0x1306   : > { %7076 = vrcp.f32 %v4841_v36  ;;  %v9813_v63 = vmul.f32 0.70710677, %v9810_v55  ;;  %v4944_v7 = vand.u32 2147483648, %v4841_v36  ;;  %v4942_v3 = vand.u32 2147483647, %v4841_v36 }
0x1307   : > { %vm4938_vm11 = vweird.f32 %v4841_v36  ;;  %v5063_v14 = vmul.f32 1.442695, %v5049_v62 }
0x1308   : > { %v4826_v40 = vand.u32 2147483647, %v9813_v63  ;;  %v4945_v28 = vor.u32 1.1754944e-38, %v4944_v7  ;;  %vm4943_vm14 = vcmp.eq.f32.partialorder %v4942_v3, 8.507059e+37  ;;  %vm4810_vm5 = vcmp.ge.f32.partialorder %v9813_v63, 0.0 }
0x1309   : > { %v4793_v3 = vmul.f32 0.5, %v9802_v39 }
0x130a   : > { %v4834_v17 = vmul.f32 0.3275911, %v4826_v40  ;;  %v5042_v31 = vsub.f32 0.0, %v4826_v40 }
0x130c   : > { %v7077_v50 = vpop.eup %7076  ;;  %v4842_v60 = vadd.f32 1.0, %v4834_v17  ;;  %v5050_v26 = vmul.f32 %v5042_v31, %v4826_v40 }
0x130d   : > { %v4934_v12 = vmul.f32 %v7077_v50, %v4841_v36  ;;  %vm4939_vm10 = vweird.f32 %v7077_v50 }
0x130e   : > { %7078 = vrcp.f32 %v4842_v60  ;;  %vm4940_vm13 = vmor %vm4938_vm11, %vm4939_vm10  ;;  %v4959_v5 = vand.u32 2147483648, %v4842_v60  ;;  %v4957_v23 = vand.u32 2147483647, %v4842_v60  ;;  %vm4953_vm1 = vweird.f32 %v4842_v60 }
0x130f   : > { %v4935_v8 = vsub.f32 1.0, %v4934_v12  ;;  %7080 = vpow2.f32 %v5063_v14  ;;  %v5065_v30 = vmul.f32 1.442695, %v5050_v26 }
0x1310   : > { %v4960_v13 = vor.u32 1.1754944e-38, %v4959_v5  ;;  %vm4958_vm3 = vcmp.eq.f32.partialorder %v4957_v23, 8.507059e+37 }
0x1311   : > { %v4936_v29 = vmul.f32 %v7077_v50, %v4935_v8  ;;  %7082 = vpow2.f32 %v5065_v30  ;;  %v4818_v8 = vsel %vm4810_vm5, 1.0, %v7723_v45 }
0x1313   : > { %v4937_v41 = vadd.f32 %v7077_v50, %v4936_v29 }
0x1314   : > { %v7079_v25 = vpop.eup %7078 }
0x1315   : > { %v4941_v0 = vsel %vm4940_vm13, %v7077_v50, %v4937_v41  ;;  %v4949_v11 = vmul.f32 %v7079_v25, %v4842_v60  ;;  %vm4954_vm15 = vweird.f32 %v7079_v25  ;;  %v7081_v52 = vpop.eup %7080  ;;  %v4817_v50 = vsel %vm4809_vm4, 1.0, %v7723_v45 }
0x1316   : > { %v4946_v42 = vsel %vm4943_vm14, %v4945_v28, %v4941_v0  ;;  %vm4955_vm2 = vmor %vm4953_vm1, %vm4954_vm15  ;;  %v4794_v41 = vmul.f32 0.5, %v9810_v55  ;;  %v6727_v0 = vld [vmem:[#allocation22] ss:$0 sm:$0xff] }
0x1317   : > { %v4969_v61 = vmul.f32 1.0614054, %v4946_v42  ;;  %v4950_v2 = vsub.f32 1.0, %v4949_v11  ;;  %v7083_v17 = vpop.eup %7082 }
0x1319   : > { %v4977_v51 = vadd.f32 -1.4531521, %v4969_v61  ;;  %v4951_v37 = vmul.f32 %v7079_v25, %v4950_v2 }
0x131b   : > { %v4985_v43 = vmul.f32 %v4977_v51, %v4946_v42  ;;  %v4952_v58 = vadd.f32 %v7079_v25, %v4951_v37 }
0x131d   : > { %v4993_v57 = vadd.f32 1.4214138, %v4985_v43  ;;  %v4956_v53 = vsel %vm4955_vm2, %v7079_v25, %v4952_v58 }
0x131e   : > { %v4961_v33 = vsel %vm4958_vm3, %v4960_v13, %v4956_v53 }
0x131f   : > { %v5001_v38 = vmul.f32 %v4993_v57, %v4946_v42  ;;  %v4970_v47 = vmul.f32 1.0614054, %v4961_v33 }
0x1321   : > { %v5009_v24 = vadd.f32 -0.28449672, %v5001_v38  ;;  %v4978_v59 = vadd.f32 -1.4531521, %v4970_v47 }
0x1323   : > { %v5017_v54 = vmul.f32 %v5009_v24, %v4946_v42  ;;  %v4986_v22 = vmul.f32 %v4978_v59, %v4961_v33 }
0x1325   : > { %v5025_v46 = vadd.f32 0.2548296, %v5017_v54  ;;  %v4994_v32 = vadd.f32 1.4214138, %v4986_v22 }
0x1327   : > { %v5033_v9 = vmul.f32 %v5025_v46, %v4946_v42  ;;  %v5002_v35 = vmul.f32 %v4994_v32, %v4961_v33 }
0x1329   : > { %v5073_v4 = vmul.f32 %v7081_v52, %v5033_v9  ;;  %v5010_v44 = vadd.f32 -0.28449672, %v5002_v35 }
0x132b   : > { %v5018_v48 = vmul.f32 %v5010_v44, %v4961_v33  ;;  %v5081_v56 = vsub.f32 1.0, %v5073_v4 }
0x132d   : > { %v5026_v19 = vadd.f32 0.2548296, %v5018_v48  ;;  %v5089_v40 = vmul.f32 %v5081_v56, %v4817_v50 }
0x132f   : > { %v5034_v36 = vmul.f32 %v5026_v19, %v4961_v33  ;;  %v5097_v7 = vadd.f32 1.0, %v5089_v40 }
0x1331   : > { %v5074_v12 = vmul.f32 %v7083_v17, %v5034_v36  ;;  %v5105_v28 = vmul.f32 %v5097_v7, %v4793_v3 }
0x1333   : > { %v5082_v60 = vsub.f32 1.0, %v5074_v12 }
0x1335   : > { %v5090_v29 = vmul.f32 %v5082_v60, %v4818_v8 }
0x1337   : > { %v5098_v18 = vadd.f32 1.0, %v5090_v29 }
0x1339   : > { %v5106_v25 = vmul.f32 %v5098_v18, %v4794_v41 }
0x133b   : > { %v5118_v42 = vpack.c.bf16 %v5106_v25, %v5105_v28  ;;  %v5164_v11 = vpop.f32.mrf.mxu2 }
0x133c   : > { %v5184_v61 = vadd.f32 %v5164_v11, %v9602_v15 }
0x133d   : > { %6330 = vmatmul.msk.bf16.gmra.mxu2 %vm1523_vm12, %v5118_v42 }
0x133e   : > { %v9824_v63 = vadd.f32 %v6727_v0, %v5184_v61 }
0x1340   : > { %v5204_v6 = vsel %vm1184_vm0, %v9824_v63, 0.0 }
0x1341   : > { %5205 = vadd.xlane.f32.xlu0 %v5204_v6  ;;  %v6404_v6 = vld [vmem:[%s10196_s9 + $0x8] sm:$0xff] }
0x1342   : > { %5422 = vmatpush.bf16.msra.mxu1 %v6404_v6 }
0x1343   : > { %v5166_v2 = vpop.f32.mrf.mxu2 }
0x1344   : > { %v5185_v39 = vadd.f32 %v5166_v2, %v9596_v34 }
0x1346   : > { %v9829_v55 = vadd.f32 %v6727_v0, %v5185_v39  ;;  %v6403_v39 = vld [vmem:[%s10196_s9] sm:$0xff] }
0x1347   : > { %5423 = vmatpush.bf16.msra.mxu1 %v6403_v39 }
0x1348   : > { %v5207_v51 = vsel %vm1184_vm0, %v9829_v55, 0.0 }
0x1349   : > { %5208 = vadd.xlane.f32.xlu1 %v5207_v51 }
0x1372   : > { %v5169_v5 = vpop.f32.mrf.mxu2 }
0x1373   : > { %v5186_v15 = vadd.f32 %v5169_v5, %v9620_v10 }
0x1375   : > { %v9834_v37 = vadd.f32 %v6727_v0, %v5186_v15 }
0x1377   : > { %v5210_v23 = vsel %vm1184_vm0, %v9834_v37, 0.0 }
0x1378   : > { %5211 = vadd.xlane.f32.xlu2 %v5210_v23 }
0x137a   : > { %v5171_v43 = vpop.f32.mrf.mxu2 }
0x137b   : > { %v5187_v62 = vadd.f32 %v5171_v43, %v9614_v16 }
0x137d   : > { %v9839_v58 = vadd.f32 %v6727_v0, %v5187_v62 }
0x137f   : > { %v5213_v34 = vsel %vm1184_vm0, %v9839_v58, 0.0 }
0x1380   : > { %5214 = vadd.xlane.f32.xlu0 %v5213_v34 }
0x1382   : > { %v5174_v57 = vpop.f32.mrf.mxu2 }
0x1383   : > { %v5188_v13 = vadd.f32 %v5174_v57, %v9608_v1 }
0x1385   : > { %v9844_v53 = vadd.f32 %v6727_v0, %v5188_v13 }
0x1387   : > { %v5216_v10 = vsel %vm1184_vm0, %v9844_v53, 0.0 }
0x1388   : > { %5217 = vadd.xlane.f32.xlu1 %v5216_v10 }
0x138a   : > { %v5176_v38 = vpop.f32.mrf.mxu2 }
0x138b   : > { %v5189_v14 = vadd.f32 %v5176_v38, %v9626_v49 }
0x138d   : > { %v9849_v33 = vadd.f32 %v6727_v0, %v5189_v14 }
0x138f   : > { %v5219_v16 = vsel %vm1184_vm0, %v9849_v33, 0.0 }
0x1390   : > { %5220 = vadd.xlane.f32.xlu2 %v5219_v16 }
0x13b4   : > { %v5206_v31 = vpop.xlane.xlu0 %5205 }
0x13b5   : > { %v5228_v47 = vmul.f32 %v5206_v31, %v8186_v21 }
0x13b7   : > { %v9855_v1 = vsub.f32 %v9824_v63, %v5228_v47 }
0x13b9   : > { %v5244_v24 = vmul.f32 %v9855_v1, %v9855_v1 }
0x13bb   : > { %v5252_v59 = vsel %vm1184_vm0, %v5244_v24, 0.0 }
0x13bc   : > { %v5209_v54 = vpop.xlane.xlu1 %5208  ;;  %5253 = vadd.xlane.f32.xlu0 %v5252_v59 }
0x13bd   : > { %v5229_v49 = vmul.f32 %v5209_v54, %v8186_v21 }
0x13bf   : > { %v9862_v26 = vsub.f32 %v9829_v55, %v5229_v49 }
0x13c0   : > { %v5179_v22 = vpop.f32.mrf.mxu2 }
0x13c1   : > { %v5190_v46 = vadd.f32 %v5179_v22, %v9646_v27  ;;  %v5245_v32 = vmul.f32 %v9862_v26, %v9862_v26 }
0x13c3   : > { %v9867_v9 = vadd.f32 %v6727_v0, %v5190_v46  ;;  %v5255_v30 = vsel %vm1184_vm0, %v5245_v32, 0.0 }
0x13c4   : > { %5256 = vadd.xlane.f32.xlu1 %v5255_v30 }
0x13c5   : > { %v5222_v35 = vsel %vm1184_vm0, %v9867_v9, 0.0 }
0x13c6   : > { %5223 = vadd.xlane.f32.xlu2 %v5222_v35 }
0x13c8   : > { %v5181_v52 = vpop.f32.mrf.mxu2 }
0x13c9   : > { %v5191_v4 = vadd.f32 %v5181_v52, %v9650_v20 }
0x13cb   : > { %v9873_v44 = vadd.f32 %v6727_v0, %v5191_v4 }
0x13cd   : > { %v5225_v27 = vsel %vm1184_vm0, %v9873_v44, 0.0 }
0x13ce   : > { %5226 = vadd.xlane.f32.xlu0 %v5225_v27 }
0x13eb   : > { %v5212_v48 = vpop.xlane.xlu2 %5211 }
0x13ec   : > { %v5230_v56 = vmul.f32 %v5212_v48, %v8186_v21 }
0x13ee   : > { %v9879_v19 = vsub.f32 %v9834_v37, %v5230_v56 }
0x13f0   : > { %v5246_v36 = vmul.f32 %v9879_v19, %v9879_v19 }
0x13f2   : > { %v5258_v17 = vsel %vm1184_vm0, %v5246_v36, 0.0 }
0x13f3   : > { %5259 = vadd.xlane.f32.xlu1 %v5258_v17  ;;  %v5215_v50 = vpop.xlane.xlu0 %5214 }
0x13f4   : > { %v5231_v20 = vmul.f32 %v5215_v50, %v8186_v21 }
0x13f6   : > { %v9886_v40 = vsub.f32 %v9839_v58, %v5231_v20 }
0x13f8   : > { %v5247_v12 = vmul.f32 %v9886_v40, %v9886_v40 }
0x13fa   : > { %v5261_v60 = vsel %vm1184_vm0, %v5247_v12, 0.0 }
0x13fb   : > { %5262 = vadd.xlane.f32.xlu2 %v5261_v60  ;;  %v5218_v8 = vpop.xlane.xlu1 %5217 }
0x13fc   : > { %v5232_v7 = vmul.f32 %v5218_v8, %v8186_v21 }
0x13fe   : > { %v9893_v29 = vsub.f32 %v9844_v53, %v5232_v7 }
0x1400   : > { %v5248_v3 = vmul.f32 %v9893_v29, %v9893_v29 }
0x1402   : > { %v5264_v41 = vsel %vm1184_vm0, %v5248_v3, 0.0 }
0x1403   : > { %v5221_v18 = vpop.xlane.xlu2 %5220  ;;  %5265 = vadd.xlane.f32.xlu0 %v5264_v41 }
0x1404   : > { %v5233_v28 = vmul.f32 %v5221_v18, %v8186_v21 }
0x1406   : > { %v9900_v25 = vsub.f32 %v9849_v33, %v5233_v28 }
0x1408   : > { %v5249_v0 = vmul.f32 %v9900_v25, %v9900_v25 }
0x140a   : > { %v5267_v42 = vsel %vm1184_vm0, %v5249_v0, 0.0 }
0x140b   : > { %5268 = vadd.xlane.f32.xlu1 %v5267_v42 }
0x142f   : > { %v5254_v11 = vpop.xlane.xlu0 %5253 }
0x1430   : > { %v5276_v61 = vmul.f32 %v5254_v11, %v8186_v21 }
0x1432   : > { %v5284_v2 = vadd.f32 1e-05, %v5276_v61 }
0x1434   : > { %7084 = vrsqrt.f32 %v5284_v2  ;;  %vm5298_vm6 = vweird.f32 %v5284_v2 }
0x1437   : > { %v5257_v51 = vpop.xlane.xlu1 %5256 }
0x1438   : > { %v5277_v5 = vmul.f32 %v5257_v51, %v8186_v21 }
0x1439   : > { %v5224_v15 = vpop.xlane.xlu2 %5223 }
0x143a   : > { %v7085_v23 = vpop.eup %7084  ;;  %v5285_v43 = vadd.f32 1e-05, %v5277_v5  ;;  %v5234_v62 = vmul.f32 %v5224_v15, %v8186_v21 }
0x143b   : > { %v5293_v34 = vmul.f32 %v7085_v23, %v5284_v2  ;;  %vm5299_vm12 = vweird.f32 %v7085_v23 }
0x143c   : > { %7086 = vrsqrt.f32 %v5285_v43  ;;  %v9911_v57 = vsub.f32 %v9867_v9, %v5234_v62  ;;  %vm5300_vm8 = vmor %vm5298_vm6, %vm5299_vm12  ;;  %vm5308_vm9 = vweird.f32 %v5285_v43 }
0x143d   : > { %v5294_v13 = vmul.f32 %v7085_v23, %v5293_v34 }
0x143e   : > { %v5250_v10 = vmul.f32 %v9911_v57, %v9911_v57 }
0x143f   : > { %v5295_v38 = vmul.f32 0.5, %v5294_v13 }
0x1440   : > { %v5270_v14 = vsel %vm1184_vm0, %v5250_v10, 0.0 }
0x1441   : > { %5271 = vadd.xlane.f32.xlu2 %v5270_v14  ;;  %v5227_v16 = vpop.xlane.xlu0 %5226  ;;  %v5296_v24 = vsub.f32 1.5, %v5295_v38 }
0x1442   : > { %v7087_v31 = vpop.eup %7086  ;;  %v5235_v47 = vmul.f32 %v5227_v16, %v8186_v21 }
0x1443   : > { %v5303_v59 = vmul.f32 %v7087_v31, %v5285_v43  ;;  %v5297_v46 = vmul.f32 %v7085_v23, %v5296_v24  ;;  %vm5309_vm7 = vweird.f32 %v7087_v31 }
0x1444   : > { %v9918_v54 = vsub.f32 %v9873_v44, %v5235_v47  ;;  %vm5310_vm10 = vmor %vm5308_vm9, %vm5309_vm7 }
0x1445   : > { %v5304_v49 = vmul.f32 %v7087_v31, %v5303_v59  ;;  %v5301_v52 = vsel %vm5300_vm8, %v7085_v23, %v5297_v46 }
0x1446   : > { %v5251_v22 = vmul.f32 %v9918_v54, %v9918_v54  ;;  %v5372_v48 = vmul.f32 %v5301_v52, %v9855_v1 }
0x1447   : > { %v5305_v32 = vmul.f32 0.5, %v5304_v49 }
0x1448   : > { %v5273_v30 = vsel %vm1184_vm0, %v5251_v22, 0.0 }
0x1449   : > { %v5306_v35 = vsub.f32 1.5, %v5305_v32  ;;  %5274 = vadd.xlane.f32.xlu0 %v5273_v30 }
0x144b   : > { %v5307_v4 = vmul.f32 %v7087_v31, %v5306_v35 }
0x144d   : > { %v5311_v27 = vsel %vm5310_vm10, %v7087_v31, %v5307_v4 }
0x144e   : > { %v5373_v56 = vmul.f32 %v5311_v27, %v9862_v26 }
0x1450   : > { %v5384_v36 = vpack.c.bf16 %v5373_v56, %v5372_v48 }
0x1452   : > { %6339 = vmatmul.msk.bf16.vlgmr.msra.gmra.mxu1 %vm1184_vm0, %v5384_v36 }
0x1466   : > { %v5260_v17 = vpop.xlane.xlu1 %5259 }
0x1467   : > { %v5278_v50 = vmul.f32 %v5260_v17, %v8186_v21 }
0x1469   : > { %v5286_v20 = vadd.f32 1e-05, %v5278_v50 }
0x146b   : > { %7088 = vrsqrt.f32 %v5286_v20  ;;  %vm5318_vm13 = vweird.f32 %v5286_v20 }
0x146e   : > { %v5263_v12 = vpop.xlane.xlu2 %5262 }
0x146f   : > { %v5279_v60 = vmul.f32 %v5263_v12, %v8186_v21 }
0x1471   : > { %v7089_v8 = vpop.eup %7088  ;;  %v5287_v7 = vadd.f32 1e-05, %v5279_v60 }
0x1472   : > { %v5313_v3 = vmul.f32 %v7089_v8, %v5286_v20  ;;  %vm5319_vm11 = vweird.f32 %v7089_v8 }
0x1473   : > { %7090 = vrsqrt.f32 %v5287_v7  ;;  %vm5320_vm15 = vmor %vm5318_vm13, %vm5319_vm11  ;;  %vm5328_vm1 = vweird.f32 %v5287_v7 }
0x1474   : > { %v5314_v41 = vmul.f32 %v7089_v8, %v5313_v3 }
0x1476   : > { %v5315_v18 = vmul.f32 0.5, %v5314_v41  ;;  %v5266_v1 = vpop.xlane.xlu0 %5265 }
0x1477   : > { %v5280_v26 = vmul.f32 %v5266_v1, %v8186_v21  ;;  %v9938_v1 = vld [vmem:[#allocation24] ss:$0 sm:$0xff] }
0x1478   : > { %v5316_v0 = vsub.f32 1.5, %v5315_v18 }
0x1479   : > { %v7091_v28 = vpop.eup %7090  ;;  %v5288_v11 = vadd.f32 1e-05, %v5280_v26 }
0x147a   : > { %v5323_v42 = vmul.f32 %v7091_v28, %v5287_v7  ;;  %v5317_v6 = vmul.f32 %v7089_v8, %v5316_v0  ;;  %vm5329_vm14 = vweird.f32 %v7091_v28 }
0x147b   : > { %7092 = vrsqrt.f32 %v5288_v11  ;;  %vm5330_vm2 = vmor %vm5328_vm1, %vm5329_vm14  ;;  %vm5338_vm4 = vweird.f32 %v5288_v11 }
0x147c   : > { %v5324_v61 = vmul.f32 %v7091_v28, %v5323_v42  ;;  %v5321_v23 = vsel %vm5320_vm15, %v7089_v8, %v5317_v6 }
0x147d   : > { %v5374_v38 = vmul.f32 %v5321_v23, %v9879_v19 }
0x147e   : > { %v5325_v2 = vmul.f32 0.5, %v5324_v61  ;;  %v5269_v39 = vpop.xlane.xlu1 %5268 }
0x147f   : > { %v5281_v5 = vmul.f32 %v5269_v39, %v8186_v21 }
0x1480   : > { %v5326_v51 = vsub.f32 1.5, %v5325_v2 }
0x1481   : > { %v7093_v15 = vpop.eup %7092  ;;  %v5289_v62 = vadd.f32 1e-05, %v5281_v5 }
0x1482   : > { %v5327_v43 = vmul.f32 %v7091_v28, %v5326_v51  ;;  %v5333_v34 = vmul.f32 %v7093_v15, %v5288_v11  ;;  %vm5339_vm3 = vweird.f32 %v7093_v15 }
0x1483   : > { %7094 = vrsqrt.f32 %v5289_v62  ;;  %vm5340_vm12 = vmor %vm5338_vm4, %vm5339_vm3  ;;  %vm5348_vm6 = vweird.f32 %v5289_v62 }
0x1484   : > { %v5331_v13 = vsel %vm5330_vm2, %v7091_v28, %v5327_v43  ;;  %v5334_v10 = vmul.f32 %v7093_v15, %v5333_v34 }
0x1485   : > { %v5375_v14 = vmul.f32 %v5331_v13, %v9886_v40 }
0x1486   : > { %v5335_v16 = vmul.f32 0.5, %v5334_v10 }
0x1487   : > { %v5385_v31 = vpack.c.bf16 %v5375_v14, %v5374_v38  ;;  %v6410_v38 = vld [vmem:[%s10197_s7 + $0x28] sm:$0xff] }
0x1488   : > { %v5336_v24 = vsub.f32 1.5, %v5335_v16 }
0x1489   : > { %6340 = vmatmul.msk.bf16.gmra.mxu1 %vm1184_vm0, %v5385_v31  ;;  %v7095_v47 = vpop.eup %7094 }
0x148a   : > { %v5343_v59 = vmul.f32 %v7095_v47, %v5289_v62  ;;  %v5337_v22 = vmul.f32 %v7093_v15, %v5336_v24  ;;  %vm5349_vm5 = vweird.f32 %v7095_v47  ;;  %v6412_v62 = vld [vmem:[%s10197_s7 + $0x38] sm:$0xff]  ;;  %v6409_v24 = vld [vmem:[%s10197_s7 + $0x20] sm:$0xff] }
0x148b   : > { %vm5350_vm7 = vmor %vm5348_vm6, %vm5349_vm5  ;;  %5833 = vmatpush.bf16.msra.mxu3 %v6412_v62 }
0x148c   : > { %v5344_v49 = vmul.f32 %v7095_v47, %v5343_v59  ;;  %v5341_v30 = vsel %vm5340_vm12, %v7093_v15, %v5337_v22 }
0x148d   : > { %v5376_v40 = vmul.f32 %v5341_v30, %v9893_v29 }
0x148e   : > { %v5345_v46 = vmul.f32 0.5, %v5344_v49 }
0x1490   : > { %v5346_v32 = vsub.f32 1.5, %v5345_v46 }
0x1492   : > { %v5347_v35 = vmul.f32 %v7095_v47, %v5346_v32  ;;  %v6408_v32 = vld [vmem:[%s10197_s7 + $0x18] sm:$0xff] }
0x1494   : > { %v5351_v19 = vsel %vm5350_vm7, %v7095_v47, %v5347_v35 }
0x1495   : > { %v5377_v52 = vmul.f32 %v5351_v19, %v9900_v25 }
0x1497   : > { %v5386_v4 = vpack.c.bf16 %v5377_v52, %v5376_v40 }
0x1499   : > { %6341 = vmatmul.msk.bf16.gmra.mxu1 %vm1184_vm0, %v5386_v4 }
0x14b4   : > { %v5272_v27 = vpop.xlane.xlu2 %5271 }
0x14b5   : > { %v5282_v48 = vmul.f32 %v5272_v27, %v8186_v21 }
0x14b7   : > { %v5290_v56 = vadd.f32 1e-05, %v5282_v48  ;;  %v6407_v48 = vld [vmem:[%s10197_s7 + $0x10] sm:$0xff] }
0x14b9   : > { %7096 = vrsqrt.f32 %v5290_v56  ;;  %vm5358_vm9 = vweird.f32 %v5290_v56 }
0x14bc   : > { %v5275_v36 = vpop.xlane.xlu0 %5274 }
0x14bd   : > { %v5283_v17 = vmul.f32 %v5275_v36, %v8186_v21 }
0x14bf   : > { %v7097_v50 = vpop.eup %7096  ;;  %v5291_v20 = vadd.f32 1e-05, %v5283_v17 }
0x14c0   : > { %v5353_v12 = vmul.f32 %v7097_v50, %v5290_v56  ;;  %vm5359_vm8 = vweird.f32 %v7097_v50 }
0x14c1   : > { %7098 = vrsqrt.f32 %v5291_v20  ;;  %vm5360_vm11 = vmor %vm5358_vm9, %vm5359_vm8  ;;  %vm5368_vm13 = vweird.f32 %v5291_v20 }
0x14c2   : > { %v5354_v60 = vmul.f32 %v7097_v50, %v5353_v12 }
0x14c4   : > { %v5355_v8 = vmul.f32 0.5, %v5354_v60 }
0x14c6   : > { %v5356_v7 = vsub.f32 1.5, %v5355_v8  ;;  %v6406_v8 = vld [vmem:[%s10197_s7 + $0x8] sm:$0xff] }
0x14c7   : > { %v7099_v29 = vpop.eup %7098 }
0x14c8   : > { %v5363_v25 = vmul.f32 %v7099_v29, %v5291_v20  ;;  %v5357_v41 = vmul.f32 %v7097_v50, %v5356_v7  ;;  %vm5369_vm10 = vweird.f32 %v7099_v29 }
0x14c9   : > { %vm5370_vm14 = vmor %vm5368_vm13, %vm5369_vm10 }
0x14ca   : > { %v5364_v3 = vmul.f32 %v7099_v29, %v5363_v25  ;;  %v5361_v28 = vsel %vm5360_vm11, %v7097_v50, %v5357_v41 }
0x14cb   : > { %v5378_v6 = vmul.f32 %v5361_v28, %v9911_v57  ;;  %v6405_v28 = vld [vmem:[%s10197_s7] sm:$0xff] }
0x14cc   : > { %v5365_v18 = vmul.f32 0.5, %v5364_v3 }
0x14ce   : > { %v5366_v26 = vsub.f32 1.5, %v5365_v18 }
0x14cf   : > { %v5425_v21 = vpop.f32.mrf.mxu1 }
0x14d0   : > { %v5367_v0 = vmul.f32 %v7099_v29, %v5366_v26  ;;  %v9941_v42 = vadd.f32 %v9938_v1, %v5425_v21 }
0x14d2   : > { %v5371_v11 = vsel %vm5370_vm14, %v7099_v29, %v5367_v0  ;;  %v9944_v61 = vmul.f32 0.70710677, %v9941_v42 }
0x14d3   : > { %v5379_v2 = vmul.f32 %v5371_v11, %v9918_v54  ;;  %v6411_v54 = vld [vmem:[%s10197_s7 + $0x30] sm:$0xff]  ;;  %s7574_s7 = sshra.s32 %s5906_s5, 4  ;;  %s7575_s7 = int_to_ptr.hbm [resolvable:$true] %s7574_s7 }
0x14d4   : > { %v5477_v39 = vand.u32 2147483647, %v9944_v61  ;;  %5834 = vmatpush.bf16.msra.mxu3 %v6411_v54  ;;  %vm5461_vm7 = vcmp.ge.f32.partialorder %v9944_v61, 0.0  ;;  %s7576_s26 = scalar_lea.hbm %s7575_s7, 64  ;;  %p7581_p5 = scmp.lt.s32.totalorder %s7575_s7, %s10198_s14 }
0x14d5   : > { %v5387_v51 = vpack.c.bf16 %v5379_v2, %v5378_v6  ;;  %p7577_p3 = scmp.ne.s32.totalorder %s7575_s7, %s7576_s26  ;;  %p7582_p7 = scmp.lt.s32.totalorder %s7580_s15, %s7576_s26 }
0x14d6   : > { %v5485_v5 = vmul.f32 0.3275911, %v5477_v39  ;;  %v5693_v4 = vsub.f32 0.0, %v5477_v39 }
0x14d7   : > { %6342 = vmatmul.msk.bf16.gmra.mxu1 %vm1184_vm0, %v5387_v51  ;;  %v5427_v15 = vpop.f32.mrf.mxu1  ;;  %p7578_p4 = pnand %p7577_p3, %p8105_p0  ;;  %p7583_p6 = por %p7582_p7, %p7581_p5 }
0x14d8   : > { %v5493_v23 = vadd.f32 1.0, %v5485_v5  ;;  %v9951_v43 = vadd.f32 %v9938_v1, %v5427_v15  ;;  %5835 = vmatpush.bf16.msra.mxu3 %v6410_v38  ;;  %v5701_v12 = vmul.f32 %v5693_v4, %v5477_v39 }
0x14d9   : > { %p7579_p13 = pneg %p7578_p4 }
0x14da   : > { %7100 = vrcp.f32 %v5493_v23  ;;  %v9955_v57 = vmul.f32 0.70710677, %v9951_v43  ;;  %v5512_v47 = vand.u32 2147483648, %v5493_v23  ;;  %v5510_v49 = vand.u32 2147483647, %v5493_v23 }
0x14db   : > { %vm5506_vm1 = vweird.f32 %v5493_v23  ;;  %v5709_v41 = vmul.f32 1.442695, %v5701_v12  ;;  %p7584_p8 = pnand %p7583_p6, %p7579_p13 }
0x14dc   : > { %v5478_v34 = vand.u32 2147483647, %v9955_v57  ;;  %5836 = vmatpush.bf16.msra.mxu3 %v6409_v24  ;;  %v5513_v46 = vor.u32 1.1754944e-38, %v5512_v47  ;;  %vm5511_vm3 = vcmp.eq.f32.partialorder %v5510_v49, 8.507059e+37  ;;  %v5469_v24 = vsel %vm5461_vm7, 1.0, %v7723_v45 }
0x14dd   : > { %vm5462_vm8 = vcmp.ge.f32.partialorder %v9955_v57, 0.0 }
0x14de   : > { %v5486_v13 = vmul.f32 0.3275911, %v5478_v34  ;;  %v5694_v26 = vsub.f32 0.0, %v5478_v34 }
0x14e0   : > { %v7101_v10 = vpop.eup %7100  ;;  %v5494_v16 = vadd.f32 1.0, %v5486_v13  ;;  %5837 = vmatpush.bf16.msra.mxu3 %v6408_v32  ;;  %v5702_v2 = vmul.f32 %v5694_v26, %v5478_v34  ;;  %v5470_v32 = vsel %vm5462_vm8, 1.0, %v7723_v45 }
0x14e1   : > { %v5502_v14 = vmul.f32 %v7101_v10, %v5493_v23  ;;  %vm5507_vm15 = vweird.f32 %v7101_v10 }
0x14e2   : > { %7102 = vrcp.f32 %v5494_v16  ;;  %vm5508_vm2 = vmor %vm5506_vm1, %vm5507_vm15  ;;  %v5527_v36 = vand.u32 2147483648, %v5494_v16  ;;  %v5525_v50 = vand.u32 2147483647, %v5494_v16  ;;  %vm5521_vm5 = vweird.f32 %v5494_v16 }
0x14e3   : > { %v5503_v31 = vsub.f32 1.0, %v5502_v14  ;;  %7104 = vpow2.f32 %v5709_v41  ;;  %v5711_v23 = vmul.f32 1.442695, %v5702_v2 }
0x14e4   : > { %5838 = vmatpush.bf16.msra.mxu3 %v6407_v48  ;;  %v5528_v7 = vor.u32 1.1754944e-38, %v5527_v36  ;;  %vm5526_vm6 = vcmp.eq.f32.partialorder %v5525_v50, 8.507059e+37 }
0x14e5   : > { %v5504_v59 = vmul.f32 %v7101_v10, %v5503_v31  ;;  %7106 = vpow2.f32 %v5711_v23 }
0x14e7   : > { %v5505_v22 = vadd.f32 %v7101_v10, %v5504_v59 }
0x14e8   : > { %v7103_v30 = vpop.eup %7102  ;;  %5839 = vmatpush.bf16.msra.mxu3 %v6406_v8 }
0x14e9   : > { %v5509_v35 = vsel %vm5508_vm2, %v7101_v10, %v5505_v22  ;;  %v5517_v40 = vmul.f32 %v7103_v30, %v5494_v16  ;;  %vm5522_vm4 = vweird.f32 %v7103_v30  ;;  %v7105_v54 = vpop.eup %7104 }
0x14ea   : > { %v5514_v19 = vsel %vm5511_vm3, %v5513_v46, %v5509_v35  ;;  %vm5523_vm12 = vmor %vm5521_vm5, %vm5522_vm4 }
0x14eb   : > { %v5621_v52 = vmul.f32 1.0614054, %v5514_v19  ;;  %v5518_v27 = vsub.f32 1.0, %v5517_v40  ;;  %v7107_v47 = vpop.eup %7106  ;;  %v5445_v40 = vmul.f32 0.5, %v9941_v42 }
0x14ec   : > { %5840 = vmatpush.bf16.msra.mxu3 %v6405_v28 }
0x14ed   : > { %v5629_v56 = vadd.f32 -1.4531521, %v5621_v52  ;;  %v5519_v17 = vmul.f32 %v7103_v30, %v5518_v27  ;;  %v5446_v52 = vmul.f32 0.5, %v9951_v43 }
0x14ef   : > { %v5637_v20 = vmul.f32 %v5629_v56, %v5514_v19  ;;  %v5520_v60 = vadd.f32 %v7103_v30, %v5519_v17 }
0x14f1   : > { %v5645_v29 = vadd.f32 1.4214138, %v5637_v20  ;;  %v5524_v25 = vsel %vm5523_vm12, %v7103_v30, %v5520_v60 }
0x14f2   : > { %v5529_v18 = vsel %vm5526_vm6, %v5528_v7, %v5524_v25 }
0x14f3   : > { %v5653_v3 = vmul.f32 %v5645_v29, %v5514_v19  ;;  %v5622_v21 = vmul.f32 1.0614054, %v5529_v18 }
0x14f5   : > { %v5661_v0 = vadd.f32 -0.28449672, %v5653_v3  ;;  %v5630_v11 = vadd.f32 -1.4531521, %v5622_v21 }
0x14f7   : > { %v5669_v6 = vmul.f32 %v5661_v0, %v5514_v19  ;;  %v5638_v39 = vmul.f32 %v5630_v11, %v5529_v18 }
0x14f9   : > { %v5677_v51 = vadd.f32 0.2548296, %v5669_v6  ;;  %v5646_v5 = vadd.f32 1.4214138, %v5638_v39 }
0x14fb   : > { %v5685_v15 = vmul.f32 %v5677_v51, %v5514_v19  ;;  %v5654_v62 = vmul.f32 %v5646_v5, %v5529_v18 }
0x14fd   : > { %v5725_v13 = vmul.f32 %v7105_v54, %v5685_v15  ;;  %v5662_v10 = vadd.f32 -0.28449672, %v5654_v62 }
0x14ff   : > { %v5670_v38 = vmul.f32 %v5662_v10, %v5529_v18  ;;  %v5733_v14 = vsub.f32 1.0, %v5725_v13 }
0x1501   : > { %v5678_v16 = vadd.f32 0.2548296, %v5670_v38  ;;  %v5741_v34 = vmul.f32 %v5733_v14, %v5469_v24 }
0x1503   : > { %v5686_v31 = vmul.f32 %v5678_v16, %v5529_v18  ;;  %v5749_v61 = vadd.f32 1.0, %v5741_v34 }
0x1505   : > { %v5726_v59 = vmul.f32 %v7107_v47, %v5686_v31  ;;  %v5757_v27 = vmul.f32 %v5749_v61, %v5445_v40 }
0x1506   : > { %v5430_v49 = vpop.f32.mrf.mxu1 }
0x1507   : > { %v9969_v22 = vadd.f32 %v9938_v1, %v5430_v49  ;;  %v5734_v46 = vsub.f32 1.0, %v5726_v59 }
0x1509   : > { %v9973_v30 = vmul.f32 0.70710677, %v9969_v22  ;;  %v5742_v35 = vmul.f32 %v5734_v46, %v5470_v32 }
0x150b   : > { %v5479_v19 = vand.u32 2147483647, %v9973_v30  ;;  %v5750_v57 = vadd.f32 1.0, %v5742_v35  ;;  %vm5463_vm8 = vcmp.ge.f32.partialorder %v9973_v30, 0.0 }
0x150d   : > { %v5487_v4 = vmul.f32 0.3275911, %v5479_v19  ;;  %v5758_v48 = vmul.f32 %v5750_v57, %v5446_v52  ;;  %v5695_v51 = vsub.f32 0.0, %v5479_v19 }
0x150e   : > { %v5432_v56 = vpop.f32.mrf.mxu1 }
0x150f   : > { %v5495_v36 = vadd.f32 1.0, %v5487_v4  ;;  %v9979_v17 = vadd.f32 %v9938_v1, %v5432_v56  ;;  %v5781_v50 = vpack.c.bf16 %v5758_v48, %v5757_v27  ;;  %v5703_v14 = vmul.f32 %v5695_v51, %v5479_v19 }
0x1511   : > { %7108 = vrcp.f32 %v5495_v36  ;;  %v9982_v20 = vmul.f32 0.70710677, %v9979_v17  ;;  %5841 = vmatmul.bf16.vlgmr.msra.gmra.mxu3 %v5781_v50  ;;  %v5542_v3 = vand.u32 2147483648, %v5495_v36  ;;  %v5540_v26 = vand.u32 2147483647, %v5495_v36 }
0x1512   : > { %vm5536_vm10 = vweird.f32 %v5495_v36  ;;  %v5713_v32 = vmul.f32 1.442695, %v5703_v14 }
0x1513   : > { %v5480_v12 = vand.u32 2147483647, %v9982_v20  ;;  %v5543_v0 = vor.u32 1.1754944e-38, %v5542_v3  ;;  %vm5541_vm13 = vcmp.eq.f32.partialorder %v5540_v26, 8.507059e+37 }
0x1515   : > { %v5488_v42 = vmul.f32 0.3275911, %v5480_v12  ;;  %v5696_v19 = vsub.f32 0.0, %v5480_v12 }
0x1516   : > { %v5435_v43 = vpop.f32.mrf.mxu1 }
0x1517   : > { %v7109_v60 = vpop.eup %7108  ;;  %v5496_v29 = vadd.f32 1.0, %v5488_v42  ;;  %v9986_v7 = vadd.f32 %v9938_v1, %v5435_v43  ;;  %v5704_v42 = vmul.f32 %v5696_v19, %v5480_v12 }
0x1518   : > { %v5532_v8 = vmul.f32 %v7109_v60, %v5495_v36  ;;  %vm5537_vm9 = vweird.f32 %v7109_v60 }
0x1519   : > { %7110 = vrcp.f32 %v5496_v29  ;;  %v9989_v41 = vmul.f32 0.70710677, %v9986_v7  ;;  %vm5538_vm11 = vmor %vm5536_vm10, %vm5537_vm9  ;;  %v5557_v16 = vand.u32 2147483648, %v5496_v29  ;;  %v5555_v47 = vand.u32 2147483647, %v5496_v29 }
0x151a   : > { %v5533_v25 = vsub.f32 1.0, %v5532_v8  ;;  %vm5551_vm15 = vweird.f32 %v5496_v29 }
0x151b   : > { %v9992_v21 = vand.u32 2147483647, %v9989_v41  ;;  %v5558_v61 = vor.u32 1.1754944e-38, %v5557_v16  ;;  %vm5556_vm2 = vcmp.eq.f32.partialorder %v5555_v47, 8.507059e+37 }
0x151c   : > { %v5534_v18 = vmul.f32 %v7109_v60, %v5533_v25 }
0x151d   : > { %v5489_v11 = vmul.f32 0.3275911, %v9992_v21 }
0x151e   : > { %v5535_v28 = vadd.f32 %v7109_v60, %v5534_v18  ;;  %v5437_v6 = vpop.f32.mrf.mxu1 }
0x151f   : > { %v7111_v2 = vpop.eup %7110  ;;  %v9996_v5 = vadd.f32 %v9938_v1, %v5437_v6  ;;  %v5497_v62 = vadd.f32 1.0, %v5489_v11 }
0x1520   : > { %v5539_v39 = vsel %vm5538_vm11, %v7109_v60, %v5535_v28  ;;  %v5547_v23 = vmul.f32 %v7111_v2, %v5496_v29  ;;  %vm5552_vm14 = vweird.f32 %v7111_v2  ;;  %vm5464_vm11 = vcmp.ge.f32.partialorder %v9982_v20, 0.0 }
0x1521   : > { %v5544_v15 = vsel %vm5541_vm13, %v5543_v0, %v5539_v39  ;;  %v9999_v13 = vmul.f32 0.70710677, %v9996_v5  ;;  %7112 = vrcp.f32 %v5497_v62  ;;  %vm5553_vm1 = vmor %vm5551_vm15, %vm5552_vm14  ;;  %v5572_v60 = vand.u32 2147483648, %v5497_v62 }
0x1522   : > { %v5623_v54 = vmul.f32 1.0614054, %v5544_v15  ;;  %v5548_v10 = vsub.f32 1.0, %v5547_v23  ;;  %v5570_v29 = vand.u32 2147483647, %v5497_v62  ;;  %vm5566_vm4 = vweird.f32 %v5497_v62 }
0x1523   : > { %v10002_v24 = vand.u32 2147483647, %v9999_v13  ;;  %v5715_v0 = vmul.f32 1.442695, %v5704_v42  ;;  %v5573_v11 = vor.u32 1.1754944e-38, %v5572_v60  ;;  %vm5465_vm13 = vcmp.ge.f32.partialorder %v9989_v41, 0.0 }
0x1524   : > { %v5631_v38 = vadd.f32 -1.4531521, %v5623_v54  ;;  %v5549_v31 = vmul.f32 %v7111_v2, %v5548_v10  ;;  %vm5571_vm12 = vcmp.eq.f32.partialorder %v5570_v29, 8.507059e+37  ;;  %v5697_v54 = vsub.f32 0.0, %v9992_v21 }
0x1525   : > { %v5490_v49 = vmul.f32 0.3275911, %v10002_v24  ;;  %vm5466_vm14 = vcmp.ge.f32.partialorder %v9999_v13, 0.0 }
0x1526   : > { %v5639_v34 = vmul.f32 %v5631_v38, %v5544_v15  ;;  %v5550_v59 = vadd.f32 %v7111_v2, %v5549_v31 }
0x1527   : > { %v7113_v35 = vpop.eup %7112  ;;  %v5498_v52 = vadd.f32 1.0, %v5490_v49 }
0x1528   : > { %v5647_v46 = vadd.f32 1.4214138, %v5639_v34  ;;  %v5554_v40 = vsel %vm5553_vm1, %v7111_v2, %v5550_v59  ;;  %v5562_v27 = vmul.f32 %v7113_v35, %v5497_v62  ;;  %vm5567_vm3 = vweird.f32 %v7113_v35 }
0x1529   : > { %v5559_v4 = vsel %vm5556_vm2, %v5558_v61, %v5554_v40  ;;  %7114 = vrcp.f32 %v5498_v52  ;;  %vm5568_vm5 = vmor %vm5566_vm4, %vm5567_vm3  ;;  %v5587_v62 = vand.u32 2147483648, %v5498_v52  ;;  %v5585_v34 = vand.u32 2147483647, %v5498_v52 }
0x152a   : > { %v5655_v57 = vmul.f32 %v5647_v46, %v5544_v15  ;;  %v5624_v48 = vmul.f32 1.0614054, %v5559_v4  ;;  %v5563_v36 = vsub.f32 1.0, %v5562_v27  ;;  %7116 = vpow2.f32 %v5713_v32 }
0x152b   : > { %7118 = vpow2.f32 %v5715_v0  ;;  %vm5581_vm7 = vweird.f32 %v5498_v52  ;;  %vm5586_vm10 = vcmp.eq.f32.partialorder %v5585_v34, 8.507059e+37 }
0x152c   : > { %v5663_v56 = vadd.f32 -0.28449672, %v5655_v57  ;;  %v5632_v50 = vadd.f32 -1.4531521, %v5624_v48  ;;  %v5564_v8 = vmul.f32 %v7113_v35, %v5563_v36  ;;  %v5698_v36 = vsub.f32 0.0, %v10002_v24 }
0x152e   : > { %v5671_v43 = vmul.f32 %v5663_v56, %v5544_v15  ;;  %v5640_v25 = vmul.f32 %v5632_v50, %v5559_v4  ;;  %v5565_v18 = vadd.f32 %v7113_v35, %v5564_v8  ;;  %v5706_v29 = vmul.f32 %v5698_v36, %v10002_v24 }
0x152f   : > { %v7115_v26 = vpop.eup %7114 }
0x1530   : > { %v5679_v3 = vadd.f32 0.2548296, %v5671_v43  ;;  %v5648_v28 = vadd.f32 1.4214138, %v5640_v25  ;;  %v5569_v2 = vsel %vm5568_vm5, %v7113_v35, %v5565_v18  ;;  %v5577_v39 = vmul.f32 %v7115_v26, %v5498_v52  ;;  %v7117_v51 = vpop.eup %7116 }
0x1531   : > { %v5574_v23 = vsel %vm5571_vm12, %v5573_v11, %v5569_v2  ;;  %vm5582_vm6 = vweird.f32 %v7115_v26  ;;  %v5588_v35 = vor.u32 1.1754944e-38, %v5587_v62  ;;  %v7119_v57 = vpop.eup %7118  ;;  %v5447_v11 = vmul.f32 0.5, %v9969_v22 }
0x1532   : > { %v5687_v6 = vmul.f32 %v5679_v3, %v5544_v15  ;;  %v5656_v12 = vmul.f32 %v5648_v28, %v5559_v4  ;;  %v5625_v10 = vmul.f32 1.0614054, %v5574_v23  ;;  %v5578_v38 = vsub.f32 1.0, %v5577_v39  ;;  %vm5583_vm9 = vmor %vm5581_vm7, %vm5582_vm6 }
0x1533   : > { %v5705_v15 = vmul.f32 %v5697_v54, %v9992_v21  ;;  %v5471_v21 = vsel %vm5463_vm8, 1.0, %v7723_v45  ;;  %v5719_v2 = vmul.f32 1.442695, %v5706_v29 }
0x1534   : > { %v5727_v14 = vmul.f32 %v7117_v51, %v5687_v6  ;;  %v5664_v16 = vadd.f32 -0.28449672, %v5656_v12  ;;  %v5633_v31 = vadd.f32 -1.4531521, %v5625_v10  ;;  %v5579_v47 = vmul.f32 %v7115_v26, %v5578_v38 }
0x1535   : > { %v5717_v48 = vmul.f32 1.442695, %v5705_v15  ;;  %v5448_v6 = vmul.f32 0.5, %v9979_v17  ;;  %v5473_v17 = vsel %vm5465_vm13, 1.0, %v7723_v45  ;;  %v5474_v15 = vsel %vm5466_vm14, 1.0, %v7723_v45 }
0x1536   : > { %v5672_v59 = vmul.f32 %v5664_v16, %v5559_v4  ;;  %v5641_v49 = vmul.f32 %v5633_v31, %v5574_v23  ;;  %v5580_v46 = vadd.f32 %v7115_v26, %v5579_v47  ;;  %v5735_v32 = vsub.f32 1.0, %v5727_v14 }
0x1537   : > { %7120 = vpow2.f32 %v5717_v48 }
0x1538   : > { %v5680_v61 = vadd.f32 0.2548296, %v5672_v59  ;;  %v5649_v40 = vadd.f32 1.4214138, %v5641_v49  ;;  %v5584_v19 = vsel %vm5583_vm9, %v7115_v26, %v5580_v46  ;;  %v5743_v52 = vmul.f32 %v5735_v32, %v5471_v21 }
0x1539   : > { %v5589_v56 = vsel %vm5586_vm10, %v5588_v35, %v5584_v19  ;;  %7122 = vpow2.f32 %v5719_v2  ;;  %v5449_v32 = vmul.f32 0.5, %v9986_v7 }
0x153a   : > { %v5688_v27 = vmul.f32 %v5680_v61, %v5559_v4  ;;  %v5657_v50 = vmul.f32 %v5649_v40, %v5574_v23  ;;  %v5626_v42 = vmul.f32 1.0614054, %v5589_v56  ;;  %v5472_v4 = vsel %vm5464_vm11, 1.0, %v7723_v45 }
0x153b   : > { %v5751_v18 = vadd.f32 1.0, %v5743_v52  ;;  %v5450_v61 = vmul.f32 0.5, %v9996_v5 }
0x153c   : > { %v5728_v30 = vmul.f32 %v7119_v57, %v5688_v27  ;;  %v5665_v60 = vadd.f32 -0.28449672, %v5657_v50  ;;  %v5634_v43 = vadd.f32 -1.4531521, %v5626_v42 }
0x153d   : > { %v7121_v12 = vpop.eup %7120  ;;  %v5759_v54 = vmul.f32 %v5751_v18, %v5447_v11 }
0x153e   : > { %v5736_v8 = vsub.f32 1.0, %v5728_v30  ;;  %v5673_v25 = vmul.f32 %v5665_v60, %v5574_v23  ;;  %v5642_v3 = vmul.f32 %v5634_v43, %v5589_v56 }
0x153f   : > { %v7123_v47 = vpop.eup %7122 }
0x1540   : > { %v5744_v26 = vmul.f32 %v5736_v8, %v5472_v4  ;;  %v5681_v28 = vadd.f32 0.2548296, %v5673_v25  ;;  %v5650_v0 = vadd.f32 1.4214138, %v5642_v3 }
0x1542   : > { %v5752_v20 = vadd.f32 1.0, %v5744_v26  ;;  %v5689_v39 = vmul.f32 %v5681_v28, %v5574_v23  ;;  %v5658_v51 = vmul.f32 %v5650_v0, %v5589_v56 }
0x1544   : > { %v5760_v10 = vmul.f32 %v5752_v20, %v5448_v6  ;;  %v5729_v24 = vmul.f32 %v7121_v12, %v5689_v39  ;;  %v5666_v38 = vadd.f32 -0.28449672, %v5658_v51 }
0x1546   : > { %v5782_v14 = vpack.c.bf16 %v5760_v10, %v5759_v54  ;;  %v5674_v16 = vmul.f32 %v5666_v38, %v5589_v56  ;;  %v5737_v62 = vsub.f32 1.0, %v5729_v24 }
0x1548   : > { %5846 = vmatmul.bf16.gmra.mxu3 %v5782_v14  ;;  %v5682_v31 = vadd.f32 0.2548296, %v5674_v16  ;;  %v5745_v34 = vmul.f32 %v5737_v62, %v5473_v17 }
0x154a   : > { %v5690_v22 = vmul.f32 %v5682_v31, %v5589_v56  ;;  %v5753_v49 = vadd.f32 1.0, %v5745_v34 }
0x154c   : > { %v5730_v23 = vmul.f32 %v7123_v47, %v5690_v22  ;;  %v5761_v19 = vmul.f32 %v5753_v49, %v5449_v32 }
0x154e   : > { %v5738_v59 = vsub.f32 1.0, %v5730_v23 }
0x1550   : > { %v5746_v46 = vmul.f32 %v5738_v59, %v5474_v15 }
0x1552   : > { %v5754_v41 = vadd.f32 1.0, %v5746_v46 }
0x1554   : > { %v5440_v35 = vpop.f32.mrf.mxu1  ;;  %v5762_v57 = vmul.f32 %v5754_v41, %v5450_v61 }
0x1555   : > { %v10022_v40 = vadd.f32 %v9938_v1, %v5440_v35 }
0x1556   : > { %v5783_v13 = vpack.c.bf16 %v5762_v57, %v5761_v19 }
0x1557   : > { %v10025_v27 = vmul.f32 0.70710677, %v10022_v40 }
0x1558   : > { %5851 = vmatmul.bf16.gmra.mxu3 %v5783_v13 }
0x1559   : > { %v5483_v48 = vand.u32 2147483647, %v10025_v27  ;;  %vm5467_vm7 = vcmp.ge.f32.partialorder %v10025_v27, 0.0 }
0x155b   : > { %v5491_v56 = vmul.f32 0.3275911, %v5483_v48  ;;  %v5699_v11 = vsub.f32 0.0, %v5483_v48 }
0x155c   : > { %v5442_v36 = vpop.f32.mrf.mxu1 }
0x155d   : > { %v5499_v21 = vadd.f32 1.0, %v5491_v56  ;;  %v10029_v7 = vadd.f32 %v9938_v1, %v5442_v36  ;;  %v5707_v54 = vmul.f32 %v5699_v11, %v5483_v48 }
0x155f   : > { %7124 = vrcp.f32 %v5499_v21  ;;  %v10032_v5 = vmul.f32 0.70710677, %v10029_v7  ;;  %v5602_v8 = vand.u32 2147483648, %v5499_v21  ;;  %v5600_v4 = vand.u32 2147483647, %v5499_v21 }
0x1560   : > { %vm5596_vm1 = vweird.f32 %v5499_v21  ;;  %v5721_v62 = vmul.f32 1.442695, %v5707_v54  ;;  %v5452_v27 = vmul.f32 0.5, %v10029_v7 }
0x1561   : > { %v5484_v50 = vand.u32 2147483647, %v10032_v5  ;;  %v5603_v1 = vor.u32 1.1754944e-38, %v5602_v8  ;;  %vm5601_vm3 = vcmp.eq.f32.partialorder %v5600_v4, 8.507059e+37  ;;  %vm5468_vm8 = vcmp.ge.f32.partialorder %v10032_v5, 0.0 }
0x1563   : > { %v5492_v42 = vmul.f32 0.3275911, %v5484_v50  ;;  %v5700_v22 = vsub.f32 0.0, %v5484_v50 }
0x1565   : > { %v7125_v52 = vpop.eup %7124  ;;  %v5500_v60 = vadd.f32 1.0, %v5492_v42  ;;  %v5708_v59 = vmul.f32 %v5700_v22, %v5484_v50  ;;  %v5475_v42 = vsel %vm5467_vm7, 1.0, %v7723_v45 }
0x1566   : > { %v5592_v30 = vmul.f32 %v7125_v52, %v5499_v21  ;;  %vm5597_vm15 = vweird.f32 %v7125_v52 }
0x1567   : > { %7126 = vrcp.f32 %v5500_v60  ;;  %vm5598_vm2 = vmor %vm5596_vm1, %vm5597_vm15  ;;  %v5617_v2 = vand.u32 2147483648, %v5500_v60  ;;  %v5615_v51 = vand.u32 2147483647, %v5500_v60  ;;  %vm5611_vm5 = vweird.f32 %v5500_v60 }
0x1568   : > { %v5593_v43 = vsub.f32 1.0, %v5592_v30  ;;  %7128 = vpow2.f32 %v5721_v62  ;;  %v5723_v61 = vmul.f32 1.442695, %v5708_v59 }
0x1569   : > { %v5618_v38 = vor.u32 1.1754944e-38, %v5617_v2  ;;  %vm5616_vm6 = vcmp.eq.f32.partialorder %v5615_v51, 8.507059e+37 }
0x156a   : > { %v5594_v29 = vmul.f32 %v7125_v52, %v5593_v43  ;;  %7130 = vpow2.f32 %v5723_v61 }
0x156c   : > { %v5595_v25 = vadd.f32 %v7125_v52, %v5594_v29  ;;  %v5451_v29 = vmul.f32 0.5, %v10022_v40 }
0x156d   : > { %v7127_v3 = vpop.eup %7126 }
0x156e   : > { %v5599_v18 = vsel %vm5598_vm2, %v7125_v52, %v5595_v25  ;;  %v5607_v28 = vmul.f32 %v7127_v3, %v5500_v60  ;;  %vm5612_vm4 = vweird.f32 %v7127_v3  ;;  %v7129_v35 = vpop.eup %7128  ;;  %v5476_v60 = vsel %vm5468_vm8, 1.0, %v7723_v45 }
0x156f   : > { %v5604_v26 = vsel %vm5601_vm3, %v5603_v1, %v5599_v18  ;;  %vm5613_vm12 = vmor %vm5611_vm5, %vm5612_vm4 }
0x1570   : > { %v5627_v0 = vmul.f32 1.0614054, %v5604_v26  ;;  %v5608_v6 = vsub.f32 1.0, %v5607_v28  ;;  %v7131_v21 = vpop.eup %7130 }
0x1572   : > { %v5635_v20 = vadd.f32 -1.4531521, %v5627_v0  ;;  %v5609_v39 = vmul.f32 %v7127_v3, %v5608_v6 }
0x1574   : > { %v5643_v12 = vmul.f32 %v5635_v20, %v5604_v26  ;;  %v5610_v10 = vadd.f32 %v7127_v3, %v5609_v39 }
0x1576   : > { %v5651_v24 = vadd.f32 1.4214138, %v5643_v12  ;;  %v5614_v14 = vsel %vm5613_vm12, %v7127_v3, %v5610_v10  ;;  %v6729_v3 = vld [vmem:[#allocation25] ss:$0 sm:$0xff] }
0x1577   : > { %v5619_v31 = vsel %vm5616_vm6, %v5618_v38, %v5614_v14 }
0x1578   : > { %v5659_v16 = vmul.f32 %v5651_v24, %v5604_v26  ;;  %v5628_v47 = vmul.f32 1.0614054, %v5619_v31 }
0x157a   : > { %v5667_v17 = vadd.f32 -0.28449672, %v5659_v16  ;;  %v5636_v34 = vadd.f32 -1.4531521, %v5628_v47 }
0x157c   : > { %v5675_v23 = vmul.f32 %v5667_v17, %v5604_v26  ;;  %v5644_v15 = vmul.f32 %v5636_v34, %v5619_v31 }
0x157e   : > { %v5683_v49 = vadd.f32 0.2548296, %v5675_v23  ;;  %v5652_v46 = vadd.f32 1.4214138, %v5644_v15 }
0x1580   : > { %v5691_v32 = vmul.f32 %v5683_v49, %v5604_v26  ;;  %v5660_v41 = vmul.f32 %v5652_v46, %v5619_v31 }
0x1582   : > { %v5731_v19 = vmul.f32 %v7129_v35, %v5691_v32  ;;  %v5668_v57 = vadd.f32 -0.28449672, %v5660_v41 }
0x1584   : > { %v5676_v13 = vmul.f32 %v5668_v57, %v5619_v31  ;;  %v5739_v48 = vsub.f32 1.0, %v5731_v19 }
0x1586   : > { %v5684_v56 = vadd.f32 0.2548296, %v5676_v13  ;;  %v5747_v50 = vmul.f32 %v5739_v48, %v5475_v42 }
0x1588   : > { %v5692_v36 = vmul.f32 %v5684_v56, %v5619_v31  ;;  %v5755_v43 = vadd.f32 1.0, %v5747_v50 }
0x158a   : > { %v5732_v52 = vmul.f32 %v7131_v21, %v5692_v36  ;;  %v5763_v25 = vmul.f32 %v5755_v43, %v5451_v29 }
0x158c   : > { %v5740_v30 = vsub.f32 1.0, %v5732_v52 }
0x158e   : > { %v5748_v8 = vmul.f32 %v5740_v30, %v5476_v60 }
0x1590   : > { %v5756_v4 = vadd.f32 1.0, %v5748_v8 }
0x1592   : > { %v5764_v1 = vmul.f32 %v5756_v4, %v5452_v27 }
0x1594   : > { %v5842_v18 = vpop.f32.mrf.mxu3  ;;  %v5784_v26 = vpack.c.bf16 %v5764_v1, %v5763_v25 }
0x1595   : > { %v5862_v28 = vadd.f32 %v5842_v18, %v9824_v63 }
0x1596   : > { %5856 = vmatmul.bf16.gmra.mxu3 %v5784_v26 }
0x1597   : > { %v5874_v5 = vadd.f32 %v6729_v3, %v5862_v28 }
0x1599   : > { %5882 = vst.msk [vmem:[%s10044_s16] sm:$0xff] %vm1184_vm0, %v5874_v5 }
0x159c   : > { %v5844_v45 = vpop.f32.mrf.mxu3 }
0x159d   : > { %v5863_v40 = vadd.f32 %v5844_v45, %v9829_v55 }
0x159f   : > { %v5875_v7 = vadd.f32 %v6729_v3, %v5863_v40 }
0x15a1   : > { %5883 = vst.msk [vmem:[%s10044_s16 + $0x8] sm:$0xff] %vm1184_vm0, %v5875_v7 }
0x15cb   : > { %v5847_v63 = vpop.f32.mrf.mxu3 }
0x15cc   : > { %v5864_v0 = vadd.f32 %v5847_v63, %v9834_v37 }
0x15ce   : > { %v5876_v11 = vadd.f32 %v6729_v3, %v5864_v0 }
0x15d0   : > { %5884 = vst.msk [vmem:[%s10044_s16 + $0x10] sm:$0xff] %vm1184_vm0, %v5876_v11 }
0x15d3   : > { %v5849_v6 = vpop.f32.mrf.mxu3 }
0x15d4   : > { %v5865_v20 = vadd.f32 %v5849_v6, %v9839_v58 }
0x15d6   : > { %v5877_v2 = vadd.f32 %v6729_v3, %v5865_v20 }
0x15d8   : > { %5885 = vst.msk [vmem:[%s10044_s16 + $0x18] sm:$0xff] %vm1184_vm0, %v5877_v2 }
0x15db   : > { %v5852_v55 = vpop.f32.mrf.mxu3 }
0x15dc   : > { %v5866_v39 = vadd.f32 %v5852_v55, %v9844_v53 }
0x15de   : > { %v5878_v51 = vadd.f32 %v6729_v3, %v5866_v39 }
0x15e0   : > { %5886 = vst.msk [vmem:[%s10044_s16 + $0x20] sm:$0xff] %vm1184_vm0, %v5878_v51 }
0x15e3   : > { %v5854_v37 = vpop.f32.mrf.mxu3 }
0x15e4   : > { %v5867_v12 = vadd.f32 %v5854_v37, %v9849_v33 }
0x15e6   : > { %v5879_v54 = vadd.f32 %v6729_v3, %v5867_v12 }
0x15e8   : > { %5887 = vst.msk [vmem:[%s10044_s16 + $0x28] sm:$0xff] %vm1184_vm0, %v5879_v54 }
0x1619   : > { %v5857_v58 = vpop.f32.mrf.mxu3 }
0x161a   : > { %v5868_v10 = vadd.f32 %v5857_v58, %v9867_v9 }
0x161c   : > { %v5880_v24 = vadd.f32 %v6729_v3, %v5868_v10 }
0x161e   : > { %5888 = vst.msk [vmem:[%s10044_s16 + $0x30] sm:$0xff] %vm1184_vm0, %v5880_v24 }
0x1621   : > { %v5859_v53 = vpop.f32.mrf.mxu3 }
0x1622   : > { %v5869_v33 = vadd.f32 %v5859_v53, %v9873_v44 }
0x1624   : > { %v5881_v38 = vadd.f32 %v6729_v3, %v5869_v33 }
0x1626   : > { %5889 = vst.msk [vmem:[%s10044_s16 + $0x38] sm:$0xff] %vm1184_vm0, %v5881_v38 }
0x1627   : > { %7587 = shalt.err (!%p7584_p8)
}
0x1628   : > { %s7724_s1 = smov 128   ;;  %s10199_s9 = smov 8  }
0x1629   : > { %6472 = dma.vmem_to_hbm [thread:$0]  (%p8105_p0), %s5904_s4, 1024, %s5906_s5, %s5891_s6, %s7724_s1, %s7724_s1, %s10199_s9  }
0x162a PF: > { %s5920_s28 = sand.u32 1, %s7642_s25   ;;  %p10200_p9 = scmp.ne.s32.totalorder %s10167_s18, 0 }
0x162b   : > { %p10201_p11 = scmp.ge.s32.totalorder %s7654_s8, 2  ;;  %s5921_s16 = scalar_lea.sflag [#allocation6], %s5920_s28 }
0x162d   : > { %p6519_p10 = pnand %p10201_p11, %p10200_p9 }
0x162f   : > { %p6520_p12 = pneg %p6519_p10 }
0x1631   : > { %7637 = dma.done.wait (%p6520_p12), %s5921_s16, 1024  }
0x1632   : > { %7639 = vsyncadd (%p6520_p12), %s5921_s16, 4294966272  ;;  %p85_p2 = scmp.ge.s32.totalorder %s8081_s2, 4   ;;  %s10202_s25 = smov %s7646_s3 }
0x1633   : > { %s10203_s3 = smov %s7650_s22  ;;  %s10204_s22 = smov %s8093_s0 }
0x1634   : > { %s10205_s8 = smov %s8081_s2  ;;  %87 = sbr.rel (!%p85_p2) target bundleno = 72 (0x48), region = 272 }
0x1639   :  { %5927 = vsyncpa [#allocation5], 1 }
0x163a   :  { %5929 = vsyncpa [#allocation5 + $0x1], 1 }
0x163b   :  { %5930 = vsyncpa [#allocation8], 1 }
0x163c   :  { %5931 = vsyncpa [#allocation11], 1 }
0x163d   :  { %5932 = vsyncpa [#allocation14], 1 }
0x163e   :  { %5933 = vsyncpa [#allocation17], 1 }
0x163f   :  { %5934 = vsyncpa [#allocation20], 1 }
0x1640   :  { %5935 = vsyncpa [#allocation23], 1 }
0x1641   :  { %5936 = vsyncpa [#allocation26], 1 }
0x1642   :  { %5937 = vsyncpa [#allocation6], 1 }
0x1643   :  { %5939 = vsyncpa [#allocation6 + $0x1], 1 }

</bundles_post_ra>
